<compile_context>
chip_gen: v7x
topology: tpu7x:2x2x1
jax: 0.10.0
libtpu: 0.0.40
codegen_flags: <defaults>
</compile_context>

<pallas_src>
import functools

import jax
import jax.numpy as jnp
from jax.experimental import pallas as pl
from jax.experimental.pallas import tpu as pltpu


NUM_LANDMARKS = 68
LANE = 128  # head channels zero-padded to this lane width for dense stores


# --------------------------------------------------------------------------
# Fused forward kernel (one batch element per grid step)
# --------------------------------------------------------------------------

def _landmark_kernel(
    # inputs
    x_ref,                      # (1, H, W, 3) NHWC input tile (bf16)
    w1_ref, b1_ref,             # backbone conv1: 3   -> 32   (im2col packed)
    w2_ref, b2_ref,             # backbone conv2: 32  -> 64
    w3_ref, b3_ref,             # backbone conv3: 64  -> 128
    w4_ref, b4_ref,             # stage1 3x3:     128 -> 64
    w5_ref, b5_ref,             # stage1 1x1:     64  -> LANE (68 zero-padded)
    w6f_ref, w6h_ref, b6_ref,   # stage2 3x3, input split: feats(128)+h1(pad)
    w7_ref, b7_ref,             # stage2 1x1:     64  -> LANE (68 zero-padded)
    # outputs
    h1_ref, h2_ref,             # (1, H4*W4, LANE) each, lane-dense stores
    # scratch (bf16 VMEM halo buffers)
    p1, p2, p3, p4, p5,
    *, H, W,
):
    f32 = jnp.float32
    bf16 = jnp.bfloat16
    H2, W2, H4, W4 = H // 2, W // 2, H // 4, W // 4

    def set_padded(p_ref, val):
        """Write `val` into the interior of a halo'd buffer; only the four
        1-wide border strips are zeroed (interior fully rewritten each step),
        so there is no double write of the bulk of the buffer."""
        h, w, c = val.shape
        zrow = jnp.zeros((1, w + 2, c), p_ref.dtype)
        zcol = jnp.zeros((h + 2, 1, c), p_ref.dtype)
        p_ref[0:1, :, :] = zrow
        p_ref[h + 1:h + 2, :, :] = zrow
        p_ref[:, 0:1, :] = zcol
        p_ref[:, w + 1:w + 2, :] = zcol
        p_ref[1:h + 1, 1:w + 1, :] = val.astype(p_ref.dtype)

    def conv3x3(p_ref, h, w, w_ref):
        """'same' 3x3 conv as ONE im2col MXU matmul with K = 9*Cin."""
        c = p_ref.shape[-1]
        taps = [p_ref[dy:dy + h, dx:dx + w, :]
                for dy in range(3) for dx in range(3)]
        lhs = jnp.concatenate(taps, axis=-1).reshape(h * w, 9 * c)  # bf16
        return jnp.dot(lhs, w_ref[...], preferred_element_type=f32)

    def bias_relu(acc, b_ref):
        return jnp.maximum(acc + b_ref[...], 0.0)

    def maxpool2x2(y_flat, h, w):
        """2x2/2 max pool on a (h*w, C) value; plain reshapes + VPU max
        (no strided / int ref indexing)."""
        c = y_flat.shape[-1]
        h2, w2 = h // 2, w // 2
        y = y_flat.reshape(h * w2, 2, c)
        y = jnp.maximum(y[:, 0, :], y[:, 1, :])        # horizontal: (h*w2, c)
        y = y.reshape(h2, 2 * w2, c)
        y = jnp.maximum(y[:, :w2, :], y[:, w2:, :])    # vertical: (h2, w2, c)
        return y

    # ------------------------------ backbone -------------------------------
    x = x_ref[...].reshape(H, W, 3)                               # bf16 NHWC
    set_padded(p1, x)
    a1 = bias_relu(conv3x3(p1, H, W, w1_ref), b1_ref)             # (H*W, 32)
    set_padded(p2, maxpool2x2(a1, H, W))

    a2 = bias_relu(conv3x3(p2, H2, W2, w2_ref), b2_ref)           # (H2*W2, 64)
    set_padded(p3, maxpool2x2(a2, H2, W2))

    feats = bias_relu(conv3x3(p3, H4, W4, w3_ref), b3_ref)        # (H4*W4,128)
    set_padded(p4, feats.reshape(H4, W4, feats.shape[-1]))

    # ----------------- stage 1 head: 3x3 + fused 1x1 epilogue --------------
    s1 = bias_relu(conv3x3(p4, H4, W4, w4_ref), b4_ref)           # (H4*W4, 64)
    h1 = jnp.dot(s1.astype(bf16), w5_ref[...],
                 preferred_element_type=f32) + b5_ref[...]        # (H4*W4,128)
    h1_ref[...] = h1.reshape(1, H4 * W4, h1.shape[-1]).astype(h1_ref.dtype)

    # --------- stage 2 refine: channel concat folded into split weights ----
    set_padded(p5, h1.reshape(H4, W4, h1.shape[-1]))
    s2 = conv3x3(p4, H4, W4, w6f_ref) + conv3x3(p5, H4, W4, w6h_ref)
    s2 = bias_relu(s2, b6_ref)                                    # (H4*W4, 64)
    h2 = jnp.dot(s2.astype(bf16), w7_ref[...],
                 preferred_element_type=f32) + b7_ref[...]
    h2_ref[...] = h2.reshape(1, H4 * W4, h2.shape[-1]).astype(h2_ref.dtype)


# --------------------------------------------------------------------------
# Wrapper
# --------------------------------------------------------------------------

_WEIGHT_ORDER = ("w1", "b1", "w2", "b2", "w3", "b3", "w4", "b4",
                 "w5", "b5", "w6f", "w6h", "b6", "w7", "b7")


def landmark_cnn_forward(x_nchw, packed, *, num_landmarks=NUM_LANDMARKS):
    N, Cin, H, W = x_nchw.shape
    assert Cin == 3 and H % 4 == 0 and W % 4 == 0
    H2, W2, H4, W4 = H // 2, W // 2, H // 4, W // 4
    lpad = packed["w5"].shape[-1]

    # NCHW -> NHWC (channels on lanes), bf16 MXU operands.
    x = jnp.transpose(x_nchw, (0, 2, 3, 1)).astype(jnp.bfloat16)
    wargs = [packed[k] for k in _WEIGHT_ORDER]

    def wspec(a):
        nd = a.ndim
        return pl.BlockSpec(a.shape, lambda n, _nd=nd: (0,) * _nd)

    kernel = functools.partial(_landmark_kernel, H=H, W=W)

    h1p, h2p = pl.pallas_call(
        kernel,
        out_shape=(jax.ShapeDtypeStruct((N, H4 * W4, lpad), jnp.float32),
                   jax.ShapeDtypeStruct((N, H4 * W4, lpad), jnp.float32)),
        grid=(N,),
        in_specs=[pl.BlockSpec((1, H, W, Cin), lambda n: (n, 0, 0, 0))]
                + [wspec(a) for a in wargs],
        out_specs=(pl.BlockSpec((1, H4 * W4, lpad), lambda n: (n, 0, 0)),
                   pl.BlockSpec((1, H4 * W4, lpad), lambda n: (n, 0, 0))),
        scratch_shapes=[
            pltpu.VMEM((H + 2, W + 2, 3), jnp.bfloat16),        # padded input
            pltpu.VMEM((H2 + 2, W2 + 2, 32), jnp.bfloat16),     # padded pool1
            pltpu.VMEM((H4 + 2, W4 + 2, 64), jnp.bfloat16),     # padded pool2
            pltpu.VMEM((H4 + 2, W4 + 2, 128), jnp.bfloat16),    # padded feats
            pltpu.VMEM((H4 + 2, W4 + 2, lpad), jnp.bfloat16),   # padded h1
        ],
        compiler_params=pltpu.CompilerParams(
            dimension_semantics=("parallel",),
            vmem_limit_bytes=32 * 1024 * 1024),
    )(x, *wargs)

    def unpack(hp):
        h = hp.reshape(N, H4, W4, lpad)[..., :num_landmarks]
        return jnp.transpose(h, (0, 3, 1, 2))                   # back to NCHW

    return unpack(h1p), unpack(h2p)


# --------------------------------------------------------------------------
# Parameters: PyTorch-layout init + one-time packing into kernel layout
# --------------------------------------------------------------------------

def init_params(key, num_landmarks=NUM_LANDMARKS):
    """PyTorch-layout parameters (OIHW conv weights + biases), f32."""
    def conv_p(k, cout, cin, ksz):
        kw, kb = jax.random.split(k)
        fan_in = cin * ksz * ksz
        w = jax.random.normal(kw, (cout, cin, ksz, ksz), jnp.float32) \
            * (1.0 / jnp.sqrt(fan_in))
        b = jax.random.normal(kb, (cout,), jnp.float32) * 0.01
        return (w, b)

    ks = jax.random.split(key, 7)
    return {
        "bb1": conv_p(ks[0], 32, 3, 3),
        "bb2": conv_p(ks[1], 64, 32, 3),
        "bb3": conv_p(ks[2], 128, 64, 3),
        "s1a": conv_p(ks[3], 64, 128, 3),
        "s1b": conv_p(ks[4], num_landmarks, 64, 1),
        "s2a": conv_p(ks[5], 64, 128 + num_landmarks, 3),
        "s2b": conv_p(ks[6], num_landmarks, 64, 1),
    }


def pack_params(params, num_landmarks=NUM_LANDMARKS):
    """One-time re-layout of PyTorch OIHW params into kernel layout:
    3x3 convs -> im2col (9*Cin, Cout) bf16; 1x1 heads -> (Cin, 128) bf16 with
    zero-padded output lanes; biases stay f32; stage-2 weights split for the
    folded channel concat."""
    lpad = ((num_landmarks + LANE - 1) // LANE) * LANE
    bf16 = jnp.bfloat16

    def im2col_w(w_oihw):          # (O, I, 3, 3) -> (9*I, O), rows = (dy,dx,ci)
        o, i, kh, kw = w_oihw.shape
        return jnp.transpose(w_oihw, (2, 3, 1, 0)).reshape(kh * kw * i, o) \
                  .astype(bf16)

    def bias(b):
        return b.reshape(1, -1).astype(jnp.float32)

    def head_1x1(w, b):            # (O, I, 1, 1) -> (I, lpad) bf16, (1, lpad) f32
        w_io = jnp.transpose(w[:, :, 0, 0], (1, 0))
        w_io = jnp.pad(w_io, ((0, 0), (0, lpad - w_io.shape[-1])))
        bp = jnp.pad(b.reshape(1, -1), ((0, 0), (0, lpad - b.shape[0])))
        return w_io.astype(bf16), bp.astype(jnp.float32)

    w1, b1 = params["bb1"]; w2, b2 = params["bb2"]; w3, b3 = params["bb3"]
    w4, b4 = params["s1a"]; w5, b5 = params["s1b"]
    w6, b6 = params["s2a"]; w7, b7 = params["s2b"]

    w5p, b5p = head_1x1(w5, b5)
    w7p, b7p = head_1x1(w7, b7)

    # stage-2 3x3: split torch.cat([feats, h1]) input channels (no in-kernel
    # concat); pad the h1 part's input channels 68 -> lpad per tap to match
    # the lane-padded h1 buffer (padded lanes are zero on both sides).
    w6f = im2col_w(w6[:, :128])                                  # (9*128, 64)
    w6h_hwio = jnp.transpose(w6[:, 128:], (2, 3, 1, 0))          # (3,3,68,64)
    w6h_hwio = jnp.pad(
        w6h_hwio, ((0, 0), (0, 0), (0, lpad - w6h_hwio.shape[2]), (0, 0)))
    w6h = w6h_hwio.reshape(9 * lpad, 64).astype(bf16)            # (9*128, 64)

    return {
        "w1": im2col_w(w1), "b1": bias(b1),
        "w2": im2col_w(w2), "b2": bias(b2),
        "w3": im2col_w(w3), "b3": bias(b3),
        "w4": im2col_w(w4), "b4": bias(b4),
        "w5": w5p, "b5": b5p,
        "w6f": w6f, "w6h": w6h, "b6": bias(b6),
        "w7": w7p, "b7": b7p,
    }


# --------------------------------------------------------------------------
# Pure-JAX reference (lax.conv, f32) for correctness checking
# --------------------------------------------------------------------------

def reference_forward(x_nchw, params):
    def conv(x, w, b, relu):
        y = jax.lax.conv_general_dilated(
            x, w, window_strides=(1, 1), padding="SAME",
            dimension_numbers=("NCHW", "OIHW", "NCHW"))
        y = y + b[None, :, None, None]
        return jnp.maximum(y, 0.0) if relu else y

    def pool(x):
        return jax.lax.reduce_window(
            x, -jnp.inf, jax.lax.max,
            window_dimensions=(1, 1, 2, 2), window_strides=(1, 1, 2, 2),
            padding="VALID")

    f = conv(x_nchw, *params["bb1"], True)
    f = pool(f)
    f = conv(f, *params["bb2"], True)
    f = pool(f)
    feats = conv(f, *params["bb3"], True)
    h1 = conv(feats, *params["s1a"], True)
    h1 = conv(h1, *params["s1b"], False)
    cat = jnp.concatenate([feats, h1], axis=1)
    h2 = conv(cat, *params["s2a"], True)
    h2 = conv(h2, *params["s2b"], False)
    return h1, h2


# --------------------------------------------------------------------------
# Main
# --------------------------------------------------------------------------

if __name__ == "__main__":
    key = jax.random.PRNGKey(0)
    k_param, k_x = jax.random.split(key)

    params = init_params(k_param, num_landmarks=NUM_LANDMARKS)
    packed = pack_params(params, num_landmarks=NUM_LANDMARKS)    # one-time pack

    # Small NCHW input consistent with the module (3 input channels).
    x = jax.random.normal(k_x, (2, 3, 16, 16), jnp.float32)

    fwd = jax.jit(landmark_cnn_forward)
    h1, h2 = fwd(x, packed)
    jax.block_until_ready((h1, h2))

    assert h1.shape == (2, NUM_LANDMARKS, 4, 4), h1.shape
    assert h2.shape == (2, NUM_LANDMARKS, 4, 4), h2.shape

    # Cross-check against the pure-JAX f32 reference.  The kernel uses bf16
    # MXU operands (f32 accumulation), so across 5 stacked convs the expected
    # deviation from the f32 reference is ~1e-2 relative -> bf16 tolerance.
    r1, r2 = reference_forward(x, params)
    assert jnp.allclose(h1, r1, atol=5e-2, rtol=5e-2), \
        float(jnp.max(jnp.abs(h1 - r1)))
    assert jnp.allclose(h2, r2, atol=5e-2, rtol=5e-2), \
        float(jnp.max(jnp.abs(h2 - r2)))

    print("KERNEL_OK")
</pallas_src>

<mosaic_0001>
module attributes {stable_mosaic.version = 11 : i64} {
  func.func @_landmark_kernel(%arg0: i32, %arg1: memref<1x16x16x3xbf16, #tpu.memory_space<vmem>>, %arg2: memref<27x32xbf16, #tpu.memory_space<vmem>>, %arg3: memref<1x32xf32, #tpu.memory_space<vmem>>, %arg4: memref<288x64xbf16, #tpu.memory_space<vmem>>, %arg5: memref<1x64xf32, #tpu.memory_space<vmem>>, %arg6: memref<576x128xbf16, #tpu.memory_space<vmem>>, %arg7: memref<1x128xf32, #tpu.memory_space<vmem>>, %arg8: memref<1152x64xbf16, #tpu.memory_space<vmem>>, %arg9: memref<1x64xf32, #tpu.memory_space<vmem>>, %arg10: memref<64x128xbf16, #tpu.memory_space<vmem>>, %arg11: memref<1x128xf32, #tpu.memory_space<vmem>>, %arg12: memref<1152x64xbf16, #tpu.memory_space<vmem>>, %arg13: memref<1152x64xbf16, #tpu.memory_space<vmem>>, %arg14: memref<1x64xf32, #tpu.memory_space<vmem>>, %arg15: memref<64x128xbf16, #tpu.memory_space<vmem>>, %arg16: memref<1x128xf32, #tpu.memory_space<vmem>>, %arg17: memref<1x16x128xf32, #tpu.memory_space<vmem>>, %arg18: memref<1x16x128xf32, #tpu.memory_space<vmem>>, %arg19: memref<18x18x3xbf16, #tpu.memory_space<vmem>>, %arg20: memref<10x10x32xbf16, #tpu.memory_space<vmem>>, %arg21: memref<6x6x64xbf16, #tpu.memory_space<vmem>>, %arg22: memref<6x6x128xbf16, #tpu.memory_space<vmem>>, %arg23: memref<6x6x128xbf16, #tpu.memory_space<vmem>>) attributes {dimension_semantics = [#tpu.dimension_semantics<parallel>], iteration_bounds = array<i64: 2>, scalar_prefetch = 0 : i64, scratch_operands = 5 : i64, tpu.core_type = #tpu.core_type<tc>, window_params = [{transform_indices = @transform_0, window_bounds = array<i64: 1, 16, 16, 3>}, {pipeline_mode = #tpu.pipeline_mode<synchronous>, transform_indices = @transform_1, window_bounds = array<i64: 27, 32>}, {pipeline_mode = #tpu.pipeline_mode<synchronous>, transform_indices = @transform_2, window_bounds = array<i64: 1, 32>}, {pipeline_mode = #tpu.pipeline_mode<synchronous>, transform_indices = @transform_3, window_bounds = array<i64: 288, 64>}, {pipeline_mode = #tpu.pipeline_mode<synchronous>, transform_indices = @transform_4, window_bounds = array<i64: 1, 64>}, {pipeline_mode = #tpu.pipeline_mode<synchronous>, transform_indices = @transform_5, window_bounds = array<i64: 576, 128>}, {pipeline_mode = #tpu.pipeline_mode<synchronous>, transform_indices = @transform_6, window_bounds = array<i64: 1, 128>}, {pipeline_mode = #tpu.pipeline_mode<synchronous>, transform_indices = @transform_7, window_bounds = array<i64: 1152, 64>}, {pipeline_mode = #tpu.pipeline_mode<synchronous>, transform_indices = @transform_8, window_bounds = array<i64: 1, 64>}, {pipeline_mode = #tpu.pipeline_mode<synchronous>, transform_indices = @transform_9, window_bounds = array<i64: 64, 128>}, {pipeline_mode = #tpu.pipeline_mode<synchronous>, transform_indices = @transform_10, window_bounds = array<i64: 1, 128>}, {pipeline_mode = #tpu.pipeline_mode<synchronous>, transform_indices = @transform_11, window_bounds = array<i64: 1152, 64>}, {pipeline_mode = #tpu.pipeline_mode<synchronous>, transform_indices = @transform_12, window_bounds = array<i64: 1152, 64>}, {pipeline_mode = #tpu.pipeline_mode<synchronous>, transform_indices = @transform_13, window_bounds = array<i64: 1, 64>}, {pipeline_mode = #tpu.pipeline_mode<synchronous>, transform_indices = @transform_14, window_bounds = array<i64: 64, 128>}, {pipeline_mode = #tpu.pipeline_mode<synchronous>, transform_indices = @transform_15, window_bounds = array<i64: 1, 128>}, {transform_indices = @transform_16, window_bounds = array<i64: 1, 16, 128>}, {transform_indices = @transform_17, window_bounds = array<i64: 1, 16, 128>}]} {
    %c0 = arith.constant 0 : index
    %c0_0 = arith.constant 0 : index
    %c0_1 = arith.constant 0 : index
    %c0_2 = arith.constant 0 : index
    %0 = vector.load %arg1[%c0, %c0_0, %c0_1, %c0_2] : memref<1x16x16x3xbf16, #tpu.memory_space<vmem>>, vector<1x16x16x3xbf16>
    %1 = vector.shape_cast %0 : vector<1x16x16x3xbf16> to vector<16x16x3xbf16>
    %cst = arith.constant 0.000000e+00 : bf16
    %2 = vector.broadcast %cst : bf16 to vector<1x18x3xbf16>
    %cst_3 = arith.constant 0.000000e+00 : bf16
    %3 = vector.broadcast %cst_3 : bf16 to vector<18x1x3xbf16>
    %c0_4 = arith.constant 0 : index
    %c0_5 = arith.constant 0 : index
    %c0_6 = arith.constant 0 : index
    %4 = vector.load %arg19[%c0_4, %c0_5, %c0_6] : memref<18x18x3xbf16, #tpu.memory_space<vmem>>, vector<1x18x3xbf16>
    tpu.vector_store %arg19[%c0_4, %c0_5, %c0_6], %2 {strides = array<i32>} : memref<18x18x3xbf16, #tpu.memory_space<vmem>>, vector<1x18x3xbf16>,
    %c17 = arith.constant 17 : index
    %c0_7 = arith.constant 0 : index
    %c0_8 = arith.constant 0 : index
    %5 = vector.load %arg19[%c17, %c0_7, %c0_8] : memref<18x18x3xbf16, #tpu.memory_space<vmem>>, vector<1x18x3xbf16>
    tpu.vector_store %arg19[%c17, %c0_7, %c0_8], %2 {strides = array<i32>} : memref<18x18x3xbf16, #tpu.memory_space<vmem>>, vector<1x18x3xbf16>,
    %c0_9 = arith.constant 0 : index
    %c0_10 = arith.constant 0 : index
    %c0_11 = arith.constant 0 : index
    %6 = vector.load %arg19[%c0_9, %c0_10, %c0_11] : memref<18x18x3xbf16, #tpu.memory_space<vmem>>, vector<18x1x3xbf16>
    tpu.vector_store %arg19[%c0_9, %c0_10, %c0_11], %3 {strides = array<i32>} : memref<18x18x3xbf16, #tpu.memory_space<vmem>>, vector<18x1x3xbf16>,
    %c0_12 = arith.constant 0 : index
    %c17_13 = arith.constant 17 : index
    %c0_14 = arith.constant 0 : index
    %7 = vector.load %arg19[%c0_12, %c17_13, %c0_14] : memref<18x18x3xbf16, #tpu.memory_space<vmem>>, vector<18x1x3xbf16>
    tpu.vector_store %arg19[%c0_12, %c17_13, %c0_14], %3 {strides = array<i32>} : memref<18x18x3xbf16, #tpu.memory_space<vmem>>, vector<18x1x3xbf16>,
    %c1 = arith.constant 1 : index
    %c1_15 = arith.constant 1 : index
    %c0_16 = arith.constant 0 : index
    %8 = vector.load %arg19[%c1, %c1_15, %c0_16] : memref<18x18x3xbf16, #tpu.memory_space<vmem>>, vector<16x16x3xbf16>
    tpu.vector_store %arg19[%c1, %c1_15, %c0_16], %1 {strides = array<i32>} : memref<18x18x3xbf16, #tpu.memory_space<vmem>>, vector<16x16x3xbf16>,
    %c0_17 = arith.constant 0 : index
    %c0_18 = arith.constant 0 : index
    %c0_19 = arith.constant 0 : index
    %9 = vector.load %arg19[%c0_17, %c0_18, %c0_19] : memref<18x18x3xbf16, #tpu.memory_space<vmem>>, vector<16x16x3xbf16>
    %c0_20 = arith.constant 0 : index
    %c1_21 = arith.constant 1 : index
    %c0_22 = arith.constant 0 : index
    %10 = vector.load %arg19[%c0_20, %c1_21, %c0_22] : memref<18x18x3xbf16, #tpu.memory_space<vmem>>, vector<16x16x3xbf16>
    %c0_23 = arith.constant 0 : index
    %c2 = arith.constant 2 : index
    %c0_24 = arith.constant 0 : index
    %11 = vector.load %arg19[%c0_23, %c2, %c0_24] : memref<18x18x3xbf16, #tpu.memory_space<vmem>>, vector<16x16x3xbf16>
    %c1_25 = arith.constant 1 : index
    %c0_26 = arith.constant 0 : index
    %c0_27 = arith.constant 0 : index
    %12 = vector.load %arg19[%c1_25, %c0_26, %c0_27] : memref<18x18x3xbf16, #tpu.memory_space<vmem>>, vector<16x16x3xbf16>
    %c1_28 = arith.constant 1 : index
    %c1_29 = arith.constant 1 : index
    %c0_30 = arith.constant 0 : index
    %13 = vector.load %arg19[%c1_28, %c1_29, %c0_30] : memref<18x18x3xbf16, #tpu.memory_space<vmem>>, vector<16x16x3xbf16>
    %c1_31 = arith.constant 1 : index
    %c2_32 = arith.constant 2 : index
    %c0_33 = arith.constant 0 : index
    %14 = vector.load %arg19[%c1_31, %c2_32, %c0_33] : memref<18x18x3xbf16, #tpu.memory_space<vmem>>, vector<16x16x3xbf16>
    %c2_34 = arith.constant 2 : index
    %c0_35 = arith.constant 0 : index
    %c0_36 = arith.constant 0 : index
    %15 = vector.load %arg19[%c2_34, %c0_35, %c0_36] : memref<18x18x3xbf16, #tpu.memory_space<vmem>>, vector<16x16x3xbf16>
    %c2_37 = arith.constant 2 : index
    %c1_38 = arith.constant 1 : index
    %c0_39 = arith.constant 0 : index
    %16 = vector.load %arg19[%c2_37, %c1_38, %c0_39] : memref<18x18x3xbf16, #tpu.memory_space<vmem>>, vector<16x16x3xbf16>
    %c2_40 = arith.constant 2 : index
    %c2_41 = arith.constant 2 : index
    %c0_42 = arith.constant 0 : index
    %17 = vector.load %arg19[%c2_40, %c2_41, %c0_42] : memref<18x18x3xbf16, #tpu.memory_space<vmem>>, vector<16x16x3xbf16>
    %18 = tpu.concatenate %9, %10, %11, %12, %13, %14, %15, %16, %17 in 2 : vector<16x16x3xbf16>, vector<16x16x3xbf16>, vector<16x16x3xbf16>, vector<16x16x3xbf16>, vector<16x16x3xbf16>, vector<16x16x3xbf16>, vector<16x16x3xbf16>, vector<16x16x3xbf16>, vector<16x16x3xbf16> -> vector<16x16x27xbf16>
    %19 = vector.shape_cast %18 : vector<16x16x27xbf16> to vector<256x27xbf16>
    %c0_43 = arith.constant 0 : index
    %c0_44 = arith.constant 0 : index
    %20 = vector.load %arg2[%c0_43, %c0_44] : memref<27x32xbf16, #tpu.memory_space<vmem>>, vector<27x32xbf16>
    %cst_45 = arith.constant dense<0.000000e+00> : vector<256x32xf32>
    %21 = tpu.matmul %19, %20, %cst_45 {dimension_numbers = #tpu.dot_dimension_numbers<[1], [0], [0], [1], [0, 0, 1, 1], [], []>} : vector<256x27xbf16>, vector<27x32xbf16>, vector<256x32xf32> -> vector<256x32xf32>
    %c0_46 = arith.constant 0 : index
    %c0_47 = arith.constant 0 : index
    %22 = vector.load %arg3[%c0_46, %c0_47] : memref<1x32xf32, #tpu.memory_space<vmem>>, vector<1x32xf32>
    %23 = vector.broadcast %22 : vector<1x32xf32> to vector<256x32xf32>
    %24 = arith.addf %21, %23 : vector<256x32xf32>
    %cst_48 = arith.constant 0.000000e+00 : f32
    %25 = vector.broadcast %cst_48 : f32 to vector<256x32xf32>
    %26 = arith.maximumf %24, %25 : vector<256x32xf32>
    %27 = vector.shape_cast %26 : vector<256x32xf32> to vector<128x2x32xf32>
    %28 = vector.extract_strided_slice %27 {offsets = [0, 0, 0], sizes = [128, 1, 32], strides = [1, 1, 1]} : vector<128x2x32xf32> to vector<128x1x32xf32>
    %29 = vector.shape_cast %28 : vector<128x1x32xf32> to vector<128x32xf32>
    %30 = vector.extract_strided_slice %27 {offsets = [0, 1, 0], sizes = [128, 1, 32], strides = [1, 1, 1]} : vector<128x2x32xf32> to vector<128x1x32xf32>
    %31 = vector.shape_cast %30 : vector<128x1x32xf32> to vector<128x32xf32>
    %32 = arith.maximumf %29, %31 : vector<128x32xf32>
    %33 = vector.shape_cast %32 : vector<128x32xf32> to vector<8x16x32xf32>
    %34 = vector.extract_strided_slice %33 {offsets = [0, 0, 0], sizes = [8, 8, 32], strides = [1, 1, 1]} : vector<8x16x32xf32> to vector<8x8x32xf32>
    %35 = vector.extract_strided_slice %33 {offsets = [0, 8, 0], sizes = [8, 8, 32], strides = [1, 1, 1]} : vector<8x16x32xf32> to vector<8x8x32xf32>
    %36 = arith.maximumf %34, %35 : vector<8x8x32xf32>
    %cst_49 = arith.constant 0.000000e+00 : bf16
    %37 = vector.broadcast %cst_49 : bf16 to vector<1x10x32xbf16>
    %cst_50 = arith.constant 0.000000e+00 : bf16
    %38 = vector.broadcast %cst_50 : bf16 to vector<10x1x32xbf16>
    %c0_51 = arith.constant 0 : index
    %c0_52 = arith.constant 0 : index
    %c0_53 = arith.constant 0 : index
    %39 = vector.load %arg20[%c0_51, %c0_52, %c0_53] : memref<10x10x32xbf16, #tpu.memory_space<vmem>>, vector<1x10x32xbf16>
    tpu.vector_store %arg20[%c0_51, %c0_52, %c0_53], %37 {strides = array<i32>} : memref<10x10x32xbf16, #tpu.memory_space<vmem>>, vector<1x10x32xbf16>,
    %c9 = arith.constant 9 : index
    %c0_54 = arith.constant 0 : index
    %c0_55 = arith.constant 0 : index
    %40 = vector.load %arg20[%c9, %c0_54, %c0_55] : memref<10x10x32xbf16, #tpu.memory_space<vmem>>, vector<1x10x32xbf16>
    tpu.vector_store %arg20[%c9, %c0_54, %c0_55], %37 {strides = array<i32>} : memref<10x10x32xbf16, #tpu.memory_space<vmem>>, vector<1x10x32xbf16>,
    %c0_56 = arith.constant 0 : index
    %c0_57 = arith.constant 0 : index
    %c0_58 = arith.constant 0 : index
    %41 = vector.load %arg20[%c0_56, %c0_57, %c0_58] : memref<10x10x32xbf16, #tpu.memory_space<vmem>>, vector<10x1x32xbf16>
    tpu.vector_store %arg20[%c0_56, %c0_57, %c0_58], %38 {strides = array<i32>} : memref<10x10x32xbf16, #tpu.memory_space<vmem>>, vector<10x1x32xbf16>,
    %c0_59 = arith.constant 0 : index
    %c9_60 = arith.constant 9 : index
    %c0_61 = arith.constant 0 : index
    %42 = vector.load %arg20[%c0_59, %c9_60, %c0_61] : memref<10x10x32xbf16, #tpu.memory_space<vmem>>, vector<10x1x32xbf16>
    tpu.vector_store %arg20[%c0_59, %c9_60, %c0_61], %38 {strides = array<i32>} : memref<10x10x32xbf16, #tpu.memory_space<vmem>>, vector<10x1x32xbf16>,
    %43 = arith.truncf %36 : vector<8x8x32xf32> to vector<8x8x32xbf16>
    %c1_62 = arith.constant 1 : index
    %c1_63 = arith.constant 1 : index
    %c0_64 = arith.constant 0 : index
    %44 = vector.load %arg20[%c1_62, %c1_63, %c0_64] : memref<10x10x32xbf16, #tpu.memory_space<vmem>>, vector<8x8x32xbf16>
    tpu.vector_store %arg20[%c1_62, %c1_63, %c0_64], %43 {strides = array<i32>} : memref<10x10x32xbf16, #tpu.memory_space<vmem>>, vector<8x8x32xbf16>,
    %c0_65 = arith.constant 0 : index
    %c0_66 = arith.constant 0 : index
    %c0_67 = arith.constant 0 : index
    %45 = vector.load %arg20[%c0_65, %c0_66, %c0_67] : memref<10x10x32xbf16, #tpu.memory_space<vmem>>, vector<8x8x32xbf16>
    %c0_68 = arith.constant 0 : index
    %c1_69 = arith.constant 1 : index
    %c0_70 = arith.constant 0 : index
    %46 = vector.load %arg20[%c0_68, %c1_69, %c0_70] : memref<10x10x32xbf16, #tpu.memory_space<vmem>>, vector<8x8x32xbf16>
    %c0_71 = arith.constant 0 : index
    %c2_72 = arith.constant 2 : index
    %c0_73 = arith.constant 0 : index
    %47 = vector.load %arg20[%c0_71, %c2_72, %c0_73] : memref<10x10x32xbf16, #tpu.memory_space<vmem>>, vector<8x8x32xbf16>
    %c1_74 = arith.constant 1 : index
    %c0_75 = arith.constant 0 : index
    %c0_76 = arith.constant 0 : index
    %48 = vector.load %arg20[%c1_74, %c0_75, %c0_76] : memref<10x10x32xbf16, #tpu.memory_space<vmem>>, vector<8x8x32xbf16>
    %c1_77 = arith.constant 1 : index
    %c1_78 = arith.constant 1 : index
    %c0_79 = arith.constant 0 : index
    %49 = vector.load %arg20[%c1_77, %c1_78, %c0_79] : memref<10x10x32xbf16, #tpu.memory_space<vmem>>, vector<8x8x32xbf16>
    %c1_80 = arith.constant 1 : index
    %c2_81 = arith.constant 2 : index
    %c0_82 = arith.constant 0 : index
    %50 = vector.load %arg20[%c1_80, %c2_81, %c0_82] : memref<10x10x32xbf16, #tpu.memory_space<vmem>>, vector<8x8x32xbf16>
    %c2_83 = arith.constant 2 : index
    %c0_84 = arith.constant 0 : index
    %c0_85 = arith.constant 0 : index
    %51 = vector.load %arg20[%c2_83, %c0_84, %c0_85] : memref<10x10x32xbf16, #tpu.memory_space<vmem>>, vector<8x8x32xbf16>
    %c2_86 = arith.constant 2 : index
    %c1_87 = arith.constant 1 : index
    %c0_88 = arith.constant 0 : index
    %52 = vector.load %arg20[%c2_86, %c1_87, %c0_88] : memref<10x10x32xbf16, #tpu.memory_space<vmem>>, vector<8x8x32xbf16>
    %c2_89 = arith.constant 2 : index
    %c2_90 = arith.constant 2 : index
    %c0_91 = arith.constant 0 : index
    %53 = vector.load %arg20[%c2_89, %c2_90, %c0_91] : memref<10x10x32xbf16, #tpu.memory_space<vmem>>, vector<8x8x32xbf16>
    %54 = tpu.concatenate %45, %46, %47, %48, %49, %50, %51, %52, %53 in 2 : vector<8x8x32xbf16>, vector<8x8x32xbf16>, vector<8x8x32xbf16>, vector<8x8x32xbf16>, vector<8x8x32xbf16>, vector<8x8x32xbf16>, vector<8x8x32xbf16>, vector<8x8x32xbf16>, vector<8x8x32xbf16> -> vector<8x8x288xbf16>
    %55 = vector.shape_cast %54 : vector<8x8x288xbf16> to vector<64x288xbf16>
    %c0_92 = arith.constant 0 : index
    %c0_93 = arith.constant 0 : index
    %56 = vector.load %arg4[%c0_92, %c0_93] : memref<288x64xbf16, #tpu.memory_space<vmem>>, vector<288x64xbf16>
    %cst_94 = arith.constant dense<0.000000e+00> : vector<64x64xf32>
    %57 = tpu.matmul %55, %56, %cst_94 {dimension_numbers = #tpu.dot_dimension_numbers<[1], [0], [0], [1], [0, 0, 1, 1], [], []>} : vector<64x288xbf16>, vector<288x64xbf16>, vector<64x64xf32> -> vector<64x64xf32>
    %c0_95 = arith.constant 0 : index
    %c0_96 = arith.constant 0 : index
    %58 = vector.load %arg5[%c0_95, %c0_96] : memref<1x64xf32, #tpu.memory_space<vmem>>, vector<1x64xf32>
    %59 = vector.broadcast %58 : vector<1x64xf32> to vector<64x64xf32>
    %60 = arith.addf %57, %59 : vector<64x64xf32>
    %cst_97 = arith.constant 0.000000e+00 : f32
    %61 = vector.broadcast %cst_97 : f32 to vector<64x64xf32>
    %62 = arith.maximumf %60, %61 : vector<64x64xf32>
    %63 = vector.shape_cast %62 : vector<64x64xf32> to vector<32x2x64xf32>
    %64 = vector.extract_strided_slice %63 {offsets = [0, 0, 0], sizes = [32, 1, 64], strides = [1, 1, 1]} : vector<32x2x64xf32> to vector<32x1x64xf32>
    %65 = vector.shape_cast %64 : vector<32x1x64xf32> to vector<32x64xf32>
    %66 = vector.extract_strided_slice %63 {offsets = [0, 1, 0], sizes = [32, 1, 64], strides = [1, 1, 1]} : vector<32x2x64xf32> to vector<32x1x64xf32>
    %67 = vector.shape_cast %66 : vector<32x1x64xf32> to vector<32x64xf32>
    %68 = arith.maximumf %65, %67 : vector<32x64xf32>
    %69 = vector.shape_cast %68 : vector<32x64xf32> to vector<4x8x64xf32>
    %70 = vector.extract_strided_slice %69 {offsets = [0, 0, 0], sizes = [4, 4, 64], strides = [1, 1, 1]} : vector<4x8x64xf32> to vector<4x4x64xf32>
    %71 = vector.extract_strided_slice %69 {offsets = [0, 4, 0], sizes = [4, 4, 64], strides = [1, 1, 1]} : vector<4x8x64xf32> to vector<4x4x64xf32>
    %72 = arith.maximumf %70, %71 : vector<4x4x64xf32>
    %cst_98 = arith.constant 0.000000e+00 : bf16
    %73 = vector.broadcast %cst_98 : bf16 to vector<1x6x64xbf16>
    %cst_99 = arith.constant 0.000000e+00 : bf16
    %74 = vector.broadcast %cst_99 : bf16 to vector<6x1x64xbf16>
    %c0_100 = arith.constant 0 : index
    %c0_101 = arith.constant 0 : index
    %c0_102 = arith.constant 0 : index
    %75 = vector.load %arg21[%c0_100, %c0_101, %c0_102] : memref<6x6x64xbf16, #tpu.memory_space<vmem>>, vector<1x6x64xbf16>
    tpu.vector_store %arg21[%c0_100, %c0_101, %c0_102], %73 {strides = array<i32>} : memref<6x6x64xbf16, #tpu.memory_space<vmem>>, vector<1x6x64xbf16>,
    %c5 = arith.constant 5 : index
    %c0_103 = arith.constant 0 : index
    %c0_104 = arith.constant 0 : index
    %76 = vector.load %arg21[%c5, %c0_103, %c0_104] : memref<6x6x64xbf16, #tpu.memory_space<vmem>>, vector<1x6x64xbf16>
    tpu.vector_store %arg21[%c5, %c0_103, %c0_104], %73 {strides = array<i32>} : memref<6x6x64xbf16, #tpu.memory_space<vmem>>, vector<1x6x64xbf16>,
    %c0_105 = arith.constant 0 : index
    %c0_106 = arith.constant 0 : index
    %c0_107 = arith.constant 0 : index
    %77 = vector.load %arg21[%c0_105, %c0_106, %c0_107] : memref<6x6x64xbf16, #tpu.memory_space<vmem>>, vector<6x1x64xbf16>
    tpu.vector_store %arg21[%c0_105, %c0_106, %c0_107], %74 {strides = array<i32>} : memref<6x6x64xbf16, #tpu.memory_space<vmem>>, vector<6x1x64xbf16>,
    %c0_108 = arith.constant 0 : index
    %c5_109 = arith.constant 5 : index
    %c0_110 = arith.constant 0 : index
    %78 = vector.load %arg21[%c0_108, %c5_109, %c0_110] : memref<6x6x64xbf16, #tpu.memory_space<vmem>>, vector<6x1x64xbf16>
    tpu.vector_store %arg21[%c0_108, %c5_109, %c0_110], %74 {strides = array<i32>} : memref<6x6x64xbf16, #tpu.memory_space<vmem>>, vector<6x1x64xbf16>,
    %79 = arith.truncf %72 : vector<4x4x64xf32> to vector<4x4x64xbf16>
    %c1_111 = arith.constant 1 : index
    %c1_112 = arith.constant 1 : index
    %c0_113 = arith.constant 0 : index
    %80 = vector.load %arg21[%c1_111, %c1_112, %c0_113] : memref<6x6x64xbf16, #tpu.memory_space<vmem>>, vector<4x4x64xbf16>
    tpu.vector_store %arg21[%c1_111, %c1_112, %c0_113], %79 {strides = array<i32>} : memref<6x6x64xbf16, #tpu.memory_space<vmem>>, vector<4x4x64xbf16>,
    %c0_114 = arith.constant 0 : index
    %c0_115 = arith.constant 0 : index
    %c0_116 = arith.constant 0 : index
    %81 = vector.load %arg21[%c0_114, %c0_115, %c0_116] : memref<6x6x64xbf16, #tpu.memory_space<vmem>>, vector<4x4x64xbf16>
    %c0_117 = arith.constant 0 : index
    %c1_118 = arith.constant 1 : index
    %c0_119 = arith.constant 0 : index
    %82 = vector.load %arg21[%c0_117, %c1_118, %c0_119] : memref<6x6x64xbf16, #tpu.memory_space<vmem>>, vector<4x4x64xbf16>
    %c0_120 = arith.constant 0 : index
    %c2_121 = arith.constant 2 : index
    %c0_122 = arith.constant 0 : index
    %83 = vector.load %arg21[%c0_120, %c2_121, %c0_122] : memref<6x6x64xbf16, #tpu.memory_space<vmem>>, vector<4x4x64xbf16>
    %c1_123 = arith.constant 1 : index
    %c0_124 = arith.constant 0 : index
    %c0_125 = arith.constant 0 : index
    %84 = vector.load %arg21[%c1_123, %c0_124, %c0_125] : memref<6x6x64xbf16, #tpu.memory_space<vmem>>, vector<4x4x64xbf16>
    %c1_126 = arith.constant 1 : index
    %c1_127 = arith.constant 1 : index
    %c0_128 = arith.constant 0 : index
    %85 = vector.load %arg21[%c1_126, %c1_127, %c0_128] : memref<6x6x64xbf16, #tpu.memory_space<vmem>>, vector<4x4x64xbf16>
    %c1_129 = arith.constant 1 : index
    %c2_130 = arith.constant 2 : index
    %c0_131 = arith.constant 0 : index
    %86 = vector.load %arg21[%c1_129, %c2_130, %c0_131] : memref<6x6x64xbf16, #tpu.memory_space<vmem>>, vector<4x4x64xbf16>
    %c2_132 = arith.constant 2 : index
    %c0_133 = arith.constant 0 : index
    %c0_134 = arith.constant 0 : index
    %87 = vector.load %arg21[%c2_132, %c0_133, %c0_134] : memref<6x6x64xbf16, #tpu.memory_space<vmem>>, vector<4x4x64xbf16>
    %c2_135 = arith.constant 2 : index
    %c1_136 = arith.constant 1 : index
    %c0_137 = arith.constant 0 : index
    %88 = vector.load %arg21[%c2_135, %c1_136, %c0_137] : memref<6x6x64xbf16, #tpu.memory_space<vmem>>, vector<4x4x64xbf16>
    %c2_138 = arith.constant 2 : index
    %c2_139 = arith.constant 2 : index
    %c0_140 = arith.constant 0 : index
    %89 = vector.load %arg21[%c2_138, %c2_139, %c0_140] : memref<6x6x64xbf16, #tpu.memory_space<vmem>>, vector<4x4x64xbf16>
    %90 = tpu.concatenate %81, %82, %83, %84, %85, %86, %87, %88, %89 in 2 : vector<4x4x64xbf16>, vector<4x4x64xbf16>, vector<4x4x64xbf16>, vector<4x4x64xbf16>, vector<4x4x64xbf16>, vector<4x4x64xbf16>, vector<4x4x64xbf16>, vector<4x4x64xbf16>, vector<4x4x64xbf16> -> vector<4x4x576xbf16>
    %91 = vector.shape_cast %90 : vector<4x4x576xbf16> to vector<16x576xbf16>
    %c0_141 = arith.constant 0 : index
    %c0_142 = arith.constant 0 : index
    %92 = vector.load %arg6[%c0_141, %c0_142] : memref<576x128xbf16, #tpu.memory_space<vmem>>, vector<576x128xbf16>
    %cst_143 = arith.constant dense<0.000000e+00> : vector<16x128xf32>
    %93 = tpu.matmul %91, %92, %cst_143 {dimension_numbers = #tpu.dot_dimension_numbers<[1], [0], [0], [1], [0, 0, 1, 1], [], []>} : vector<16x576xbf16>, vector<576x128xbf16>, vector<16x128xf32> -> vector<16x128xf32>
    %c0_144 = arith.constant 0 : index
    %c0_145 = arith.constant 0 : index
    %94 = vector.load %arg7[%c0_144, %c0_145] : memref<1x128xf32, #tpu.memory_space<vmem>>, vector<1x128xf32>
    %95 = vector.broadcast %94 : vector<1x128xf32> to vector<16x128xf32>
    %96 = arith.addf %93, %95 : vector<16x128xf32>
    %cst_146 = arith.constant 0.000000e+00 : f32
    %97 = vector.broadcast %cst_146 : f32 to vector<16x128xf32>
    %98 = arith.maximumf %96, %97 : vector<16x128xf32>
    %99 = vector.shape_cast %98 : vector<16x128xf32> to vector<4x4x128xf32>
    %cst_147 = arith.constant 0.000000e+00 : bf16
    %100 = vector.broadcast %cst_147 : bf16 to vector<1x6x128xbf16>
    %cst_148 = arith.constant 0.000000e+00 : bf16
    %101 = vector.broadcast %cst_148 : bf16 to vector<6x1x128xbf16>
    %c0_149 = arith.constant 0 : index
    %c0_150 = arith.constant 0 : index
    %c0_151 = arith.constant 0 : index
    %102 = vector.load %arg22[%c0_149, %c0_150, %c0_151] : memref<6x6x128xbf16, #tpu.memory_space<vmem>>, vector<1x6x128xbf16>
    tpu.vector_store %arg22[%c0_149, %c0_150, %c0_151], %100 {strides = array<i32>} : memref<6x6x128xbf16, #tpu.memory_space<vmem>>, vector<1x6x128xbf16>,
    %c5_152 = arith.constant 5 : index
    %c0_153 = arith.constant 0 : index
    %c0_154 = arith.constant 0 : index
    %103 = vector.load %arg22[%c5_152, %c0_153, %c0_154] : memref<6x6x128xbf16, #tpu.memory_space<vmem>>, vector<1x6x128xbf16>
    tpu.vector_store %arg22[%c5_152, %c0_153, %c0_154], %100 {strides = array<i32>} : memref<6x6x128xbf16, #tpu.memory_space<vmem>>, vector<1x6x128xbf16>,
    %c0_155 = arith.constant 0 : index
    %c0_156 = arith.constant 0 : index
    %c0_157 = arith.constant 0 : index
    %104 = vector.load %arg22[%c0_155, %c0_156, %c0_157] : memref<6x6x128xbf16, #tpu.memory_space<vmem>>, vector<6x1x128xbf16>
    tpu.vector_store %arg22[%c0_155, %c0_156, %c0_157], %101 {strides = array<i32>} : memref<6x6x128xbf16, #tpu.memory_space<vmem>>, vector<6x1x128xbf16>,
    %c0_158 = arith.constant 0 : index
    %c5_159 = arith.constant 5 : index
    %c0_160 = arith.constant 0 : index
    %105 = vector.load %arg22[%c0_158, %c5_159, %c0_160] : memref<6x6x128xbf16, #tpu.memory_space<vmem>>, vector<6x1x128xbf16>
    tpu.vector_store %arg22[%c0_158, %c5_159, %c0_160], %101 {strides = array<i32>} : memref<6x6x128xbf16, #tpu.memory_space<vmem>>, vector<6x1x128xbf16>,
    %106 = arith.truncf %99 : vector<4x4x128xf32> to vector<4x4x128xbf16>
    %c1_161 = arith.constant 1 : index
    %c1_162 = arith.constant 1 : index
    %c0_163 = arith.constant 0 : index
    %107 = vector.load %arg22[%c1_161, %c1_162, %c0_163] : memref<6x6x128xbf16, #tpu.memory_space<vmem>>, vector<4x4x128xbf16>
    tpu.vector_store %arg22[%c1_161, %c1_162, %c0_163], %106 {strides = array<i32>} : memref<6x6x128xbf16, #tpu.memory_space<vmem>>, vector<4x4x128xbf16>,
    %c0_164 = arith.constant 0 : index
    %c0_165 = arith.constant 0 : index
    %c0_166 = arith.constant 0 : index
    %108 = vector.load %arg22[%c0_164, %c0_165, %c0_166] : memref<6x6x128xbf16, #tpu.memory_space<vmem>>, vector<4x4x128xbf16>
    %c0_167 = arith.constant 0 : index
    %c1_168 = arith.constant 1 : index
    %c0_169 = arith.constant 0 : index
    %109 = vector.load %arg22[%c0_167, %c1_168, %c0_169] : memref<6x6x128xbf16, #tpu.memory_space<vmem>>, vector<4x4x128xbf16>
    %c0_170 = arith.constant 0 : index
    %c2_171 = arith.constant 2 : index
    %c0_172 = arith.constant 0 : index
    %110 = vector.load %arg22[%c0_170, %c2_171, %c0_172] : memref<6x6x128xbf16, #tpu.memory_space<vmem>>, vector<4x4x128xbf16>
    %c1_173 = arith.constant 1 : index
    %c0_174 = arith.constant 0 : index
    %c0_175 = arith.constant 0 : index
    %111 = vector.load %arg22[%c1_173, %c0_174, %c0_175] : memref<6x6x128xbf16, #tpu.memory_space<vmem>>, vector<4x4x128xbf16>
    %c1_176 = arith.constant 1 : index
    %c1_177 = arith.constant 1 : index
    %c0_178 = arith.constant 0 : index
    %112 = vector.load %arg22[%c1_176, %c1_177, %c0_178] : memref<6x6x128xbf16, #tpu.memory_space<vmem>>, vector<4x4x128xbf16>
    %c1_179 = arith.constant 1 : index
    %c2_180 = arith.constant 2 : index
    %c0_181 = arith.constant 0 : index
    %113 = vector.load %arg22[%c1_179, %c2_180, %c0_181] : memref<6x6x128xbf16, #tpu.memory_space<vmem>>, vector<4x4x128xbf16>
    %c2_182 = arith.constant 2 : index
    %c0_183 = arith.constant 0 : index
    %c0_184 = arith.constant 0 : index
    %114 = vector.load %arg22[%c2_182, %c0_183, %c0_184] : memref<6x6x128xbf16, #tpu.memory_space<vmem>>, vector<4x4x128xbf16>
    %c2_185 = arith.constant 2 : index
    %c1_186 = arith.constant 1 : index
    %c0_187 = arith.constant 0 : index
    %115 = vector.load %arg22[%c2_185, %c1_186, %c0_187] : memref<6x6x128xbf16, #tpu.memory_space<vmem>>, vector<4x4x128xbf16>
    %c2_188 = arith.constant 2 : index
    %c2_189 = arith.constant 2 : index
    %c0_190 = arith.constant 0 : index
    %116 = vector.load %arg22[%c2_188, %c2_189, %c0_190] : memref<6x6x128xbf16, #tpu.memory_space<vmem>>, vector<4x4x128xbf16>
    %117 = tpu.concatenate %108, %109, %110, %111, %112, %113, %114, %115, %116 in 2 : vector<4x4x128xbf16>, vector<4x4x128xbf16>, vector<4x4x128xbf16>, vector<4x4x128xbf16>, vector<4x4x128xbf16>, vector<4x4x128xbf16>, vector<4x4x128xbf16>, vector<4x4x128xbf16>, vector<4x4x128xbf16> -> vector<4x4x1152xbf16>
    %118 = vector.shape_cast %117 : vector<4x4x1152xbf16> to vector<16x1152xbf16>
    %c0_191 = arith.constant 0 : index
    %c0_192 = arith.constant 0 : index
    %119 = vector.load %arg8[%c0_191, %c0_192] : memref<1152x64xbf16, #tpu.memory_space<vmem>>, vector<1152x64xbf16>
    %cst_193 = arith.constant dense<0.000000e+00> : vector<16x64xf32>
    %120 = tpu.matmul %118, %119, %cst_193 {dimension_numbers = #tpu.dot_dimension_numbers<[1], [0], [0], [1], [0, 0, 1, 1], [], []>} : vector<16x1152xbf16>, vector<1152x64xbf16>, vector<16x64xf32> -> vector<16x64xf32>
    %c0_194 = arith.constant 0 : index
    %c0_195 = arith.constant 0 : index
    %121 = vector.load %arg9[%c0_194, %c0_195] : memref<1x64xf32, #tpu.memory_space<vmem>>, vector<1x64xf32>
    %122 = vector.broadcast %121 : vector<1x64xf32> to vector<16x64xf32>
    %123 = arith.addf %120, %122 : vector<16x64xf32>
    %cst_196 = arith.constant 0.000000e+00 : f32
    %124 = vector.broadcast %cst_196 : f32 to vector<16x64xf32>
    %125 = arith.maximumf %123, %124 : vector<16x64xf32>
    %126 = arith.truncf %125 : vector<16x64xf32> to vector<16x64xbf16>
    %c0_197 = arith.constant 0 : index
    %c0_198 = arith.constant 0 : index
    %127 = vector.load %arg10[%c0_197, %c0_198] : memref<64x128xbf16, #tpu.memory_space<vmem>>, vector<64x128xbf16>
    %cst_199 = arith.constant dense<0.000000e+00> : vector<16x128xf32>
    %128 = tpu.matmul %126, %127, %cst_199 {dimension_numbers = #tpu.dot_dimension_numbers<[1], [0], [0], [1], [0, 0, 1, 1], [], []>} : vector<16x64xbf16>, vector<64x128xbf16>, vector<16x128xf32> -> vector<16x128xf32>
    %c0_200 = arith.constant 0 : index
    %c0_201 = arith.constant 0 : index
    %129 = vector.load %arg11[%c0_200, %c0_201] : memref<1x128xf32, #tpu.memory_space<vmem>>, vector<1x128xf32>
    %130 = vector.broadcast %129 : vector<1x128xf32> to vector<16x128xf32>
    %131 = arith.addf %128, %130 : vector<16x128xf32>
    %132 = vector.shape_cast %131 : vector<16x128xf32> to vector<1x16x128xf32>
    %c0_202 = arith.constant 0 : index
    %c0_203 = arith.constant 0 : index
    %c0_204 = arith.constant 0 : index
    %133 = vector.load %arg17[%c0_202, %c0_203, %c0_204] : memref<1x16x128xf32, #tpu.memory_space<vmem>>, vector<1x16x128xf32>
    tpu.vector_store %arg17[%c0_202, %c0_203, %c0_204], %132 {strides = array<i32>} : memref<1x16x128xf32, #tpu.memory_space<vmem>>, vector<1x16x128xf32>,
    %134 = vector.shape_cast %131 : vector<16x128xf32> to vector<4x4x128xf32>
    %cst_205 = arith.constant 0.000000e+00 : bf16
    %135 = vector.broadcast %cst_205 : bf16 to vector<1x6x128xbf16>
    %cst_206 = arith.constant 0.000000e+00 : bf16
    %136 = vector.broadcast %cst_206 : bf16 to vector<6x1x128xbf16>
    %c0_207 = arith.constant 0 : index
    %c0_208 = arith.constant 0 : index
    %c0_209 = arith.constant 0 : index
    %137 = vector.load %arg23[%c0_207, %c0_208, %c0_209] : memref<6x6x128xbf16, #tpu.memory_space<vmem>>, vector<1x6x128xbf16>
    tpu.vector_store %arg23[%c0_207, %c0_208, %c0_209], %135 {strides = array<i32>} : memref<6x6x128xbf16, #tpu.memory_space<vmem>>, vector<1x6x128xbf16>,
    %c5_210 = arith.constant 5 : index
    %c0_211 = arith.constant 0 : index
    %c0_212 = arith.constant 0 : index
    %138 = vector.load %arg23[%c5_210, %c0_211, %c0_212] : memref<6x6x128xbf16, #tpu.memory_space<vmem>>, vector<1x6x128xbf16>
    tpu.vector_store %arg23[%c5_210, %c0_211, %c0_212], %135 {strides = array<i32>} : memref<6x6x128xbf16, #tpu.memory_space<vmem>>, vector<1x6x128xbf16>,
    %c0_213 = arith.constant 0 : index
    %c0_214 = arith.constant 0 : index
    %c0_215 = arith.constant 0 : index
    %139 = vector.load %arg23[%c0_213, %c0_214, %c0_215] : memref<6x6x128xbf16, #tpu.memory_space<vmem>>, vector<6x1x128xbf16>
    tpu.vector_store %arg23[%c0_213, %c0_214, %c0_215], %136 {strides = array<i32>} : memref<6x6x128xbf16, #tpu.memory_space<vmem>>, vector<6x1x128xbf16>,
    %c0_216 = arith.constant 0 : index
    %c5_217 = arith.constant 5 : index
    %c0_218 = arith.constant 0 : index
    %140 = vector.load %arg23[%c0_216, %c5_217, %c0_218] : memref<6x6x128xbf16, #tpu.memory_space<vmem>>, vector<6x1x128xbf16>
    tpu.vector_store %arg23[%c0_216, %c5_217, %c0_218], %136 {strides = array<i32>} : memref<6x6x128xbf16, #tpu.memory_space<vmem>>, vector<6x1x128xbf16>,
    %141 = arith.truncf %134 : vector<4x4x128xf32> to vector<4x4x128xbf16>
    %c1_219 = arith.constant 1 : index
    %c1_220 = arith.constant 1 : index
    %c0_221 = arith.constant 0 : index
    %142 = vector.load %arg23[%c1_219, %c1_220, %c0_221] : memref<6x6x128xbf16, #tpu.memory_space<vmem>>, vector<4x4x128xbf16>
    tpu.vector_store %arg23[%c1_219, %c1_220, %c0_221], %141 {strides = array<i32>} : memref<6x6x128xbf16, #tpu.memory_space<vmem>>, vector<4x4x128xbf16>,
    %c0_222 = arith.constant 0 : index
    %c0_223 = arith.constant 0 : index
    %c0_224 = arith.constant 0 : index
    %143 = vector.load %arg22[%c0_222, %c0_223, %c0_224] : memref<6x6x128xbf16, #tpu.memory_space<vmem>>, vector<4x4x128xbf16>
    %c0_225 = arith.constant 0 : index
    %c1_226 = arith.constant 1 : index
    %c0_227 = arith.constant 0 : index
    %144 = vector.load %arg22[%c0_225, %c1_226, %c0_227] : memref<6x6x128xbf16, #tpu.memory_space<vmem>>, vector<4x4x128xbf16>
    %c0_228 = arith.constant 0 : index
    %c2_229 = arith.constant 2 : index
    %c0_230 = arith.constant 0 : index
    %145 = vector.load %arg22[%c0_228, %c2_229, %c0_230] : memref<6x6x128xbf16, #tpu.memory_space<vmem>>, vector<4x4x128xbf16>
    %c1_231 = arith.constant 1 : index
    %c0_232 = arith.constant 0 : index
    %c0_233 = arith.constant 0 : index
    %146 = vector.load %arg22[%c1_231, %c0_232, %c0_233] : memref<6x6x128xbf16, #tpu.memory_space<vmem>>, vector<4x4x128xbf16>
    %c1_234 = arith.constant 1 : index
    %c1_235 = arith.constant 1 : index
    %c0_236 = arith.constant 0 : index
    %147 = vector.load %arg22[%c1_234, %c1_235, %c0_236] : memref<6x6x128xbf16, #tpu.memory_space<vmem>>, vector<4x4x128xbf16>
    %c1_237 = arith.constant 1 : index
    %c2_238 = arith.constant 2 : index
    %c0_239 = arith.constant 0 : index
    %148 = vector.load %arg22[%c1_237, %c2_238, %c0_239] : memref<6x6x128xbf16, #tpu.memory_space<vmem>>, vector<4x4x128xbf16>
    %c2_240 = arith.constant 2 : index
    %c0_241 = arith.constant 0 : index
    %c0_242 = arith.constant 0 : index
    %149 = vector.load %arg22[%c2_240, %c0_241, %c0_242] : memref<6x6x128xbf16, #tpu.memory_space<vmem>>, vector<4x4x128xbf16>
    %c2_243 = arith.constant 2 : index
    %c1_244 = arith.constant 1 : index
    %c0_245 = arith.constant 0 : index
    %150 = vector.load %arg22[%c2_243, %c1_244, %c0_245] : memref<6x6x128xbf16, #tpu.memory_space<vmem>>, vector<4x4x128xbf16>
    %c2_246 = arith.constant 2 : index
    %c2_247 = arith.constant 2 : index
    %c0_248 = arith.constant 0 : index
    %151 = vector.load %arg22[%c2_246, %c2_247, %c0_248] : memref<6x6x128xbf16, #tpu.memory_space<vmem>>, vector<4x4x128xbf16>
    %152 = tpu.concatenate %143, %144, %145, %146, %147, %148, %149, %150, %151 in 2 : vector<4x4x128xbf16>, vector<4x4x128xbf16>, vector<4x4x128xbf16>, vector<4x4x128xbf16>, vector<4x4x128xbf16>, vector<4x4x128xbf16>, vector<4x4x128xbf16>, vector<4x4x128xbf16>, vector<4x4x128xbf16> -> vector<4x4x1152xbf16>
    %153 = vector.shape_cast %152 : vector<4x4x1152xbf16> to vector<16x1152xbf16>
    %c0_249 = arith.constant 0 : index
    %c0_250 = arith.constant 0 : index
    %154 = vector.load %arg12[%c0_249, %c0_250] : memref<1152x64xbf16, #tpu.memory_space<vmem>>, vector<1152x64xbf16>
    %cst_251 = arith.constant dense<0.000000e+00> : vector<16x64xf32>
    %155 = tpu.matmul %153, %154, %cst_251 {dimension_numbers = #tpu.dot_dimension_numbers<[1], [0], [0], [1], [0, 0, 1, 1], [], []>} : vector<16x1152xbf16>, vector<1152x64xbf16>, vector<16x64xf32> -> vector<16x64xf32>
    %c0_252 = arith.constant 0 : index
    %c0_253 = arith.constant 0 : index
    %c0_254 = arith.constant 0 : index
    %156 = vector.load %arg23[%c0_252, %c0_253, %c0_254] : memref<6x6x128xbf16, #tpu.memory_space<vmem>>, vector<4x4x128xbf16>
    %c0_255 = arith.constant 0 : index
    %c1_256 = arith.constant 1 : index
    %c0_257 = arith.constant 0 : index
    %157 = vector.load %arg23[%c0_255, %c1_256, %c0_257] : memref<6x6x128xbf16, #tpu.memory_space<vmem>>, vector<4x4x128xbf16>
    %c0_258 = arith.constant 0 : index
    %c2_259 = arith.constant 2 : index
    %c0_260 = arith.constant 0 : index
    %158 = vector.load %arg23[%c0_258, %c2_259, %c0_260] : memref<6x6x128xbf16, #tpu.memory_space<vmem>>, vector<4x4x128xbf16>
    %c1_261 = arith.constant 1 : index
    %c0_262 = arith.constant 0 : index
    %c0_263 = arith.constant 0 : index
    %159 = vector.load %arg23[%c1_261, %c0_262, %c0_263] : memref<6x6x128xbf16, #tpu.memory_space<vmem>>, vector<4x4x128xbf16>
    %c1_264 = arith.constant 1 : index
    %c1_265 = arith.constant 1 : index
    %c0_266 = arith.constant 0 : index
    %160 = vector.load %arg23[%c1_264, %c1_265, %c0_266] : memref<6x6x128xbf16, #tpu.memory_space<vmem>>, vector<4x4x128xbf16>
    %c1_267 = arith.constant 1 : index
    %c2_268 = arith.constant 2 : index
    %c0_269 = arith.constant 0 : index
    %161 = vector.load %arg23[%c1_267, %c2_268, %c0_269] : memref<6x6x128xbf16, #tpu.memory_space<vmem>>, vector<4x4x128xbf16>
    %c2_270 = arith.constant 2 : index
    %c0_271 = arith.constant 0 : index
    %c0_272 = arith.constant 0 : index
    %162 = vector.load %arg23[%c2_270, %c0_271, %c0_272] : memref<6x6x128xbf16, #tpu.memory_space<vmem>>, vector<4x4x128xbf16>
    %c2_273 = arith.constant 2 : index
    %c1_274 = arith.constant 1 : index
    %c0_275 = arith.constant 0 : index
    %163 = vector.load %arg23[%c2_273, %c1_274, %c0_275] : memref<6x6x128xbf16, #tpu.memory_space<vmem>>, vector<4x4x128xbf16>
    %c2_276 = arith.constant 2 : index
    %c2_277 = arith.constant 2 : index
    %c0_278 = arith.constant 0 : index
    %164 = vector.load %arg23[%c2_276, %c2_277, %c0_278] : memref<6x6x128xbf16, #tpu.memory_space<vmem>>, vector<4x4x128xbf16>
    %165 = tpu.concatenate %156, %157, %158, %159, %160, %161, %162, %163, %164 in 2 : vector<4x4x128xbf16>, vector<4x4x128xbf16>, vector<4x4x128xbf16>, vector<4x4x128xbf16>, vector<4x4x128xbf16>, vector<4x4x128xbf16>, vector<4x4x128xbf16>, vector<4x4x128xbf16>, vector<4x4x128xbf16> -> vector<4x4x1152xbf16>
    %166 = vector.shape_cast %165 : vector<4x4x1152xbf16> to vector<16x1152xbf16>
    %c0_279 = arith.constant 0 : index
    %c0_280 = arith.constant 0 : index
    %167 = vector.load %arg13[%c0_279, %c0_280] : memref<1152x64xbf16, #tpu.memory_space<vmem>>, vector<1152x64xbf16>
    %cst_281 = arith.constant dense<0.000000e+00> : vector<16x64xf32>
    %168 = tpu.matmul %166, %167, %cst_281 {dimension_numbers = #tpu.dot_dimension_numbers<[1], [0], [0], [1], [0, 0, 1, 1], [], []>} : vector<16x1152xbf16>, vector<1152x64xbf16>, vector<16x64xf32> -> vector<16x64xf32>
    %169 = arith.addf %155, %168 : vector<16x64xf32>
    %c0_282 = arith.constant 0 : index
    %c0_283 = arith.constant 0 : index
    %170 = vector.load %arg14[%c0_282, %c0_283] : memref<1x64xf32, #tpu.memory_space<vmem>>, vector<1x64xf32>
    %171 = vector.broadcast %170 : vector<1x64xf32> to vector<16x64xf32>
    %172 = arith.addf %169, %171 : vector<16x64xf32>
    %cst_284 = arith.constant 0.000000e+00 : f32
    %173 = vector.broadcast %cst_284 : f32 to vector<16x64xf32>
    %174 = arith.maximumf %172, %173 : vector<16x64xf32>
    %175 = arith.truncf %174 : vector<16x64xf32> to vector<16x64xbf16>
    %c0_285 = arith.constant 0 : index
    %c0_286 = arith.constant 0 : index
    %176 = vector.load %arg15[%c0_285, %c0_286] : memref<64x128xbf16, #tpu.memory_space<vmem>>, vector<64x128xbf16>
    %cst_287 = arith.constant dense<0.000000e+00> : vector<16x128xf32>
    %177 = tpu.matmul %175, %176, %cst_287 {dimension_numbers = #tpu.dot_dimension_numbers<[1], [0], [0], [1], [0, 0, 1, 1], [], []>} : vector<16x64xbf16>, vector<64x128xbf16>, vector<16x128xf32> -> vector<16x128xf32>
    %c0_288 = arith.constant 0 : index
    %c0_289 = arith.constant 0 : index
    %178 = vector.load %arg16[%c0_288, %c0_289] : memref<1x128xf32, #tpu.memory_space<vmem>>, vector<1x128xf32>
    %179 = vector.broadcast %178 : vector<1x128xf32> to vector<16x128xf32>
    %180 = arith.addf %177, %179 : vector<16x128xf32>
    %181 = vector.shape_cast %180 : vector<16x128xf32> to vector<1x16x128xf32>
    %c0_290 = arith.constant 0 : index
    %c0_291 = arith.constant 0 : index
    %c0_292 = arith.constant 0 : index
    %182 = vector.load %arg18[%c0_290, %c0_291, %c0_292] : memref<1x16x128xf32, #tpu.memory_space<vmem>>, vector<1x16x128xf32>
    tpu.vector_store %arg18[%c0_290, %c0_291, %c0_292], %181 {strides = array<i32>} : memref<1x16x128xf32, #tpu.memory_space<vmem>>, vector<1x16x128xf32>,
    return
  }
  func.func @transform_0(%arg0: i32) -> (i32, i32, i32, i32) {
    %c0_i32 = arith.constant 0 : i32
    %c0_i32_0 = arith.constant 0 : i32
    %c0_i32_1 = arith.constant 0 : i32
    %c0_i32_2 = arith.constant 0 : i32
    return %arg0, %c0_i32, %c0_i32_0, %c0_i32_1 : i32, i32, i32, i32
  }
  func.func @transform_1(%arg0: i32) -> (i32, i32) {
    %c0_i32 = arith.constant 0 : i32
    %c0_i32_0 = arith.constant 0 : i32
    %c0_i32_1 = arith.constant 0 : i32
    return %c0_i32, %c0_i32_0 : i32, i32
  }
  func.func @transform_2(%arg0: i32) -> (i32, i32) {
    %c0_i32 = arith.constant 0 : i32
    %c0_i32_0 = arith.constant 0 : i32
    %c0_i32_1 = arith.constant 0 : i32
    return %c0_i32, %c0_i32_0 : i32, i32
  }
  func.func @transform_3(%arg0: i32) -> (i32, i32) {
    %c0_i32 = arith.constant 0 : i32
    %c0_i32_0 = arith.constant 0 : i32
    %c0_i32_1 = arith.constant 0 : i32
    return %c0_i32, %c0_i32_0 : i32, i32
  }
  func.func @transform_4(%arg0: i32) -> (i32, i32) {
    %c0_i32 = arith.constant 0 : i32
    %c0_i32_0 = arith.constant 0 : i32
    %c0_i32_1 = arith.constant 0 : i32
    return %c0_i32, %c0_i32_0 : i32, i32
  }
  func.func @transform_5(%arg0: i32) -> (i32, i32) {
    %c0_i32 = arith.constant 0 : i32
    %c0_i32_0 = arith.constant 0 : i32
    %c0_i32_1 = arith.constant 0 : i32
    return %c0_i32, %c0_i32_0 : i32, i32
  }
  func.func @transform_6(%arg0: i32) -> (i32, i32) {
    %c0_i32 = arith.constant 0 : i32
    %c0_i32_0 = arith.constant 0 : i32
    %c0_i32_1 = arith.constant 0 : i32
    return %c0_i32, %c0_i32_0 : i32, i32
  }
  func.func @transform_7(%arg0: i32) -> (i32, i32) {
    %c0_i32 = arith.constant 0 : i32
    %c0_i32_0 = arith.constant 0 : i32
    %c0_i32_1 = arith.constant 0 : i32
    return %c0_i32, %c0_i32_0 : i32, i32
  }
  func.func @transform_8(%arg0: i32) -> (i32, i32) {
    %c0_i32 = arith.constant 0 : i32
    %c0_i32_0 = arith.constant 0 : i32
    %c0_i32_1 = arith.constant 0 : i32
    return %c0_i32, %c0_i32_0 : i32, i32
  }
  func.func @transform_9(%arg0: i32) -> (i32, i32) {
    %c0_i32 = arith.constant 0 : i32
    %c0_i32_0 = arith.constant 0 : i32
    %c0_i32_1 = arith.constant 0 : i32
    return %c0_i32, %c0_i32_0 : i32, i32
  }
  func.func @transform_10(%arg0: i32) -> (i32, i32) {
    %c0_i32 = arith.constant 0 : i32
    %c0_i32_0 = arith.constant 0 : i32
    %c0_i32_1 = arith.constant 0 : i32
    return %c0_i32, %c0_i32_0 : i32, i32
  }
  func.func @transform_11(%arg0: i32) -> (i32, i32) {
    %c0_i32 = arith.constant 0 : i32
    %c0_i32_0 = arith.constant 0 : i32
    %c0_i32_1 = arith.constant 0 : i32
    return %c0_i32, %c0_i32_0 : i32, i32
  }
  func.func @transform_12(%arg0: i32) -> (i32, i32) {
    %c0_i32 = arith.constant 0 : i32
    %c0_i32_0 = arith.constant 0 : i32
    %c0_i32_1 = arith.constant 0 : i32
    return %c0_i32, %c0_i32_0 : i32, i32
  }
  func.func @transform_13(%arg0: i32) -> (i32, i32) {
    %c0_i32 = arith.constant 0 : i32
    %c0_i32_0 = arith.constant 0 : i32
    %c0_i32_1 = arith.constant 0 : i32
    return %c0_i32, %c0_i32_0 : i32, i32
  }
  func.func @transform_14(%arg0: i32) -> (i32, i32) {
    %c0_i32 = arith.constant 0 : i32
    %c0_i32_0 = arith.constant 0 : i32
    %c0_i32_1 = arith.constant 0 : i32
    return %c0_i32, %c0_i32_0 : i32, i32
  }
  func.func @transform_15(%arg0: i32) -> (i32, i32) {
    %c0_i32 = arith.constant 0 : i32
    %c0_i32_0 = arith.constant 0 : i32
    %c0_i32_1 = arith.constant 0 : i32
    return %c0_i32, %c0_i32_0 : i32, i32
  }
  func.func @transform_16(%arg0: i32) -> (i32, i32, i32) {
    %c0_i32 = arith.constant 0 : i32
    %c0_i32_0 = arith.constant 0 : i32
    %c0_i32_1 = arith.constant 0 : i32
    return %arg0, %c0_i32, %c0_i32_0 : i32, i32, i32
  }
  func.func @transform_17(%arg0: i32) -> (i32, i32, i32) {
    %c0_i32 = arith.constant 0 : i32
    %c0_i32_0 = arith.constant 0 : i32
    %c0_i32_1 = arith.constant 0 : i32
    return %arg0, %c0_i32, %c0_i32_0 : i32, i32, i32
  }
}

</mosaic_0001>

<bundles_post_ra>
// kernel: landmark_cnn_forward.1
= control target key start
LH: loop header
LB: loop body
LE: loop exit
PB: predicated region body
PF: predicated region fallthrough
CT: control target
= control target key end

     0   :  { %s14258_s24 = smov 0   ;;  %s17535_s0 = inlined_call_operand.vmem [shape: bf16[2,16,16,3], index: 0, kind: input, shape index: {}]   ;;  %s17536_s1 = inlined_call_operand.vmem [shape: bf16[27,32], index: 1, kind: input, shape index: {}]   ;;  %s17537_s2 = inlined_call_operand.vmem [shape: f32[1,32], index: 2, kind: input, shape index: {}]   ;;  %s17538_s3 = inlined_call_operand.vmem [shape: bf16[288,64], index: 3, kind: input, shape index: {}]   ;;  %s17539_s4 = inlined_call_operand.vmem [shape: f32[1,64], index: 4, kind: input, shape index: {}]   ;;  %s17540_s5 = inlined_call_operand.vmem [shape: bf16[576,128], index: 5, kind: input, shape index: {}]   ;;  %s17541_s6 = inlined_call_operand.vmem [shape: f32[1,128], index: 6, kind: input, shape index: {}]   ;;  %s17542_s7 = inlined_call_operand.vmem [shape: bf16[1152,64], index: 7, kind: input, shape index: {}]   ;;  %s17543_s8 = inlined_call_operand.vmem [shape: f32[1,64], index: 8, kind: input, shape index: {}]   ;;  %s17544_s9 = inlined_call_operand.vmem [shape: bf16[64,128], index: 9, kind: input, shape index: {}]   ;;  %s17545_s10 = inlined_call_operand.vmem [shape: f32[1,128], index: 10, kind: input, shape index: {}]   ;;  %s17546_s11 = inlined_call_operand.vmem [shape: bf16[1152,64], index: 11, kind: input, shape index: {}]   ;;  %s17547_s12 = inlined_call_operand.vmem [shape: bf16[1152,64], index: 12, kind: input, shape index: {}]   ;;  %s17548_s13 = inlined_call_operand.vmem [shape: f32[1,64], index: 13, kind: input, shape index: {}]   ;;  %s17549_s14 = inlined_call_operand.vmem [shape: bf16[64,128], index: 14, kind: input, shape index: {}]   ;;  %s17550_s15 = inlined_call_operand.vmem [shape: f32[1,128], index: 15, kind: input, shape index: {}]   ;;  %s17551_s16 = inlined_call_operand.vmem [shape: f32[2,16,128], index: 16, kind: output, shape index: {0}]   ;;  %s17552_s17 = inlined_call_operand.vmem [shape: f32[2,16,128], index: 17, kind: output, shape index: {1}]  }
   0x1   :  { %17556 = sst [smem:[#allocation7_spill]] %s17535_s0 }
   0x2   :  { %17557 = sst [smem:[#allocation8_spill]] %s17536_s1 }
   0x3 LB: > { %s11943_s25 = sadd.s32 4294967295, %s14150_s24   ;;  %p11947_p0 = scmp.ge.s32.totalorder %s14150_s24, 1  ;;  %s14150_s24 = sphi %s14258_s24, %s28_s24  }
   0x4   : > { %p490_p1 = scmp.lt.s32.totalorder %s14150_s24, 3 }
   0x6   : > { %p491_p2 = pnand %p11947_p0, %p490_p1 }
   0x7   : > { %vm595_vm0 = vcmask (!%p491_p2), 19456   ;;  %vm598_vm1 = vcmask (!%p491_p2), 16384   ;;  %vm17554_vm2 = vsmask.f32 (!%p491_p2), 256  ;;  %v14152_v0 = vmov (!%p491_p2), 0   ;;  %p547_p3 = scmp.lt.s32.totalorder (!%p491_p2), %s11943_s25, 1 }
   0x8   : > { %494 = sbr.rel (%p491_p2) target bundleno = 2613 (0xa35), region = 84  ;;  %596 = vst.msk [vmem:[#allocation2] sm:$0xf] (!%p491_p2), %vm595_vm0, %v14152_v0  ;;  %597 = vst.msk [vmem:[#allocation2 + $0x4] sm:$0xf] (!%p491_p2), %vm595_vm0, %v14152_v0  ;;  %s17562_s29 = sld [smem:[#allocation7_spill]] (!%p491_p2) }
   0x9   : > { %599 = vst.msk [vmem:[#allocation2 + $0x8] sm:$0x1] (!%p491_p2), %vm598_vm1, %v14152_v0  ;;  %vm14274_vm3 = vmand (!%p491_p2), %vm598_vm1, %vm17554_vm2  ;;  %vm17555_vm4 = vsmask.f32 (!%p491_p2), 7938  ;;  %v610_v2 = vld [vmem:[#allocation2 + $0xc] sm:$0x1] (!%p491_p2) }
   0xa   : > { %601 = vst.msk [vmem:[#allocation2 + $0xcc] sm:$0xf] (!%p491_p2), %vm595_vm0, %v14152_v0  ;;  %602 = vst.msk [vmem:[#allocation2 + $0xd0] sm:$0xf] (!%p491_p2), %vm595_vm0, %v14152_v0  ;;  %v611_v3 = vsel (!%p491_p2), %vm14274_vm3, 0, %v610_v2  ;;  %vm1748_vm8 = vcmask (!%p491_p2), 1046528  }
   0xb   : > { %603 = vst.msk [vmem:[#allocation2 + $0xd4] sm:$0x1] (!%p491_p2), %vm598_vm1, %v14152_v0  ;;  %7672 = vst [vmem:[#allocation5] sm:$0x7] (!%p491_p2), %v14152_v0  ;;  %v613_v4 = vld [vmem:[#allocation2 + $0x18] sm:$0x1] (!%p491_p2) }
   0xc   : > { %7674 = vst [vmem:[#allocation5 + $0x14] sm:$0x7] (!%p491_p2), %v14152_v0  ;;  %9139 = vst [vmem:[#allocation6] sm:$0x7] (!%p491_p2), %v14152_v0  ;;  %v614_v5 = vsel (!%p491_p2), %vm14274_vm3, 0, %v613_v4  ;;  %s14153_s30 = smov (!%p491_p2), 6  }
   0xd   : > { %9141 = vst [vmem:[#allocation6 + $0x14] sm:$0x7] (!%p491_p2), %v14152_v0  ;;  %612 = vst [vmem:[#allocation2 + $0xc] sm:$0x1] (!%p491_p2), %v611_v3  ;;  %v616_v6 = vld [vmem:[#allocation2 + $0x24] sm:$0x1] (!%p491_p2) }
   0xe   : > { %vm14296_vm5 = vmand (!%p491_p2), %vm598_vm1, %vm17555_vm4  ;;  %615 = vst [vmem:[#allocation2 + $0x18] sm:$0x1] (!%p491_p2), %v614_v5  ;;  %v617_v8 = vsel (!%p491_p2), %vm14274_vm3, 0, %v616_v6  ;;  %v666_v9 = vld [vmem:[#allocation2 + $0x14] sm:$0x1] (!%p491_p2)  ;;  %s14154_s18 = smov (!%p491_p2), 9  }
   0xf   : > { %s17591_s25 = smov (!%p547_p3, %s11943_s25), 1  ;;  %618 = vst [vmem:[#allocation2 + $0x24] sm:$0x1] %v617_v8  ;;  %v667_v10 = vsel %vm14296_vm5, 0, %v666_v9  ;;  %v669_v11 = vld [vmem:[#allocation2 + $0x20] sm:$0x1]  ;;  %vm14324_vm7 = vmand %vm595_vm0, %vm17555_vm4 }
  0x10   : > { %s12870_s26 = sshll.u32 %s17591_s25, 7  ;;  %vm717_vm6 = vsmask.f32 4368  ;;  %668 = vst [vmem:[#allocation2 + $0x14] sm:$0x1] %v667_v10  ;;  %v670_v12 = vsel %vm14296_vm5, 0, %v669_v11 }
  0x11   : > { %s14308_s0 = scalar_lea.vmem %s17562_s29, %s12870_s26  ;;  %v672_v13 = vld [vmem:[#allocation2 + $0x2c] sm:$0x1]  ;;  %671 = vst [vmem:[#allocation2 + $0x20] sm:$0x1] %v670_v12  ;;  %v663_v17 = vld [vmem:[#allocation2 + $0x8] sm:$0x1]  ;;  %vm14330_vm9 = vmor %vm17554_vm2, %vm717_vm6 }
  0x12   : > { %v563_v14 = vld [vmem:[%s14308_s0] sm:$0xf]  ;;  %v564_v15 = vld [vmem:[%s14308_s0 + $0x4] sm:$0xf]  ;;  %v565_v16 = vld [vmem:[%s14308_s0 + $0x8] sm:$0xf] }
  0x13   : > { %v1155_v18 = vld [vmem:[#allocation2 + $0x4] sm:$0xf]  ;;  %v1202_v19 = vld [vmem:[#allocation2] sm:$0xe]  ;;  %v664_v20 = vsel %vm14296_vm5, 0, %v663_v17  ;;  %v720_v22 = vshrl.u32 %v563_v14, 16 }
  0x14   : > { %v607_v21 = vld [vmem:[#allocation2] sm:$0x1]  ;;  %v723_v23 = vshll.u32 %v563_v14, 16  ;;  %665 = vst [vmem:[#allocation2 + $0x8] sm:$0x1] %v664_v20  ;;  %v728_v25 = vshrl.u32 %v564_v15, 16  ;;  %v11986_v38 = vcombine.low %v1202_v19, %v1155_v18 }
  0x15   : > { %v608_v24 = vsel %vm14274_vm3, 0, %v607_v21  ;;  %v731_v26 = vshll.u32 %v564_v15, 16  ;;  %v1042_v27 = vld [vmem:[#allocation2 + $0xc] sm:$0xf]  ;;  %v737_v28 = vshrl.u32 %v565_v16, 16  ;;  %v722_v29 = vrot.slane %v720_v22, 7 }
  0x16   : > { %609 = vst [vmem:[#allocation2] sm:$0x1] %v608_v24  ;;  %v566_v30 = vld [vmem:[%s14308_s0 + $0xc] sm:$0xf]  ;;  %v740_v31 = vshll.u32 %v565_v16, 16  ;;  %v673_v32 = vsel %vm14296_vm5, 0, %v672_v13 }
  0x17   : > { %v730_v34 = vrot.slane %v728_v25, 7  ;;  %v739_v35 = vrot.slane %v737_v28, 7  ;;  %v745_v36 = vshrl.u32 %v566_v30, 16  ;;  %v1049_v37 = vld [vmem:[#allocation2 + $0x18] sm:$0xf]  ;;  %v725_v40 = vor.u32 %v723_v23, %v722_v29  ;;  %s14155_s19 = smov 18  }
  0x18   : > { %674 = vst [vmem:[#allocation2 + $0x2c] sm:$0x1] %v673_v32  ;;  %v726_v41 = vrot.slane %v722_v29, 4  ;;  %v748_v42 = vshll.u32 %v566_v30, 16  ;;  %v567_v43 = vld [vmem:[%s14308_s0 + $0x10] sm:$0xf] }
  0x19   : > { %v568_v44 = vld [vmem:[%s14308_s0 + $0x14] sm:$0xf]  ;;  %v733_v45 = vor.u32 %v731_v26, %v730_v34  ;;  %v735_v46 = vrot.slane %v730_v34, 4  ;;  %v742_v47 = vor.u32 %v740_v31, %v739_v35  ;;  %v743_v48 = vrot.slane %v739_v35, 4  ;;  %v619_v54 = vld [vmem:[#allocation2 + $0x30] sm:$0x1] }
  0x1a   : > { %v1046_v49 = vld [vmem:[#allocation2 + $0x14] sm:$0x1]  ;;  %v1043_v50 = vsel %vm14324_vm7, %v725_v40, %v1042_v27  ;;  %v747_v51 = vrot.slane %v745_v36, 7  ;;  %v754_v52 = vshrl.u32 %v567_v43, 16  ;;  %v757_v53 = vshll.u32 %v567_v43, 16  ;;  %s14156_s1 = smov 3  }
  0x1b   : > { %v734_v55 = vsel %vm14330_vm9, %v726_v41, %v733_v45  ;;  %1044 = vst [vmem:[#allocation2 + $0xc] sm:$0xf] %v1043_v50  ;;  %v1050_v56 = vsel %vm14324_vm7, %v742_v47, %v1049_v37  ;;  %v762_v57 = vshrl.u32 %v568_v44, 16  ;;  %v765_v58 = vshll.u32 %v568_v44, 16  ;;  %v1056_v62 = vld [vmem:[#allocation2 + $0x24] sm:$0xf] }
  0x1c   : > { %v13551_v59 = vld [vmem:[#allocation2 + $0x8] ss:$0 sps:$4 sm:$0x11]   ;;  %v1749_v60 = vrot.slane %v11986_v38, 1  ;;  %1045 = vst.msk [vmem:[#allocation2 + $0x10] sm:$0xf] %vm595_vm0, %v734_v55  ;;  %v750_v61 = vor.u32 %v748_v42, %v747_v51  ;;  %v1047_v63 = vsel %vm14274_vm3, %v735_v46, %v1046_v49 }
  0x1d   : > { %1051 = vst [vmem:[#allocation2 + $0x18] sm:$0xf] %v1050_v56  ;;  %v1154_v2 = vld [vmem:[#allocation2] sm:$0xf]  ;;  %v752_v3 = vrot.slane %v747_v51, 4  ;;  %v756_v4 = vrot.slane %v754_v52, 7 }
  0x1e   : > { %v764_v5 = vrot.slane %v762_v57, 7  ;;  %1048 = vst [vmem:[#allocation2 + $0x14] sm:$0x1] %v1047_v63  ;;  %v620_v6 = vsel %vm14274_vm3, 0, %v619_v54  ;;  %v1750_v8 = vrot.slane %v13551_v59, 1  ;;  %v14347_v9 = vcombine.low %v1154_v2, %v1155_v18  ;;  %s14157_s20 = smov 15  }
  0x1f   : > { %v751_v10 = vsel %vm14330_vm9, %v743_v48, %v750_v61  ;;  %v1053_v11 = vld [vmem:[#allocation2 + $0x20] sm:$0x1]  ;;  %v1060_v12 = vld [vmem:[#allocation2 + $0x2c] sm:$0x1]  ;;  %621 = vst [vmem:[#allocation2 + $0x30] sm:$0x1] %v620_v6  ;;  %v759_v13 = vor.u32 %v757_v53, %v756_v4 }
  0x20   : > { %1052 = vst.msk [vmem:[#allocation2 + $0x1c] sm:$0xf] %vm595_vm0, %v751_v10  ;;  %v760_v14 = vrot.slane %v756_v4, 4  ;;  %v767_v15 = vor.u32 %v765_v58, %v764_v5  ;;  %v769_v16 = vrot.slane %v764_v5, 4  ;;  %v1751_v17 = vsel %vm1748_vm8, %v1749_v60, %v1750_v8  ;;  %v14366_v30 = vld [vmem:[%s14308_s0 + $0x18] sm:$0xf] }
  0x21   : > { %vm1475_vm10 = vsmask.f32 7424  ;;  %v1479_v19 = vshll.u32 %v14347_v9, 16  ;;  %1797 = vrot.lane.b32.xlu1 %v1751_v17, %s14153_s30  ;;  %v1057_v20 = vsel %vm14324_vm7, %v759_v13, %v1056_v62  ;;  %v1054_v21 = vsel %vm14274_vm3, %v752_v3, %v1053_v11  ;;  %s14158_s21 = smov 24   ;;  %s17567_s26 = sld [smem:[#allocation8_spill]] }
  0x22   : > { %v768_v18 = vsel %vm14330_vm9, %v760_v14, %v767_v15  ;;  %v1061_v22 = vsel %vm14274_vm3, %v769_v16, %v1060_v12  ;;  %v1218_v23 = vld [vmem:[#allocation2 + $0xc] sm:$0xf]  ;;  %1058 = vst [vmem:[#allocation2 + $0x24] sm:$0xf] %v1057_v20  ;;  %v1484_v25 = vshll.u32 %v13551_v59, 16  ;;  %v1477_v28 = vshrl.u32 %v14347_v9, 16 }
  0x23   : > { %v1266_v24 = vld [vmem:[#allocation2 + $0xc] sm:$0xe]  ;;  %1059 = vst.msk [vmem:[#allocation2 + $0x28] sm:$0xf] %vm595_vm0, %v768_v18  ;;  %1055 = vst [vmem:[#allocation2 + $0x20] sm:$0x1] %v1054_v21 }
  0x24   : > { %1062 = vst [vmem:[#allocation2 + $0x2c] sm:$0x1] %v1061_v22  ;;  %v1219_v26 = vld [vmem:[#allocation2 + $0x10] sm:$0xf]  ;;  %v1220_v27 = vld [vmem:[#allocation2 + $0x18] sm:$0xf] }
  0x25   : > { %v1481_v29 = vrot.slane %v1479_v19, 1  ;;  %v14368_v31 = vcombine.low %v1218_v23, %v1219_v26  ;;  %v1267_v32 = vld [vmem:[#allocation2 + $0x18] sm:$0xe]  ;;  %v1157_v35 = vld [vmem:[#allocation2 + $0x10] sm:$0xf]  ;;  %v12034_v38 = vcombine.low %v1266_v24, %v1219_v26  ;;  %v1486_v47 = vrot.slane %v1484_v25, 1 }
  0x26   : > { %v1283_v34 = vld [vmem:[#allocation2 + $0x18] sm:$0xf]  ;;  %v1203_v37 = vld [vmem:[#allocation2 + $0xc] sm:$0xe]  ;;  %v771_v51 = vshrl.u32 %v14366_v30, 16  ;;  %s14159_s27 = smov 12  }
  0x27   : > { %v1331_v36 = vld [vmem:[#allocation2 + $0x18] sm:$0xe]  ;;  %1909 = vrot.lane.b32.xlu0 %v14368_v31, %s14154_s18  ;;  %v1221_v40 = vld [vmem:[#allocation2 + $0x1c] sm:$0xf]  ;;  %v11987_v42 = vcombine.low %v1203_v37, %v1157_v35  ;;  %v1156_v43 = vld [vmem:[#allocation2 + $0xc] sm:$0xf]  ;;  %v1482_v46 = vor.u32 %v1481_v29, %v1477_v28 }
  0x28   : > { %v1284_v41 = vld [vmem:[#allocation2 + $0x1c] sm:$0xf]  ;;  %v12003_v44 = vcombine.low %v1220_v27, %v1221_v40  ;;  %v13561_v48 = vld [vmem:[#allocation2 + $0x14] ss:$0 sps:$4 sm:$0x11]   ;;  %v12035_v49 = vcombine.low %v1267_v32, %v1221_v40  ;;  %v1992_v52 = vshll.u32 %v14368_v31, 16  ;;  %v14381_v57 = vcombine.low %v1156_v43, %v1157_v35 }
  0x29   : > { %v14372_v45 = vcombine.low %v1283_v34, %v1284_v41  ;;  %v14374_v50 = vld [vmem:[#allocation2 + $0x14] ss:$0 sps:$4 sm:$0x11]   ;;  %v12082_v54 = vcombine.low %v1331_v36, %v1284_v41  ;;  %v1285_v55 = vld [vmem:[#allocation2 + $0x24] sm:$0xf]  ;;  %v1752_v59 = vrot.slane %v11987_v42, 1  ;;  %v1487_v62 = vsel %vm1475_vm10, %v1482_v46, %v1486_v47 }
  0x2a   : > { %1911 = vrot.lane.b32.xlu1 %v12003_v44, %s14154_s18  ;;  %v2004_v53 = vshll.u32 %v12003_v44, 16  ;;  %v14379_v56 = vld [vmem:[#allocation2 + $0x28] sm:$0xf]  ;;  %v1753_v60 = vrot.slane %v13561_v48, 1  ;;  %v2261_v61 = vrot.slane %v12034_v38, 1  ;;  %v2262_v63 = vrot.slane %v14374_v50, 1 }
  0x2b   : > { %2421 = vrot.lane.b32.xlu0 %v14372_v45, %s14155_s19  ;;  %v12051_v58 = vcombine.low %v1285_v55, %v14379_v56  ;;  %v13565_v2 = vld [vmem:[#allocation2 + $0x20] ss:$0 sps:$4 sm:$0x11]   ;;  %v2264_v4 = vrot.slane %v12035_v49, 1  ;;  %v1489_v6 = vshrl.u32 %v14381_v57, 16  ;;  %v2773_v8 = vrot.slane %v12082_v54, 1 }
  0x2c   : > { %v14388_v5 = vld [vmem:[#allocation2 + $0x20] ss:$0 sps:$4 sm:$0x11]   ;;  %v2002_v10 = vshrl.u32 %v12003_v44, 16  ;;  %v2006_v11 = vrot.slane %v2004_v53, 1  ;;  %v2009_v12 = vshll.u32 %v13565_v2, 16  ;;  %v1754_v13 = vsel %vm1748_vm8, %v1752_v59, %v1753_v60 }
  0x2d   : > { %v2516_v3 = vshll.u32 %v12051_v58, 16  ;;  %v2265_v14 = vrot.slane %v13565_v2, 1  ;;  %v1491_v15 = vshll.u32 %v14381_v57, 16  ;;  %v1496_v16 = vshll.u32 %v13561_v48, 16  ;;  %v1158_v22 = vld [vmem:[#allocation2 + $0x18] sm:$0xf] }
  0x2e   : > { %2423 = vrot.lane.b32.xlu1 %v12051_v58, %s14155_s19  ;;  %v14395_v17 = vld [vmem:[#allocation2 + $0x2c] ss:$0 sps:$4 sm:$0x11]   ;;  %v2263_v19 = vsel %vm1748_vm8, %v2261_v61, %v2262_v63  ;;  %v2774_v18 = vrot.slane %v14388_v5, 1  ;;  %v2007_v20 = vor.u32 %v2006_v11, %v2002_v10  ;;  %v2011_v21 = vrot.slane %v2009_v12, 1  ;;  %s14160_s28 = smov 21  }
  0x2f   : > { %1668 = vrot.lane.b32.xlu0 %v1487_v62, %s14156_s1  ;;  %v14399_v23 = vld [vmem:[#allocation2 + $0x1c] sm:$0xf]  ;;  %v2504_v24 = vshll.u32 %v14372_v45, 16  ;;  %v1493_v25 = vrot.slane %v1491_v15, 1  ;;  %v2514_v26 = vshrl.u32 %v12051_v58, 16  ;;  %v2518_v27 = vrot.slane %v2516_v3, 1 }
  0x30   : > { %v2521_v28 = vshll.u32 %v14395_v17, 16  ;;  %v1990_v29 = vshrl.u32 %v14368_v31, 16  ;;  %v1994_v32 = vrot.slane %v1992_v52, 1  ;;  %v14405_v34 = vld [vmem:[#allocation2 + $0x20] ss:$0 sps:$4 sm:$0x11]   ;;  %v2266_v35 = vsel %vm1748_vm8, %v2264_v4, %v2265_v14 }
  0x31   : > { %v1498_v36 = vrot.slane %v1496_v16, 1  ;;  %v1997_v37 = vshll.u32 %v14374_v50, 16  ;;  %v14411_v38 = vcombine.low %v1158_v22, %v14399_v23  ;;  %v2775_v40 = vsel %vm1748_vm8, %v2773_v8, %v2774_v18  ;;  %v1160_v31 = vld [vmem:[#allocation2 + $0x24] sm:$0xf]  ;;  %v14415_v43 = vld [vmem:[#allocation2 + $0x28] sm:$0xf] }
  0x32   : > { %1799 = vrot.lane.b32.xlu1 %v1754_v13, %s14153_s30  ;;  %v2012_v41 = vsel %vm1475_vm10, %v2007_v20, %v2011_v21  ;;  %v1494_v42 = vor.u32 %v1493_v25, %v1489_v6  ;;  %v1332_v44 = vld [vmem:[#allocation2 + $0x24] sm:$0xe]  ;;  %v2519_v46 = vor.u32 %v2518_v27, %v2514_v26  ;;  %v2523_v47 = vrot.slane %v2521_v28, 1  ;;  %v14422_v55 = vld [vmem:[#allocation2 + $0x2c] ss:$0 sps:$4 sm:$0x11]  }
  0x33   : > { %2309 = vrot.lane.b32.xlu0 %v2263_v19, %s14157_s20  ;;  %v1503_v48 = vshll.u32 %v14411_v38, 16  ;;  %v1508_v49 = vshll.u32 %v14405_v34, 16  ;;  %v1995_v50 = vor.u32 %v1994_v32, %v1990_v29  ;;  %v1999_v52 = vrot.slane %v1997_v37, 1  ;;  %v570_v2 = vld [vmem:[%s14308_s0 + $0x1c] sm:$0xf]  ;;  %s12871_s29 = sshll.u32 %s17591_s25, 4 }
  0x34   : > { %v2502_v53 = vshrl.u32 %v14372_v45, 16  ;;  %v2509_v54 = vshll.u32 %v14388_v5, 16  ;;  %v1501_v58 = vshrl.u32 %v14411_v38, 16  ;;  %v2506_v60 = vrot.slane %v2504_v24, 1  ;;  %v13633_v45 = vld [vmem:[%s17567_s26] sm:$0xff]  }
  0x35   : > { %v1505_v59 = vrot.slane %v1503_v48, 1  ;;  %v14427_v61 = vcombine.low %v1160_v31, %v14415_v43  ;;  %v12083_v62 = vcombine.low %v1332_v44, %v14379_v56  ;;  %v1499_v63 = vsel %vm1475_vm10, %v1494_v42, %v1498_v36  ;;  %v1205_v5 = vld [vmem:[#allocation2 + $0x24] sm:$0xe]  ;;  %v1204_v12 = vld [vmem:[#allocation2 + $0x18] sm:$0xe]  ;;  %13383 = vmatprep.subr.bf16.mxu0 %v13633_v45 }
  0x36   : > { %2311 = vrot.lane.b32.xlu1 %v2266_v35, %s14157_s20  ;;  %v1510_v3 = vrot.slane %v1508_v49, 1  ;;  %v773_v6 = vrot.slane %v771_v51, 7  ;;  %v2524_v8 = vsel %vm1475_vm10, %v2519_v46, %v2523_v47  ;;  %v2000_v56 = vsel %vm1475_vm10, %v1995_v50, %v1999_v52  ;;  %v1222_v51 = vld [vmem:[#allocation2 + $0x24] sm:$0xf]  ;;  %v14444_v19 = vld [vmem:[#allocation2 + $0x28] sm:$0xf]  ;;  %13384 = vmatpush3.bf16.msra.mxu0 %v13633_v45 }
  0x37   : > { %2821 = vrot.lane.b32.xlu0 %v2775_v40, %s14158_s21  ;;  %v1515_v4 = vshll.u32 %v14427_v61, 16  ;;  %v2511_v10 = vrot.slane %v2509_v54, 1  ;;  %v1520_v11 = vshll.u32 %v14422_v55, 16  ;;  %v1506_v13 = vor.u32 %v1505_v59, %v1501_v58  ;;  %v675_v24 = vld [vmem:[#allocation2 + $0x38] sm:$0x1] }
  0x38   : > { %v2507_v14 = vor.u32 %v2506_v60, %v2502_v53  ;;  %v1513_v15 = vshrl.u32 %v14427_v61, 16  ;;  %v2776_v18 = vrot.slane %v12083_v62, 1  ;;  %v2777_v20 = vrot.slane %v14395_v17, 1  ;;  %v1063_v28 = vld [vmem:[#allocation2 + $0x30] sm:$0xf] }
  0x39   : > { %v1517_v16 = vrot.slane %v1515_v4, 1  ;;  %v774_v21 = vshll.u32 %v14366_v30, 16  ;;  %v779_v22 = vshrl.u32 %v570_v2, 16  ;;  %v11989_v25 = vcombine.low %v1205_v5, %v14415_v43  ;;  %v571_v40 = vld [vmem:[%s14308_s0 + $0x20] sm:$0xf] }
  0x3a   : > { %2183 = vrot.lane.b32.xlu1 %v2012_v41, %s14159_s27  ;;  %v11988_v26 = vcombine.low %v1204_v12, %v14399_v23  ;;  %v782_v27 = vshll.u32 %v570_v2, 16  ;;  %v777_v32 = vrot.slane %v773_v6, 4  ;;  %v14452_v17 = vcombine.low %v1222_v51, %v14444_v19  ;;  %v622_v41 = vld [vmem:[#allocation2 + $0x3c] sm:$0x1]  ;;  %v572_v46 = vld [vmem:[%s14308_s0 + $0x24] sm:$0xf] }
  0x3b   : > { %1670 = vrot.lane.b32.xlu0 %v1499_v63, %s14156_s1  ;;  %v776_v29 = vor.u32 %v774_v21, %v773_v6  ;;  %v781_v35 = vrot.slane %v779_v22, 7  ;;  %v1511_v30 = vsel %vm1475_vm10, %v1506_v13, %v1510_v3  ;;  %v1518_v36 = vor.u32 %v1517_v16, %v1513_v15  ;;  %v678_v47 = vld [vmem:[#allocation2 + $0x44] sm:$0x1]  ;;  %v625_v53 = vld [vmem:[#allocation2 + $0x48] sm:$0x1] }
  0x3c   : > { %v1522_v37 = vrot.slane %v1520_v11, 1  ;;  %v676_v23 = vsel %vm14296_vm5, 0, %v675_v24  ;;  %v2512_v42 = vsel %vm1475_vm10, %v2507_v14, %v2511_v10  ;;  %v2778_v31 = vsel %vm1748_vm8, %v2776_v18, %v2777_v20  ;;  %v573_v62 = vld [vmem:[%s14308_s0 + $0x28] sm:$0xf]  ;;  %v1268_v15 = vld [vmem:[#allocation2 + $0x24] sm:$0xe] }
  0x3d   : > { %v784_v43 = vor.u32 %v782_v27, %v781_v35  ;;  %v1064_v44 = vsel %vm14324_vm7, %v776_v29, %v1063_v28  ;;  %677 = vst [vmem:[#allocation2 + $0x38] sm:$0x1] %v676_v23  ;;  %v1758_v48 = vrot.slane %v11989_v25, 1  ;;  %v1759_v49 = vrot.slane %v14422_v55, 1 }
  0x3e   : > { %2695 = vrot.lane.b32.xlu1 %v2524_v8, %s14160_s28  ;;  %v1755_v50 = vrot.slane %v11988_v26, 1  ;;  %v1756_v52 = vrot.slane %v14405_v34, 1  ;;  %1065 = vst [vmem:[#allocation2 + $0x30] sm:$0xf] %v1064_v44  ;;  %v2016_v58 = vshll.u32 %v14452_v17, 16  ;;  %v623_v59 = vsel %vm14274_vm3, 0, %v622_v41 }
  0x3f   : > { %2181 = vrot.lane.b32.xlu0 %v2000_v56, %s14159_s27  ;;  %v785_v54 = vsel %vm14330_vm9, %v777_v32, %v784_v43  ;;  %v788_v60 = vshrl.u32 %v571_v40, 16  ;;  %v1523_v55 = vsel %vm1475_vm10, %v1518_v36, %v1522_v37  ;;  %v786_v63 = vrot.slane %v781_v35, 4  ;;  %v14476_v34 = vld [vmem:[#allocation2 + $0x2c] ss:$0 sps:$4 sm:$0x11]  }
  0x40   : > { %1066 = vst.msk [vmem:[#allocation2 + $0x34] sm:$0xf] %vm595_vm0, %v785_v54  ;;  %624 = vst [vmem:[#allocation2 + $0x3c] sm:$0x1] %v623_v59  ;;  %v791_v2 = vshll.u32 %v571_v40, 16  ;;  %v796_v45 = vshrl.u32 %v572_v46, 16  ;;  %v1760_v11 = vsel %vm1748_vm8, %v1758_v48, %v1759_v49  ;;  %v1757_v22 = vsel %vm1748_vm8, %v1755_v50, %v1756_v52 }
  0x41   : > { %v790_v3 = vrot.slane %v788_v60, 7  ;;  %v799_v4 = vshll.u32 %v572_v46, 16  ;;  %v679_v5 = vsel %vm14296_vm5, 0, %v678_v47  ;;  %v626_v6 = vsel %vm14274_vm3, 0, %v625_v53  ;;  %v681_v8 = vld [vmem:[#allocation2 + $0x50] sm:$0x1] }
  0x42   : > { %1672 = vrot.lane.b32.xlu1 %v1511_v30, %s14156_s1  ;;  %v798_v56 = vrot.slane %v796_v45, 7  ;;  %680 = vst [vmem:[#allocation2 + $0x44] sm:$0x1] %v679_v5  ;;  %627 = vst [vmem:[#allocation2 + $0x48] sm:$0x1] %v626_v6  ;;  %v805_v10 = vshrl.u32 %v573_v62, 16  ;;  %v12036_v30 = vcombine.low %v1268_v15, %v14444_v19 }
  0x43   : > { %2693 = vrot.lane.b32.xlu0 %v2512_v42, %s14160_s28  ;;  %v2014_v12 = vshrl.u32 %v14452_v17, 16  ;;  %v2018_v13 = vrot.slane %v2016_v58, 1  ;;  %v794_v14 = vrot.slane %v790_v3, 4  ;;  %v2021_v51 = vshll.u32 %v14476_v34, 16  ;;  %v574_v43 = vld [vmem:[%s14308_s0 + $0x2c] sm:$0xf] }
  0x44   : > { %v1067_v16 = vld [vmem:[#allocation2 + $0x38] sm:$0x1]  ;;  %v793_v18 = vor.u32 %v791_v2, %v790_v3  ;;  %v801_v20 = vor.u32 %v799_v4, %v798_v56  ;;  %v682_v21 = vsel %vm14296_vm5, 0, %v681_v8  ;;  %v14492_v27 = vrot.slane %v805_v10, 7 }
  0x45   : > { %v1224_v24 = vld [vmem:[#allocation2 + $0x30] sm:$0xf]  ;;  %v1068_v25 = vsel %vm14274_vm3, %v786_v63, %v1067_v16  ;;  %v808_v28 = vshll.u32 %v573_v62, 16  ;;  %683 = vst [vmem:[#allocation2 + $0x50] sm:$0x1] %v682_v21  ;;  %v803_v32 = vrot.slane %v798_v56, 4  ;;  %v2019_v44 = vor.u32 %v2018_v13, %v2014_v12 }
  0x46   : > { %1674 = vrot.lane.b32.xlu1 %v1523_v55, %s14156_s1  ;;  %v1287_v26 = vld [vmem:[#allocation2 + $0x30] sm:$0xf]  ;;  %1069 = vst [vmem:[#allocation2 + $0x38] sm:$0x1] %v1068_v25  ;;  %v802_v29 = vsel %vm14330_vm9, %v794_v14, %v801_v20  ;;  %v2023_v41 = vrot.slane %v2021_v51, 1  ;;  %v2267_v53 = vrot.slane %v12036_v30, 1 }
  0x47   : > { %2823 = vrot.lane.b32.xlu0 %v2778_v31, %s14158_s21  ;;  %v1225_v35 = vld [vmem:[#allocation2 + $0x34] sm:$0xf]  ;;  %v1070_v36 = vld [vmem:[#allocation2 + $0x3c] sm:$0xf]  ;;  %1073 = vst.msk [vmem:[#allocation2 + $0x40] sm:$0xf] %vm595_vm0, %v802_v29  ;;  %v810_v48 = vor.u32 %v808_v28, %v14492_v27 }
  0x48   : > { %v14499_v37 = vld [vmem:[#allocation2 + $0x34] sm:$0xf]  ;;  %v1269_v23 = vld [vmem:[#allocation2 + $0x30] sm:$0xe]  ;;  %v12005_v40 = vcombine.low %v1224_v24, %v1225_v35  ;;  %v1071_v42 = vsel %vm14324_vm7, %v793_v18, %v1070_v36  ;;  %v813_v58 = vshrl.u32 %v574_v43, 16  ;;  %v2268_v62 = vrot.slane %v14476_v34, 1 }
  0x49   : > { %v14505_v31 = vcombine.low %v1287_v26, %v14499_v37  ;;  %1072 = vst [vmem:[#allocation2 + $0x3c] sm:$0xf] %v1071_v42  ;;  %v1074_v19 = vld [vmem:[#allocation2 + $0x44] sm:$0x1]  ;;  %v1162_v46 = vld [vmem:[#allocation2 + $0x30] sm:$0xf]  ;;  %v12037_v59 = vcombine.low %v1269_v23, %v1225_v35  ;;  %v2024_v2 = vsel %vm1475_vm10, %v2019_v44, %v2023_v41 }
  0x4a   : > { %1803 = vrot.lane.b32.xlu1 %v1760_v11, %s14153_s30  ;;  %v14508_v47 = vld [vmem:[#allocation2 + $0x34] sm:$0xf]  ;;  %v2028_v49 = vshll.u32 %v12005_v40, 16  ;;  %v1077_v50 = vld [vmem:[#allocation2 + $0x48] sm:$0xf]  ;;  %v2026_v52 = vshrl.u32 %v12005_v40, 16  ;;  %v1075_v54 = vsel %vm14274_vm3, %v803_v32, %v1074_v19  ;;  %v2269_v51 = vsel %vm1748_vm8, %v2267_v53, %v2268_v62 }
  0x4b   : > { %1801 = vrot.lane.b32.xlu0 %v1757_v22, %s14153_s30  ;;  %v2528_v55 = vshll.u32 %v14505_v31, 16  ;;  %1076 = vst [vmem:[#allocation2 + $0x44] sm:$0x1] %v1075_v54  ;;  %v14520_v45 = vcombine.low %v1162_v46, %v14508_v47  ;;  %v816_v3 = vshll.u32 %v574_v43, 16  ;;  %v1078_v4 = vsel %vm14324_vm7, %v810_v48, %v1077_v50  ;;  %v1333_v6 = vld [vmem:[#allocation2 + $0x30] sm:$0xe] }
  0x4c   : > { %v2030_v60 = vrot.slane %v2028_v49, 1  ;;  %1079 = vst [vmem:[#allocation2 + $0x48] sm:$0xf] %v1078_v4  ;;  %v811_v34 = vrot.slane %v14492_v27, 4  ;;  %v14527_v10 = vrot.slane %v813_v58, 7  ;;  %v2270_v11 = vrot.slane %v12037_v59, 1 }
  0x4d   : > { %v13578_v63 = vld [vmem:[#allocation2 + $0x38] ss:$0 sps:$4 sm:$0x11]   ;;  %v2526_v14 = vshrl.u32 %v14505_v31, 16  ;;  %v2530_v15 = vrot.slane %v2528_v55, 1  ;;  %v1527_v20 = vshll.u32 %v14520_v45, 16  ;;  %v12084_v32 = vcombine.low %v1333_v6, %v14499_v37 }
  0x4e   : > { %1915 = vrot.lane.b32.xlu1 %v12005_v40, %s14154_s18  ;;  %v1290_v5 = vld [vmem:[#allocation2 + $0x40] sm:$0xf]  ;;  %v2033_v8 = vshll.u32 %v13578_v63, 16  ;;  %v14524_v56 = vld [vmem:[#allocation2 + $0x38] ss:$0 sps:$4 sm:$0x11]   ;;  %v818_v27 = vor.u32 %v816_v3, %v14527_v10 }
  0x4f   : > { %1913 = vrot.lane.b32.xlu0 %v14452_v17, %s14154_s18  ;;  %v2031_v17 = vor.u32 %v2030_v60, %v2026_v52  ;;  %v2271_v12 = vrot.slane %v13578_v63, 1  ;;  %v14533_v22 = vld [vmem:[#allocation2 + $0x40] sm:$0xf]  ;;  %v2533_v25 = vshll.u32 %v14524_v56, 16  ;;  %v2531_v23 = vor.u32 %v2530_v15, %v2526_v14  ;;  %v1206_v44 = vld [vmem:[#allocation2 + $0x30] sm:$0xe] }
  0x50   : > { %v1289_v13 = vld [vmem:[#allocation2 + $0x3c] sm:$0xf]  ;;  %v2035_v16 = vrot.slane %v2033_v8, 1  ;;  %v14536_v26 = vld [vmem:[#allocation2 + $0x38] ss:$0 sps:$4 sm:$0x11]   ;;  %v819_v37 = vsel %vm14330_vm9, %v811_v34, %v818_v27  ;;  %v11990_v59 = vcombine.low %v1206_v44, %v14508_v47 }
  0x51   : > { %v12053_v18 = vcombine.low %v1289_v13, %v1290_v5  ;;  %v1164_v21 = vld [vmem:[#allocation2 + $0x3c] sm:$0xf]  ;;  %v2272_v30 = vsel %vm1748_vm8, %v2270_v11, %v2271_v12  ;;  %v2535_v43 = vrot.slane %v2533_v25, 1  ;;  %v1525_v46 = vshrl.u32 %v14520_v45, 16  ;;  %1080 = vst.msk [vmem:[#allocation2 + $0x4c] sm:$0xf] %vm595_vm0, %v819_v37 }
  0x52   : > { %v1334_v24 = vld [vmem:[#allocation2 + $0x3c] sm:$0xe]  ;;  %v2036_v28 = vsel %vm1475_vm10, %v2031_v17, %v2035_v16  ;;  %v13584_v35 = vld [vmem:[#allocation2 + $0x44] ss:$0 sps:$4 sm:$0x11]   ;;  %v14545_v40 = vcombine.low %v1164_v21, %v14533_v22  ;;  %v1529_v48 = vrot.slane %v1527_v20, 1 }
  0x53   : > { %2185 = vrot.lane.b32.xlu0 %v2024_v2, %s14159_s27  ;;  %v2540_v29 = vshll.u32 %v12053_v18, 16  ;;  %2187 = vrot.lane.b32.xlu1 %v2036_v28, %s14159_s27  ;;  %v2538_v36 = vshrl.u32 %v12053_v18, 16  ;;  %v2545_v42 = vshll.u32 %v13584_v35, 16  ;;  %v12085_v19 = vcombine.low %v1334_v24, %v1290_v5  ;;  %v575_v50 = vld [vmem:[%s14308_s0 + $0x30] sm:$0xf] }
  0x54   : > { %v1532_v49 = vshll.u32 %v14536_v26, 16  ;;  %v14553_v52 = vld [vmem:[#allocation2 + $0x44] ss:$0 sps:$4 sm:$0x11]   ;;  %v628_v53 = vld [vmem:[#allocation2 + $0x54] sm:$0x1]  ;;  %v2536_v2 = vsel %vm1475_vm10, %v2531_v23, %v2535_v43  ;;  %v1530_v5 = vor.u32 %v1529_v48, %v1525_v46 }
  0x55   : > { %v2542_v41 = vrot.slane %v2540_v29, 1  ;;  %v2779_v54 = vrot.slane %v12084_v32, 1  ;;  %v1539_v58 = vshll.u32 %v14545_v40, 16  ;;  %v1226_v60 = vld [vmem:[#allocation2 + $0x3c] sm:$0xf]  ;;  %v2547_v63 = vrot.slane %v2545_v42, 1 }
  0x56   : > { %v1081_v62 = vld [vmem:[#allocation2 + $0x50] sm:$0x1]  ;;  %v2780_v3 = vrot.slane %v14524_v56, 1  ;;  %v14562_v4 = vld [vmem:[#allocation2 + $0x40] sm:$0xf]  ;;  %v1534_v6 = vrot.slane %v1532_v49, 1 }
  0x57   : > { %2313 = vrot.lane.b32.xlu0 %v2269_v51, %s14157_s20  ;;  %2315 = vrot.lane.b32.xlu1 %v2272_v30, %s14157_s20  ;;  %v2543_v55 = vor.u32 %v2542_v41, %v2538_v36  ;;  %v2782_v17 = vrot.slane %v12085_v19, 1  ;;  %v1544_v8 = vshll.u32 %v14553_v52, 16  ;;  %v2783_v34 = vrot.slane %v13584_v35, 1  ;;  %v1207_v47 = vld [vmem:[#allocation2 + $0x3c] sm:$0xe] }
  0x58   : > { %v629_v11 = vsel %vm14274_vm3, 0, %v628_v53  ;;  %v822_v12 = vshrl.u32 %v575_v50, 16  ;;  %v1537_v56 = vshrl.u32 %v14545_v40, 16  ;;  %v1541_v13 = vrot.slane %v1539_v58, 1  ;;  %v576_v15 = vld [vmem:[%s14308_s0 + $0x34] sm:$0xf] }
  0x59   : > { %v14572_v14 = vcombine.low %v1226_v60, %v14562_v4  ;;  %630 = vst [vmem:[#allocation2 + $0x54] sm:$0x1] %v629_v11  ;;  %v2548_v16 = vsel %vm1475_vm10, %v2543_v55, %v2547_v63  ;;  %v2781_v51 = vsel %vm1748_vm8, %v2779_v54, %v2780_v3  ;;  %v1228_v20 = vld [vmem:[#allocation2 + $0x48] sm:$0xf]  ;;  %v14579_v21 = vld [vmem:[#allocation2 + $0x4c] sm:$0xf]  ;;  %v11991_v24 = vcombine.low %v1207_v47, %v14533_v22 }
  0x5a   : > { %v1761_v25 = vrot.slane %v11990_v59, 1  ;;  %v825_v27 = vshll.u32 %v575_v50, 16  ;;  %v1535_v28 = vsel %vm1475_vm10, %v1530_v5, %v1534_v6  ;;  %v1546_v29 = vrot.slane %v1544_v8, 1  ;;  %v684_v30 = vld [vmem:[#allocation2 + $0x5c] sm:$0x1] }
  0x5b   : > { %2425 = vrot.lane.b32.xlu0 %v14505_v31, %s14155_s19  ;;  %v820_v31 = vrot.slane %v14527_v10, 4  ;;  %2427 = vrot.lane.b32.xlu1 %v12053_v18, %s14155_s19  ;;  %v824_v18 = vrot.slane %v822_v12, 7  ;;  %v2784_v32 = vsel %vm1748_vm8, %v2782_v17, %v2783_v34  ;;  %v830_v35 = vshrl.u32 %v576_v15, 16  ;;  %v14591_v42 = vld [vmem:[#allocation2 + $0x44] ss:$0 sps:$4 sm:$0x11]  }
  0x5c   : > { %v1542_v36 = vor.u32 %v1541_v13, %v1537_v56  ;;  %v1762_v23 = vrot.slane %v14536_v26, 1  ;;  %v14588_v41 = vcombine.low %v1228_v20, %v14579_v21  ;;  %v2040_v22 = vshll.u32 %v14572_v14, 16  ;;  %v1270_v49 = vld [vmem:[#allocation2 + $0x3c] sm:$0xe]  ;;  %v1271_v53 = vld [vmem:[#allocation2 + $0x48] sm:$0xe] }
  0x5d   : > { %v1082_v10 = vsel %vm14274_vm3, %v820_v31, %v1081_v62  ;;  %v827_v43 = vor.u32 %v825_v27, %v824_v18  ;;  %v828_v44 = vrot.slane %v824_v18, 4  ;;  %v832_v37 = vrot.slane %v830_v35, 7  ;;  %v1291_v58 = vld [vmem:[#allocation2 + $0x48] sm:$0xf]  ;;  %v1292_v59 = vld [vmem:[#allocation2 + $0x4c] sm:$0xf] }
  0x5e   : > { %1083 = vst [vmem:[#allocation2 + $0x50] sm:$0x1] %v1082_v10  ;;  %v833_v19 = vshll.u32 %v576_v15, 16  ;;  %v1764_v46 = vrot.slane %v11991_v24, 1  ;;  %v1765_v48 = vrot.slane %v14553_v52, 1  ;;  %v685_v50 = vsel %vm14296_vm5, 0, %v684_v30 }
  0x5f   : > { %2697 = vrot.lane.b32.xlu0 %v2536_v2, %s14160_s28  ;;  %2699 = vrot.lane.b32.xlu1 %v2548_v16, %s14160_s28  ;;  %686 = vst [vmem:[#allocation2 + $0x5c] sm:$0x1] %v685_v50  ;;  %v631_v60 = vld [vmem:[#allocation2 + $0x60] sm:$0x1]  ;;  %v2038_v62 = vshrl.u32 %v14572_v14, 16  ;;  %v2042_v55 = vrot.slane %v2040_v22, 1  ;;  %v1547_v2 = vsel %vm1475_vm10, %v1542_v36, %v1546_v29  ;;  %v1763_v3 = vsel %vm1748_vm8, %v1761_v25, %v1762_v23 }
  0x60   : > { %v835_v26 = vor.u32 %v833_v19, %v832_v37  ;;  %v1084_v54 = vld [vmem:[#allocation2 + $0x54] sm:$0xf]  ;;  %v2045_v52 = vshll.u32 %v14591_v42, 16  ;;  %v2052_v5 = vshll.u32 %v14588_v41, 16  ;;  %v14610_v31 = vcombine.low %v1291_v58, %v1292_v59  ;;  %v1335_v47 = vld [vmem:[#allocation2 + $0x48] sm:$0xe] }
  0x61   : > { %v1085_v63 = vsel %vm14324_vm7, %v827_v43, %v1084_v54  ;;  %v12038_v8 = vcombine.low %v1270_v49, %v14562_v4  ;;  %v837_v34 = vrot.slane %v832_v37, 4  ;;  %v12039_v11 = vcombine.low %v1271_v53, %v14579_v21  ;;  %v1166_v13 = vld [vmem:[#allocation2 + $0x48] sm:$0xf]  ;;  %v577_v10 = vld [vmem:[%s14308_s0 + $0x38] sm:$0xf] }
  0x62   : > { %v836_v17 = vsel %vm14330_vm9, %v828_v44, %v835_v26  ;;  %1086 = vst [vmem:[#allocation2 + $0x54] sm:$0xf] %v1085_v63  ;;  %v2043_v12 = vor.u32 %v2042_v55, %v2038_v62  ;;  %v2047_v56 = vrot.slane %v2045_v52, 1  ;;  %v632_v15 = vsel %vm14274_vm3, 0, %v631_v60  ;;  %v14622_v18 = vld [vmem:[#allocation2 + $0x4c] sm:$0xf] }
  0x63   : > { %2825 = vrot.lane.b32.xlu0 %v2781_v51, %s14158_s21  ;;  %1676 = vrot.lane.b32.xlu1 %v1535_v28, %s14156_s1  ;;  %1087 = vst.msk [vmem:[#allocation2 + $0x58] sm:$0xf] %vm595_vm0, %v836_v17  ;;  %v1766_v16 = vsel %vm1748_vm8, %v1764_v46, %v1765_v48  ;;  %v2050_v4 = vshrl.u32 %v14588_v41, 16  ;;  %v2054_v51 = vrot.slane %v2052_v5, 1  ;;  %633 = vst [vmem:[#allocation2 + $0x60] sm:$0x1] %v632_v15 }
  0x64   : > { %v2552_v21 = vshll.u32 %v14610_v31, 16  ;;  %v12086_v24 = vcombine.low %v1335_v47, %v1292_v59  ;;  %v2273_v28 = vrot.slane %v12038_v8, 1  ;;  %v839_v35 = vshrl.u32 %v577_v10, 16  ;;  %v1208_v48 = vld [vmem:[#allocation2 + $0x48] sm:$0xe] }
  0x65   : > { %v14605_v6 = vld [vmem:[#allocation2 + $0x50] ss:$0 sps:$4 sm:$0x11]   ;;  %v2048_v30 = vsel %vm1475_vm10, %v2043_v12, %v2047_v56  ;;  %v2276_v36 = vrot.slane %v12039_v11, 1  ;;  %v2274_v23 = vrot.slane %v14591_v42, 1  ;;  %v2550_v43 = vshrl.u32 %v14610_v31, 16 }
  0x66   : > { %v2057_v20 = vshll.u32 %v14605_v6, 16  ;;  %v1088_v25 = vld [vmem:[#allocation2 + $0x5c] sm:$0x1]  ;;  %v14625_v27 = vld [vmem:[#allocation2 + $0x50] ss:$0 sps:$4 sm:$0x11]   ;;  %v2055_v44 = vor.u32 %v2054_v51, %v2050_v4  ;;  %v14639_v46 = vcombine.low %v1166_v13, %v14622_v18  ;;  %v11992_v52 = vcombine.low %v1208_v48, %v14622_v18 }
  0x67   : > { %2827 = vrot.lane.b32.xlu0 %v2784_v32, %s14158_s21  ;;  %1678 = vrot.lane.b32.xlu1 %v1547_v2, %s14156_s1  ;;  %v1089_v29 = vsel %vm14274_vm3, %v837_v34, %v1088_v25  ;;  %v578_v32 = vld [vmem:[%s14308_s0 + $0x3c] sm:$0xf]  ;;  %v842_v49 = vshll.u32 %v577_v10, 16  ;;  %v2554_v50 = vrot.slane %v2552_v21, 1  ;;  %v2557_v53 = vshll.u32 %v14625_v27, 16 }
  0x68   : > { %1090 = vst [vmem:[#allocation2 + $0x5c] sm:$0x1] %v1089_v29  ;;  %v2059_v37 = vrot.slane %v2057_v20, 1  ;;  %v2785_v42 = vrot.slane %v12086_v24, 1  ;;  %v2277_v26 = vrot.slane %v14605_v6, 1  ;;  %v1549_v54 = vshrl.u32 %v14639_v46, 16 }
  0x69   : > { %v1293_v22 = vld [vmem:[#allocation2 + $0x54] sm:$0xf]  ;;  %v841_v58 = vrot.slane %v839_v35, 7  ;;  %v847_v59 = vshrl.u32 %v578_v32, 16  ;;  %v687_v60 = vld [vmem:[#allocation2 + $0x68] sm:$0x1]  ;;  %v2275_v62 = vsel %vm1748_vm8, %v2273_v28, %v2274_v23  ;;  %v2555_v4 = vor.u32 %v2554_v50, %v2550_v43 }
  0x6a   : > { %v14636_v19 = vld [vmem:[#allocation2 + $0x58] sm:$0xf]  ;;  %v14651_v55 = vld [vmem:[#allocation2 + $0x50] ss:$0 sps:$4 sm:$0x11]   ;;  %v850_v63 = vshll.u32 %v578_v32, 16  ;;  %v2278_v25 = vsel %vm1748_vm8, %v2276_v36, %v2277_v26 }
  0x6b   : > { %1805 = vrot.lane.b32.xlu0 %v1763_v3, %s14153_s30  ;;  %1807 = vrot.lane.b32.xlu1 %v1766_v16, %s14153_s30  ;;  %v1091_v2 = vld [vmem:[#allocation2 + $0x60] sm:$0xf]  ;;  %v2060_v3 = vsel %vm1475_vm10, %v2055_v44, %v2059_v37  ;;  %v1551_v6 = vshll.u32 %v14639_v46, 16  ;;  %v1168_v17 = vld [vmem:[#allocation2 + $0x54] sm:$0xf]  ;;  %v2559_v47 = vrot.slane %v2557_v53, 1 }
  0x6c   : > { %v14657_v8 = vld [vmem:[#allocation2 + $0x58] sm:$0xf]  ;;  %v1336_v34 = vld [vmem:[#allocation2 + $0x54] sm:$0xe]  ;;  %v2786_v11 = vrot.slane %v14625_v27, 1  ;;  %v845_v12 = vrot.slane %v841_v58, 4 }
  0x6d   : > { %v849_v56 = vrot.slane %v847_v59, 7  ;;  %v634_v13 = vld [vmem:[#allocation2 + $0x6c] sm:$0x1]  ;;  %v688_v16 = vsel %vm14296_vm5, 0, %v687_v60  ;;  %v14669_v51 = vcombine.low %v1168_v17, %v14657_v8  ;;  %v1230_v18 = vld [vmem:[#allocation2 + $0x54] sm:$0xf]  ;;  %v12087_v43 = vcombine.low %v1336_v34, %v14636_v19 }
  0x6e   : > { %v14671_v21 = vld [vmem:[#allocation2 + $0x58] sm:$0xf]  ;;  %689 = vst [vmem:[#allocation2 + $0x68] sm:$0x1] %v688_v16  ;;  %v579_v24 = vld [vmem:[%s14308_s0 + $0x40] sm:$0xf]  ;;  %v2787_v44 = vsel %vm1748_vm8, %v2785_v42, %v2786_v11  ;;  %v2560_v48 = vsel %vm1475_vm10, %v2555_v4, %v2559_v47 }
  0x6f   : > { %1917 = vrot.lane.b32.xlu0 %v14572_v14, %s14154_s18  ;;  %v14642_v14 = vcombine.low %v1293_v22, %v14636_v19  ;;  %1919 = vrot.lane.b32.xlu1 %v14588_v41, %s14154_s18  ;;  %v844_v41 = vor.u32 %v842_v49, %v841_v58  ;;  %v14660_v10 = vld [vmem:[#allocation2 + $0x5c] ss:$0 sps:$4 sm:$0x11]   ;;  %v852_v20 = vor.u32 %v850_v63, %v849_v56  ;;  %v1553_v32 = vrot.slane %v1551_v6, 1  ;;  %v580_v22 = vld [vmem:[%s14308_s0 + $0x44] sm:$0xf] }
  0x70   : > { %v2569_v29 = vshll.u32 %v14660_v10, 16  ;;  %v1556_v35 = vshll.u32 %v14651_v55, 16  ;;  %v14687_v36 = vcombine.low %v1230_v18, %v14671_v21  ;;  %v635_v37 = vsel %vm14274_vm3, 0, %v634_v13  ;;  %v1209_v19 = vld [vmem:[#allocation2 + $0x54] sm:$0xe] }
  0x71   : > { %v2564_v5 = vshll.u32 %v14642_v14, 16  ;;  %v1092_v15 = vsel %vm14324_vm7, %v844_v41, %v1091_v2  ;;  %v2562_v27 = vshrl.u32 %v14642_v14, 16  ;;  %v853_v23 = vsel %vm14330_vm9, %v845_v12, %v852_v20  ;;  %636 = vst [vmem:[#allocation2 + $0x6c] sm:$0x1] %v635_v37  ;;  %v690_v2 = vld [vmem:[#allocation2 + $0x74] sm:$0x1] }
  0x72   : > { %1093 = vst [vmem:[#allocation2 + $0x60] sm:$0xf] %v1092_v15  ;;  %1094 = vst.msk [vmem:[#allocation2 + $0x64] sm:$0xf] %vm595_vm0, %v853_v23  ;;  %v1563_v49 = vshll.u32 %v14669_v51, 16  ;;  %v1768_v50 = vrot.slane %v14651_v55, 1  ;;  %v11993_v6 = vcombine.low %v1209_v19, %v14657_v8 }
  0x73   : > { %2189 = vrot.lane.b32.xlu0 %v2048_v30, %s14159_s27  ;;  %2191 = vrot.lane.b32.xlu1 %v2060_v3, %s14159_s27  ;;  %v2566_v28 = vrot.slane %v2564_v5, 1  ;;  %v14678_v30 = vrot.slane %v11992_v52, 1  ;;  %v854_v53 = vrot.slane %v849_v56, 4  ;;  %v2571_v26 = vrot.slane %v2569_v29, 1  ;;  %v637_v34 = vld [vmem:[#allocation2 + $0x78] sm:$0x1] }
  0x74   : > { %v14697_v58 = vld [vmem:[#allocation2 + $0x5c] ss:$0 sps:$4 sm:$0x11]   ;;  %v856_v59 = vshrl.u32 %v579_v24, 16  ;;  %v864_v60 = vshrl.u32 %v580_v22, 16  ;;  %v1558_v52 = vrot.slane %v1556_v35, 1 }
  0x75   : > { %v2567_v42 = vor.u32 %v2566_v28, %v2562_v27  ;;  %v867_v63 = vshll.u32 %v580_v22, 16  ;;  %v1561_v3 = vshrl.u32 %v14669_v51, 16  ;;  %v2788_v5 = vrot.slane %v12087_v43, 1  ;;  %v1095_v41 = vld [vmem:[#allocation2 + $0x68] sm:$0x1] }
  0x76   : > { %v2064_v17 = vshll.u32 %v14687_v36, 16  ;;  %v1565_v47 = vrot.slane %v1563_v49, 1  ;;  %v1096_v11 = vsel %vm14274_vm3, %v854_v53, %v1095_v41  ;;  %v858_v12 = vrot.slane %v856_v59, 7  ;;  %v14717_v18 = vld [vmem:[#allocation2 + $0x5c] ss:$0 sps:$4 sm:$0x11]  }
  0x77   : > { %2317 = vrot.lane.b32.xlu0 %v2275_v62, %s14157_s20  ;;  %2319 = vrot.lane.b32.xlu1 %v2278_v25, %s14157_s20  ;;  %v1554_v62 = vor.u32 %v1553_v32, %v1549_v54  ;;  %v1272_v54 = vld [vmem:[#allocation2 + $0x54] sm:$0xe]  ;;  %v866_v56 = vrot.slane %v864_v60, 7  ;;  %v2572_v13 = vsel %vm1475_vm10, %v2567_v42, %v2571_v26  ;;  %v1568_v8 = vshll.u32 %v14697_v58, 16  ;;  %1097 = vst [vmem:[#allocation2 + $0x68] sm:$0x1] %v1096_v11 }
  0x78   : > { %v2789_v15 = vrot.slane %v14660_v10, 1  ;;  %v862_v25 = vrot.slane %v858_v12, 4  ;;  %v1770_v28 = vrot.slane %v11993_v6, 1  ;;  %v12040_v29 = vcombine.low %v1272_v54, %v14671_v21  ;;  %v1098_v35 = vld [vmem:[#allocation2 + $0x6c] sm:$0xf] }
  0x79   : > { %v1232_v16 = vld [vmem:[#allocation2 + $0x60] sm:$0xf]  ;;  %v1559_v4 = vsel %vm1475_vm10, %v1554_v62, %v1558_v52  ;;  %v14715_v20 = vld [vmem:[#allocation2 + $0x64] sm:$0xf]  ;;  %v869_v27 = vor.u32 %v867_v63, %v866_v56  ;;  %v2062_v10 = vshrl.u32 %v14687_v36, 16  ;;  %v2066_v32 = vrot.slane %v2064_v17, 1 }
  0x7a   : > { %v14724_v23 = vcombine.low %v1232_v16, %v14715_v20  ;;  %v581_v37 = vld [vmem:[%s14308_s0 + $0x48] sm:$0xf]  ;;  %v638_v21 = vsel %vm14274_vm3, 0, %v637_v34  ;;  %v1570_v49 = vrot.slane %v1568_v8, 1  ;;  %v2790_v19 = vsel %vm1748_vm8, %v2788_v5, %v2789_v15  ;;  %v1296_v42 = vld [vmem:[#allocation2 + $0x64] sm:$0xf] }
  0x7b   : > { %2429 = vrot.lane.b32.xlu0 %v14610_v31, %s14155_s19  ;;  %v859_v31 = vshll.u32 %v579_v24, 16  ;;  %2431 = vrot.lane.b32.xlu1 %v14642_v14, %s14155_s19  ;;  %v691_v14 = vsel %vm14296_vm5, 0, %v690_v2  ;;  %v870_v22 = vsel %vm14330_vm9, %v862_v25, %v869_v27  ;;  %v1771_v53 = vrot.slane %v14697_v58, 1  ;;  %639 = vst [vmem:[#allocation2 + $0x78] sm:$0x1] %v638_v21 }
  0x7c   : > { %692 = vst [vmem:[#allocation2 + $0x74] sm:$0x1] %v691_v14  ;;  %1101 = vst.msk [vmem:[#allocation2 + $0x70] sm:$0xf] %vm595_vm0, %v870_v22  ;;  %v2069_v26 = vshll.u32 %v14717_v18, 16  ;;  %v871_v59 = vrot.slane %v866_v56, 4  ;;  %v1769_v17 = vsel %vm1748_vm8, %v14678_v30, %v1768_v50  ;;  %v2067_v54 = vor.u32 %v2066_v32, %v2062_v10 }
  0x7d   : > { %v861_v24 = vor.u32 %v859_v31, %v858_v12  ;;  %v1170_v60 = vld [vmem:[#allocation2 + $0x60] sm:$0xf]  ;;  %v1171_v62 = vld [vmem:[#allocation2 + $0x64] sm:$0xf]  ;;  %v14737_v31 = vrot.slane %v12040_v29, 1  ;;  %v873_v2 = vshrl.u32 %v581_v37, 16 }
  0x7e   : > { %v1273_v52 = vld [vmem:[#allocation2 + $0x60] sm:$0xe]  ;;  %v2076_v58 = vshll.u32 %v14724_v23, 16  ;;  %v14751_v34 = vcombine.low %v1170_v60, %v1171_v62  ;;  %v2071_v11 = vrot.slane %v2069_v26, 1  ;;  %v876_v55 = vshll.u32 %v581_v37, 16 }
  0x7f   : > { %2701 = vrot.lane.b32.xlu0 %v2560_v48, %s14160_s28  ;;  %2703 = vrot.lane.b32.xlu1 %v2572_v13, %s14160_s28  ;;  %v1099_v43 = vsel %vm14324_vm7, %v861_v24, %v1098_v35  ;;  %v1566_v48 = vor.u32 %v1565_v47, %v1561_v3  ;;  %v1337_v63 = vld [vmem:[#allocation2 + $0x60] sm:$0xe]  ;;  %v14742_v3 = vld [vmem:[#allocation2 + $0x68] ss:$0 sps:$4 sm:$0x11]   ;;  %v12041_v47 = vcombine.low %v1273_v52, %v14715_v20  ;;  %v2074_v13 = vshrl.u32 %v14724_v23, 16 }
  0x80   : > { %1100 = vst [vmem:[#allocation2 + $0x6c] sm:$0xf] %v1099_v43  ;;  %v1210_v56 = vld [vmem:[#allocation2 + $0x60] sm:$0xe]  ;;  %v12088_v8 = vcombine.low %v1337_v63, %v1296_v42  ;;  %v14757_v15 = vrot.slane %v873_v2, 7  ;;  %v2078_v30 = vrot.slane %v2076_v58, 1  ;;  %v2072_v43 = vsel %vm1475_vm10, %v2067_v54, %v2071_v11 }
  0x81   : > { %v1571_v6 = vsel %vm1475_vm10, %v1566_v48, %v1570_v49  ;;  %v2081_v50 = vshll.u32 %v14742_v3, 16  ;;  %v14763_v14 = vld [vmem:[#allocation2 + $0x68] ss:$0 sps:$4 sm:$0x11]   ;;  %v2280_v20 = vrot.slane %v14717_v18, 1  ;;  %v1575_v27 = vshll.u32 %v14751_v34, 16 }
  0x82   : > { %v11994_v29 = vcombine.low %v1210_v56, %v1171_v62  ;;  %v2282_v10 = vrot.slane %v12041_v47, 1  ;;  %v1573_v35 = vshrl.u32 %v14751_v34, 16  ;;  %v878_v22 = vor.u32 %v876_v55, %v14757_v15  ;;  %v14774_v37 = vld [vmem:[#allocation2 + $0x68] ss:$0 sps:$4 sm:$0x11]  }
  0x83   : > { %2829 = vrot.lane.b32.xlu0 %v2787_v44, %s14158_s21  ;;  %v1295_v44 = vld [vmem:[#allocation2 + $0x60] sm:$0xf]  ;;  %1680 = vrot.lane.b32.xlu1 %v1559_v4, %s14156_s1  ;;  %v1102_v41 = vld [vmem:[#allocation2 + $0x74] sm:$0x1]  ;;  %v1772_v4 = vsel %vm1748_vm8, %v1770_v28, %v1771_v53  ;;  %v14767_v25 = vld [vmem:[#allocation2 + $0x70] sm:$0xf]  ;;  %v2079_v21 = vor.u32 %v2078_v30, %v2074_v13 }
  0x84   : > { %v14744_v5 = vcombine.low %v1295_v44, %v1296_v42  ;;  %v1103_v12 = vsel %vm14274_vm3, %v871_v59, %v1102_v41  ;;  %v2791_v28 = vrot.slane %v12088_v8, 1  ;;  %v1105_v18 = vld [vmem:[#allocation2 + $0x78] sm:$0xf]  ;;  %v2083_v48 = vrot.slane %v2081_v50, 1  ;;  %v582_v59 = vld [vmem:[%s14308_s0 + $0x4c] sm:$0xf] }
  0x85   : > { %1104 = vst [vmem:[#allocation2 + $0x74] sm:$0x1] %v1103_v12  ;;  %v2283_v53 = vrot.slane %v14742_v3, 1  ;;  %v2581_v44 = vshll.u32 %v14763_v14, 16  ;;  %v1577_v42 = vrot.slane %v1575_v27, 1  ;;  %v14784_v26 = vrot.slane %v11994_v29, 1 }
  0x86   : > { %v2576_v16 = vshll.u32 %v14744_v5, 16  ;;  %v2574_v32 = vshrl.u32 %v14744_v5, 16  ;;  %v1173_v62 = vld [vmem:[#allocation2 + $0x70] sm:$0xf]  ;;  %v1106_v52 = vsel %vm14324_vm7, %v878_v22, %v1105_v18  ;;  %v1580_v63 = vshll.u32 %v14774_v37, 16 }
  0x87   : > { %2831 = vrot.lane.b32.xlu0 %v2790_v19, %s14158_s21  ;;  %1682 = vrot.lane.b32.xlu1 %v1571_v6, %s14156_s1  ;;  %v1297_v24 = vld [vmem:[#allocation2 + $0x6c] sm:$0xf]  ;;  %v2792_v2 = vrot.slane %v14763_v14, 1  ;;  %1107 = vst [vmem:[#allocation2 + $0x78] sm:$0xf] %v1106_v52  ;;  %v2084_v58 = vsel %vm1475_vm10, %v2079_v21, %v2083_v48  ;;  %v2281_v3 = vsel %vm1748_vm8, %v14737_v31, %v2280_v20  ;;  %v881_v41 = vshrl.u32 %v582_v59, 16 }
  0x88   : > { %v14780_v49 = vcombine.low %v1297_v24, %v14767_v25  ;;  %v2578_v19 = vrot.slane %v2576_v16, 1  ;;  %v1172_v60 = vld [vmem:[#allocation2 + $0x6c] sm:$0xf]  ;;  %v693_v47 = vld [vmem:[#allocation2 + $0x80] sm:$0x1]  ;;  %v2583_v11 = vrot.slane %v2581_v44, 1  ;;  %v2284_v16 = vsel %vm1748_vm8, %v2282_v10, %v2283_v53 }
  0x89   : > { %v14800_v12 = vcombine.low %v1172_v60, %v1173_v62  ;;  %v1774_v56 = vrot.slane %v14774_v37, 1  ;;  %v879_v55 = vrot.slane %v14757_v15, 4  ;;  %v14805_v30 = vrot.slane %v881_v41, 7  ;;  %v1234_v31 = vld [vmem:[#allocation2 + $0x6c] sm:$0xf] }
  0x8a   : > { %v2588_v6 = vshll.u32 %v14780_v49, 16  ;;  %v2579_v8 = vor.u32 %v2578_v19, %v2574_v32  ;;  %v14807_v50 = vld [vmem:[#allocation2 + $0x70] sm:$0xf]  ;;  %v14813_v20 = vor.u32 %v1577_v42, %v1573_v35  ;;  %v13635_v10 = vld [vmem:[%s17567_s26 + $0x8] sm:$0x3f]   ;;  %v14827_v35 = vsel %vm1748_vm8, %v2791_v28, %v2792_v2 }
  0x8b   : > { %1809 = vrot.lane.b32.xlu0 %v1769_v17, %s14153_s30  ;;  %1811 = vrot.lane.b32.xlu1 %v1772_v4, %s14153_s30  ;;  %v1211_v17 = vld [vmem:[#allocation2 + $0x6c] sm:$0xe]  ;;  %v2586_v4 = vshrl.u32 %v14780_v49, 16  ;;  %v1587_v22 = vshll.u32 %v14800_v12, 16  ;;  %v14833_v18 = vld [vmem:[%s14308_s0 + $0x50] sm:$0xf] }
  0x8c   : > { %v14798_v54 = vld [vmem:[#allocation2 + $0x74] ss:$0 sps:$4 sm:$0x11]   ;;  %v2590_v15 = vrot.slane %v2588_v6, 1  ;;  %v11995_v27 = vcombine.low %v1211_v17, %v1173_v62  ;;  %v2584_v48 = vsel %vm1475_vm10, %v2579_v8, %v2583_v11  ;;  %v1585_v19 = vshrl.u32 %v14800_v12, 16 }
  0x8d   : > { %v14815_v24 = vld [vmem:[#allocation2 + $0x74] ss:$0 sps:$4 sm:$0x11]   ;;  %v2593_v32 = vshll.u32 %v14798_v54, 16  ;;  %v640_v42 = vld [vmem:[#allocation2 + $0x84] sm:$0x1] }
  0x8e   : > { %v584_v28 = vld [vmem:[%s14308_s0 + $0x54] sm:$0xf]  ;;  %vm3172_vm11 = vcmask 1044480   ;;  %vm3173_vm12 = vcmask 1045504   ;;  %v696_v60 = vld [vmem:[#allocation2 + $0x8c] sm:$0x1]  ;;  %v2591_v62 = vor.u32 %v2590_v15, %v2586_v4 }
  0x8f   : > { %1921 = vrot.lane.b32.xlu0 %v14687_v36, %s14154_s18  ;;  %v1338_v36 = vld [vmem:[#allocation2 + $0x6c] sm:$0xe]  ;;  %1923 = vrot.lane.b32.xlu1 %v14724_v23, %s14154_s18  ;;  %v884_v23 = vshll.u32 %v582_v59, 16  ;;  %v14846_v59 = vcombine.low %v1234_v31, %v14807_v50  ;;  %v2795_v52 = vrot.slane %v14798_v54, 1  ;;  %v2595_v6 = vrot.slane %v2593_v32, 1 }
  0x90   : > { %v12089_v13 = vcombine.low %v1338_v36, %v14767_v25  ;;  %v14819_v25 = vrot.slane %v1580_v63, 1  ;;  %v14852_v36 = vrot.slane %v11995_v27, 1  ;;  %v14161_v63 = vmov 65535   ;;  %v643_v11 = vld [vmem:[#allocation2 + $0x90] sm:$0x1] }
  0x91   : > { %v886_v29 = vor.u32 %v884_v23, %v14805_v30  ;;  %v3174_v2 = vsel %vm3172_vm11, 4294967295, %v14161_v63  ;;  %v1589_v17 = vrot.slane %v1587_v22, 1  ;;  %v1592_v41 = vshll.u32 %v14815_v24, 16  ;;  %v1274_v54 = vld [vmem:[#allocation2 + $0x6c] sm:$0xe] }
  0x92   : > { %v14839_v53 = vrot.slane %v12089_v13, 1  ;;  %vm2853_vm13 = vcmask 23552   ;;  %v641_v8 = vsel %vm14274_vm3, 0, %v640_v42  ;;  %v1777_v31 = vrot.slane %v14815_v24, 1  ;;  %v1236_v42 = vld [vmem:[#allocation2 + $0x78] sm:$0xf] }
  0x93   : > { %2193 = vrot.lane.b32.xlu0 %v2072_v43, %s14159_s27  ;;  %v14810_v14 = vpop.permute.xlu1 %1797  ;;  %2195 = vrot.lane.b32.xlu1 %v2084_v58, %s14159_s27  ;;  %v694_v43 = vsel %vm14296_vm5, 0, %v693_v47  ;;  %v887_v44 = vsel %vm14330_vm9, %v879_v55, %v886_v29  ;;  %v14855_v58 = vld [vmem:[%s14308_s0 + $0x58] sm:$0xf]  ;;  %v3175_v47 = vsel %vm3173_vm12, %v3174_v2, 0  ;;  %v890_v55 = vshrl.u32 %v14833_v18, 16 }
  0x94   : > { %695 = vst [vmem:[#allocation2 + $0x80] sm:$0x1] %v694_v43  ;;  %1108 = vst.msk [vmem:[#allocation2 + $0x7c] sm:$0xf] %vm595_vm0, %v887_v44  ;;  %v3177_v13 = vand.u32 %v13635_v10, %v3175_v47  ;;  %v893_v4 = vshll.u32 %v14833_v18, 16  ;;  %v898_v15 = vshrl.u32 %v584_v28, 16  ;;  %v2596_v22 = vsel %vm1475_vm10, %v2591_v62, %v2595_v6 }
  0x95   : > { %642 = vst [vmem:[#allocation2 + $0x84] sm:$0x1] %v641_v8  ;;  %v901_v27 = vshll.u32 %v584_v28, 16  ;;  %v697_v29 = vsel %vm14296_vm5, 0, %v696_v60  ;;  %v644_v10 = vsel %vm14274_vm3, 0, %v643_v11  ;;  %v907_v32 = vshrl.u32 %v14855_v58, 16 }
  0x96   : > { %vm2886_vm14 = vcmask 48128   ;;  %v1594_v18 = vrot.slane %v1592_v41, 1  ;;  %v2088_v44 = vshll.u32 %v14846_v59, 16  ;;  %13385 = vmatprep.subr.bf16.mxu0 %v3177_v13  ;;  %698 = vst [vmem:[#allocation2 + $0x8c] sm:$0x1] %v697_v29  ;;  %v12042_v63 = vcombine.low %v1274_v54, %v14807_v50 }
  0x97   : > { %2321 = vrot.lane.b32.xlu0 %v2281_v3, %s14157_s20  ;;  %2323 = vrot.lane.b32.xlu1 %v2284_v16, %s14157_s20  ;;  %v14867_v16 = vld [vmem:[#allocation2 + $0x74] ss:$0 sps:$4 sm:$0x11]   ;;  %645 = vst [vmem:[#allocation2 + $0x90] sm:$0x1] %v644_v10  ;;  %v2086_v2 = vshrl.u32 %v14846_v59, 16  ;;  %v1583_v41 = vsel %vm1475_vm10, %v14813_v20, %v14819_v25  ;;  %v1590_v50 = vor.u32 %v1589_v17, %v1585_v19 }
  0x98   : > { %13386 = vmatpush3.bf16.msra.mxu0 %v3177_v13  ;;  %v1299_v8 = vld [vmem:[#allocation2 + $0x78] sm:$0xf]  ;;  %v14900_v20 = vrot.slane %v907_v32, 7  ;;  %v910_v25 = vshll.u32 %v14855_v58, 16  ;;  %v14911_v19 = vrot.slane %v12042_v63, 1  ;;  %vm2919_vm15 = vcmask 72704  }
  0x99   : > { %v14835_v21 = vpop.permute.xlu0 %1909  ;;  %v1275_v54 = vld [vmem:[#allocation2 + $0x78] sm:$0xe]  ;;  %v14917_v58 = vld [vmem:[%s14308_s0 + $0x5c] sm:$0xf]  ;;  %vm2952_vm1 = vcmask 97280   ;;  %vm2985_vm6 = vcmask 121856  }
  0x9a   : > { %v1339_v10 = vld [vmem:[#allocation2 + $0x78] sm:$0xe]  ;;  %vm3018_vm11 = vcmask 146432   ;;  %vm3084_vm12 = vcmask 195584   ;;  %vm3051_vm2 = vcmask 171008   ;;  %vm3139_vm4 = vcmask 220160  }
  0x9b   : > { %2433 = vrot.lane.b32.xlu0 %v14744_v5, %s14155_s19  ;;  %v888_v5 = vrot.slane %v14805_v30, 4  ;;  %2435 = vrot.lane.b32.xlu1 %v14780_v49, %s14155_s19  ;;  %v892_v30 = vrot.slane %v890_v55, 7  ;;  %v1109_v49 = vld [vmem:[#allocation2 + $0x80] sm:$0x1]  ;;  %v14882_v60 = vld [vmem:[#allocation2 + $0x7c] sm:$0xf] }
  0x9c   : > { %v14857_v3 = vpop.permute.xlu1 %1911  ;;  %v14891_v55 = vld [vmem:[#allocation2 + $0x7c] sm:$0xf]  ;;  %v1112_v17 = vld [vmem:[#allocation2 + $0x84] sm:$0xf] }
  0x9d   : > { %v14860_v23 = vpop.permute.xlu0 %2421  ;;  %v1110_v62 = vsel %vm14274_vm3, %v888_v5, %v1109_v49  ;;  %v896_v6 = vrot.slane %v892_v30, 4  ;;  %v895_v47 = vor.u32 %v893_v4, %v892_v30  ;;  %v2796_v5 = vsel %vm1748_vm8, %v14839_v53, %v2795_v52  ;;  %v14932_v63 = vld [vmem:[#allocation2 + $0x7c] sm:$0xf] }
  0x9e   : > { %1111 = vst [vmem:[#allocation2 + $0x80] sm:$0x1] %v1110_v62  ;;  %v14906_v4 = vcombine.low %v1236_v42, %v14882_v60  ;;  %v2286_v53 = vrot.slane %v14867_v16, 1  ;;  %v14923_v32 = vcombine.low %v1299_v8, %v14891_v55  ;;  %v1775_v49 = vsel %vm1748_vm8, %v14784_v26, %v1774_v56  ;;  %v1174_v42 = vld [vmem:[#allocation2 + $0x78] sm:$0xf] }
  0x9f   : > { %2705 = vrot.lane.b32.xlu0 %v2584_v48, %s14160_s28  ;;  %v900_v48 = vrot.slane %v898_v15, 7  ;;  %2707 = vrot.lane.b32.xlu1 %v2596_v22, %s14160_s28  ;;  %v2090_v15 = vrot.slane %v2088_v44, 1  ;;  %v1113_v29 = vsel %vm14324_vm7, %v895_v47, %v1112_v17  ;;  %v699_v22 = vld [vmem:[#allocation2 + $0x98] sm:$0x1]  ;;  %v1595_v44 = vsel %vm1475_vm10, %v1590_v50, %v1594_v18  ;;  %v14943_v26 = vld [vmem:[#allocation2 + $0x78] sm:$0xe] }
  0xa0   : > { %v14879_v43 = vpop.permute.xlu1 %2423  ;;  %1114 = vst [vmem:[#allocation2 + $0x84] sm:$0xf] %v1113_v29  ;;  %v912_v62 = vor.u32 %v910_v25, %v14900_v20  ;;  %v2100_v18 = vshll.u32 %v14906_v4, 16  ;;  %v12043_v47 = vcombine.low %v1275_v54, %v14882_v60  ;;  %v1119_v56 = vld [vmem:[#allocation2 + $0x90] sm:$0xf]  ;;  %v14954_v54 = vcombine.low %v1174_v42, %v14932_v63 }
  0xa1   : > { %v1669_v28 = vpop.permute.xlu0 %1668  ;;  %v903_v11 = vor.u32 %v901_v27, %v900_v48  ;;  %v905_v27 = vrot.slane %v900_v48, 4  ;;  %v1116_v48 = vld [vmem:[#allocation2 + $0x8c] sm:$0x1]  ;;  %v915_v25 = vshrl.u32 %v14917_v58, 16  ;;  %v700_v29 = vsel %vm14296_vm5, 0, %v699_v22 }
  0xa2   : > { %v1120_v60 = vsel %vm14324_vm7, %v912_v62, %v1119_v56  ;;  %v14974_v24 = vrot.slane %v12043_v47, 1  ;;  %701 = vst [vmem:[#allocation2 + $0x98] sm:$0x1] %v700_v29  ;;  %v11996_v22 = vcombine.low %v14943_v26, %v14932_v63  ;;  %v1599_v47 = vshll.u32 %v14954_v54, 16 }
  0xa3   : > { %2833 = vrot.lane.b32.xlu0 %v14827_v35, %s14158_s21  ;;  %v2093_v35 = vshll.u32 %v14867_v16, 16  ;;  %v904_v52 = vsel %vm14330_vm9, %v896_v6, %v903_v11  ;;  %1684 = vrot.lane.b32.xlu1 %v1583_v41, %s14156_s1  ;;  %v2855_v6 = vsel %vm2853_vm13, %v14347_v9, %v1669_v28  ;;  %v1117_v37 = vsel %vm14274_vm3, %v905_v27, %v1116_v48  ;;  %v646_v11 = vld [vmem:[#allocation2 + $0x9c] sm:$0x1] }
  0xa4   : > { %v14903_v13 = vpop.permute.xlu1 %1799  ;;  %1115 = vst.msk [vmem:[#allocation2 + $0x88] sm:$0xf] %vm595_vm0, %v904_v52  ;;  %v12090_v28 = vcombine.low %v1339_v10, %v14891_v55  ;;  %1118 = vst [vmem:[#allocation2 + $0x8c] sm:$0x1] %v1117_v37  ;;  %v918_v27 = vshll.u32 %v14917_v58, 16  ;;  %v2888_v52 = vsel %vm2886_vm14, %v2855_v6, %v14810_v14  ;;  %v1778_v55 = vsel %vm1748_vm8, %v14852_v36, %v1777_v31 }
  0xa5   : > { %v14909_v30 = vpop.permute.xlu0 %2309  ;;  %v14947_v50 = vld [vmem:[#allocation2 + $0x80] ss:$0 sps:$4 sm:$0x11]   ;;  %v2095_v9 = vrot.slane %v2093_v35, 1  ;;  %1121 = vst [vmem:[#allocation2 + $0x90] sm:$0xf] %v1120_v60  ;;  %v2091_v35 = vor.u32 %v2090_v15, %v2086_v2 }
  0xa6   : > { %v14968_v17 = vld [vmem:[#allocation2 + $0x80] ss:$0 sps:$4 sm:$0x11]   ;;  %v2098_v14 = vshrl.u32 %v14906_v4, 16  ;;  %v2102_v48 = vrot.slane %v2100_v18, 1  ;;  %v2598_v2 = vshrl.u32 %v14923_v32, 16 }
  0xa7   : > { %2835 = vrot.lane.b32.xlu0 %v2796_v5, %s14158_s21  ;;  %v2600_v5 = vshll.u32 %v14923_v32, 16  ;;  %1686 = vrot.lane.b32.xlu1 %v1595_v44, %s14156_s1  ;;  %v2105_v44 = vshll.u32 %v14947_v50, 16  ;;  %v14979_v15 = vrot.slane %v12090_v28, 1  ;;  %v1301_v62 = vld [vmem:[#allocation2 + $0x84] sm:$0xf]  ;;  %v1597_v18 = vshrl.u32 %v14954_v54, 16 }
  0xa8   : > { %v14937_v41 = vpop.permute.xlu1 %2311  ;;  %v14998_v26 = vrot.slane %v915_v25, 7  ;;  %v2103_v28 = vor.u32 %v2102_v48, %v2098_v14  ;;  %v2287_v25 = vsel %vm1748_vm8, %v14911_v19, %v2286_v53  ;;  %v2289_v19 = vrot.slane %v14947_v50, 1 }
  0xa9   : > { %v14945_v8 = vpop.permute.xlu0 %2821  ;;  %v2602_v6 = vrot.slane %v2600_v5, 1  ;;  %v2107_v60 = vrot.slane %v2105_v44, 1  ;;  %v2096_v5 = vsel %vm1475_vm10, %v2091_v35, %v2095_v9  ;;  %v1601_v9 = vrot.slane %v1599_v47, 1  ;;  %v1340_v47 = vld [vmem:[#allocation2 + $0x84] sm:$0xe] }
  0xaa   : > { %v15017_v35 = vrot.slane %v11996_v22, 1  ;;  %v920_v50 = vor.u32 %v918_v27, %v14998_v26 }
  0xab   : > { %1813 = vrot.lane.b32.xlu0 %v1775_v49, %s14153_s30  ;;  %v14976_v31 = vld [vmem:[#allocation2 + $0x88] sm:$0xf]  ;;  %v647_v49 = vsel %vm14274_vm3, 0, %v646_v11  ;;  %1815 = vrot.lane.b32.xlu1 %v1778_v55, %s14153_s30  ;;  %v15003_v55 = vld [vmem:[#allocation2 + $0x80] ss:$0 sps:$4 sm:$0x11]  }
  0xac   : > { %v2184_v10 = vpop.permute.xlu1 %2183  ;;  %648 = vst [vmem:[#allocation2 + $0x9c] sm:$0x1] %v647_v49  ;;  %v14995_v63 = vcombine.low %v1301_v62, %v14976_v31  ;;  %v15015_v48 = vld [vmem:[#allocation2 + $0x8c] ss:$0 sps:$4 sm:$0x11]   ;;  %v2798_v49 = vrot.slane %v14968_v17, 1 }
  0xad   : > { %v1671_v36 = vpop.permute.xlu0 %1670 }
  0xae   : > { %v2857_v42 = vsel %vm2853_vm13, %v14381_v57, %v1671_v36  ;;  %v2605_v57 = vshll.u32 %v14968_v17, 16  ;;  %v1176_v36 = vld [vmem:[#allocation2 + $0x84] sm:$0xf]  ;;  %v2612_v53 = vshll.u32 %v14995_v63, 16  ;;  %v2603_v17 = vor.u32 %v2602_v6, %v2598_v2 }
  0xaf   : > { %v2890_v37 = vsel %vm2886_vm14, %v2857_v42, %v14903_v13  ;;  %1925 = vrot.lane.b32.xlu0 %v14846_v59, %s14154_s18  ;;  %v2921_v59 = vsel %vm2919_vm15, %v2888_v52, %v14835_v21  ;;  %1927 = vrot.lane.b32.xlu1 %v14906_v4, %s14154_s18  ;;  %v2108_v52 = vsel %vm1475_vm10, %v2103_v28, %v2107_v60  ;;  %v1604_v4 = vshll.u32 %v15003_v55, 16 }
  0xb0   : > { %v2923_v56 = vsel %vm2919_vm15, %v2890_v37, %v14857_v3  ;;  %v2696_v11 = vpop.permute.xlu1 %2695  ;;  %v15012_v3 = vld [vmem:[#allocation2 + $0x88] sm:$0xf]  ;;  %v922_v42 = vrot.slane %v14998_v26, 4  ;;  %v2610_v37 = vshrl.u32 %v14995_v63, 16  ;;  %v2614_v27 = vrot.slane %v2612_v53, 1 }
  0xb1   : > { %v2956_v13 = vsel %vm2952_vm1, %v2923_v56, %v2184_v10  ;;  %v2182_v29 = vpop.permute.xlu0 %2181  ;;  %v913_v10 = vrot.slane %v14900_v20, 4  ;;  %v15052_v26 = vld [vmem:[#allocation2 + $0x8c] ss:$0 sps:$4 sm:$0x11]   ;;  %v587_v56 = vld [vmem:[%s14308_s0 + $0x60] sm:$0xf]  ;;  %v2290_v28 = vsel %vm1748_vm8, %v14974_v24, %v2289_v19 }
  0xb2   : > { %v2954_v14 = vsel %vm2952_vm1, %v2921_v59, %v2182_v29  ;;  %v2989_v21 = vsel %vm2985_vm6, %v2956_v13, %v14937_v41  ;;  %v15036_v41 = vcombine.low %v1176_v36, %v15012_v3  ;;  %v1780_v59 = vrot.slane %v15003_v55, 1  ;;  %v1238_v36 = vld [vmem:[#allocation2 + $0x84] sm:$0xf]  ;;  %v649_v19 = vld [vmem:[#allocation2 + $0xa8] sm:$0x1] }
  0xb3   : > { %v2987_v16 = vsel %vm2985_vm6, %v2954_v14, %v14909_v30  ;;  %2197 = vrot.lane.b32.xlu0 %v2096_v5, %s14159_s27  ;;  %v2607_v30 = vrot.slane %v2605_v57, 1  ;;  %v3022_v62 = vsel %vm3018_vm11, %v2989_v21, %v14879_v43  ;;  %v2617_v57 = vshll.u32 %v15015_v48, 16  ;;  %2199 = vrot.lane.b32.xlu1 %v2108_v52, %s14159_s27  ;;  %v1123_v43 = vld [vmem:[#allocation2 + $0x98] sm:$0x1] }
  0xb4   : > { %v15030_v44 = vpop.permute.xlu1 %1672  ;;  %v3020_v20 = vsel %vm3018_vm11, %v2987_v16, %v14860_v23  ;;  %v15060_v5 = vrot.slane %v1604_v4, 1  ;;  %v1611_v13 = vshll.u32 %v15036_v41, 16  ;;  %v3055_v2 = vsel %vm3051_vm2, %v3022_v62, %v2696_v11  ;;  %v1240_v62 = vld [vmem:[#allocation2 + $0x90] sm:$0xf] }
  0xb5   : > { %v2694_v22 = vpop.permute.xlu0 %2693  ;;  %v12091_v29 = vcombine.low %v1340_v47, %v14976_v31  ;;  %v921_v24 = vsel %vm14330_vm9, %v913_v10, %v920_v50  ;;  %v1602_v21 = vor.u32 %v1601_v9, %v1597_v18  ;;  %v2799_v16 = vsel %vm1748_vm8, %v14979_v15, %v2798_v49  ;;  %v702_v31 = vld [vmem:[#allocation2 + $0xa4] sm:$0x1]  ;;  %v15084_v9 = vld [vmem:[#allocation2 + $0x88] sm:$0xf] }
  0xb6   : > { %v3053_v23 = vsel %vm3051_vm2, %v3020_v20, %v2694_v22  ;;  %1122 = vst.msk [vmem:[#allocation2 + $0x94] sm:$0xf] %vm595_vm0, %v921_v24  ;;  %v1124_v11 = vsel %vm14274_vm3, %v922_v42, %v1123_v43  ;;  %v2615_v10 = vor.u32 %v2614_v27, %v2610_v37  ;;  %v2619_v53 = vrot.slane %v2617_v57, 1 }
  0xb7   : > { %2325 = vrot.lane.b32.xlu0 %v2287_v25, %s14157_s20  ;;  %v3086_v58 = vsel %vm3084_vm12, %v3053_v23, %v14945_v8  ;;  %v588_v8 = vld [vmem:[%s14308_s0 + $0x64] sm:$0xf]  ;;  %2327 = vrot.lane.b32.xlu1 %v2290_v28, %s14157_s20  ;;  %v2608_v52 = vsel %vm1475_vm10, %v2603_v17, %v2607_v30  ;;  %v1616_v18 = vshll.u32 %v15052_v26, 16  ;;  %1125 = vst [vmem:[#allocation2 + $0x98] sm:$0x1] %v1124_v11  ;;  %v1609_v15 = vshrl.u32 %v15036_v41, 16 }
  0xb8   : > { %v15057_v60 = vpop.permute.xlu1 %1674  ;;  %13387 = vmatprep.mubr.msk.bf16.mxu0 %vm3139_vm4, %v3086_v58  ;;  %v15067_v25 = vld [vmem:[#allocation2 + $0x84] sm:$0xe]  ;;  %v924_v20 = vshrl.u32 %v587_v56, 16  ;;  %v927_v4 = vshll.u32 %v587_v56, 16  ;;  %v932_v22 = vshrl.u32 %v588_v8, 16  ;;  %v2800_v42 = vrot.slane %v12091_v29, 1 }
  0xb9   : > { %v2824_v6 = vpop.permute.xlu0 %2823  ;;  %v2801_v30 = vrot.slane %v15015_v48, 1  ;;  %v1276_v23 = vld [vmem:[#allocation2 + $0x84] sm:$0xe]  ;;  %v935_v47 = vshll.u32 %v588_v8, 16  ;;  %v11997_v37 = vcombine.low %v15067_v25, %v15012_v3  ;;  %v15096_v57 = vcombine.low %v1238_v36, %v15084_v9  ;;  %v1126_v17 = vld [vmem:[#allocation2 + $0x9c] sm:$0xf] }
  0xba   : > { %v3088_v14 = vsel %vm3084_vm12, %v3055_v2, %v2824_v6  ;;  %v926_v58 = vrot.slane %v924_v20, 7  ;;  %v15098_v27 = vrot.slane %v932_v22, 7  ;;  %v2620_v43 = vsel %vm1475_vm10, %v2615_v10, %v2619_v53  ;;  %v1303_v25 = vld [vmem:[#allocation2 + $0x90] sm:$0xf]  ;;  %v15126_v10 = vld [vmem:[%s14308_s0 + $0x68] sm:$0xf] }
  0xbb   : > { %2437 = vrot.lane.b32.xlu0 %v14923_v32, %s14155_s19  ;;  %13388 = vmatmul.mubr.msk.bf16.vlgmr.msra.gmra.mrb[0].mxu0 %vm3139_vm4, %v3088_v14  ;;  %v1613_v32 = vrot.slane %v1611_v13, 1  ;;  %v1618_v48 = vrot.slane %v1616_v18, 1  ;;  %v703_v56 = vsel %vm14296_vm5, 0, %v702_v31  ;;  %v650_v3 = vsel %vm14274_vm3, 0, %v649_v19  ;;  %v1277_v36 = vld [vmem:[#allocation2 + $0x90] sm:$0xe] }
  0xbc   : > { %v15088_v49 = vpop.permute.xlu1 %1803  ;;  %2439 = vrot.lane.b32.xlu1 %v14995_v63, %s14155_s19  ;;  %v1783_v28 = vrot.slane %v15052_v26, 1  ;;  %v929_v13 = vor.u32 %v927_v4, %v926_v58  ;;  %v930_v8 = vrot.slane %v926_v58, 4  ;;  %v937_v2 = vor.u32 %v935_v47, %v15098_v27  ;;  %704 = vst [vmem:[#allocation2 + $0xa4] sm:$0x1] %v703_v56  ;;  %651 = vst [vmem:[#allocation2 + $0xa8] sm:$0x1] %v650_v3 }
  0xbd   : > { %v15090_v50 = vpop.permute.xlu0 %1801  ;;  %v1614_v6 = vor.u32 %v1613_v32, %v1609_v15  ;;  %v15112_v29 = vld [vmem:[#allocation2 + $0x94] sm:$0xf]  ;;  %v2112_v26 = vshll.u32 %v15096_v57, 16  ;;  %v12044_v11 = vcombine.low %v1276_v23, %v15084_v9  ;;  %v15121_v31 = vld [vmem:[#allocation2 + $0x8c] ss:$0 sps:$4 sm:$0x11]   ;;  %v2859_v20 = vsel %vm2853_vm13, %v14411_v38, %v15030_v44 }
  0xbe   : > { %v15114_v24 = vld [vmem:[#allocation2 + $0x94] sm:$0xf]  ;;  %v15117_v14 = vcombine.low %v1240_v62, %v15112_v29  ;;  %v938_v19 = vsel %vm14330_vm9, %v930_v8, %v937_v2  ;;  %v1782_v18 = vrot.slane %v11997_v37, 1  ;;  %v15134_v15 = vld [vmem:[#allocation2 + $0x98] ss:$0 sps:$4 sm:$0x11]   ;;  %v1127_v9 = vsel %vm14324_vm7, %v929_v13, %v1126_v17 }
  0xbf   : > { %2709 = vrot.lane.b32.xlu0 %v2608_v52, %s14160_s28  ;;  %v1607_v52 = vsel %vm1475_vm10, %v1602_v21, %v15060_v5  ;;  %1129 = vst.msk [vmem:[#allocation2 + $0xa0] sm:$0xf] %vm595_vm0, %v938_v19  ;;  %v2802_v4 = vsel %vm1748_vm8, %v2800_v42, %v2801_v30  ;;  %v939_v22 = vrot.slane %v15098_v27, 4  ;;  %1128 = vst [vmem:[#allocation2 + $0x9c] sm:$0xf] %v1127_v9  ;;  %v2110_v30 = vshrl.u32 %v15096_v57, 16 }
  0xc0   : > { %2711 = vrot.lane.b32.xlu1 %v2620_v43, %s14160_s28  ;;  %v15129_v53 = vpop.permute.xlu1 %1915  ;;  %v15145_v5 = vcombine.low %v1303_v25, %v15114_v24  ;;  %v15147_v21 = vld [vmem:[#allocation2 + $0x98] ss:$0 sps:$4 sm:$0x11]   ;;  %v1619_v62 = vsel %vm1475_vm10, %v1614_v6, %v1618_v48  ;;  %v1781_v38 = vsel %vm1748_vm8, %v15017_v35, %v1780_v59  ;;  %v2124_v44 = vshll.u32 %v15117_v14, 16  ;;  %v1341_v42 = vld [vmem:[#allocation2 + $0x90] sm:$0xe] }
  0xc1   : > { %v15110_v63 = vpop.permute.xlu0 %1913  ;;  %v2114_v23 = vrot.slane %v2112_v26, 1  ;;  %v2117_v47 = vshll.u32 %v15121_v31, 16  ;;  %v2291_v37 = vrot.slane %v12044_v11, 1  ;;  %v1178_v58 = vld [vmem:[#allocation2 + $0x90] sm:$0xf]  ;;  %v12045_v55 = vcombine.low %v1277_v36, %v15112_v29 }
  0xc2   : > { %v2292_v35 = vrot.slane %v15121_v31, 1  ;;  %v15167_v59 = vld [vmem:[#allocation2 + $0x94] sm:$0xf]  ;;  %v941_v27 = vshrl.u32 %v15126_v10, 16  ;;  %v2129_v17 = vshll.u32 %v15134_v15, 16  ;;  %v2624_v43 = vshll.u32 %v15145_v5, 16 }
  0xc3   : > { %2837 = vrot.lane.b32.xlu0 %v2799_v16, %s14158_s21  ;;  %v2861_v16 = vsel %vm2853_vm13, %v14427_v61, %v15057_v60  ;;  %v1784_v61 = vsel %vm1748_vm8, %v1782_v18, %v1783_v28  ;;  %v1130_v60 = vld [vmem:[#allocation2 + $0xa4] sm:$0x1]  ;;  %v2629_v56 = vshll.u32 %v15147_v21, 16  ;;  %v2122_v8 = vshrl.u32 %v15117_v14, 16  ;;  %v1214_v29 = vld [vmem:[#allocation2 + $0x90] sm:$0xe] }
  0xc4   : > { %1688 = vrot.lane.b32.xlu1 %v1607_v52, %s14156_s1  ;;  %v1131_v48 = vsel %vm14274_vm3, %v939_v22, %v1130_v60  ;;  %v2894_v3 = vsel %vm2886_vm14, %v2861_v16, %v15088_v49  ;;  %v2126_v2 = vrot.slane %v2124_v44, 1  ;;  %v12092_v6 = vcombine.low %v1341_v42, %v15114_v24  ;;  %v15188_v49 = vld [vmem:[#allocation2 + $0x98] ss:$0 sps:$4 sm:$0x11]  }
  0xc5   : > { %v15152_v32 = vpop.permute.xlu0 %2185  ;;  %v15177_v28 = vpop.permute.xlu1 %2187  ;;  %1132 = vst [vmem:[#allocation2 + $0xa4] sm:$0x1] %v1131_v48  ;;  %v2892_v25 = vsel %vm2886_vm14, %v2859_v20, %v15090_v50  ;;  %v2115_v36 = vor.u32 %v2114_v23, %v2110_v30  ;;  %v2119_v26 = vrot.slane %v2117_v47, 1  ;;  %v15186_v31 = vcombine.low %v1178_v58, %v15167_v59  ;;  %v705_v48 = vld [vmem:[#allocation2 + $0xb0] sm:$0x1] }
  0xc6   : > { %v15183_v11 = vld [vmem:[#allocation2 + $0xa0] sm:$0xf]  ;;  %v2294_v19 = vrot.slane %v12045_v55, 1  ;;  %v2295_v24 = vrot.slane %v15134_v15, 1  ;;  %v1305_v52 = vld [vmem:[#allocation2 + $0x9c] sm:$0xf]  ;;  %v2293_v30 = vsel %vm1748_vm8, %v2291_v37, %v2292_v35  ;;  %v11998_v55 = vcombine.low %v1214_v29, %v15167_v59 }
  0xc7   : > { %2839 = vrot.lane.b32.xlu0 %v2802_v4, %s14158_s21  ;;  %v2622_v18 = vshrl.u32 %v15145_v5, 16  ;;  %v15194_v50 = vrot.slane %v941_v27, 7  ;;  %v2131_v9 = vrot.slane %v2129_v17, 1  ;;  %v15197_v20 = vcombine.low %v1305_v52, %v15183_v11  ;;  %v15206_v58 = vld [vmem:[#allocation2 + $0xa0] sm:$0xf] }
  0xc8   : > { %1690 = vrot.lane.b32.xlu1 %v1619_v62, %s14156_s1  ;;  %v2626_v4 = vrot.slane %v2624_v43, 1  ;;  %v2631_v22 = vrot.slane %v2629_v56, 1  ;;  %v2127_v62 = vor.u32 %v2126_v2, %v2122_v8  ;;  %v2803_v42 = vrot.slane %v12092_v6, 1  ;;  %v1342_v37 = vld [vmem:[#allocation2 + $0x9c] sm:$0xe] }
  0xc9   : > { %v2314_v13 = vpop.permute.xlu0 %2313  ;;  %v15199_v16 = vpop.permute.xlu1 %2315  ;;  %v944_v15 = vshll.u32 %v15126_v10, 16  ;;  %v1623_v23 = vshll.u32 %v15186_v31, 16  ;;  %v1628_v47 = vshll.u32 %v15188_v49, 16  ;;  %v2927_v60 = vsel %vm2919_vm15, %v2894_v3, %v15129_v53  ;;  %v1180_v35 = vld [vmem:[#allocation2 + $0x9c] sm:$0xf] }
  0xca   : > { %v2925_v27 = vsel %vm2919_vm15, %v2892_v25, %v15110_v63  ;;  %v2120_v10 = vsel %vm1475_vm10, %v2115_v36, %v2119_v26  ;;  %v15218_v17 = vld [vmem:[%s14308_s0 + $0x6c] sm:$0xf]  ;;  %v15223_v43 = vsel %vm1748_vm8, %v2294_v19, %v2295_v24  ;;  %v2636_v53 = vshll.u32 %v15197_v20, 16 }
  0xcb   : > { %1817 = vrot.lane.b32.xlu0 %v1781_v38, %s14153_s30  ;;  %v1621_v38 = vshrl.u32 %v15186_v31, 16  ;;  %v2958_v59 = vsel %vm2952_vm1, %v2925_v27, %v15152_v32  ;;  %v2132_v8 = vsel %vm1475_vm10, %v2127_v62, %v2131_v9  ;;  %v2804_v2 = vrot.slane %v15147_v21, 1  ;;  %v1133_v32 = vld [vmem:[#allocation2 + $0xa8] sm:$0xf]  ;;  %v15248_v9 = vld [vmem:[#allocation2 + $0xa0] sm:$0xf] }
  0xcc   : > { %1819 = vrot.lane.b32.xlu1 %v1784_v61, %s14153_s30  ;;  %v15226_v63 = vld [vmem:[#allocation2 + $0xa4] ss:$0 sps:$4 sm:$0x11]   ;;  %v2627_v61 = vor.u32 %v2626_v4, %v2622_v18  ;;  %v946_v6 = vor.u32 %v944_v15, %v15194_v50  ;;  %v1625_v29 = vrot.slane %v1623_v23, 1  ;;  %v15232_v25 = vrot.slane %v1628_v47, 1 }
  0xcd   : > { %v2426_v44 = vpop.permute.xlu0 %2425  ;;  %v2428_v56 = vpop.permute.xlu1 %2427  ;;  %v15234_v36 = vrot.slane %v11998_v55, 1  ;;  %v1786_v26 = vrot.slane %v15188_v49, 1  ;;  %v12093_v21 = vcombine.low %v1342_v37, %v15183_v11  ;;  %v15245_v24 = vld [vmem:[#allocation2 + $0xa4] ss:$0 sps:$4 sm:$0x11]   ;;  %v947_v52 = vrot.slane %v15194_v50, 4 }
  0xce   : > { %v1242_v18 = vld [vmem:[#allocation2 + $0x9c] sm:$0xf]  ;;  %v652_v4 = vld [vmem:[#allocation2 + $0xb4] sm:$0x1]  ;;  %v2638_v62 = vrot.slane %v2636_v53, 1  ;;  %v949_v15 = vshrl.u32 %v15218_v17, 16  ;;  %v1134_v50 = vsel %vm14324_vm7, %v946_v6, %v1133_v32  ;;  %v2960_v37 = vsel %vm2952_vm1, %v2927_v60, %v15177_v28 }
  0xcf   : > { %1929 = vrot.lane.b32.xlu0 %v15096_v57, %s14154_s18  ;;  %v2991_v57 = vsel %vm2985_vm6, %v2958_v59, %v2314_v13  ;;  %v15243_v13 = vcombine.low %v1180_v35, %v15206_v58  ;;  %v591_v23 = vld [vmem:[%s14308_s0 + $0x70] sm:$0xf]  ;;  %v952_v27 = vshll.u32 %v15218_v17, 16  ;;  %v2632_v59 = vsel %vm1475_vm10, %v2627_v61, %v2631_v22  ;;  %1135 = vst [vmem:[#allocation2 + $0xa8] sm:$0xf] %v1134_v50 }
  0xd0   : > { %v3024_v19 = vsel %vm3018_vm11, %v2991_v57, %v2426_v44  ;;  %1931 = vrot.lane.b32.xlu1 %v15117_v14, %s14154_s18  ;;  %v2634_v44 = vshrl.u32 %v15197_v20, 16  ;;  %v2641_v14 = vshll.u32 %v15226_v63, 16  ;;  %v15265_v53 = vsel %vm1748_vm8, %v2803_v42, %v2804_v2  ;;  %v15274_v57 = vld [vmem:[%s14308_s0 + $0x74] sm:$0xf] }
  0xd1   : > { %v2698_v3 = vpop.permute.xlu0 %2697  ;;  %v2700_v11 = vpop.permute.xlu1 %2699  ;;  %v2993_v17 = vsel %vm2985_vm6, %v2960_v37, %v15199_v16  ;;  %v1635_v28 = vshll.u32 %v15243_v13, 16  ;;  %v951_v60 = vrot.slane %v949_v15, 7  ;;  %v15278_v42 = vrot.slane %v12093_v21, 1  ;;  %v15289_v32 = vld [vmem:[#allocation2 + $0xa4] ss:$0 sps:$4 sm:$0x11]  }
  0xd2   : > { %v3057_v47 = vsel %vm3051_vm2, %v3024_v19, %v2698_v3  ;;  %v3026_v22 = vsel %vm3018_vm11, %v2993_v17, %v2428_v56  ;;  %v15281_v61 = vcombine.low %v1242_v18, %v15248_v9  ;;  %v653_v16 = vsel %vm14274_vm3, 0, %v652_v4  ;;  %v655_v21 = vld [vmem:[#allocation2 + $0xc0] sm:$0x1]  ;;  %v15304_v37 = vld [vmem:[%s14308_s0 + $0x7c] sm:$0xf] }
  0xd3   : > { %2201 = vrot.lane.b32.xlu0 %v2120_v10, %s14159_s27  ;;  %v706_v10 = vsel %vm14296_vm5, 0, %v705_v48  ;;  %v1633_v48 = vshrl.u32 %v15243_v13, 16  ;;  %v3059_v3 = vsel %vm3051_vm2, %v3026_v22, %v2700_v11  ;;  %v1640_v6 = vshll.u32 %v15245_v24, 16  ;;  %654 = vst [vmem:[#allocation2 + $0xb4] sm:$0x1] %v653_v16 }
  0xd4   : > { %707 = vst [vmem:[#allocation2 + $0xb0] sm:$0x1] %v706_v10  ;;  %2203 = vrot.lane.b32.xlu1 %v2132_v8, %s14159_s27  ;;  %v954_v56 = vor.u32 %v952_v27, %v951_v60  ;;  %v958_v19 = vshrl.u32 %v591_v23, 16  ;;  %v2639_v15 = vor.u32 %v2638_v62, %v2634_v44  ;;  %v956_v4 = vrot.slane %v951_v60, 4  ;;  %v711_v44 = vld [vmem:[#allocation2 + $0xc8] sm:$0x1] }
  0xd5   : > { %v2826_v55 = vpop.permute.xlu0 %2825  ;;  %v15286_v8 = vpop.permute.xlu1 %1676  ;;  %v1626_v11 = vor.u32 %v1625_v29, %v1621_v38  ;;  %v961_v10 = vshll.u32 %v591_v23, 16  ;;  %v1637_v62 = vrot.slane %v1635_v28, 1  ;;  %v656_v38 = vsel %vm14274_vm3, 0, %v655_v21  ;;  %v1215_v22 = vld [vmem:[#allocation2 + $0x9c] sm:$0xe] }
  0xd6   : > { %v3090_v35 = vsel %vm3084_vm12, %v3057_v47, %v2826_v55  ;;  %v2643_v47 = vrot.slane %v2641_v14, 1  ;;  %v15293_v55 = vld [vmem:[%s14308_s0 + $0x78] sm:$0xf]  ;;  %v955_v27 = vsel %vm14330_vm9, %v947_v52, %v954_v56  ;;  %v960_v50 = vrot.slane %v958_v19, 7  ;;  %657 = vst [vmem:[#allocation2 + $0xc0] sm:$0x1] %v656_v38 }
  0xd7   : > { %2329 = vrot.lane.b32.xlu0 %v2293_v30, %s14157_s20  ;;  %13391 = vmatprep.mubr.msk.bf16.mxu0 %vm3139_vm4, %v3090_v35  ;;  %v708_v30 = vld [vmem:[#allocation2 + $0xbc] sm:$0x1]  ;;  %1136 = vst.msk [vmem:[#allocation2 + $0xac] sm:$0xf] %vm595_vm0, %v955_v27  ;;  %v15317_v14 = vrot.slane %v1640_v6, 1  ;;  %v2807_v23 = vrot.slane %v15226_v63, 1  ;;  %v11999_v38 = vcombine.low %v1215_v22, %v15206_v58 }
  0xd8   : > { %2331 = vrot.lane.b32.xlu1 %v15223_v43, %s14157_s20  ;;  %v966_v43 = vshrl.u32 %v15274_v57, 16  ;;  %v963_v17 = vor.u32 %v961_v10, %v960_v50  ;;  %v969_v28 = vshll.u32 %v15274_v57, 16  ;;  %v2644_v60 = vsel %vm1475_vm10, %v2639_v15, %v2643_v47  ;;  %v1244_v63 = vld [vmem:[#allocation2 + $0xa8] sm:$0xf]  ;;  %v1278_v6 = vld [vmem:[#allocation2 + $0x9c] sm:$0xe] }
  0xd9   : > { %v2828_v2 = vpop.permute.xlu0 %2827  ;;  %v15313_v29 = vpop.permute.xlu1 %1678  ;;  %v2141_v57 = vshll.u32 %v15289_v32, 16  ;;  %v964_v56 = vrot.slane %v960_v50, 4  ;;  %v975_v21 = vshrl.u32 %v15293_v55, 16  ;;  %v978_v15 = vshll.u32 %v15293_v55, 16  ;;  %s14162_s0 = smov 32  }
  0xda   : > { %v3092_v18 = vsel %vm3084_vm12, %v3059_v3, %v2828_v2  ;;  %v2136_v3 = vshll.u32 %v15281_v61, 16  ;;  %v658_v2 = vld [vmem:[#allocation2 + $0xcc] sm:$0x1]  ;;  %v968_v19 = vrot.slane %v966_v43, 7  ;;  %v983_v47 = vshrl.u32 %v15304_v37, 16 }
  0xdb   : > { %2441 = vrot.lane.b32.xlu0 %v15145_v5, %s14155_s19  ;;  %13392 = vmatmul.mubr.msk.bf16.gmra.mrb[4].mxu0 %vm3139_vm4, %v3092_v18  ;;  %v709_v5 = vsel %vm14296_vm5, 0, %v708_v30  ;;  %v1137_v35 = vld [vmem:[#allocation2 + $0xb0] sm:$0x1]  ;;  %v2134_v30 = vshrl.u32 %v15281_v61, 16  ;;  %v1140_v18 = vld [vmem:[#allocation2 + $0xb4] sm:$0xf]  ;;  %v2865_v39 = vsel %vm2853_vm13, %v14545_v40, %v15313_v29  ;;  %v2863_v40 = vsel %vm2853_vm13, %v14520_v45, %v15286_v8 }
  0xdc   : > { %710 = vst [vmem:[#allocation2 + $0xbc] sm:$0x1] %v709_v5  ;;  %v1138_v16 = vsel %vm14274_vm3, %v956_v4, %v1137_v35  ;;  %2443 = vrot.lane.b32.xlu1 %v15197_v20, %s14155_s19  ;;  %v986_v4 = vshll.u32 %v15304_v37, 16  ;;  %v712_v20 = vsel %vm14296_vm5, 0, %v711_v44  ;;  %v971_v10 = vor.u32 %v969_v28, %v968_v19  ;;  %v1307_v28 = vld [vmem:[#allocation2 + $0xa8] sm:$0xf] }
  0xdd   : > { %v15315_v52 = vpop.permute.xlu0 %1805  ;;  %1139 = vst [vmem:[#allocation2 + $0xb0] sm:$0x1] %v1138_v16  ;;  %v973_v5 = vrot.slane %v968_v19, 4  ;;  %v1141_v50 = vsel %vm14324_vm7, %v963_v17, %v1140_v18  ;;  %v977_v43 = vrot.slane %v975_v21, 7  ;;  %713 = vst [vmem:[#allocation2 + $0xc8] sm:$0x1] %v712_v20  ;;  %v1631_v44 = vsel %vm1475_vm10, %v1626_v11, %v15232_v25 }
  0xde   : > { %1142 = vst [vmem:[#allocation2 + $0xb4] sm:$0xf] %v1141_v50  ;;  %v15342_v55 = vrot.slane %v983_v47, 7  ;;  %v659_v37 = vsel %vm14274_vm3, 0, %v658_v2  ;;  %v1245_v35 = vld [vmem:[#allocation2 + $0xac] sm:$0xf]  ;;  %v972_v17 = vsel %vm14330_vm9, %v964_v56, %v971_v10  ;;  %v1638_v2 = vor.u32 %v1637_v62, %v1633_v48 }
  0xdf   : > { %2713 = vrot.lane.b32.xlu0 %v2632_v59, %s14160_s28  ;;  %v15336_v59 = vpop.permute.xlu1 %1807  ;;  %v15354_v16 = vld [vmem:[#allocation2 + $0xac] sm:$0xf]  ;;  %660 = vst [vmem:[#allocation2 + $0xcc] sm:$0x1] %v659_v37  ;;  %v15360_v25 = vcombine.low %v1244_v63, %v1245_v35  ;;  %v1279_v11 = vld [vmem:[#allocation2 + $0xa8] sm:$0xe]  ;;  %v980_v48 = vor.u32 %v978_v15, %v977_v43 }
  0xe0   : > { %2715 = vrot.lane.b32.xlu1 %v2644_v60, %s14160_s28  ;;  %v2808_v60 = vsel %vm1748_vm8, %v15278_v42, %v2807_v23  ;;  %1143 = vst.msk [vmem:[#allocation2 + $0xb8] sm:$0xf] %vm595_vm0, %v972_v17  ;;  %v2138_v19 = vrot.slane %v2136_v3, 1  ;;  %v981_v62 = vrot.slane %v977_v43, 4  ;;  %v15371_v42 = vcombine.low %v1307_v28, %v15354_v16  ;;  %v1343_v37 = vld [vmem:[#allocation2 + $0xa8] sm:$0xe] }
  0xe1   : > { %v15338_v27 = vpop.permute.xlu0 %1917  ;;  %v988_v23 = vor.u32 %v986_v4, %v15342_v55  ;;  %v1788_v63 = vrot.slane %v11999_v38, 1  ;;  %v1787_v3 = vsel %vm1748_vm8, %v15234_v36, %v1786_v26  ;;  %v12047_v18 = vcombine.low %v1279_v11, %v1245_v35 }
  0xe2   : > { %v1643_v15 = vsel %vm1475_vm10, %v1638_v2, %v15317_v14  ;;  %v2148_v4 = vshll.u32 %v15360_v25, 16  ;;  %v2143_v49 = vrot.slane %v2141_v57, 1  ;;  %v2298_v43 = vrot.slane %v15289_v32, 1  ;;  %v1182_v14 = vld [vmem:[#allocation2 + $0xa8] sm:$0xf] }
  0xe3   : > { %2841 = vrot.lane.b32.xlu0 %v15265_v53, %s14158_s21  ;;  %v12046_v53 = vcombine.low %v1278_v6, %v15248_v9  ;;  %v1144_v58 = vld [vmem:[#allocation2 + $0xbc] sm:$0x1]  ;;  %v15364_v22 = vpop.permute.xlu1 %1919  ;;  %v1147_v9 = vld [vmem:[#allocation2 + $0xc0] sm:$0xf]  ;;  %v1789_v6 = vrot.slane %v15245_v24, 1  ;;  %v989_v10 = vsel %vm14330_vm9, %v981_v62, %v988_v23  ;;  %v2139_v24 = vor.u32 %v2138_v19, %v2134_v30 }
  0xe4   : > { %v1145_v21 = vsel %vm14274_vm3, %v973_v5, %v1144_v58  ;;  %1692 = vrot.lane.b32.xlu1 %v1631_v44, %s14156_s1  ;;  %v13668_v47 = vld [vmem:[#allocation2 + $0xb0] ss:$0 sps:$4 sm:$0x11]   ;;  %v1148_v36 = vsel %vm14324_vm7, %v980_v48, %v1147_v9  ;;  %1150 = vst.msk [vmem:[#allocation2 + $0xc4] sm:$0xf] %vm595_vm0, %v989_v10  ;;  %v2648_v26 = vshll.u32 %v15371_v42, 16  ;;  %v2898_v19 = vsel %vm2886_vm14, %v2865_v39, %v15336_v59 }
  0xe5   : > { %v15366_v56 = vpop.permute.xlu0 %2189  ;;  %1146 = vst [vmem:[#allocation2 + $0xbc] sm:$0x1] %v1145_v21  ;;  %v2297_v20 = vrot.slane %v12046_v53, 1  ;;  %1149 = vst [vmem:[#allocation2 + $0xc0] sm:$0xf] %v1148_v36  ;;  %v2146_v32 = vshrl.u32 %v15360_v25, 16  ;;  %v1790_v44 = vsel %vm1748_vm8, %v1788_v63, %v1789_v6  ;;  %v2896_v21 = vsel %vm2886_vm14, %v2863_v40, %v15315_v52 }
  0xe6   : > { %v2300_v30 = vrot.slane %v12047_v18, 1  ;;  %v2646_v33 = vshrl.u32 %v15371_v42, 16  ;;  %v15400_v57 = vld [vmem:[#allocation2 + $0xac] sm:$0xf]  ;;  %v2150_v38 = vrot.slane %v2148_v4, 1  ;;  %v2153_v35 = vshll.u32 %v13668_v47, 16 }
  0xe7   : > { %2843 = vrot.lane.b32.xlu0 %v2808_v60, %s14158_s21  ;;  %v2192_v5 = vpop.permute.xlu1 %2191  ;;  %v1309_v17 = vld [vmem:[#allocation2 + $0xb4] sm:$0xf]  ;;  %v15403_v28 = vld [vmem:[#allocation2 + $0xb8] sm:$0xf]  ;;  %v2144_v60 = vsel %vm1475_vm10, %v2139_v24, %v2143_v49  ;;  %v2301_v11 = vrot.slane %v13668_v47, 1  ;;  %v2299_v53 = vsel %vm1748_vm8, %v2297_v20, %v2298_v43  ;;  %v2650_v48 = vrot.slane %v2648_v26, 1 }
  0xe8   : > { %1694 = vrot.lane.b32.xlu1 %v1643_v15, %s14156_s1  ;;  %v15410_v58 = vld [vmem:[#allocation2 + $0xb0] ss:$0 sps:$4 sm:$0x11]   ;;  %v15417_v62 = vcombine.low %v1182_v14, %v15400_v57  ;;  %v2929_v8 = vsel %vm2919_vm15, %v2896_v21, %v15338_v27  ;;  %v15427_v23 = vcombine.low %v1309_v17, %v15403_v28  ;;  %v12094_v52 = vcombine.low %v1343_v37, %v15354_v16  ;;  %v15436_v18 = vld [vmem:[#allocation2 + $0xb8] sm:$0xf] }
  0xe9   : > { %v2318_v50 = vpop.permute.xlu0 %2317  ;;  %v15419_v45 = vld [vmem:[#allocation2 + $0xb0] ss:$0 sps:$4 sm:$0x11]   ;;  %v2931_v9 = vsel %vm2919_vm15, %v2898_v19, %v15364_v22  ;;  %v2962_v63 = vsel %vm2952_vm1, %v2929_v8, %v15366_v56  ;;  %v2151_v6 = vor.u32 %v2150_v38, %v2146_v32  ;;  %v2155_v27 = vrot.slane %v2153_v35, 1  ;;  %v1344_v10 = vld [vmem:[#allocation2 + $0xb4] sm:$0xe] }
  0xea   : > { %v2995_v15 = vsel %vm2985_vm6, %v2962_v63, %v2318_v50  ;;  %v2653_v20 = vshll.u32 %v15410_v58, 16  ;;  %v1645_v16 = vshrl.u32 %v15417_v62, 16  ;;  %v2302_v22 = vsel %vm1748_vm8, %v2300_v30, %v2301_v11  ;;  %v1151_v17 = vld [vmem:[#allocation2 + $0xc8] sm:$0x1]  ;;  %v1217_v63 = vld [vmem:[#allocation2 + $0xb4] sm:$0xe] }
  0xeb   : > { %1821 = vrot.lane.b32.xlu0 %v1787_v3, %s14153_s30  ;;  %v2320_v29 = vpop.permute.xlu1 %2319  ;;  %v1184_v3 = vld [vmem:[#allocation2 + $0xb4] sm:$0xf]  ;;  %v2651_v24 = vor.u32 %v2650_v48, %v2646_v33  ;;  %v1647_v56 = vshll.u32 %v15417_v62, 16  ;;  %v1652_v49 = vshll.u32 %v15419_v45, 16  ;;  %v15450_v43 = vrot.slane %v12094_v52, 1 }
  0xec   : > { %1823 = vrot.lane.b32.xlu1 %v1790_v44, %s14153_s30  ;;  %v15429_v59 = vld [vmem:[#allocation2 + $0xbc] ss:$0 sps:$4 sm:$0x11]   ;;  %v15453_v36 = vcombine.low %v1184_v3, %v15436_v18  ;;  %v2156_v14 = vsel %vm1475_vm10, %v2151_v6, %v2155_v27  ;;  %v2810_v37 = vrot.slane %v15410_v58, 1  ;;  %v2655_v38 = vrot.slane %v2653_v20, 1 }
  0xed   : > { %v2430_v2 = vpop.permute.xlu0 %2429  ;;  %v2665_v50 = vshll.u32 %v15429_v59, 16  ;;  %v15458_v39 = vld [vmem:[#allocation2 + $0xbc] ss:$0 sps:$4 sm:$0x11]   ;;  %v990_v35 = vrot.slane %v15342_v55, 4  ;;  %v15466_v11 = vrot.slane %v1652_v49, 1 }
  0xee   : > { %v3028_v26 = vsel %vm3018_vm11, %v2995_v15, %v2430_v2  ;;  %v2658_v2 = vshrl.u32 %v15427_v23, 16  ;;  %v1657_v19 = vshrl.u32 %v15453_v36, 16  ;;  %v1659_v21 = vshll.u32 %v15453_v36, 16  ;;  %v1216_v48 = vld [vmem:[#allocation2 + $0xa8] sm:$0xe] }
  0xef   : > { %1933 = vrot.lane.b32.xlu0 %v15281_v61, %s14154_s18  ;;  %v2964_v61 = vsel %vm2952_vm1, %v2931_v9, %v2192_v5  ;;  %v2432_v47 = vpop.permute.xlu1 %2431  ;;  %v2660_v5 = vshll.u32 %v15427_v23, 16  ;;  %v714_v55 = vld [vmem:[#allocation2 + $0xd4] sm:$0x1]  ;;  %v1664_v52 = vshll.u32 %v15458_v39, 16  ;;  %v1249_v6 = vld [vmem:[#allocation2 + $0xc4] sm:$0xf]  ;;  %v12000_v1 = vcombine.low %v1216_v48, %v15400_v57 }
  0xf0   : > { %1935 = vrot.lane.b32.xlu1 %v15360_v25, %s14154_s18  ;;  %v12095_v25 = vcombine.low %v1344_v10, %v15403_v28  ;;  %v2997_v32 = vsel %vm2985_vm6, %v2964_v61, %v2320_v29  ;;  %v2667_v29 = vrot.slane %v2665_v50, 1  ;;  %v1248_v15 = vld [vmem:[#allocation2 + $0xc0] sm:$0xf]  ;;  %v1247_v20 = vld [vmem:[#allocation2 + $0xb8] sm:$0xf]  ;;  %v1661_v10 = vrot.slane %v1659_v21, 1 }
  0xf1   : > { %v2702_v4 = vpop.permute.xlu0 %2701  ;;  %v2662_v28 = vrot.slane %v2660_v5, 1  ;;  %v3030_v8 = vsel %vm3018_vm11, %v2997_v32, %v2432_v47  ;;  %v2656_v5 = vsel %vm1475_vm10, %v2651_v24, %v2655_v38  ;;  %v1666_v50 = vrot.slane %v1664_v52, 1  ;;  %v1280_v24 = vld [vmem:[#allocation2 + $0xb4] sm:$0xe]  ;;  %v1312_v48 = vld [vmem:[#allocation2 + $0xc4] sm:$0xf] }
  0xf2   : > { %v3061_v33 = vsel %vm3051_vm2, %v3028_v26, %v2702_v4  ;;  %v2812_v9 = vrot.slane %v12095_v25, 1  ;;  %v1246_v4 = vld [vmem:[#allocation2 + $0xb4] sm:$0xf]  ;;  %v715_v26 = vsel %vm14296_vm5, 0, %v714_v55  ;;  %v12001_v25 = vcombine.low %v1217_v63, %v15436_v18 }
  0xf3   : > { %2205 = vrot.lane.b32.xlu0 %v2144_v60, %s14159_s27  ;;  %v2704_v30 = vpop.permute.xlu1 %2703  ;;  %v1649_v60 = vrot.slane %v1647_v56, 1  ;;  %v15485_v56 = vld [vmem:[#allocation2 + $0xbc] ss:$0 sps:$4 sm:$0x11]   ;;  %v2663_v49 = vor.u32 %v2662_v28, %v2658_v2  ;;  %v1795_v57 = vrot.slane %v15458_v39, 1  ;;  %v15498_v32 = vcombine.low %v1248_v15, %v1249_v6 }
  0xf4   : > { %2207 = vrot.lane.b32.xlu1 %v2156_v14, %s14159_s27  ;;  %v3063_v27 = vsel %vm3051_vm2, %v3030_v8, %v2704_v30  ;;  %716 = vst [vmem:[#allocation2 + $0xd4] sm:$0x1] %v715_v26  ;;  %v12016_v30 = vcombine.low %v1246_v4, %v1247_v20  ;;  %v2811_v18 = vsel %vm1748_vm8, %v15450_v43, %v2810_v37  ;;  %v1791_v39 = vrot.slane %v12000_v1, 1  ;;  %v1345_v26 = vld [vmem:[#allocation2 + $0xc0] sm:$0xe] }
  0xf5   : > { %v2830_v44 = vpop.permute.xlu0 %2829  ;;  %v1650_v7 = vor.u32 %v1649_v60, %v1645_v16  ;;  %v2165_v38 = vshll.u32 %v15485_v56, 16  ;;  %v2172_v16 = vshll.u32 %v15498_v32, 16  ;;  %v1311_v60 = vld [vmem:[#allocation2 + $0xc0] sm:$0xf]  ;;  %v1792_v28 = vrot.slane %v15419_v45, 1 }
  0xf6   : > { %v3094_v40 = vsel %vm3084_vm12, %v3061_v33, %v2830_v44  ;;  %v1281_v33 = vld [vmem:[#allocation2 + $0xc0] sm:$0xe]  ;;  %v15505_v44 = vld [vmem:[#allocation2 + $0xd0] sm:$0xf]  ;;  %v12048_v21 = vcombine.low %v1280_v24, %v1247_v20  ;;  %v1662_v43 = vor.u32 %v1661_v10, %v1657_v19  ;;  %v2170_v55 = vshrl.u32 %v15498_v32, 16 }
  0xf7   : > { %2333 = vrot.lane.b32.xlu0 %v2299_v53, %s14157_s20  ;;  %13395 = vmatprep.mubr.msk.bf16.mxu0 %vm3139_vm4, %v3094_v40  ;;  %v1152_v53 = vsel %vm14274_vm3, %v990_v35, %v1151_v17  ;;  %v15478_v3 = vpop.permute.xlu1 %1680  ;;  %v1313_v35 = vld [vmem:[#allocation2 + $0xcc] sm:$0xf]  ;;  %v1794_v40 = vrot.slane %v12001_v25, 1  ;;  %v12049_v2 = vcombine.low %v1281_v33, %v1249_v6  ;;  %v1655_v58 = vsel %vm1475_vm10, %v1650_v7, %v15466_v11 }
  0xf8   : > { %1153 = vst [vmem:[#allocation2 + $0xc8] sm:$0x1] %v1152_v53  ;;  %2335 = vrot.lane.b32.xlu1 %v2302_v22, %s14157_s20  ;;  %v2158_v8 = vshrl.u32 %v12016_v30, 16  ;;  %v2167_v52 = vrot.slane %v2165_v38, 1  ;;  %v15524_v63 = vcombine.low %v1313_v35, %v15505_v44  ;;  %v2303_v15 = vrot.slane %v12048_v21, 1 }
  0xf9   : > { %v2832_v61 = vpop.permute.xlu0 %2831  ;;  %v15530_v19 = vcombine.low %v1311_v60, %v1312_v48  ;;  %v1793_v20 = vsel %vm1748_vm8, %v1791_v39, %v1792_v28  ;;  %v1796_v25 = vsel %vm1748_vm8, %v1794_v40, %v1795_v57  ;;  %v12096_v38 = vcombine.low %v1345_v26, %v1312_v48 }
  0xfa   : > { %v3096_v47 = vsel %vm3084_vm12, %v3063_v27, %v2832_v61  ;;  %v2174_v27 = vrot.slane %v2172_v16, 1  ;;  %v15528_v61 = vrot.slane %v12049_v2, 1  ;;  %v2682_v4 = vshrl.u32 %v15524_v63, 16 }
  0xfb   : > { %2445 = vrot.lane.b32.xlu0 %v15371_v42, %s14155_s19  ;;  %13396 = vmatmul.mubr.msk.bf16.gmra.mrb[8].mxu0 %vm3139_vm4, %v3096_v47  ;;  %v15491_v14 = vpop.permute.xlu1 %1682  ;;  %v2813_v42 = vrot.slane %v15429_v59, 1  ;;  %v2668_v59 = vsel %vm1475_vm10, %v2663_v49, %v2667_v29  ;;  %v2160_v29 = vshll.u32 %v12016_v30, 16  ;;  %v1667_v47 = vsel %vm1475_vm10, %v1662_v43, %v1666_v50 }
  0xfc   : > { %2447 = vrot.lane.b32.xlu1 %v15427_v23, %s14155_s19  ;;  %v2684_v10 = vshll.u32 %v15524_v63, 16  ;;  %v2670_v1 = vshrl.u32 %v15530_v19, 16  ;;  %v2175_v57 = vor.u32 %v2174_v27, %v2170_v55  ;;  %v2869_v16 = vsel %vm2853_vm13, %v14669_v51, %v15491_v14 }
  0xfd   : > { %v15493_v22 = vpop.permute.xlu0 %1809  ;;  %v2814_v37 = vsel %vm1748_vm8, %v2812_v9, %v2813_v42  ;;  %v2162_v11 = vrot.slane %v2160_v29, 1  ;;  %v2304_v9 = vrot.slane %v15485_v56, 1  ;;  %v2672_v56 = vshll.u32 %v15530_v19, 16 }
  0xfe   : > { %v2686_v39 = vrot.slane %v2684_v10, 1  ;;  %v2815_v51 = vrot.slane %v12096_v38, 1  ;;  %vm4652_vm0 = vcmask 257024   ;;  %vm4654_vm3 = vcmask 253952  }
  0xff   : > { %2717 = vrot.lane.b32.xlu0 %v2656_v5, %s14160_s28  ;;  %v15513_v23 = vpop.permute.xlu1 %1811  ;;  %v15526_v53 = vld [vmem:[#allocation2 + $0xc8] ss:$0 sps:$4 sm:$0x11]   ;;  %v2163_v50 = vor.u32 %v2162_v11, %v2158_v8  ;;  %v2674_v28 = vrot.slane %v2672_v56, 1  ;;  %4653 = vst.msk [vmem:[#allocation3] sm:$0xf] %vm4652_vm0, %v14152_v0 }
 0x100   : > { %2719 = vrot.lane.b32.xlu1 %v2668_v59, %s14160_s28  ;;  %v2177_v42 = vshll.u32 %v15526_v53, 16  ;;  %v15545_v24 = vld [vmem:[#allocation2 + $0xc8] ss:$0 sps:$4 sm:$0x11]   ;;  %v2867_v59 = vsel %vm2853_vm13, %v14639_v46, %v15478_v3  ;;  %v2902_v14 = vsel %vm2886_vm14, %v2869_v16, %v15513_v23  ;;  %v2307_v43 = vrot.slane %v15526_v53, 1 }
 0x101   : > { %v1922_v17 = vpop.permute.xlu0 %1921  ;;  %v2900_v35 = vsel %vm2886_vm14, %v2867_v59, %v15493_v22  ;;  %v2168_v40 = vsel %vm1475_vm10, %v2163_v50, %v2167_v52  ;;  %v2305_v22 = vsel %vm1748_vm8, %v2303_v15, %v2304_v9  ;;  %v2677_v21 = vshll.u32 %v15545_v24, 16  ;;  %4655 = vst.msk [vmem:[#allocation3 + $0x4] sm:$0x1] %vm4654_vm3, %v14152_v0  ;;  %4658 = vst.msk [vmem:[#allocation3 + $0x4c] sm:$0x1] %vm4654_vm3, %v14152_v0 }
 0x102   : > { %v2933_v2 = vsel %vm2919_vm15, %v2900_v35, %v1922_v17  ;;  %v2675_v15 = vor.u32 %v2674_v28, %v2670_v1  ;;  %v2816_v26 = vrot.slane %v15545_v24, 1  ;;  %4657 = vst.msk [vmem:[#allocation3 + $0x48] sm:$0xf] %vm4652_vm0, %v14152_v0  ;;  %vm17568_vm5 = vsmask.f32 7938 }
 0x103   : > { %2845 = vrot.lane.b32.xlu0 %v2811_v18, %s14158_s21  ;;  %v1924_v45 = vpop.permute.xlu1 %1923  ;;  %v2179_v18 = vrot.slane %v2177_v42, 1  ;;  %v2679_v11 = vrot.slane %v2677_v21, 1  ;;  %vm15611_vm7 = vmand %vm4654_vm3, %vm17568_vm5  ;;  %vm17571_vm9 = vsmask.f32 256 }
 0x104   : > { %1696 = vrot.lane.b32.xlu1 %v1655_v58, %s14156_s1  ;;  %v2817_v50 = vsel %vm1748_vm8, %v2815_v51, %v2816_v26 }
 0x105   : > { %v2194_v6 = vpop.permute.xlu0 %2193  ;;  %v2180_v58 = vsel %vm1475_vm10, %v2175_v57, %v2179_v18  ;;  %v2680_v1 = vsel %vm1475_vm10, %v2675_v15, %v2679_v11  ;;  %v4695_v18 = vld [vmem:[#allocation3 + $0xc] sm:$0x1] }
 0x106   : > { %v2966_v60 = vsel %vm2952_vm1, %v2933_v2, %v2194_v6  ;;  %v1346_v6 = vld [vmem:[#allocation2 + $0xcc] sm:$0xe]  ;;  %v4661_v2 = vld [vmem:[#allocation3] sm:$0x1] }
 0x107   : > { %2847 = vrot.lane.b32.xlu0 %v2814_v37, %s14158_s21  ;;  %v2196_v49 = vpop.permute.xlu1 %2195  ;;  %v2935_v37 = vsel %vm2919_vm15, %v2902_v14, %v1924_v45  ;;  %v2308_v45 = vsel %vm1748_vm8, %v15528_v61, %v2307_v43  ;;  %v2687_v61 = vor.u32 %v2686_v39, %v2682_v4  ;;  %v4696_v39 = vsel %vm15611_vm7, 0, %v4695_v18 }
 0x108   : > { %1698 = vrot.lane.b32.xlu1 %v1667_v47, %s14156_s1  ;;  %v2968_v8 = vsel %vm2952_vm1, %v2935_v37, %v2196_v49  ;;  %4697 = vst [vmem:[#allocation3 + $0xc] sm:$0x1] %v4696_v39  ;;  %v4719_v43 = vld [vmem:[#allocation3 + $0x4c] sm:$0x1] }
 0x109   : > { %v2322_v5 = vpop.permute.xlu0 %2321 }
 0x10a   : > { %v2999_v29 = vsel %vm2985_vm6, %v2966_v60, %v2322_v5  ;;  %v12097_v5 = vcombine.low %v1346_v6, %v15505_v44 }
 0x10b   : > { %1825 = vrot.lane.b32.xlu0 %v1793_v20, %s14153_s30  ;;  %v2324_v33 = vpop.permute.xlu1 %2323 }
 0x10c   : > { %1827 = vrot.lane.b32.xlu1 %v1796_v25, %s14153_s30  ;;  %v3001_v27 = vsel %vm2985_vm6, %v2968_v8, %v2324_v33  ;;  %s14163_s30 = smov 64  }
 0x10d   : > { %v2434_v7 = vpop.permute.xlu0 %2433 }
 0x10e   : > { %v3032_v17 = vsel %vm3018_vm11, %v2999_v29, %v2434_v7 }
 0x10f   : > { %1937 = vrot.lane.b32.xlu0 %v12016_v30, %s14154_s18  ;;  %v2436_v46 = vpop.permute.xlu1 %2435  ;;  %v13691_v30 = vld [vmem:[#allocation2 + $0xd4] ss:$0 sps:$4 sm:$0x11]  }
 0x110   : > { %1939 = vrot.lane.b32.xlu1 %v15498_v32, %s14154_s18  ;;  %v2689_v23 = vshll.u32 %v13691_v30, 16  ;;  %v3034_v53 = vsel %vm3018_vm11, %v3001_v27, %v2436_v46  ;;  %v2819_v25 = vrot.slane %v13691_v30, 1  ;;  %v4692_v46 = vld [vmem:[#allocation3 + $0x4] sm:$0x1]  ;;  %s14164_s18 = smov 96  }
 0x111   : > { %v2706_v3 = vpop.permute.xlu0 %2705  ;;  %v4693_v60 = vsel %vm15611_vm7, 0, %v4692_v46  ;;  %v4698_v46 = vld [vmem:[#allocation3 + $0x14] sm:$0x1] }
 0x112   : > { %v3065_v32 = vsel %vm3051_vm2, %v3032_v17, %v2706_v3  ;;  %v2691_v49 = vrot.slane %v2689_v23, 1  ;;  %4694 = vst [vmem:[#allocation3 + $0x4] sm:$0x1] %v4693_v60 }
 0x113   : > { %2209 = vrot.lane.b32.xlu0 %v2168_v40, %s14159_s27  ;;  %v2708_v48 = vpop.permute.xlu1 %2707  ;;  %v4664_v40 = vld [vmem:[#allocation3 + $0x8] sm:$0x1] }
 0x114   : > { %2211 = vrot.lane.b32.xlu1 %v2180_v58, %s14159_s27  ;;  %v3067_v9 = vsel %vm3051_vm2, %v3034_v53, %v2708_v48  ;;  %v2692_v44 = vsel %vm1475_vm10, %v2687_v61, %v2691_v49  ;;  %v4688_v58 = vld [vmem:[#allocation3 + $0x48] sm:$0x1]  ;;  %vm5044_vm10 = vcmask 1042434  }
 0x115   : > { %v2834_v55 = vpop.permute.xlu0 %2833 }
 0x116   : > { %v3098_v52 = vsel %vm3084_vm12, %v3065_v32, %v2834_v55 }
 0x117   : > { %2337 = vrot.lane.b32.xlu0 %v2305_v22, %s14157_s20  ;;  %13399 = vmatprep.mubr.msk.bf16.mxu0 %vm3139_vm4, %v3098_v52  ;;  %v1685_v47 = vpop.permute.xlu1 %1684 }
 0x118   : > { %2339 = vrot.lane.b32.xlu1 %v2308_v45, %s14157_s20  ;;  %v2871_v29 = vsel %vm2853_vm13, %v14751_v34, %v1685_v47  ;;  %v4720_v34 = vsel %vm15611_vm7, 0, %v4719_v43 }
 0x119   : > { %v2836_v20 = vpop.permute.xlu0 %2835  ;;  %4721 = vst [vmem:[#allocation3 + $0x4c] sm:$0x1] %v4720_v34  ;;  %v5243_v11 = vld [vmem:[#allocation3 + $0x4] sm:$0x1] }
 0x11a   : > { %v3100_v10 = vsel %vm3084_vm12, %v3067_v9, %v2836_v20 }
 0x11b   : > { %2449 = vrot.lane.b32.xlu0 %v15530_v19, %s14155_s19  ;;  %13400 = vmatmul.mubr.msk.bf16.gmra.mrb[12].mxu0 %vm3139_vm4, %v3100_v10  ;;  %v1687_v42 = vpop.permute.xlu1 %1686  ;;  %v2818_v19 = vrot.slane %v12097_v5, 1 }
 0x11c   : > { %2451 = vrot.lane.b32.xlu1 %v15524_v63, %s14155_s19  ;;  %v2873_v21 = vsel %vm2853_vm13, %v14800_v12, %v1687_v42 }
 0x11d   : > { %v1814_v56 = vpop.permute.xlu0 %1813  ;;  %v2820_v63 = vsel %vm1748_vm8, %v2818_v19, %v2819_v25  ;;  %vm15620_vm8 = vmand %vm4654_vm3, %vm17571_vm9  ;;  %vm6600_vm3 = vcmask 518144  }
 0x11e   : > { %v4665_v16 = vsel %vm15620_vm8, 0, %v4664_v40  ;;  %v4662_v3 = vsel %vm15620_vm8, 0, %v4661_v2  ;;  %v2904_v22 = vsel %vm2886_vm14, %v2871_v29, %v1814_v56  ;;  %v4689_v48 = vsel %vm15620_vm8, 0, %v4688_v58  ;;  %6601 = vst.msk [vmem:[#allocation4] sm:$0x7] %vm6600_vm3, %v14152_v0 }
 0x11f   : > { %2721 = vrot.lane.b32.xlu0 %v2680_v1, %s14160_s28  ;;  %v1816_v33 = vpop.permute.xlu1 %1815  ;;  %4666 = vst [vmem:[#allocation3 + $0x8] sm:$0x1] %v4665_v16  ;;  %4663 = vst [vmem:[#allocation3] sm:$0x1] %v4662_v3 }
 0x120   : > { %2723 = vrot.lane.b32.xlu1 %v2692_v44, %s14160_s28  ;;  %4690 = vst [vmem:[#allocation3 + $0x48] sm:$0x1] %v4689_v48  ;;  %v2906_v55 = vsel %vm2886_vm14, %v2873_v21, %v1816_v33  ;;  %v5299_v56 = vld [vmem:[#allocation3 + $0x4c] sm:$0x1]  ;;  %v5251_v44 = vld [vmem:[#allocation3] sm:$0xe] }
 0x121   : > { %v1926_v7 = vpop.permute.xlu0 %1925  ;;  %6603 = vst.msk [vmem:[#allocation4 + $0x14] sm:$0x7] %vm6600_vm3, %v14152_v0 }
 0x122   : > { %v2937_v51 = vsel %vm2919_vm15, %v2904_v22, %v1926_v7 }
 0x123   : > { %2849 = vrot.lane.b32.xlu0 %v2817_v50, %s14158_s21  ;;  %v1928_v4 = vpop.permute.xlu1 %1927 }
 0x124   : > { %2851 = vrot.lane.b32.xlu1 %v2820_v63, %s14158_s21  ;;  %v2939_v52 = vsel %vm2919_vm15, %v2906_v55, %v1928_v4  ;;  %v12325_v63 = vcombine.low %v5251_v44, %v5243_v11  ;;  %s556_s21 = scalar_lea.vmem %s17551_s16, %s12871_s29 }
 0x125   : > { %v2198_v24 = vpop.permute.xlu0 %2197 }
 0x126   : > { %v2970_v37 = vsel %vm2952_vm1, %v2937_v51, %v2198_v24  ;;  %v5235_v8 = vld [vmem:[#allocation3] sm:$0xf]  ;;  %v5444_v24 = vrot.slane %v12325_v63, 1 }
 0x127   : > { %v2200_v38 = vpop.permute.xlu1 %2199  ;;  %v12317_v15 = vcombine.low %v5235_v8, %v5243_v11  ;;  %v5291_v42 = vld [vmem:[#allocation3 + $0x48] sm:$0xf] }
 0x128   : > { %v2972_v53 = vsel %vm2952_vm1, %v2939_v52, %v2200_v38  ;;  %v12372_v25 = vcombine.low %v5291_v42, %v5299_v56  ;;  %v12364_v7 = vcombine.low %v5291_v42, %v5291_v42  ;;  %v4701_v42 = vld [vmem:[#allocation3 + $0x1c] sm:$0x1] }
 0x129   : > { %v2326_v35 = vpop.permute.xlu0 %2325  ;;  %v5351_v20 = vshll.u32 %v12317_v15, 16  ;;  %v5349_v26 = vshrl.u32 %v12317_v15, 16 }
 0x12a   : > { %v3003_v32 = vsel %vm2985_vm6, %v2970_v37, %v2326_v35  ;;  %v5752_v4 = vshll.u32 %v12372_v25, 16  ;;  %5674 = vrot.lane.b32.xlu1 %v12364_v7, %s14163_s30  ;;  %v5750_v18 = vshrl.u32 %v12372_v25, 16 }
 0x12b   : > { %v2328_v30 = vpop.permute.xlu1 %2327  ;;  %v5353_v1 = vrot.slane %v5351_v20, 1 }
 0x12c   : > { %v3005_v9 = vsel %vm2985_vm6, %v2972_v53, %v2328_v30  ;;  %v5754_v39 = vrot.slane %v5752_v4, 1  ;;  %v4699_v30 = vsel %vm15611_vm7, 0, %v4698_v46 }
 0x12d   : > { %v2438_v28 = vpop.permute.xlu0 %2437  ;;  %v5354_v19 = vor.u32 %v5353_v1, %v5349_v26  ;;  %4700 = vst [vmem:[#allocation3 + $0x14] sm:$0x1] %v4699_v30  ;;  %v4670_v1 = vld [vmem:[#allocation3 + $0x18] sm:$0x1] }
 0x12e   : > { %v3036_v12 = vsel %vm3018_vm11, %v3003_v32, %v2438_v28  ;;  %v5755_v40 = vor.u32 %v5754_v39, %v5750_v18  ;;  %v4667_v28 = vld [vmem:[#allocation3 + $0x10] sm:$0x1]  ;;  %v4671_v56 = vsel %vm15620_vm8, 0, %v4670_v1  ;;  %v3408_v18 = vlaneseq }
 0x12f   : > { %v2440_v14 = vpop.permute.xlu1 %2439  ;;  %5404 = vrot.lane.b32.xlu0 %v5354_v19, %s14162_s0  ;;  %v4668_v29 = vsel %vm15620_vm8, 0, %v4667_v28  ;;  %v4702_v19 = vsel %vm15611_vm7, 0, %v4701_v42  ;;  %4672 = vst [vmem:[#allocation3 + $0x18] sm:$0x1] %v4671_v56 }
 0x130   : > { %v3038_v47 = vsel %vm3018_vm11, %v3005_v9, %v2440_v14  ;;  %5770 = vrot.lane.b32.xlu1 %v5755_v40, %s14164_s18  ;;  %4669 = vst [vmem:[#allocation3 + $0x10] sm:$0x1] %v4668_v29  ;;  %4703 = vst [vmem:[#allocation3 + $0x1c] sm:$0x1] %v4702_v19 }
 0x131   : > { %v2710_v17 = vpop.permute.xlu0 %2709 }
 0x132   : > { %v3069_v27 = vsel %vm3051_vm2, %v3036_v12, %v2710_v17 }
 0x133   : > { %v2712_v6 = vpop.permute.xlu1 %2711  ;;  %5452 = vrot.lane.b32.xlu0 %v5444_v24, %s14163_s30 }
 0x134   : > { %v3071_v10 = vsel %vm3051_vm2, %v3038_v47, %v2712_v6 }
 0x135   : > { %v2838_v23 = vpop.permute.xlu0 %2837 }
 0x136   : > { %v3102_v45 = vsel %vm3084_vm12, %v3069_v27, %v2838_v23 }
 0x137   : > { %13403 = vmatprep.mubr.msk.bf16.mxu0 %vm3139_vm4, %v3102_v45  ;;  %v1689_v49 = vpop.permute.xlu1 %1688 }
 0x138   : > { %v2875_v51 = vsel %vm2853_vm13, %v14954_v54, %v1689_v49 }
 0x139   : > { %v2840_v5 = vpop.permute.xlu0 %2839 }
 0x13a   : > { %v3104_v61 = vsel %vm3084_vm12, %v3071_v10, %v2840_v5 }
 0x13b   : > { %13404 = vmatmul.mubr.msk.bf16.gmra.mrb[16].mxu0 %vm3139_vm4, %v3104_v61  ;;  %v1691_v50 = vpop.permute.xlu1 %1690 }
 0x13c   : > { %v2877_v17 = vsel %vm2853_vm13, %v15036_v41, %v1691_v50 }
 0x13d   : > { %v1818_v33 = vpop.permute.xlu0 %1817 }
 0x13e   : > { %v2908_v14 = vsel %vm2886_vm14, %v2875_v51, %v1818_v33 }
 0x13f   : > { %v1820_v38 = vpop.permute.xlu1 %1819 }
 0x140   : > { %v2910_v34 = vsel %vm2886_vm14, %v2877_v17, %v1820_v38 }
 0x141   : > { %v1930_v35 = vpop.permute.xlu0 %1929 }
 0x142   : > { %v2941_v58 = vsel %vm2919_vm15, %v2908_v14, %v1930_v35 }
 0x143   : > { %v1932_v16 = vpop.permute.xlu1 %1931 }
 0x144   : > { %v2943_v12 = vsel %vm2919_vm15, %v2910_v34, %v1932_v16 }
 0x145   : > { %v2202_v2 = vpop.permute.xlu0 %2201 }
 0x146   : > { %v2974_v48 = vsel %vm2952_vm1, %v2941_v58, %v2202_v2 }
 0x147   : > { %v2204_v3 = vpop.permute.xlu1 %2203 }
 0x148   : > { %v2976_v41 = vsel %vm2952_vm1, %v2943_v12, %v2204_v3  ;;  %v4673_v12 = vld [vmem:[#allocation3 + $0x20] sm:$0x1] }
 0x149   : > { %v2330_v60 = vpop.permute.xlu0 %2329 }
 0x14a   : > { %v3007_v32 = vsel %vm2985_vm6, %v2974_v48, %v2330_v60 }
 0x14b   : > { %v2332_v22 = vpop.permute.xlu1 %2331 }
 0x14c   : > { %v3009_v27 = vsel %vm2985_vm6, %v2976_v41, %v2332_v22  ;;  %v4674_v41 = vsel %vm15620_vm8, 0, %v4673_v12 }
 0x14d   : > { %v2442_v21 = vpop.permute.xlu0 %2441  ;;  %4675 = vst [vmem:[#allocation3 + $0x20] sm:$0x1] %v4674_v41 }
 0x14e   : > { %v3040_v55 = vsel %vm3018_vm11, %v3007_v32, %v2442_v21  ;;  %v14165_v32 = vmov 1983009808  }
 0x14f   : > { %v2444_v43 = vpop.permute.xlu1 %2443  ;;  %v3406_v34 = vunpack.c.l.s4 %v14165_v32 }
 0x150   : > { %v3042_v23 = vsel %vm3018_vm11, %v3009_v27, %v2444_v43 }
 0x151   : > { %v2714_v37 = vpop.permute.xlu0 %2713  ;;  %v3407_v27 = vunpack.c.0.s8 %v3406_v34 }
 0x152   : > { %v3073_v8 = vsel %vm3051_vm2, %v3040_v55, %v2714_v37 }
 0x153   : > { %v2716_v54 = vpop.permute.xlu1 %2715 }
 0x154   : > { %v3075_v11 = vsel %vm3051_vm2, %v3042_v23, %v2716_v54  ;;  %v4704_v54 = vld [vmem:[#allocation3 + $0x24] sm:$0x1] }
 0x155   : > { %v2842_v52 = vpop.permute.xlu0 %2841 }
 0x156   : > { %v3106_v6 = vsel %vm3084_vm12, %v3073_v8, %v2842_v52  ;;  %v15709_v52 = vld [vmem:[%s17537_s2] ss:$0 sm:$0xff] }
 0x157   : > { %13407 = vmatprep.mubr.msk.bf16.mxu0 %vm3139_vm4, %v3106_v6  ;;  %v1693_v53 = vpop.permute.xlu1 %1692  ;;  %v4705_v6 = vsel %vm15611_vm7, 0, %v4704_v54 }
 0x158   : > { %v2879_v50 = vsel %vm2853_vm13, %v15186_v31, %v1693_v53  ;;  %4706 = vst [vmem:[#allocation3 + $0x24] sm:$0x1] %v4705_v6 }
 0x159   : > { %v2844_v45 = vpop.permute.xlu0 %2843 }
 0x15a   : > { %v3108_v15 = vsel %vm3084_vm12, %v3075_v11, %v2844_v45 }
 0x15b   : > { %13408 = vmatmul.mubr.msk.bf16.gmra.mrb[20].mxu0 %vm3139_vm4, %v3108_v15  ;;  %v1695_v9 = vpop.permute.xlu1 %1694 }
 0x15c   : > { %v2881_v7 = vsel %vm2853_vm13, %v15243_v13, %v1695_v9  ;;  %v3409_v13 = vshrl.u32 %v3408_v18, 7 }
 0x15d   : > { %v1822_v47 = vpop.permute.xlu0 %1821 }
 0x15e   : > { %v2912_v33 = vsel %vm2886_vm14, %v2879_v50, %v1822_v47  ;;  %v15721_v47 = vsub.s32 %v3407_v27, %v3409_v13 }
 0x15f   : > { %v1824_v20 = vpop.permute.xlu1 %1823 }
 0x160   : > { %v2914_v35 = vsel %vm2886_vm14, %v2881_v7, %v1824_v20 }
 0x161   : > { %v1934_v10 = vpop.permute.xlu0 %1933 }
 0x162   : > { %v2945_v63 = vsel %vm2919_vm15, %v2912_v33, %v1934_v10 }
 0x163   : > { %v1936_v49 = vpop.permute.xlu1 %1935 }
 0x164   : > { %v2947_v31 = vsel %vm2919_vm15, %v2914_v35, %v1936_v49 }
 0x165   : > { %v2206_v5 = vpop.permute.xlu0 %2205 }
 0x166   : > { %v2978_v39 = vsel %vm2952_vm1, %v2945_v63, %v2206_v5 }
 0x167   : > { %v2208_v26 = vpop.permute.xlu1 %2207 }
 0x168   : > { %v2980_v3 = vsel %vm2952_vm1, %v2947_v31, %v2208_v26 }
 0x169   : > { %v2334_v61 = vpop.permute.xlu0 %2333 }
 0x16a   : > { %v3011_v38 = vsel %vm2985_vm6, %v2978_v39, %v2334_v61 }
 0x16b   : > { %v2336_v25 = vpop.permute.xlu1 %2335 }
 0x16c   : > { %v3013_v30 = vsel %vm2985_vm6, %v2980_v3, %v2336_v25 }
 0x16d   : > { %v2446_v44 = vpop.permute.xlu0 %2445 }
 0x16e   : > { %v3044_v40 = vsel %vm3018_vm11, %v3011_v38, %v2446_v44 }
 0x16f   : > { %v2448_v4 = vpop.permute.xlu1 %2447 }
 0x170   : > { %v3046_v28 = vsel %vm3018_vm11, %v3013_v30, %v2448_v4 }
 0x171   : > { %v2718_v24 = vpop.permute.xlu0 %2717 }
 0x172   : > { %v3077_v2 = vsel %vm3051_vm2, %v3044_v40, %v2718_v24 }
 0x173   : > { %v2720_v16 = vpop.permute.xlu1 %2719 }
 0x174   : > { %v3079_v29 = vsel %vm3051_vm2, %v3046_v28, %v2720_v16 }
 0x175   : > { %v2846_v46 = vpop.permute.xlu0 %2845 }
 0x176   : > { %v3110_v60 = vsel %vm3084_vm12, %v3077_v2, %v2846_v46 }
 0x177   : > { %13411 = vmatprep.mubr.msk.bf16.mxu0 %vm3139_vm4, %v3110_v60  ;;  %v1697_v22 = vpop.permute.xlu1 %1696 }
 0x178   : > { %v2883_v53 = vsel %vm2853_vm13, %v15417_v62, %v1697_v22 }
 0x179   : > { %v2848_v21 = vpop.permute.xlu0 %2847 }
 0x17a   : > { %v3112_v51 = vsel %vm3084_vm12, %v3079_v29, %v2848_v21 }
 0x17b   : > { %13412 = vmatmul.mubr.msk.bf16.gmra.mrb[24].mxu0 %vm3139_vm4, %v3112_v51  ;;  %v1699_v14 = vpop.permute.xlu1 %1698 }
 0x17c   : > { %v2885_v11 = vsel %vm2853_vm13, %v15453_v36, %v1699_v14  ;;  %vm5047_vm13 = vcmask 1043459  }
 0x17d   : > { %v1826_v17 = vpop.permute.xlu0 %1825 }
 0x17e   : > { %v2916_v15 = vsel %vm2886_vm14, %v2883_v53, %v1826_v17 }
 0x17f   : > { %v1828_v58 = vpop.permute.xlu1 %1827 }
 0x180   : > { %v2918_v10 = vsel %vm2886_vm14, %v2885_v11, %v1828_v58  ;;  %vm5050_vm14 = vcmask 1044484  }
 0x181   : > { %v1938_v43 = vpop.permute.xlu0 %1937 }
 0x182   : > { %v2949_v49 = vsel %vm2919_vm15, %v2916_v15, %v1938_v43 }
 0x183   : > { %v1940_v37 = vpop.permute.xlu1 %1939 }
 0x184   : > { %v2951_v36 = vsel %vm2919_vm15, %v2918_v10, %v1940_v37  ;;  %vm5059_vm15 = vcmask 1047559  }
 0x185   : > { %v2210_v48 = vpop.permute.xlu0 %2209 }
 0x186   : > { %v2982_v62 = vsel %vm2952_vm1, %v2949_v49, %v2210_v48 }
 0x187   : > { %v2212_v55 = vpop.permute.xlu1 %2211 }
 0x188   : > { %v2984_v25 = vsel %vm2952_vm1, %v2951_v36, %v2212_v55  ;;  %vm17574_vm1 = vmmov %vm17568_vm5  ;;  %vm6604_vm5 = vcmask 516096  }
 0x189   : > { %v2338_v8 = vpop.permute.xlu0 %2337 }
 0x18a   : > { %v3015_v44 = vsel %vm2985_vm6, %v2982_v62, %v2338_v8 }
 0x18b   : > { %v2340_v23 = vpop.permute.xlu1 %2339 }
 0x18c   : > { %v3017_v7 = vsel %vm2985_vm6, %v2984_v25, %v2340_v23  ;;  %vm15766_vm6 = vmand %vm4652_vm0, %vm17574_vm1  ;;  %vm5846_vm0 = vcmask 785408  }
 0x18d   : > { %v2450_v5 = vpop.permute.xlu0 %2449 }
 0x18e   : > { %v13389_v45 = vpop.f32.mrb[0].mxu0  ;;  %v3048_v39 = vsel %vm3018_vm11, %v3015_v44, %v2450_v5 }
 0x18f   : > { %v3222_v9 = vadd.f32 %v13389_v45, %v15709_v52  ;;  %v3213_v20 = vpop.f32.mrb[1].mxu0  ;;  %v2452_v1 = vpop.permute.xlu1 %2451 }
 0x190   : > { %v3214_v26 = vadd.f32 %v15709_v52, %v3213_v20  ;;  %v13390_v61 = vpop.f32.mrb[2].mxu0  ;;  %v3050_v18 = vsel %vm3018_vm11, %v3017_v7, %v2452_v1  ;;  %vm5804_vm11 = vcmask 261120  }
 0x191   : > { %v3342_v42 = vmax.f32 %v3222_v9, 0.0  ;;  %v3225_v56 = vadd.f32 %v13390_v61, %v15709_v52  ;;  %v3216_v19 = vpop.f32.mrb[3].mxu0  ;;  %v2722_v34 = vpop.permute.xlu0 %2721 }
 0x192   : > { %v3340_v50 = vmax.f32 %v3214_v26, 0.0  ;;  %v3217_v33 = vadd.f32 %v15709_v52, %v3216_v19  ;;  %v3081_v49 = vsel %vm3051_vm2, %v3048_v39, %v2722_v34  ;;  %v4707_v34 = vld [vmem:[#allocation3 + $0x2c] sm:$0x1] }
 0x193   : > { %v3438_v63 = vcombine.high %v3342_v42, %v3342_v42  ;;  %v3445_v4 = vrot.slane %v3342_v42, %v15721_v47  ;;  %v3343_v24 = vmax.f32 %v3225_v56, 0.0  ;;  %v2724_v58 = vpop.permute.xlu1 %2723 }
 0x194   : > { %v3404_v38 = vcombine.high %v3340_v50, %v3340_v50  ;;  %v3411_v35 = vrot.slane %v3340_v50, %v15721_v47  ;;  %v3341_v2 = vmax.f32 %v3217_v33, 0.0  ;;  %v3083_v9 = vsel %vm3051_vm2, %v3050_v18, %v2724_v58 }
 0x195   : > { %v3452_v40 = vrot.slane %v3438_v63, %v15721_v47  ;;  %v3453_v31 = vcombine.high %v3445_v4, %v3445_v4  ;;  %v12125_v16 = vrot.slane %v3445_v4, 9  ;;  %v3455_v60 = vcombine.high %v3343_v24, %v3343_v24  ;;  %v2850_v25 = vpop.permute.xlu0 %2849 }
 0x196   : > { %v3418_v46 = vrot.slane %v3404_v38, %v15721_v47  ;;  %v3419_v13 = vcombine.high %v3411_v35, %v3411_v35  ;;  %v12117_v3 = vrot.slane %v3411_v35, 9  ;;  %v3462_v32 = vrot.slane %v3343_v24, %v15721_v47 }
 0x197   : > { %v3454_v30 = vcombine.high %v3452_v40, %v3452_v40  ;;  %v12126_v28 = vrot.slane %v3453_v31, 9  ;;  %v12127_v29 = vrot.slane %v3452_v40, 9  ;;  %v4468_v22 = vmax.f32 %v3445_v4, %v12125_v16  ;;  %v2852_v62 = vpop.permute.xlu1 %2851 }
 0x198   : > { %v3420_v21 = vcombine.high %v3418_v46, %v3418_v46  ;;  %v12118_v51 = vrot.slane %v3419_v13, 9  ;;  %v12119_v14 = vrot.slane %v3418_v46, 9  ;;  %v4460_v17 = vmax.f32 %v3411_v35, %v12117_v3 }
 0x199   : > { %v12128_v43 = vrot.slane %v3454_v30, 9  ;;  %v4469_v37 = vmax.f32 %v3453_v31, %v12126_v28  ;;  %v4470_v48 = vmax.f32 %v3452_v40, %v12127_v29  ;;  %v3469_v6 = vrot.slane %v3455_v60, %v15721_v47 }
 0x19a   : > { %v12120_v55 = vrot.slane %v3420_v21, 9  ;;  %v4461_v12 = vmax.f32 %v3419_v13, %v12118_v51  ;;  %v4462_v54 = vmax.f32 %v3418_v46, %v12119_v14  ;;  %v4588_v8 = vmax.f32 %v4460_v17, %v4468_v22 }
 0x19b   : > { %v4471_v41 = vmax.f32 %v3454_v30, %v12128_v43  ;;  %v3470_v27 = vcombine.high %v3462_v32, %v3462_v32  ;;  %v12129_v23 = vrot.slane %v3462_v32, 9  ;;  %v3471_v20 = vcombine.high %v3469_v6, %v3469_v6 }
 0x19c   : > { %v4463_v11 = vmax.f32 %v3420_v21, %v12120_v55  ;;  %v4589_v53 = vmax.f32 %v4461_v12, %v4469_v37  ;;  %v4590_v45 = vmax.f32 %v4462_v54, %v4470_v48  ;;  %v12873_v15 = vpack.c.bf16 %v4588_v8, %v4588_v8  ;;  %v5190_v48 = vld [vmem:[#allocation3 + $0xc] sm:$0x1] }
 0x19d   : > { %v12130_v10 = vrot.slane %v3470_v27, 9  ;;  %v12131_v1 = vrot.slane %v3469_v6, 9  ;;  %v12132_v42 = vrot.slane %v3471_v20, 9  ;;  %v4472_v56 = vmax.f32 %v3462_v32, %v12129_v23  ;;  %v4676_v32 = vld [vmem:[#allocation3 + $0x28] sm:$0x1] }
 0x19e   : > { %v4591_v5 = vmax.f32 %v4463_v11, %v4471_v41  ;;  %v12874_v26 = vpack.c.bf16 %v4589_v53, %v4589_v53  ;;  %v12875_v61 = vpack.c.bf16 %v4590_v45, %v4590_v45  ;;  %v4978_v36 = vunpack.c.l.b16 %v12873_v15 }
 0x19f   : > { %v3421_v19 = vcombine.high %v3341_v2, %v3341_v2  ;;  %v4473_v63 = vmax.f32 %v3470_v27, %v12130_v10  ;;  %v3428_v4 = vrot.slane %v3341_v2, %v15721_v47  ;;  %v3116_v18 = vsel %vm3084_vm12, %v3083_v9, %v2852_v62 }
 0x1a0   : > { %v12876_v44 = vpack.c.bf16 %v4591_v5, %v4591_v5  ;;  %v4979_v50 = vunpack.c.l.b16 %v12874_v26  ;;  %v4980_v33 = vunpack.c.l.b16 %v12875_v61  ;;  %v5042_v7 = vrot.slane %v4978_v36, 7 }
 0x1a1   : > { %v3435_v24 = vrot.slane %v3421_v19, %v15721_v47  ;;  %v3114_v40 = vsel %vm3084_vm12, %v3081_v49, %v2850_v25  ;;  %v3436_v31 = vcombine.high %v3428_v4, %v3428_v4  ;;  %v12121_v46 = vrot.slane %v3428_v4, 9 }
 0x1a2   : > { %v4981_v39 = vunpack.c.l.b16 %v12876_v44  ;;  %v5043_v38 = vrot.slane %v4979_v50, 6  ;;  %v5046_v35 = vrot.slane %v4980_v33, 5  ;;  %13415 = vmatprep.mubr.msk.bf16.mxu0 %vm3139_vm4, %v3114_v40  ;;  %v4474_v30 = vmax.f32 %v3469_v6, %v12131_v1  ;;  %v5187_v50 = vld [vmem:[#allocation3 + $0x8] sm:$0xf] }
 0x1a3   : > { %v3437_v16 = vcombine.high %v3435_v24, %v3435_v24  ;;  %v12123_v13 = vrot.slane %v3435_v24, 9  ;;  %v4475_v2 = vmax.f32 %v3471_v20, %v12132_v42  ;;  %13416 = vmatmul.mubr.msk.bf16.gmra.mrb[28].mxu0 %vm3139_vm4, %v3116_v18  ;;  %v12122_v29 = vrot.slane %v3436_v31, 9 }
 0x1a4   : > { %v5045_v3 = vsel %vm5044_vm10, %v5043_v38, %v5042_v7  ;;  %v5049_v60 = vrot.slane %v4981_v39, 4  ;;  %v4464_v21 = vmax.f32 %v3428_v4, %v12121_v46  ;;  %v4677_v8 = vsel %vm15620_vm8, 0, %v4676_v32 }
 0x1a5   : > { %v5048_v28 = vsel %vm5047_vm13, %v5046_v35, %v5045_v3  ;;  %v12124_v22 = vrot.slane %v3437_v16, 9  ;;  %v4466_v51 = vmax.f32 %v3435_v24, %v12123_v13  ;;  %v4465_v17 = vmax.f32 %v3436_v31, %v12122_v29  ;;  %4678 = vst [vmem:[#allocation3 + $0x28] sm:$0x1] %v4677_v8 }
 0x1a6   : > { %v5051_v14 = vsel %vm5050_vm14, %v5049_v60, %v5048_v28  ;;  %v4592_v43 = vmax.f32 %v4464_v21, %v4472_v56  ;;  %vm5053_vm2 = vcmask 1045509   ;;  %v4708_v6 = vsel %vm15611_vm7, 0, %v4707_v34 }
 0x1a7   : > { %v4467_v58 = vmax.f32 %v3437_v16, %v12124_v22  ;;  %v4594_v37 = vmax.f32 %v4466_v51, %v4474_v30  ;;  %v4593_v55 = vmax.f32 %v4465_v17, %v4473_v63  ;;  %4709 = vst [vmem:[#allocation3 + $0x2c] sm:$0x1] %v4708_v6  ;;  %vm5056_vm4 = vcmask 1046534  }
 0x1a8   : > { %v12877_v54 = vpack.c.bf16 %v4592_v43, %v4592_v43  ;;  %vm5829_vm12 = vcmask 523264  }
 0x1a9   : > { %v4595_v12 = vmax.f32 %v4467_v58, %v4475_v2  ;;  %v12879_v41 = vpack.c.bf16 %v4594_v37, %v4594_v37  ;;  %v12878_v27 = vpack.c.bf16 %v4593_v55, %v4593_v55 }
 0x1aa   : > { %v4982_v23 = vunpack.c.l.b16 %v12877_v54 }
 0x1ab   : > { %v12937_v11 = vpack.c.bf16 %v4595_v12, %v4595_v12  ;;  %v4984_v53 = vunpack.c.l.b16 %v12879_v41  ;;  %v4983_v45 = vunpack.c.l.b16 %v12878_v27 }
 0x1ac   : > { %v5052_v15 = vrot.slane %v4982_v23, 3 }
 0x1ad   : > { %v5191_v9 = vsel %vm15620_vm8, %v12937_v11, %v5190_v48  ;;  %v5055_v49 = vrot.slane %v4983_v45, 2  ;;  %v5058_v61 = vrot.slane %v4984_v53, 1 }
 0x1ae   : > { %5192 = vst [vmem:[#allocation3 + $0xc] sm:$0x1] %v5191_v9  ;;  %v13393_v20 = vpop.f32.mrb[4].mxu0  ;;  %v5054_v10 = vsel %vm5053_vm2, %v5052_v15, %v5051_v14 }
 0x1af   : > { %v3238_v5 = vadd.f32 %v13393_v20, %v15709_v52  ;;  %v3229_v26 = vpop.f32.mrb[5].mxu0  ;;  %v5057_v1 = vsel %vm5056_vm4, %v5055_v49, %v5054_v10 }
 0x1b0   : > { %v3230_v36 = vadd.f32 %v15709_v52, %v3229_v26  ;;  %v13394_v62 = vpop.f32.mrb[6].mxu0  ;;  %v5060_v25 = vsel %vm5059_vm15, %v5058_v61, %v5057_v1 }
 0x1b1   : > { %v3346_v42 = vmax.f32 %v3238_v5, 0.0  ;;  %v3241_v56 = vadd.f32 %v13394_v62, %v15709_v52  ;;  %v3232_v19 = vpop.f32.mrb[7].mxu0  ;;  %v5152_v63 = vpack.c.b16 %v5060_v25, %v5060_v25 }
 0x1b2   : > { %v3344_v33 = vmax.f32 %v3230_v36, 0.0  ;;  %v3233_v7 = vadd.f32 %v15709_v52, %v3232_v19 }
 0x1b3   : > { %v3506_v4 = vcombine.high %v3346_v42, %v3346_v42  ;;  %v3513_v24 = vrot.slane %v3346_v42, %v15721_v47  ;;  %v3347_v18 = vmax.f32 %v3241_v56, 0.0  ;;  %v5188_v40 = vsel %vm15766_vm6, %v5152_v63, %v5187_v50 }
 0x1b4   : > { %v3472_v39 = vcombine.high %v3344_v33, %v3344_v33  ;;  %v3479_v38 = vrot.slane %v3344_v33, %v15721_v47  ;;  %v3345_v35 = vmax.f32 %v3233_v7, 0.0  ;;  %5189 = vst [vmem:[#allocation3 + $0x8] sm:$0xf] %v5188_v40 }
 0x1b5   : > { %v3520_v31 = vrot.slane %v3506_v4, %v15721_v47  ;;  %v3521_v16 = vcombine.high %v3513_v24, %v3513_v24  ;;  %v12141_v46 = vrot.slane %v3513_v24, 9  ;;  %v3523_v30 = vcombine.high %v3347_v18, %v3347_v18  ;;  %v5244_v19 = vld [vmem:[#allocation3 + $0xc] sm:$0x1] }
 0x1b6   : > { %v3486_v13 = vrot.slane %v3472_v39, %v15721_v47  ;;  %v3487_v3 = vcombine.high %v3479_v38, %v3479_v38  ;;  %v12133_v60 = vrot.slane %v3479_v38, 9  ;;  %v3530_v48 = vrot.slane %v3347_v18, %v15721_v47 }
 0x1b7   : > { %v3522_v2 = vcombine.high %v3520_v31, %v3520_v31  ;;  %v12142_v28 = vrot.slane %v3521_v16, 9  ;;  %v12143_v29 = vrot.slane %v3520_v31, 9  ;;  %v4484_v22 = vmax.f32 %v3513_v24, %v12141_v46 }
 0x1b8   : > { %v3488_v21 = vcombine.high %v3486_v13, %v3486_v13  ;;  %v12134_v51 = vrot.slane %v3487_v3, 9  ;;  %v12135_v14 = vrot.slane %v3486_v13, 9  ;;  %v4476_v17 = vmax.f32 %v3479_v38, %v12133_v60 }
 0x1b9   : > { %v12144_v58 = vrot.slane %v3522_v2, 9  ;;  %v4485_v43 = vmax.f32 %v3521_v16, %v12142_v28  ;;  %v4486_v37 = vmax.f32 %v3520_v31, %v12143_v29  ;;  %v3537_v8 = vrot.slane %v3523_v30, %v15721_v47 }
 0x1ba   : > { %v12136_v32 = vrot.slane %v3488_v21, 9  ;;  %v4477_v34 = vmax.f32 %v3487_v3, %v12134_v51  ;;  %v4478_v55 = vmax.f32 %v3486_v13, %v12135_v14  ;;  %v4596_v12 = vmax.f32 %v4476_v17, %v4484_v22 }
 0x1bb   : > { %v4487_v54 = vmax.f32 %v3522_v2, %v12144_v58  ;;  %v3538_v41 = vcombine.high %v3530_v48, %v3530_v48  ;;  %v12145_v6 = vrot.slane %v3530_v48, 9  ;;  %v3539_v45 = vcombine.high %v3537_v8, %v3537_v8  ;;  %v5259_v61 = vld [vmem:[#allocation3 + $0x8] sm:$0xf]  ;;  %v5267_v2 = vld [vmem:[#allocation3 + $0xc] sm:$0x1] }
 0x1bc   : > { %v4479_v27 = vmax.f32 %v3488_v21, %v12136_v32  ;;  %v4597_v23 = vmax.f32 %v4477_v34, %v4485_v43  ;;  %v4598_v11 = vmax.f32 %v4478_v55, %v4486_v37  ;;  %v12881_v53 = vpack.c.bf16 %v4596_v12, %v4596_v12  ;;  %v5252_v36 = vld [vmem:[#allocation3 + $0x8] sm:$0xe] }
 0x1bd   : > { %v12146_v15 = vrot.slane %v3538_v41, 9  ;;  %v12147_v9 = vrot.slane %v3537_v8, 9  ;;  %v4488_v20 = vmax.f32 %v3530_v48, %v12145_v6  ;;  %v12148_v62 = vrot.slane %v3539_v45, 9  ;;  %v5236_v25 = vld [vmem:[#allocation3 + $0x8] sm:$0xf] }
 0x1be   : > { %v4599_v10 = vmax.f32 %v4479_v27, %v4487_v54  ;;  %v12882_v49 = vpack.c.bf16 %v4597_v23, %v4597_v23  ;;  %v12883_v5 = vpack.c.bf16 %v4598_v11, %v4598_v11  ;;  %v4986_v26 = vunpack.c.l.b16 %v12881_v53  ;;  %v5275_v38 = vld [vmem:[#allocation3 + $0x8] sm:$0xe]  ;;  %v5196_v11 = vld [vmem:[#allocation3 + $0x14] sm:$0x1] }
 0x1bf   : > { %v4489_v1 = vmax.f32 %v3538_v41, %v12146_v15  ;;  %v4490_v42 = vmax.f32 %v3537_v8, %v12147_v9  ;;  %v3489_v56 = vcombine.high %v3345_v35, %v3345_v35  ;;  %v4491_v4 = vmax.f32 %v3539_v45, %v12148_v62  ;;  %v4679_v15 = vld [vmem:[#allocation3 + $0x30] sm:$0x1] }
 0x1c0   : > { %v12884_v50 = vpack.c.bf16 %v4599_v10, %v4599_v10  ;;  %v4987_v33 = vunpack.c.l.b16 %v12882_v49  ;;  %v4988_v7 = vunpack.c.l.b16 %v12883_v5  ;;  %v5061_v63 = vrot.slane %v4986_v26, 7  ;;  %v4710_v5 = vld [vmem:[#allocation3 + $0x34] sm:$0x1] }
 0x1c1   : > { %v3496_v24 = vrot.slane %v3345_v35, %v15721_v47  ;;  %v3503_v18 = vrot.slane %v3489_v56, %v15721_v47  ;;  %v12333_v39 = vcombine.low %v5259_v61, %v5259_v61  ;;  %v12326_v46 = vcombine.low %v5252_v36, %v5244_v19 }
 0x1c2   : > { %v4989_v40 = vunpack.c.l.b16 %v12884_v50  ;;  %v5062_v31 = vrot.slane %v4987_v33, 6  ;;  %v5064_v16 = vrot.slane %v4988_v7, 5  ;;  %v12318_v35 = vcombine.low %v5236_v25, %v5244_v19 }
 0x1c3   : > { %v3504_v13 = vcombine.high %v3496_v24, %v3496_v24  ;;  %v3505_v3 = vcombine.high %v3503_v18, %v3503_v18  ;;  %v12137_v60 = vrot.slane %v3496_v24, 9  ;;  %v12139_v30 = vrot.slane %v3503_v18, 9  ;;  %5492 = vrot.lane.b32.xlu0 %v12333_v39, %s14164_s18 }
 0x1c4   : > { %v5063_v28 = vsel %vm5044_vm10, %v5062_v31, %v5061_v63  ;;  %v5066_v29 = vrot.slane %v4989_v40, 4  ;;  %v5445_v22 = vrot.slane %v12326_v46, 1  ;;  %v15786_v37 = vcombine.low %v5259_v61, %v5267_v2  ;;  %v5193_v31 = vld [vmem:[#allocation3 + $0x10] sm:$0xf] }
 0x1c5   : > { %v5065_v21 = vsel %vm5047_vm13, %v5064_v16, %v5063_v28  ;;  %v12138_v51 = vrot.slane %v3504_v13, 9  ;;  %v12140_v14 = vrot.slane %v3505_v3, 9  ;;  %v4480_v17 = vmax.f32 %v3496_v24, %v12137_v60 }
 0x1c6   : > { %v4482_v58 = vmax.f32 %v3503_v18, %v12139_v30  ;;  %v5067_v43 = vsel %vm5050_vm14, %v5066_v29, %v5065_v21  ;;  %5454 = vrot.lane.b32.xlu1 %v5445_v22, %s14163_s30  ;;  %v12349_v48 = vcombine.low %v5275_v38, %v5267_v2  ;;  %v5358_v8 = vshll.u32 %v12318_v35, 16 }
 0x1c7   : > { %v4481_v32 = vmax.f32 %v3504_v13, %v12138_v51  ;;  %v4483_v34 = vmax.f32 %v3505_v3, %v12140_v14  ;;  %v4600_v55 = vmax.f32 %v4480_v17, %v4488_v20  ;;  %v5356_v53 = vshrl.u32 %v12318_v35, 16 }
 0x1c8   : > { %v4602_v12 = vmax.f32 %v4482_v58, %v4490_v42  ;;  %v5612_v54 = vrot.slane %v12349_v48, 1  ;;  %v5360_v45 = vrot.slane %v5358_v8, 1  ;;  %v4711_v56 = vsel %vm15611_vm7, 0, %v4710_v5 }
 0x1c9   : > { %v4601_v41 = vmax.f32 %v4481_v32, %v4489_v1  ;;  %v4603_v6 = vmax.f32 %v4483_v34, %v4491_v4  ;;  %v12885_v27 = vpack.c.bf16 %v4600_v55, %v4600_v55  ;;  %v4680_v1 = vsel %vm15620_vm8, 0, %v4679_v15  ;;  %4712 = vst [vmem:[#allocation3 + $0x34] sm:$0x1] %v4711_v56 }
 0x1ca   : > { %v12887_v23 = vpack.c.bf16 %v4602_v12, %v4602_v12  ;;  %5620 = vrot.lane.b32.xlu0 %v5612_v54, %s14162_s0  ;;  %v5361_v61 = vor.u32 %v5360_v45, %v5356_v53  ;;  %4681 = vst [vmem:[#allocation3 + $0x30] sm:$0x1] %v4680_v1 }
 0x1cb   : > { %v12886_v9 = vpack.c.bf16 %v4601_v41, %v4601_v41  ;;  %v4990_v10 = vunpack.c.l.b16 %v12885_v27  ;;  %v12938_v49 = vpack.c.bf16 %v4603_v6, %v4603_v6 }
 0x1cc   : > { %v4992_v26 = vunpack.c.l.b16 %v12887_v23  ;;  %5406 = vrot.lane.b32.xlu1 %v5361_v61, %s14162_s0 }
 0x1cd   : > { %v4991_v20 = vunpack.c.l.b16 %v12886_v9  ;;  %v5068_v36 = vrot.slane %v4990_v10, 3  ;;  %v5197_v62 = vsel %vm15620_vm8, %v12938_v49, %v5196_v11 }
 0x1ce   : > { %5198 = vst [vmem:[#allocation3 + $0x14] sm:$0x1] %v5197_v62  ;;  %v13397_v42 = vpop.f32.mrb[8].mxu0  ;;  %v5072_v7 = vrot.slane %v4992_v26, 1 }
 0x1cf   : > { %v5069_v19 = vsel %vm5053_vm2, %v5068_v36, %v5067_v43  ;;  %v5070_v25 = vrot.slane %v4991_v20, 2  ;;  %v3254_v50 = vadd.f32 %v13397_v42, %v15709_v52  ;;  %v3245_v33 = vpop.f32.mrb[9].mxu0 }
 0x1d0   : > { %v3246_v63 = vadd.f32 %v15709_v52, %v3245_v33  ;;  %v13398_v4 = vpop.f32.mrb[10].mxu0 }
 0x1d1   : > { %v5071_v24 = vsel %vm5056_vm4, %v5070_v25, %v5069_v19  ;;  %v3350_v18 = vmax.f32 %v3254_v50, 0.0  ;;  %v3257_v39 = vadd.f32 %v13398_v4, %v15709_v52  ;;  %v3248_v38 = vpop.f32.mrb[11].mxu0 }
 0x1d2   : > { %v5073_v40 = vsel %vm5059_vm15, %v5072_v7, %v5071_v24  ;;  %v3348_v16 = vmax.f32 %v3246_v63, 0.0  ;;  %v3249_v46 = vadd.f32 %v15709_v52, %v3248_v38 }
 0x1d3   : > { %v5154_v13 = vpack.c.b16 %v5073_v40, %v5073_v40  ;;  %v3574_v3 = vcombine.high %v3350_v18, %v3350_v18  ;;  %v3581_v60 = vrot.slane %v3350_v18, %v15721_v47  ;;  %v3351_v30 = vmax.f32 %v3257_v39, 0.0 }
 0x1d4   : > { %v3540_v2 = vcombine.high %v3348_v16, %v3348_v16  ;;  %v3547_v28 = vrot.slane %v3348_v16, %v15721_v47  ;;  %v3349_v29 = vmax.f32 %v3249_v46, 0.0 }
 0x1d5   : > { %v5194_v22 = vsel %vm15766_vm6, %v5154_v13, %v5193_v31  ;;  %v3588_v35 = vrot.slane %v3574_v3, %v15721_v47  ;;  %v3589_v21 = vcombine.high %v3581_v60, %v3581_v60  ;;  %v12157_v51 = vrot.slane %v3581_v60, 9 }
 0x1d6   : > { %5195 = vst [vmem:[#allocation3 + $0x10] sm:$0xf] %v5194_v22  ;;  %v3554_v14 = vrot.slane %v3540_v2, %v15721_v47  ;;  %v3555_v52 = vcombine.high %v3547_v28, %v3547_v28  ;;  %v12149_v17 = vrot.slane %v3547_v28, 9  ;;  %v3591_v58 = vcombine.high %v3351_v30, %v3351_v30  ;;  %v15813_v22 = vld [vmem:[#allocation3 + $0x14] sm:$0x1] }
 0x1d7   : > { %v3590_v43 = vcombine.high %v3588_v35, %v3588_v35  ;;  %v12158_v48 = vrot.slane %v3589_v21, 9  ;;  %v12159_v32 = vrot.slane %v3588_v35, 9  ;;  %v4500_v34 = vmax.f32 %v3581_v60, %v12157_v51 }
 0x1d8   : > { %v3556_v55 = vcombine.high %v3554_v14, %v3554_v14  ;;  %v12150_v12 = vrot.slane %v3555_v52, 9  ;;  %v12151_v54 = vrot.slane %v3554_v14, 9  ;;  %v4492_v8 = vmax.f32 %v3547_v28, %v12149_v17 }
 0x1d9   : > { %v12160_v41 = vrot.slane %v3590_v43, 9  ;;  %v4501_v6 = vmax.f32 %v3589_v21, %v12158_v48  ;;  %v4502_v27 = vmax.f32 %v3588_v35, %v12159_v32  ;;  %v3598_v23 = vrot.slane %v3351_v30, %v15721_v47  ;;  %v5268_v21 = vld [vmem:[#allocation3 + $0x14] sm:$0x1] }
 0x1da   : > { %v12152_v11 = vrot.slane %v3556_v55, 9  ;;  %v4493_v53 = vmax.f32 %v3555_v52, %v12150_v12  ;;  %v4494_v45 = vmax.f32 %v3554_v14, %v12151_v54  ;;  %v4604_v15 = vmax.f32 %v4492_v8, %v4500_v34 }
 0x1db   : > { %v4503_v9 = vmax.f32 %v3590_v43, %v12160_v41  ;;  %v3605_v10 = vrot.slane %v3591_v58, %v15721_v47  ;;  %v3606_v49 = vcombine.high %v3598_v23, %v3598_v23  ;;  %v12161_v5 = vrot.slane %v3598_v23, 9 }
 0x1dc   : > { %v4495_v26 = vmax.f32 %v3556_v55, %v12152_v11  ;;  %v4605_v61 = vmax.f32 %v4493_v53, %v4501_v6  ;;  %v4606_v20 = vmax.f32 %v4494_v45, %v4502_v27  ;;  %v12889_v36 = vpack.c.bf16 %v4604_v15, %v4604_v15  ;;  %v5245_v6 = vld [vmem:[#allocation3 + $0x14] sm:$0x1] }
 0x1dd   : > { %v3607_v62 = vcombine.high %v3605_v10, %v3605_v10  ;;  %v12162_v1 = vrot.slane %v3606_v49, 9  ;;  %v12163_v42 = vrot.slane %v3605_v10, 9  ;;  %v4504_v56 = vmax.f32 %v3598_v23, %v12161_v5  ;;  %v5260_v7 = vld [vmem:[#allocation3 + $0x10] sm:$0xf] }
 0x1de   : > { %v4607_v19 = vmax.f32 %v4495_v26, %v4503_v9  ;;  %v12890_v25 = vpack.c.bf16 %v4605_v61, %v4605_v61  ;;  %v12891_v50 = vpack.c.bf16 %v4606_v20, %v4606_v20  ;;  %v4994_v33 = vunpack.c.l.b16 %v12889_v36  ;;  %v5284_v39 = vld [vmem:[#allocation3 + $0x10] sm:$0xf] }
 0x1df   : > { %v12164_v63 = vrot.slane %v3607_v62, 9  ;;  %v4505_v4 = vmax.f32 %v3606_v49, %v12162_v1  ;;  %v4506_v24 = vmax.f32 %v3605_v10, %v12163_v42  ;;  %v3557_v18 = vcombine.high %v3349_v29, %v3349_v29  ;;  %v5276_v58 = vld [vmem:[#allocation3 + $0x10] sm:$0xe] }
 0x1e0   : > { %v12892_v38 = vpack.c.bf16 %v4607_v19, %v4607_v19  ;;  %v4995_v40 = vunpack.c.l.b16 %v12890_v25  ;;  %v4996_v31 = vunpack.c.l.b16 %v12891_v50  ;;  %v5074_v16 = vrot.slane %v4994_v33, 7  ;;  %v5237_v43 = vld [vmem:[#allocation3 + $0x10] sm:$0xf]  ;;  %v4682_v33 = vld [vmem:[#allocation3 + $0x38] sm:$0x1] }
 0x1e1   : > { %v4507_v46 = vmax.f32 %v3607_v62, %v12164_v63  ;;  %v3564_v13 = vrot.slane %v3349_v29, %v15721_v47  ;;  %v3571_v3 = vrot.slane %v3557_v18, %v15721_v47  ;;  %v12334_v60 = vcombine.low %v5260_v7, %v5260_v7  ;;  %v5253_v55 = vld [vmem:[#allocation3 + $0x10] sm:$0xe]  ;;  %v5202_v62 = vld [vmem:[#allocation3 + $0x1c] sm:$0x1] }
 0x1e2   : > { %v4997_v30 = vunpack.c.l.b16 %v12892_v38  ;;  %v5075_v2 = vrot.slane %v4995_v40, 6  ;;  %v5077_v28 = vrot.slane %v4996_v31, 5  ;;  %v12357_v35 = vcombine.low %v5284_v39, %v5284_v39 }
 0x1e3   : > { %v3572_v51 = vcombine.high %v3564_v13, %v3564_v13  ;;  %v3573_v14 = vcombine.high %v3571_v3, %v3571_v3  ;;  %v12153_v52 = vrot.slane %v3564_v13, 9  ;;  %v12155_v17 = vrot.slane %v3571_v3, 9  ;;  %5494 = vrot.lane.b32.xlu1 %v12334_v60, %s14164_s18 }
 0x1e4   : > { %v5076_v29 = vsel %vm5044_vm10, %v5075_v2, %v5074_v16  ;;  %v5079_v48 = vrot.slane %v4997_v30, 4  ;;  %v12365_v32 = vcombine.low %v5284_v39, %v15813_v22  ;;  %5660 = vrot.lane.b32.xlu0 %v12357_v35, %s14163_s30  ;;  %v15819_v34 = vcombine.low %v5260_v7, %v5268_v21 }
 0x1e5   : > { %v5078_v12 = vsel %vm5047_vm13, %v5077_v28, %v5076_v29  ;;  %v12154_v54 = vrot.slane %v3572_v51, 9  ;;  %v12156_v8 = vrot.slane %v3573_v14, 9  ;;  %v4496_v41 = vmax.f32 %v3564_v13, %v12153_v52  ;;  %v15839_v28 = vld [vmem:[%s17537_s2] ss:$0 sm:$0xff] }
 0x1e6   : > { %v4498_v27 = vmax.f32 %v3571_v3, %v12155_v17  ;;  %v5080_v23 = vsel %vm5050_vm14, %v5079_v48, %v5078_v12  ;;  %v12350_v11 = vcombine.low %v5276_v58, %v5268_v21  ;;  %v12319_v53 = vcombine.low %v5237_v43, %v5245_v6  ;;  %v13733_v3 = vld [vmem:[%s17538_s3 + $0x40] sm:$0xff]   ;;  %v5199_v12 = vld [vmem:[#allocation3 + $0x18] sm:$0xf] }
 0x1e7   : > { %v4497_v45 = vmax.f32 %v3572_v51, %v12154_v54  ;;  %v4499_v15 = vmax.f32 %v3573_v14, %v12156_v8  ;;  %v4608_v9 = vmax.f32 %v4496_v41, %v4504_v56  ;;  %v12327_v10 = vcombine.low %v5253_v55, %v5245_v6  ;;  %v4713_v56 = vld [vmem:[#allocation3 + $0x3c] sm:$0x1]  ;;  %v13734_v51 = vld [vmem:[%s17538_s3] sm:$0xff]   ;;  %12987 = vmatprep.subr.bf16.mxu1 %v13733_v3  ;;  %v13738_v41 = vld [vmem:[%s17538_s3 + $0x48] sm:$0xff]  }
 0x1e8   : > { %v4610_v49 = vmax.f32 %v4498_v27, %v4506_v24  ;;  %v5613_v5 = vrot.slane %v12350_v11, 1  ;;  %v5703_v26 = vshll.u32 %v12365_v32, 16  ;;  %v5701_v19 = vshrl.u32 %v12365_v32, 16  ;;  %12988 = vmatpush3.bf16.msra.mxu1 %v13734_v51 }
 0x1e9   : > { %v4609_v61 = vmax.f32 %v4497_v45, %v4505_v4  ;;  %v4611_v20 = vmax.f32 %v4499_v15, %v4507_v46  ;;  %v12893_v36 = vpack.c.bf16 %v4608_v9, %v4608_v9  ;;  %v5446_v1 = vrot.slane %v12327_v10, 1  ;;  %12989 = vmatprep.subr.bf16.mxu1 %v13738_v41 }
 0x1ea   : > { %v12895_v42 = vpack.c.bf16 %v4610_v49, %v4610_v49  ;;  %5622 = vrot.lane.b32.xlu1 %v5613_v5, %s14162_s0  ;;  %v5705_v25 = vrot.slane %v5703_v26, 1  ;;  %v5365_v50 = vshll.u32 %v12319_v53, 16  ;;  %v4683_v16 = vsel %vm15620_vm8, 0, %v4682_v33  ;;  %v13745_v33 = vld [vmem:[%s17538_s3 + $0x10] sm:$0xff]  }
 0x1eb   : > { %v12894_v7 = vpack.c.bf16 %v4609_v61, %v4609_v61  ;;  %v4998_v63 = vunpack.c.l.b16 %v12893_v36  ;;  %v12939_v18 = vpack.c.bf16 %v4611_v20, %v4611_v20  ;;  %5456 = vrot.lane.b32.xlu0 %v5446_v1, %s14163_s30  ;;  %4684 = vst [vmem:[#allocation3 + $0x38] sm:$0x1] %v4683_v16  ;;  %v4714_v13 = vsel %vm15611_vm7, 0, %v4713_v56  ;;  %v13744_v1 = vld [vmem:[%s17538_s3 + $0x50] sm:$0xff]  }
 0x1ec   : > { %v5000_v24 = vunpack.c.l.b16 %v12895_v42  ;;  %v5706_v39 = vor.u32 %v5705_v25, %v5701_v19  ;;  %v5367_v4 = vrot.slane %v5365_v50, 1  ;;  %v5363_v2 = vshrl.u32 %v12319_v53, 16  ;;  %4715 = vst [vmem:[#allocation3 + $0x3c] sm:$0x1] %v4714_v13  ;;  %v13739_v53 = vld [vmem:[%s17538_s3 + $0x8] sm:$0xff]  }
 0x1ed   : > { %v4999_v38 = vunpack.c.l.b16 %v12894_v7  ;;  %v5081_v40 = vrot.slane %v4998_v63, 3  ;;  %v5203_v31 = vsel %vm15620_vm8, %v12939_v18, %v5202_v62  ;;  %12990 = vmatpush3.bf16.msra.mxu1 %v13739_v53  ;;  %v13746_v7 = vld [vmem:[%s17538_s3 + $0x58] sm:$0xff]  }
 0x1ee   : > { %5204 = vst [vmem:[#allocation3 + $0x1c] sm:$0x1] %v5203_v31  ;;  %v13401_v46 = vpop.f32.mrb[12].mxu0  ;;  %v5085_v14 = vrot.slane %v5000_v24, 1  ;;  %v5368_v43 = vor.u32 %v5367_v4, %v5363_v2  ;;  %12991 = vmatprep.subr.bf16.mxu1 %v13744_v1  ;;  %v13747_v31 = vld [vmem:[%s17538_s3 + $0x18] sm:$0xff]  }
 0x1ef   : > { %v5082_v60 = vsel %vm5053_vm2, %v5081_v40, %v5080_v23  ;;  %v5083_v30 = vrot.slane %v4999_v38, 2  ;;  %5756 = vrot.lane.b32.xlu0 %v5706_v39, %s14164_s18  ;;  %v3270_v35 = vadd.f32 %v15839_v28, %v13401_v46  ;;  %v3261_v21 = vpop.f32.mrb[13].mxu0 }
 0x1f0   : > { %v3262_v52 = vadd.f32 %v15839_v28, %v3261_v21  ;;  %v13402_v17 = vpop.f32.mrb[14].mxu0 }
 0x1f1   : > { %v5084_v58 = vsel %vm5056_vm4, %v5083_v30, %v5082_v60  ;;  %v3354_v29 = vmax.f32 %v3270_v35, 0.0  ;;  %v3273_v48 = vadd.f32 %v15839_v28, %v13402_v17  ;;  %v3264_v32 = vpop.f32.mrb[15].mxu0  ;;  %12992 = vmatpush3.bf16.msra.mxu1 %v13745_v33  ;;  %v13748_v60 = vld [vmem:[%s17538_s3 + $0x60] sm:$0xff]  }
 0x1f2   : > { %v5086_v55 = vsel %vm5059_vm15, %v5085_v14, %v5084_v58  ;;  %v3352_v54 = vmax.f32 %v3262_v52, 0.0  ;;  %v3265_v8 = vadd.f32 %v15839_v28, %v3264_v32  ;;  %12993 = vmatprep.subr.bf16.mxu1 %v13746_v7  ;;  %v13749_v32 = vld [vmem:[%s17538_s3 + $0x20] sm:$0xff]  }
 0x1f3   : > { %v5156_v6 = vpack.c.b16 %v5086_v55, %v5086_v55  ;;  %5408 = vrot.lane.b32.xlu0 %v5368_v43, %s14162_s0  ;;  %v3642_v27 = vcombine.high %v3354_v29, %v3354_v29  ;;  %v3649_v23 = vrot.slane %v3354_v29, %v15721_v47  ;;  %v3355_v11 = vmax.f32 %v3273_v48, 0.0 }
 0x1f4   : > { %v3608_v45 = vcombine.high %v3352_v54, %v3352_v54  ;;  %v3615_v15 = vrot.slane %v3352_v54, %v15721_v47  ;;  %v15859_v9 = vmax.f32 %v3265_v8, 0.0 }
 0x1f5   : > { %v5200_v10 = vsel %vm15766_vm6, %v5156_v6, %v5199_v12  ;;  %v3656_v49 = vrot.slane %v3642_v27, %v15721_v47  ;;  %v3657_v5 = vcombine.high %v3649_v23, %v3649_v23  ;;  %v12173_v26 = vrot.slane %v3649_v23, 9  ;;  %12994 = vmatpush3.bf16.msra.mxu1 %v13747_v31  ;;  %v13750_v6 = vld [vmem:[%s17538_s3 + $0x68] sm:$0xff]  }
 0x1f6   : > { %5201 = vst [vmem:[#allocation3 + $0x18] sm:$0xf] %v5200_v10  ;;  %v3622_v61 = vrot.slane %v3608_v45, %v15721_v47  ;;  %v3623_v20 = vcombine.high %v3615_v15, %v3615_v15  ;;  %v12165_v36 = vrot.slane %v3615_v15, 9  ;;  %v3659_v62 = vcombine.high %v3355_v11, %v3355_v11  ;;  %12995 = vmatprep.subr.bf16.mxu1 %v13748_v60  ;;  %v5246_v60 = vld [vmem:[#allocation3 + $0x1c] sm:$0x1] }
 0x1f7   : > { %v3658_v42 = vcombine.high %v3656_v49, %v3656_v49  ;;  %v12174_v19 = vrot.slane %v3657_v5, 9  ;;  %v12175_v25 = vrot.slane %v3656_v49, 9  ;;  %v4516_v50 = vmax.f32 %v3649_v23, %v12173_v26 }
 0x1f8   : > { %v3624_v63 = vcombine.high %v3622_v61, %v3622_v61  ;;  %v12166_v18 = vrot.slane %v3623_v20, 9  ;;  %v12167_v56 = vrot.slane %v3622_v61, 9  ;;  %v4508_v24 = vmax.f32 %v3615_v15, %v12165_v36 }
 0x1f9   : > { %v12176_v39 = vrot.slane %v3658_v42, 9  ;;  %v4517_v4 = vmax.f32 %v3657_v5, %v12174_v19  ;;  %v4518_v38 = vmax.f32 %v3656_v49, %v12175_v25  ;;  %v3666_v40 = vrot.slane %v3355_v11, %v15721_v47  ;;  %12996 = vmatpush3.bf16.msra.mxu1 %v13749_v32 }
 0x1fa   : > { %v12168_v16 = vrot.slane %v3624_v63, 9  ;;  %v4509_v46 = vmax.f32 %v3623_v20, %v12166_v18  ;;  %v4510_v13 = vmax.f32 %v3622_v61, %v12167_v56  ;;  %v4612_v3 = vmax.f32 %v4508_v24, %v4516_v50  ;;  %v15893_v20 = vld [vmem:[#allocation3 + $0x1c] sm:$0x1]  ;;  %12997 = vmatprep.subr.bf16.mxu1 %v13750_v6  ;;  %v13751_v24 = vld [vmem:[%s17538_s3 + $0x28] sm:$0xff]  }
 0x1fb   : > { %v4519_v30 = vmax.f32 %v3658_v42, %v12176_v39  ;;  %v3673_v2 = vrot.slane %v3659_v62, %v15721_v47  ;;  %v3674_v35 = vcombine.high %v3666_v40, %v3666_v40  ;;  %v12177_v21 = vrot.slane %v3666_v40, 9  ;;  %v5269_v50 = vld [vmem:[#allocation3 + $0x1c] sm:$0x1] }
 0x1fc   : > { %v4511_v51 = vmax.f32 %v3624_v63, %v12168_v16  ;;  %v4613_v14 = vmax.f32 %v4509_v46, %v4517_v4  ;;  %v4614_v52 = vmax.f32 %v4510_v13, %v4518_v38  ;;  %v12897_v17 = vpack.c.bf16 %v4612_v3, %v4612_v3 }
 0x1fd   : > { %v3675_v58 = vcombine.high %v3673_v2, %v3673_v2  ;;  %v12178_v43 = vrot.slane %v3674_v35, 9  ;;  %v12179_v29 = vrot.slane %v3673_v2, 9  ;;  %v4520_v48 = vmax.f32 %v3666_v40, %v12177_v21  ;;  %v5285_v41 = vld [vmem:[#allocation3 + $0x18] sm:$0xf]  ;;  %12998 = vmatpush3.bf16.msra.mxu1 %v13751_v24 }
 0x1fe   : > { %v4615_v55 = vmax.f32 %v4511_v51, %v4519_v30  ;;  %v12898_v12 = vpack.c.bf16 %v4613_v14, %v4613_v14  ;;  %v12899_v54 = vpack.c.bf16 %v4614_v52, %v4614_v52  ;;  %v5002_v8 = vunpack.c.l.b16 %v12897_v17  ;;  %v5261_v62 = vld [vmem:[#allocation3 + $0x18] sm:$0xf] }
 0x1ff   : > { %v12180_v27 = vrot.slane %v3675_v58, 9  ;;  %v4521_v23 = vmax.f32 %v3674_v35, %v12178_v43  ;;  %v4522_v11 = vmax.f32 %v3673_v2, %v12179_v29  ;;  %v3625_v53 = vcombine.high %v15859_v9, %v15859_v9  ;;  %v5277_v33 = vld [vmem:[#allocation3 + $0x18] sm:$0xe]  ;;  %v5300_v29 = vld [vmem:[#allocation3 + $0x10] sm:$0xe] }
 0x200   : > { %v12900_v45 = vpack.c.bf16 %v4615_v55, %v4615_v55  ;;  %v5003_v15 = vunpack.c.l.b16 %v12898_v12  ;;  %v5004_v10 = vunpack.c.l.b16 %v12899_v54  ;;  %v5087_v49 = vrot.slane %v5002_v8, 7  ;;  %v5254_v56 = vld [vmem:[#allocation3 + $0x18] sm:$0xe] }
 0x201   : > { %v4523_v5 = vmax.f32 %v3675_v58, %v12180_v27  ;;  %v3632_v26 = vrot.slane %v15859_v9, %v15721_v47  ;;  %v3639_v61 = vrot.slane %v3625_v53, %v15721_v47  ;;  %v12358_v36 = vcombine.low %v5285_v41, %v5285_v41  ;;  %v5238_v31 = vld [vmem:[#allocation3 + $0x18] sm:$0xf] }
 0x202   : > { %v5005_v1 = vunpack.c.l.b16 %v12900_v45  ;;  %v5088_v42 = vrot.slane %v5003_v15, 6  ;;  %v5090_v19 = vrot.slane %v5004_v10, 5  ;;  %v15896_v25 = vcombine.low %v5285_v41, %v15893_v20  ;;  %v13752_v51 = vld [vmem:[%s17538_s3 + $0x70] sm:$0xff]   ;;  %v5208_v45 = vld [vmem:[#allocation3 + $0x24] sm:$0x1] }
 0x203   : > { %v3640_v7 = vcombine.high %v3632_v26, %v3632_v26  ;;  %v3641_v63 = vcombine.high %v3639_v61, %v3639_v61  ;;  %v12169_v18 = vrot.slane %v3632_v26, 9  ;;  %v12171_v9 = vrot.slane %v3639_v61, 9  ;;  %5662 = vrot.lane.b32.xlu1 %v12358_v36, %s14163_s30  ;;  %v13753_v43 = vld [vmem:[%s17538_s3 + $0x30] sm:$0xff]   ;;  %12999 = vmatprep.subr.bf16.mxu1 %v13752_v51 }
 0x204   : > { %v5089_v39 = vsel %vm5044_vm10, %v5088_v42, %v5087_v49  ;;  %v5092_v4 = vrot.slane %v5005_v1, 4  ;;  %v12335_v38 = vcombine.low %v5261_v62, %v5261_v62  ;;  %v15903_v40 = vcombine.low %v5261_v62, %v5269_v50  ;;  %13000 = vmatpush3.bf16.msra.mxu1 %v13753_v43  ;;  %v5301_v27 = vld [vmem:[#allocation3 + $0x18] sm:$0xe] }
 0x205   : > { %v5091_v16 = vsel %vm5047_vm13, %v5090_v19, %v5089_v39  ;;  %v12170_v46 = vrot.slane %v3640_v7, 9  ;;  %v12172_v13 = vrot.slane %v3641_v63, 9  ;;  %v4512_v3 = vmax.f32 %v3632_v26, %v12169_v18 }
 0x206   : > { %v4514_v30 = vmax.f32 %v3639_v61, %v12171_v9  ;;  %v5093_v2 = vsel %vm5050_vm14, %v5092_v4, %v5091_v16  ;;  %5496 = vrot.lane.b32.xlu0 %v12335_v38, %s14164_s18  ;;  %v12351_v35 = vcombine.low %v5277_v33, %v5269_v50  ;;  %v12328_v21 = vcombine.low %v5254_v56, %v5246_v60  ;;  %v13755_v61 = vld [vmem:[%s17538_s3 + $0x38] sm:$0xff]  }
 0x207   : > { %v4513_v14 = vmax.f32 %v3640_v7, %v12170_v46  ;;  %v4515_v52 = vmax.f32 %v3641_v63, %v12172_v13  ;;  %v4616_v17 = vmax.f32 %v4512_v3, %v4520_v48  ;;  %v12320_v58 = vcombine.low %v5238_v31, %v5246_v60 }
 0x208   : > { %v4618_v32 = vmax.f32 %v4514_v30, %v4522_v11  ;;  %v5614_v55 = vrot.slane %v12351_v35, 1  ;;  %v5447_v12 = vrot.slane %v12328_v21, 1  ;;  %v5710_v6 = vshll.u32 %v15896_v25, 16  ;;  %v13754_v11 = vld [vmem:[%s17538_s3 + $0x78] sm:$0xff]  }
 0x209   : > { %v4617_v54 = vmax.f32 %v4513_v14, %v4521_v23  ;;  %v4619_v8 = vmax.f32 %v4515_v52, %v4523_v5  ;;  %v12901_v41 = vpack.c.bf16 %v4616_v17, %v4616_v17  ;;  %v5708_v48 = vshrl.u32 %v15896_v25, 16  ;;  %13001 = vmatprep.subr.bf16.mxu1 %v13754_v11  ;;  %v5205_v35 = vld [vmem:[#allocation3 + $0x20] sm:$0xf] }
 0x20a   : > { %v12903_v53 = vpack.c.bf16 %v4618_v32, %v4618_v32  ;;  %5624 = vrot.lane.b32.xlu0 %v5614_v55, %s14162_s0  ;;  %5458 = vrot.lane.b32.xlu1 %v5447_v12, %s14163_s30  ;;  %v5372_v15 = vshll.u32 %v12320_v58, 16  ;;  %v12373_v23 = vcombine.low %v5300_v29, %v15813_v22  ;;  %v5712_v26 = vrot.slane %v5710_v6, 1 }
 0x20b   : > { %v12902_v10 = vpack.c.bf16 %v4617_v54, %v4617_v54  ;;  %v5006_v49 = vunpack.c.l.b16 %v12901_v41  ;;  %v12940_v5 = vpack.c.bf16 %v4619_v8, %v4619_v8  ;;  %v12374_v1 = vcombine.low %v5301_v27, %v15893_v20  ;;  %13002 = vmatpush3.bf16.msra.mxu1 %v13755_v61 }
 0x20c   : > { %v5008_v36 = vunpack.c.l.b16 %v12903_v53  ;;  %v5374_v62 = vrot.slane %v5372_v15, 1  ;;  %v5713_v50 = vor.u32 %v5712_v26, %v5708_v48  ;;  %v5370_v33 = vshrl.u32 %v12320_v58, 16 }
 0x20d   : > { %v5007_v42 = vunpack.c.l.b16 %v12902_v10  ;;  %v5094_v19 = vrot.slane %v5006_v49, 3  ;;  %v5209_v25 = vsel %vm15620_vm8, %v12940_v5, %v5208_v45  ;;  %v15929_v18 = vrot.slane %v12373_v23, 1 }
 0x20e   : > { %v13405_v22 = vpop.f32.mrb[16].mxu0  ;;  %5210 = vst [vmem:[#allocation3 + $0x24] sm:$0x1] %v5209_v25  ;;  %5758 = vrot.lane.b32.xlu1 %v5713_v50, %s14164_s18  ;;  %v15934_v39 = vrot.slane %v12374_v1, 1  ;;  %v5098_v4 = vrot.slane %v5008_v36, 1  ;;  %v5375_v38 = vor.u32 %v5374_v62, %v5370_v33 }
 0x20f   : > { %v3286_v7 = vadd.f32 %v15839_v28, %v13405_v22  ;;  %v3277_v63 = vpop.f32.mrb[17].mxu0  ;;  %v5095_v9 = vsel %vm5053_vm2, %v5094_v19, %v5093_v2  ;;  %v5096_v56 = vrot.slane %v5007_v42, 2 }
 0x210   : > { %v3278_v20 = vadd.f32 %v15839_v28, %v3277_v63  ;;  %v13406_v24 = vpop.f32.mrb[18].mxu0  ;;  %v12384_v30 = vcombine.low %v15929_v18, %v15934_v39 }
 0x211   : > { %v3358_v31 = vmax.f32 %v3286_v7, 0.0  ;;  %v3289_v16 = vadd.f32 %v15839_v28, %v13406_v24  ;;  %v3280_v46 = vpop.f32.mrb[19].mxu0  ;;  %v5097_v13 = vsel %vm5056_vm4, %v5096_v56, %v5095_v9 }
 0x212   : > { %v3356_v3 = vmax.f32 %v3278_v20, 0.0  ;;  %v3281_v60 = vadd.f32 %v15839_v28, %v3280_v46  ;;  %v5099_v2 = vsel %vm5059_vm15, %v5098_v4, %v5097_v13  ;;  %5410 = vrot.lane.b32.xlu1 %v5375_v38, %s14162_s0 }
 0x213   : > { %v3710_v21 = vcombine.high %v3358_v31, %v3358_v31  ;;  %v3717_v51 = vrot.slane %v3358_v31, %v15721_v47  ;;  %v3359_v14 = vmax.f32 %v3289_v16, 0.0  ;;  %v5158_v52 = vpack.c.b16 %v5099_v2, %v5099_v2 }
 0x214   : > { %v3676_v17 = vcombine.high %v3356_v3, %v3356_v3  ;;  %v3683_v58 = vrot.slane %v3356_v3, %v15721_v47  ;;  %v3357_v43 = vmax.f32 %v3281_v60, 0.0 }
 0x215   : > { %v3724_v29 = vrot.slane %v3710_v21, %v15721_v47  ;;  %v3725_v32 = vcombine.high %v3717_v51, %v3717_v51  ;;  %v12189_v55 = vrot.slane %v3717_v51, 9  ;;  %v3727_v12 = vcombine.high %v3359_v14, %v3359_v14 }
 0x216   : > { %v5206_v54 = vsel %vm15766_vm6, %v5158_v52, %v5205_v35  ;;  %v3690_v8 = vrot.slane %v3676_v17, %v15721_v47  ;;  %v3691_v41 = vcombine.high %v3683_v58, %v3683_v58  ;;  %v12181_v6 = vrot.slane %v3683_v58, 9 }
 0x217   : > { %5207 = vst [vmem:[#allocation3 + $0x20] sm:$0xf] %v5206_v54  ;;  %v3726_v27 = vcombine.high %v3724_v29, %v3724_v29  ;;  %v12190_v53 = vrot.slane %v3725_v32, 9  ;;  %v12191_v45 = vrot.slane %v3724_v29, 9  ;;  %v4532_v48 = vmax.f32 %v3717_v51, %v12189_v55 }
 0x218   : > { %v3692_v15 = vcombine.high %v3690_v8, %v3690_v8  ;;  %v12182_v11 = vrot.slane %v3691_v41, 9  ;;  %v12183_v23 = vrot.slane %v3690_v8, 9  ;;  %v4524_v10 = vmax.f32 %v3683_v58, %v12181_v6 }
 0x219   : > { %v12192_v49 = vrot.slane %v3726_v27, 9  ;;  %v4533_v5 = vmax.f32 %v3725_v32, %v12190_v53  ;;  %v4534_v26 = vmax.f32 %v3724_v29, %v12191_v45  ;;  %v3734_v61 = vrot.slane %v3359_v14, %v15721_v47  ;;  %v15953_v53 = vld [vmem:[#allocation3 + $0x24] sm:$0x1] }
 0x21a   : > { %v12184_v36 = vrot.slane %v3692_v15, 9  ;;  %v4525_v62 = vmax.f32 %v3691_v41, %v12182_v11  ;;  %v4526_v1 = vmax.f32 %v3690_v8, %v12183_v23  ;;  %v4620_v42 = vmax.f32 %v4524_v10, %v4532_v48  ;;  %v5270_v11 = vld [vmem:[#allocation3 + $0x24] sm:$0x1] }
 0x21b   : > { %v4535_v19 = vmax.f32 %v3726_v27, %v12192_v49  ;;  %v3741_v25 = vrot.slane %v3727_v12, %v15721_v47  ;;  %v3742_v50 = vcombine.high %v3734_v61, %v3734_v61  ;;  %v12193_v22 = vrot.slane %v3734_v61, 9 }
 0x21c   : > { %v4527_v33 = vmax.f32 %v3692_v15, %v12184_v36  ;;  %v4621_v7 = vmax.f32 %v4525_v62, %v4533_v5  ;;  %v4622_v63 = vmax.f32 %v4526_v1, %v4534_v26  ;;  %v12905_v9 = vpack.c.bf16 %v4620_v42, %v4620_v42 }
 0x21d   : > { %v3743_v56 = vcombine.high %v3741_v25, %v3741_v25  ;;  %v12194_v20 = vrot.slane %v3742_v50, 9  ;;  %v12195_v24 = vrot.slane %v3741_v25, 9  ;;  %v4536_v3 = vmax.f32 %v3734_v61, %v12193_v22 }
 0x21e   : > { %v4623_v4 = vmax.f32 %v4527_v33, %v4535_v19  ;;  %v12906_v38 = vpack.c.bf16 %v4621_v7, %v4621_v7  ;;  %v12907_v31 = vpack.c.bf16 %v4622_v63, %v4622_v63  ;;  %v5010_v16 = vunpack.c.l.b16 %v12905_v9  ;;  %v5286_v46 = vld [vmem:[#allocation3 + $0x20] sm:$0xf]  ;;  %v5247_v7 = vld [vmem:[#allocation3 + $0x24] sm:$0x1] }
 0x21f   : > { %v12196_v13 = vrot.slane %v3743_v56, 9  ;;  %v3693_v60 = vcombine.high %v3357_v43, %v3357_v43  ;;  %v4537_v51 = vmax.f32 %v3742_v50, %v12194_v20  ;;  %v4538_v14 = vmax.f32 %v3741_v25, %v12195_v24  ;;  %v5262_v29 = vld [vmem:[#allocation3 + $0x20] sm:$0xf] }
 0x220   : > { %v12908_v2 = vpack.c.bf16 %v4623_v4, %v4623_v4  ;;  %v5011_v35 = vunpack.c.l.b16 %v12906_v38  ;;  %v5012_v21 = vunpack.c.l.b16 %v12907_v31  ;;  %v3700_v52 = vrot.slane %v3357_v43, %v15721_v47  ;;  %v5278_v23 = vld [vmem:[#allocation3 + $0x20] sm:$0xe]  ;;  %v4685_v31 = vld [vmem:[#allocation3 + $0x40] sm:$0x1] }
 0x221   : > { %v3707_v17 = vrot.slane %v3693_v60, %v15721_v47  ;;  %v12359_v58 = vcombine.low %v5286_v46, %v5286_v46  ;;  %v5100_v55 = vrot.slane %v5010_v16, 7  ;;  %v4539_v43 = vmax.f32 %v3743_v56, %v12196_v13  ;;  %v5255_v61 = vld [vmem:[#allocation3 + $0x20] sm:$0xe]  ;;  %v4716_v16 = vld [vmem:[#allocation3 + $0x44] sm:$0x1] }
 0x222   : > { %v5013_v32 = vunpack.c.l.b16 %v12908_v2  ;;  %v5101_v12 = vrot.slane %v5011_v35, 6  ;;  %v5103_v54 = vrot.slane %v5012_v21, 5  ;;  %v3708_v8 = vcombine.high %v3700_v52, %v3700_v52  ;;  %v5239_v36 = vld [vmem:[#allocation3 + $0x20] sm:$0xf] }
 0x223   : > { %v3709_v41 = vcombine.high %v3707_v17, %v3707_v17  ;;  %v12185_v6 = vrot.slane %v3700_v52, 9  ;;  %v12187_v27 = vrot.slane %v3707_v17, 9  ;;  %5664 = vrot.lane.b32.xlu0 %v12359_v58, %s14163_s30  ;;  %v12336_v15 = vcombine.low %v5262_v29, %v5262_v29 }
 0x224   : > { %v5102_v45 = vsel %vm5044_vm10, %v5101_v12, %v5100_v55  ;;  %v5105_v48 = vrot.slane %v5013_v32, 4  ;;  %v12186_v49 = vrot.slane %v3708_v8, 9  ;;  %v12367_v42 = vcombine.low %v5286_v46, %v15953_v53  ;;  %v5214_v46 = vld [vmem:[#allocation3 + $0x2c] sm:$0x1] }
 0x225   : > { %v5104_v10 = vsel %vm5047_vm13, %v5103_v54, %v5102_v45  ;;  %v12188_v5 = vrot.slane %v3709_v41, 9  ;;  %v4528_v26 = vmax.f32 %v3700_v52, %v12185_v6  ;;  %v4530_v62 = vmax.f32 %v3707_v17, %v12187_v27  ;;  %5498 = vrot.lane.b32.xlu1 %v12336_v15, %s14164_s18 }
 0x226   : > { %v5106_v1 = vsel %vm5050_vm14, %v5105_v48, %v5104_v10  ;;  %v15961_v19 = vcombine.low %v5262_v29, %v5270_v11  ;;  %v4529_v25 = vmax.f32 %v3708_v8, %v12186_v49  ;;  %v12352_v33 = vcombine.low %v5278_v23, %v5270_v11  ;;  %v5302_v10 = vld [vmem:[#allocation3 + $0x20] sm:$0xe] }
 0x227   : > { %v4531_v50 = vmax.f32 %v3709_v41, %v12188_v5  ;;  %v4624_v22 = vmax.f32 %v4528_v26, %v4536_v3  ;;  %v4626_v63 = vmax.f32 %v4530_v62, %v4538_v14  ;;  %v12329_v9 = vcombine.low %v5255_v61, %v5247_v7 }
 0x228   : > { %v12321_v56 = vcombine.low %v5239_v36, %v5247_v7  ;;  %v4625_v20 = vmax.f32 %v4529_v25, %v4537_v51  ;;  %v5615_v38 = vrot.slane %v12352_v33, 1  ;;  %v5715_v2 = vshrl.u32 %v12367_v42, 16  ;;  %v5211_v36 = vld [vmem:[#allocation3 + $0x28] sm:$0xf] }
 0x229   : > { %v4627_v24 = vmax.f32 %v4531_v50, %v4539_v43  ;;  %v12909_v4 = vpack.c.bf16 %v4624_v22, %v4624_v22  ;;  %v12911_v13 = vpack.c.bf16 %v4626_v63, %v4626_v63  ;;  %v5448_v60 = vrot.slane %v12329_v9, 1 }
 0x22a   : > { %v5717_v35 = vshll.u32 %v12367_v42, 16  ;;  %v12910_v21 = vpack.c.bf16 %v4625_v20, %v4625_v20  ;;  %5626 = vrot.lane.b32.xlu1 %v5615_v38, %s14162_s0  ;;  %v5379_v3 = vshll.u32 %v12321_v56, 16  ;;  %v4686_v58 = vsel %vm15620_vm8, 0, %v4685_v31 }
 0x22b   : > { %v5014_v52 = vunpack.c.l.b16 %v12909_v4  ;;  %v12941_v17 = vpack.c.bf16 %v4627_v24, %v4627_v24  ;;  %v5016_v14 = vunpack.c.l.b16 %v12911_v13  ;;  %5460 = vrot.lane.b32.xlu0 %v5448_v60, %s14163_s30  ;;  %v4717_v29 = vsel %vm15611_vm7, 0, %v4716_v16  ;;  %4687 = vst [vmem:[#allocation3 + $0x40] sm:$0x1] %v4686_v58 }
 0x22c   : > { %v5719_v51 = vrot.slane %v5717_v35, 1  ;;  %v5015_v32 = vunpack.c.l.b16 %v12910_v21  ;;  %4718 = vst [vmem:[#allocation3 + $0x44] sm:$0x1] %v4717_v29  ;;  %v5381_v8 = vrot.slane %v5379_v3, 1  ;;  %v5377_v59 = vshrl.u32 %v12321_v56, 16 }
 0x22d   : > { %v5107_v55 = vrot.slane %v5014_v52, 3  ;;  %v5215_v12 = vsel %vm15620_vm8, %v12941_v17, %v5214_v46  ;;  %v5111_v43 = vrot.slane %v5016_v14, 1  ;;  %v12375_v33 = vcombine.low %v5302_v10, %v15953_v53 }
 0x22e   : > { %5216 = vst [vmem:[#allocation3 + $0x2c] sm:$0x1] %v5215_v12  ;;  %v5720_v54 = vor.u32 %v5719_v51, %v5715_v2  ;;  %v13409_v41 = vpop.f32.mrb[20].mxu0  ;;  %v5109_v27 = vrot.slane %v5015_v32, 2  ;;  %v5382_v62 = vor.u32 %v5381_v8, %v5377_v59  ;;  %vm6624_vm7 = vcmask 518146  }
 0x22f   : > { %v5108_v6 = vsel %vm5053_vm2, %v5107_v55, %v5106_v1  ;;  %v3302_v45 = vadd.f32 %v15839_v28, %v13409_v41  ;;  %v3293_v48 = vpop.f32.mrb[21].mxu0 }
 0x230   : > { %5760 = vrot.lane.b32.xlu0 %v5720_v54, %s14164_s18  ;;  %v3294_v15 = vadd.f32 %v15839_v28, %v3293_v48  ;;  %v13410_v11 = vpop.f32.mrb[22].mxu0  ;;  %v5110_v23 = vsel %vm5056_vm4, %v5109_v27, %v5108_v6 }
 0x231   : > { %v3362_v49 = vmax.f32 %v3302_v45, 0.0  ;;  %v3305_v5 = vadd.f32 %v15839_v28, %v13410_v11  ;;  %v3296_v26 = vpop.f32.mrb[23].mxu0  ;;  %v5112_v61 = vsel %vm5059_vm15, %v5111_v43, %v5110_v23  ;;  %v15989_v23 = vrot.slane %v12375_v33, 1 }
 0x232   : > { %v3360_v1 = vmax.f32 %v3294_v15, 0.0  ;;  %v5160_v42 = vpack.c.b16 %v5112_v61, %v5112_v61  ;;  %v3297_v16 = vadd.f32 %v15839_v28, %v3296_v26 }
 0x233   : > { %v3778_v25 = vcombine.high %v3362_v49, %v3362_v49  ;;  %v3785_v50 = vrot.slane %v3362_v49, %v15721_v47  ;;  %v3363_v22 = vmax.f32 %v3305_v5, 0.0 }
 0x234   : > { %5412 = vrot.lane.b32.xlu0 %v5382_v62, %s14162_s0  ;;  %v3744_v7 = vcombine.high %v3360_v1, %v3360_v1  ;;  %v3751_v63 = vrot.slane %v3360_v1, %v15721_v47  ;;  %v5212_v9 = vsel %vm15766_vm6, %v5160_v42, %v5211_v36  ;;  %v3361_v41 = vmax.f32 %v3297_v16, 0.0 }
 0x235   : > { %v3792_v56 = vrot.slane %v3778_v25, %v15721_v47  ;;  %v3793_v20 = vcombine.high %v3785_v50, %v3785_v50  ;;  %v12205_v24 = vrot.slane %v3785_v50, 9  ;;  %5213 = vst [vmem:[#allocation3 + $0x28] sm:$0xf] %v5212_v9  ;;  %v3795_v60 = vcombine.high %v3363_v22, %v3363_v22 }
 0x236   : > { %v3758_v4 = vrot.slane %v3744_v7, %v15721_v47  ;;  %v3759_v38 = vcombine.high %v3751_v63, %v3751_v63  ;;  %v12197_v31 = vrot.slane %v3751_v63, 9  ;;  %v3802_v55 = vrot.slane %v3363_v22, %v15721_v47 }
 0x237   : > { %v3794_v53 = vcombine.high %v3792_v56, %v3792_v56  ;;  %v12206_v13 = vrot.slane %v3793_v20, 9  ;;  %v12207_v46 = vrot.slane %v3792_v56, 9  ;;  %v4548_v2 = vmax.f32 %v3785_v50, %v12205_v24 }
 0x238   : > { %v3760_v35 = vcombine.high %v3758_v4, %v3758_v4  ;;  %v12198_v21 = vrot.slane %v3759_v38, 9  ;;  %v12199_v52 = vrot.slane %v3758_v4, 9  ;;  %v4540_v51 = vmax.f32 %v3751_v63, %v12197_v31 }
 0x239   : > { %v12208_v17 = vrot.slane %v3794_v53, 9  ;;  %v4549_v3 = vmax.f32 %v3793_v20, %v12206_v13  ;;  %v4550_v14 = vmax.f32 %v3792_v56, %v12207_v46  ;;  %v3809_v8 = vrot.slane %v3795_v60, %v15721_v47  ;;  %v5295_v13 = vld [vmem:[#allocation3 + $0x2c] sm:$0x1] }
 0x23a   : > { %v12200_v58 = vrot.slane %v3760_v35, 9  ;;  %v4541_v29 = vmax.f32 %v3759_v38, %v12198_v21  ;;  %v4542_v32 = vmax.f32 %v3758_v4, %v12199_v52  ;;  %v4628_v54 = vmax.f32 %v4540_v51, %v4548_v2 }
 0x23b   : > { %v4551_v12 = vmax.f32 %v3794_v53, %v12208_v17  ;;  %v3810_v48 = vcombine.high %v3802_v55, %v3802_v55  ;;  %v3811_v59 = vcombine.high %v3809_v8, %v3809_v8  ;;  %v12209_v15 = vrot.slane %v3802_v55, 9 }
 0x23c   : > { %v4543_v6 = vmax.f32 %v3760_v35, %v12200_v58  ;;  %v4629_v27 = vmax.f32 %v4541_v29, %v4549_v3  ;;  %v4630_v45 = vmax.f32 %v4542_v32, %v4550_v14  ;;  %v12913_v43 = vpack.c.bf16 %v4628_v54, %v4628_v54  ;;  %v5287_v22 = vld [vmem:[#allocation3 + $0x28] sm:$0xf] }
 0x23d   : > { %v12211_v11 = vrot.slane %v3809_v8, 9  ;;  %v12210_v61 = vrot.slane %v3810_v48, 9  ;;  %v12212_v36 = vrot.slane %v3811_v59, 9  ;;  %v3761_v62 = vcombine.high %v3361_v41, %v3361_v41  ;;  %v5303_v20 = vld [vmem:[#allocation3 + $0x28] sm:$0xe] }
 0x23e   : > { %v4631_v10 = vmax.f32 %v4543_v6, %v4551_v12  ;;  %v12914_v49 = vpack.c.bf16 %v4629_v27, %v4629_v27  ;;  %v12915_v5 = vpack.c.bf16 %v4630_v45, %v4630_v45  ;;  %v5018_v26 = vunpack.c.l.b16 %v12913_v43  ;;  %v5263_v60 = vld [vmem:[#allocation3 + $0x28] sm:$0xf]  ;;  %v5248_v43 = vld [vmem:[#allocation3 + $0x2c] sm:$0x1] }
 0x23f   : > { %v4552_v50 = vmax.f32 %v3802_v55, %v12209_v15  ;;  %v4553_v63 = vmax.f32 %v3810_v48, %v12210_v61  ;;  %v4554_v9 = vmax.f32 %v3809_v8, %v12211_v11  ;;  %v3768_v56 = vrot.slane %v3361_v41, %v15721_v47  ;;  %v5279_v58 = vld [vmem:[#allocation3 + $0x28] sm:$0xe]  ;;  %v5271_v8 = vld [vmem:[#allocation3 + $0x2c] sm:$0x1] }
 0x240   : > { %v12916_v1 = vpack.c.bf16 %v4631_v10, %v4631_v10  ;;  %v5019_v42 = vunpack.c.l.b16 %v12914_v49  ;;  %v5020_v25 = vunpack.c.l.b16 %v12915_v5  ;;  %v5113_v7 = vrot.slane %v5018_v26, 7  ;;  %v5256_v29 = vld [vmem:[#allocation3 + $0x28] sm:$0xe] }
 0x241   : > { %v4555_v38 = vmax.f32 %v3811_v59, %v12212_v36  ;;  %v3775_v31 = vrot.slane %v3761_v62, %v15721_v47  ;;  %v3776_v16 = vcombine.high %v3768_v56, %v3768_v56  ;;  %v12201_v53 = vrot.slane %v3768_v56, 9  ;;  %v15999_v41 = vld [vmem:[#allocation3 + $0x28] sm:$0xf] }
 0x242   : > { %v5021_v33 = vunpack.c.l.b16 %v12916_v1  ;;  %v5114_v24 = vrot.slane %v5019_v42, 6  ;;  %v5116_v4 = vrot.slane %v5020_v25, 5  ;;  %v12360_v46 = vcombine.low %v5287_v22, %v5287_v22 }
 0x243   : > { %v12368_v21 = vcombine.low %v5287_v22, %v5295_v13  ;;  %v12376_v52 = vcombine.low %v5303_v20, %v5295_v13  ;;  %v3777_v3 = vcombine.high %v3775_v31, %v3775_v31  ;;  %v12202_v14 = vrot.slane %v3776_v16, 9 }
 0x244   : > { %v5115_v2 = vsel %vm5044_vm10, %v5114_v24, %v5113_v7  ;;  %v5118_v35 = vrot.slane %v5021_v33, 4  ;;  %v12203_v51 = vrot.slane %v3775_v31, 9  ;;  %5666 = vrot.lane.b32.xlu1 %v12360_v46, %s14163_s30  ;;  %v4544_v32 = vmax.f32 %v3768_v56, %v12201_v53  ;;  %v5220_v56 = vld [vmem:[#allocation3 + $0x34] sm:$0x1] }
 0x245   : > { %v5117_v17 = vsel %vm5047_vm13, %v5116_v4, %v5115_v2  ;;  %v15997_v12 = vrot.slane %v12376_v52, 1  ;;  %v12337_v54 = vcombine.low %v5263_v60, %v5263_v60  ;;  %v12204_v6 = vrot.slane %v3777_v3, 9 }
 0x246   : > { %v5119_v55 = vsel %vm5050_vm14, %v5118_v35, %v5117_v17  ;;  %v4545_v27 = vmax.f32 %v3776_v16, %v12202_v14  ;;  %v4546_v45 = vmax.f32 %v3775_v31, %v12203_v51  ;;  %v16001_v48 = vcombine.low %v5263_v60, %v5271_v8 }
 0x247   : > { %v4632_v59 = vmax.f32 %v4544_v32, %v4552_v50  ;;  %v12387_v15 = vcombine.low %v15989_v23, %v15997_v12  ;;  %5500 = vrot.lane.b32.xlu0 %v12337_v54, %s14164_s18  ;;  %v12353_v11 = vcombine.low %v5279_v58, %v5271_v8  ;;  %v12330_v10 = vcombine.low %v5256_v29, %v5248_v43  ;;  %v5217_v32 = vld [vmem:[#allocation3 + $0x30] sm:$0xf]  ;;  %v6612_v23 = vld [vmem:[#allocation4 + $0x8] sm:$0x1] }
 0x248   : > { %v4547_v49 = vmax.f32 %v3777_v3, %v12204_v6  ;;  %v4633_v5 = vmax.f32 %v4545_v27, %v4553_v63  ;;  %v4634_v26 = vmax.f32 %v4546_v45, %v4554_v9  ;;  %v12322_v61 = vcombine.low %v15999_v41, %v5248_v43 }
 0x249   : > { %v12917_v36 = vpack.c.bf16 %v4632_v59, %v4632_v59  ;;  %v5616_v62 = vrot.slane %v12353_v11, 1  ;;  %v5449_v1 = vrot.slane %v12330_v10, 1  ;;  %v5724_v7 = vshll.u32 %v12368_v21, 16 }
 0x24a   : > { %v4635_v42 = vmax.f32 %v4547_v49, %v4555_v38  ;;  %v12918_v25 = vpack.c.bf16 %v4633_v5, %v4633_v5  ;;  %v12919_v22 = vpack.c.bf16 %v4634_v26, %v4634_v26  ;;  %v5722_v20 = vshrl.u32 %v12368_v21, 16 }
 0x24b   : > { %v5022_v50 = vunpack.c.l.b16 %v12917_v36  ;;  %5628 = vrot.lane.b32.xlu0 %v5616_v62, %s14162_s0  ;;  %5462 = vrot.lane.b32.xlu1 %v5449_v1, %s14163_s30  ;;  %v5386_v33 = vshll.u32 %v12322_v61, 16  ;;  %v5726_v4 = vrot.slane %v5724_v7, 1  ;;  %v5384_v14 = vshrl.u32 %v12322_v61, 16 }
 0x24c   : > { %v5023_v24 = vunpack.c.l.b16 %v12918_v25  ;;  %v5024_v63 = vunpack.c.l.b16 %v12919_v22  ;;  %v12942_v9 = vpack.c.bf16 %v4635_v42, %v4635_v42 }
 0x24d   : > { %v5120_v31 = vrot.slane %v5022_v50, 3  ;;  %v5727_v13 = vor.u32 %v5726_v4, %v5722_v20  ;;  %v5388_v46 = vrot.slane %v5386_v33, 1 }
 0x24e   : > { %v13413_v16 = vpop.f32.mrb[24].mxu0  ;;  %v5122_v53 = vrot.slane %v5023_v24, 2  ;;  %v5221_v38 = vsel %vm15620_vm8, %v12942_v9, %v5220_v56  ;;  %v5124_v35 = vrot.slane %v5024_v63, 1  ;;  %v16028_v56 = vpop.permute.xlu0 %5404 }
 0x24f   : > { %v3309_v60 = vpop.f32.mrb[25].mxu0  ;;  %v5121_v2 = vsel %vm5053_vm2, %v5120_v31, %v5119_v55  ;;  %5222 = vst [vmem:[#allocation3 + $0x34] sm:$0x1] %v5221_v38  ;;  %v3318_v21 = vadd.f32 %v15839_v28, %v13413_v16  ;;  %5762 = vrot.lane.b32.xlu1 %v5727_v13, %s14164_s18  ;;  %v5389_v6 = vor.u32 %v5388_v46, %v5384_v14 }
 0x250   : > { %v3310_v52 = vadd.f32 %v15839_v28, %v3309_v60  ;;  %v13414_v17 = vpop.f32.mrb[26].mxu0  ;;  %v5123_v3 = vsel %vm5056_vm4, %v5122_v53, %v5121_v2  ;;  %v16030_v60 = vpop.permute.xlu1 %5674 }
 0x251   : > { %v3321_v51 = vadd.f32 %v15839_v28, %v13414_v17  ;;  %v3312_v58 = vpop.f32.mrb[27].mxu0  ;;  %v5125_v29 = vsel %vm5059_vm15, %v5124_v35, %v5123_v3  ;;  %v3366_v54 = vmax.f32 %v3318_v21, 0.0 }
 0x252   : > { %v3364_v55 = vmax.f32 %v3310_v52, 0.0  ;;  %v5162_v8 = vpack.c.b16 %v5125_v29, %v5125_v29  ;;  %v3313_v45 = vadd.f32 %v15839_v28, %v3312_v58 }
 0x253   : > { %v3367_v27 = vmax.f32 %v3321_v51, 0.0  ;;  %v3846_v43 = vcombine.high %v3366_v54, %v3366_v54  ;;  %v3853_v59 = vrot.slane %v3366_v54, %v15721_v47  ;;  %5414 = vrot.lane.b32.xlu1 %v5389_v6, %s14162_s0  ;;  %v16032_v54 = vpop.permute.xlu0 %5452 }
 0x254   : > { %v3812_v11 = vcombine.high %v3364_v55, %v3364_v55  ;;  %v3819_v10 = vrot.slane %v3364_v55, %v15721_v47  ;;  %v5218_v49 = vsel %vm15766_vm6, %v5162_v8, %v5217_v32  ;;  %v3365_v50 = vmax.f32 %v3313_v45, 0.0 }
 0x255   : > { %v3863_v5 = vcombine.high %v3367_v27, %v3367_v27  ;;  %5219 = vst [vmem:[#allocation3 + $0x30] sm:$0xf] %v5218_v49  ;;  %v3860_v26 = vrot.slane %v3846_v43, %v15721_v47  ;;  %v3861_v61 = vcombine.high %v3853_v59, %v3853_v59  ;;  %v12221_v36 = vrot.slane %v3853_v59, 9 }
 0x256   : > { %v3826_v62 = vrot.slane %v3812_v11, %v15721_v47  ;;  %v3827_v28 = vcombine.high %v3819_v10, %v3819_v10  ;;  %v12213_v1 = vrot.slane %v3819_v10, 9  ;;  %v3870_v42 = vrot.slane %v3367_v27, %v15721_v47 }
 0x257   : > { %v3862_v25 = vcombine.high %v3860_v26, %v3860_v26  ;;  %v12222_v22 = vrot.slane %v3861_v61, 9  ;;  %v3877_v7 = vrot.slane %v3863_v5, %v15721_v47  ;;  %v12223_v20 = vrot.slane %v3860_v26, 9 }
 0x258   : > { %v4564_v33 = vmax.f32 %v3853_v59, %v12221_v36  ;;  %v3828_v24 = vcombine.high %v3826_v62, %v3826_v62  ;;  %v12214_v63 = vrot.slane %v3827_v28, 9  ;;  %v12215_v31 = vrot.slane %v3826_v62, 9  ;;  %v16034_v36 = vpop.permute.xlu1 %5770 }
 0x259   : > { %v12224_v9 = vrot.slane %v3862_v25, 9  ;;  %v4565_v4 = vmax.f32 %v3861_v61, %v12222_v22  ;;  %v4556_v16 = vmax.f32 %v3819_v10, %v12213_v1  ;;  %v4566_v53 = vmax.f32 %v3860_v26, %v12223_v20 }
 0x25a   : > { %v12216_v38 = vrot.slane %v3828_v24, 9  ;;  %v4557_v13 = vmax.f32 %v3827_v28, %v12214_v63  ;;  %v3878_v46 = vcombine.high %v3870_v42, %v3870_v42  ;;  %v4558_v35 = vmax.f32 %v3826_v62, %v12215_v31  ;;  %v16039_v31 = vpop.permute.xlu0 %5492 }
 0x25b   : > { %v4567_v2 = vmax.f32 %v3862_v25, %v12224_v9  ;;  %v4636_v21 = vmax.f32 %v4556_v16, %v4564_v33  ;;  %v3879_v52 = vcombine.high %v3877_v7, %v3877_v7  ;;  %v12225_v14 = vrot.slane %v3870_v42, 9 }
 0x25c   : > { %v4559_v17 = vmax.f32 %v3828_v24, %v12216_v38  ;;  %v4637_v3 = vmax.f32 %v4557_v13, %v4565_v4  ;;  %v12226_v51 = vrot.slane %v3878_v46, 9  ;;  %v4638_v58 = vmax.f32 %v4558_v35, %v4566_v53  ;;  %v5288_v27 = vld [vmem:[#allocation3 + $0x30] sm:$0xf]  ;;  %v5272_v4 = vld [vmem:[#allocation3 + $0x34] sm:$0x1] }
 0x25d   : > { %v12921_v29 = vpack.c.bf16 %v4636_v21, %v4636_v21  ;;  %v12227_v32 = vrot.slane %v3877_v7, 9  ;;  %v12228_v6 = vrot.slane %v3879_v52, 9  ;;  %v4568_v59 = vmax.f32 %v3870_v42, %v12225_v14  ;;  %v5264_v61 = vld [vmem:[#allocation3 + $0x30] sm:$0xf] }
 0x25e   : > { %v4639_v55 = vmax.f32 %v4559_v17, %v4567_v2  ;;  %v12922_v8 = vpack.c.bf16 %v4637_v3, %v4637_v3  ;;  %v12923_v45 = vpack.c.bf16 %v4638_v58, %v4638_v58  ;;  %v4569_v11 = vmax.f32 %v3878_v46, %v12226_v51  ;;  %v5280_v13 = vld [vmem:[#allocation3 + $0x30] sm:$0xe] }
 0x25f   : > { %v5026_v43 = vunpack.c.l.b16 %v12921_v29  ;;  %v4570_v5 = vmax.f32 %v3877_v7, %v12227_v32  ;;  %v3829_v26 = vcombine.high %v3365_v50, %v3365_v50  ;;  %v4571_v28 = vmax.f32 %v3879_v52, %v12228_v6  ;;  %v5257_v46 = vld [vmem:[#allocation3 + $0x30] sm:$0xe]  ;;  %v16043_v52 = vld [vmem:[#allocation3 + $0x34] sm:$0x1] }
 0x260   : > { %v12924_v10 = vpack.c.bf16 %v4639_v55, %v4639_v55  ;;  %v5027_v49 = vunpack.c.l.b16 %v12922_v8  ;;  %v5028_v62 = vunpack.c.l.b16 %v12923_v45  ;;  %v3836_v1 = vrot.slane %v3365_v50, %v15721_v47  ;;  %v16048_v3 = vld [vmem:[#allocation3 + $0x30] sm:$0xf]  ;;  %v5249_v32 = vld [vmem:[#allocation3 + $0x34] sm:$0x1]  ;;  %v16052_v55 = vpop.permute.xlu1 %5454 }
 0x261   : > { %v12361_v25 = vcombine.low %v5288_v27, %v5288_v27  ;;  %v5126_v20 = vrot.slane %v5026_v43, 7  ;;  %v3843_v24 = vrot.slane %v3829_v26, %v15721_v47  ;;  %v12338_v7 = vcombine.low %v5264_v61, %v5264_v61 }
 0x262   : > { %v5029_v22 = vunpack.c.l.b16 %v12924_v10  ;;  %v5127_v33 = vrot.slane %v5027_v49, 6  ;;  %v5129_v63 = vrot.slane %v5028_v62, 5  ;;  %v3844_v42 = vcombine.high %v3836_v1, %v3836_v1 }
 0x263   : > { %v12217_v9 = vrot.slane %v3836_v1, 9  ;;  %5668 = vrot.lane.b32.xlu0 %v12361_v25, %s14163_s30  ;;  %v3845_v38 = vcombine.high %v3843_v24, %v3843_v24  ;;  %v12219_v50 = vrot.slane %v3843_v24, 9  ;;  %5502 = vrot.lane.b32.xlu1 %v12338_v7, %s14164_s18  ;;  %v16046_v17 = vcombine.low %v5264_v61, %v5272_v4 }
 0x264   : > { %v5128_v16 = vsel %vm5044_vm10, %v5127_v33, %v5126_v20  ;;  %v5131_v53 = vrot.slane %v5029_v22, 4  ;;  %v12218_v35 = vrot.slane %v3844_v42, 9  ;;  %v12369_v29 = vcombine.low %v5288_v27, %v16043_v52  ;;  %v16055_v22 = vpop.permute.xlu0 %5620 }
 0x265   : > { %v5130_v2 = vsel %vm5047_vm13, %v5129_v63, %v5128_v16  ;;  %v4560_v21 = vmax.f32 %v3836_v1, %v12217_v9  ;;  %v12220_v14 = vrot.slane %v3845_v38, 9  ;;  %v4562_v51 = vmax.f32 %v3843_v24, %v12219_v50  ;;  %v5226_v9 = vld [vmem:[#allocation3 + $0x3c] sm:$0x1] }
 0x266   : > { %v5132_v58 = vsel %vm5050_vm14, %v5131_v53, %v5130_v2  ;;  %v4561_v8 = vmax.f32 %v3844_v42, %v12218_v35  ;;  %v12354_v45 = vcombine.low %v5280_v13, %v5272_v4  ;;  %v12331_v43 = vcombine.low %v5257_v46, %v5249_v32  ;;  %v5407_v4 = vpop.permute.xlu1 %5406 }
 0x267   : > { %v4640_v6 = vmax.f32 %v4560_v21, %v4568_v59  ;;  %v4563_v10 = vmax.f32 %v3845_v38, %v12220_v14  ;;  %v4642_v49 = vmax.f32 %v4562_v51, %v4570_v5  ;;  %v12323_v26 = vcombine.low %v16048_v3, %v5249_v32 }
 0x268   : > { %v4641_v61 = vmax.f32 %v4561_v8, %v4569_v11  ;;  %v5617_v1 = vrot.slane %v12354_v45, 1  ;;  %v5450_v25 = vrot.slane %v12331_v43, 1  ;;  %v5731_v27 = vshll.u32 %v12369_v29, 16  ;;  %v5661_v38 = vpop.permute.xlu0 %5660 }
 0x269   : > { %v12925_v62 = vpack.c.bf16 %v4640_v6, %v4640_v6  ;;  %v4643_v20 = vmax.f32 %v4563_v10, %v4571_v28  ;;  %v12927_v33 = vpack.c.bf16 %v4642_v49, %v4642_v49  ;;  %v5393_v59 = vshll.u32 %v12323_v26, 16  ;;  %v5223_v6 = vld [vmem:[#allocation3 + $0x38] sm:$0xf] }
 0x26a   : > { %v12926_v24 = vpack.c.bf16 %v4641_v61, %v4641_v61  ;;  %5630 = vrot.lane.b32.xlu1 %v5617_v1, %s14162_s0  ;;  %5464 = vrot.lane.b32.xlu0 %v5450_v25, %s14163_s30  ;;  %v5729_v7 = vshrl.u32 %v12369_v29, 16  ;;  %v5733_v11 = vrot.slane %v5731_v27, 1  ;;  %v5535_v35 = vshll.u32 %v15786_v37, 16  ;;  %v5495_v51 = vpop.permute.xlu1 %5494  ;;  %v14138_v61 = vld [vmem:[#allocation3 + $0x8] sm:$0xf] }
 0x26b   : > { %v5030_v63 = vunpack.c.l.b16 %v12925_v62  ;;  %v5032_v5 = vunpack.c.l.b16 %v12927_v33  ;;  %v12943_v42 = vpack.c.bf16 %v4643_v20, %v4643_v20  ;;  %v5395_v13 = vrot.slane %v5393_v59, 1 }
 0x26c   : > { %v5031_v16 = vunpack.c.l.b16 %v12926_v24  ;;  %v5734_v50 = vor.u32 %v5733_v11, %v5729_v7  ;;  %v5391_v14 = vshrl.u32 %v12323_v26, 16  ;;  %v5542_v29 = vshll.u32 %v15819_v34, 16  ;;  %v16070_v62 = vpop.permute.xlu0 %5456 }
 0x26d   : > { %v5133_v53 = vrot.slane %v5030_v63, 3  ;;  %v5227_v28 = vsel %vm15620_vm8, %v12943_v42, %v5226_v9  ;;  %v5137_v21 = vrot.slane %v5032_v5, 1  ;;  %v5537_v49 = vrot.slane %v5535_v35, 1 }
 0x26e   : > { %v5135_v2 = vrot.slane %v5031_v16, 2  ;;  %5228 = vst [vmem:[#allocation3 + $0x3c] sm:$0x1] %v5227_v28  ;;  %5764 = vrot.lane.b32.xlu0 %v5734_v50, %s14164_s18  ;;  %v5396_v45 = vor.u32 %v5395_v13, %v5391_v14  ;;  %v5810_v26 = vsel %vm5804_vm11, %v14138_v61, %v5407_v4  ;;  %v5544_v1 = vrot.slane %v5542_v29, 1  ;;  %v5623_v24 = vpop.permute.xlu1 %5622 }
 0x26f   : > { %v5134_v46 = vsel %vm5053_vm2, %v5133_v53, %v5132_v58  ;;  %v14137_v58 = vld [vmem:[#allocation3] sm:$0xf]  ;;  %v5533_v20 = vshrl.u32 %v15786_v37, 16  ;;  %v5540_v27 = vshrl.u32 %v15819_v34, 16  ;;  %v14139_v37 = vld [vmem:[%s17537_s2] ss:$0 sm:$0xff] }
 0x270   : > { %v5136_v32 = vsel %vm5056_vm4, %v5135_v2, %v5134_v46  ;;  %v5807_v10 = vsel %vm5804_vm11, %v14137_v58, %v16028_v56  ;;  %v5833_v56 = vsel %vm5829_vm12, %v5810_v26, %v16052_v55  ;;  %v5757_v4 = vpop.permute.xlu0 %5756 }
 0x271   : > { %v5138_v8 = vsel %vm5059_vm15, %v5137_v21, %v5136_v32  ;;  %v5831_v33 = vsel %vm5829_vm12, %v5807_v10, %v16032_v54  ;;  %v5538_v9 = vor.u32 %v5537_v49, %v5533_v20  ;;  %v16082_v59 = vsel %vm5846_vm0, %v5833_v56, %v5495_v51 }
 0x272   : > { %v5164_v43 = vpack.c.b16 %v5138_v8, %v5138_v8  ;;  %5416 = vrot.lane.b32.xlu0 %v5396_v45, %s14162_s0  ;;  %v5545_v7 = vor.u32 %v5544_v1, %v5540_v27  ;;  %v16089_v55 = vsel %vm5846_vm0, %v5831_v33, %v16039_v31 }
 0x273   : > { %v5865_v34 = vsel %vm5804_vm11, %v5538_v9, %v16055_v22  ;;  %v12382_v50 = vcombine.low %v16089_v55, %v16082_v59 }
 0x274   : > { %v5224_v25 = vsel %vm15766_vm6, %v5164_v43, %v5223_v6  ;;  %v5888_v13 = vsel %vm5829_vm12, %v5865_v34, %v5661_v38  ;;  %v5868_v21 = vsel %vm5804_vm11, %v5545_v7, %v5623_v24 }
 0x275   : > { %5225 = vst [vmem:[#allocation3 + $0x38] sm:$0xf] %v5224_v25  ;;  %v5663_v46 = vpop.permute.xlu1 %5662  ;;  %v16100_v8 = vsel %vm5846_vm0, %v5888_v13, %v5757_v4 }
 0x276   : > { %v13417_v63 = vpop.f32.mrb[28].mxu0 }
 0x277   : > { %v3334_v5 = vadd.f32 %v14139_v37, %v13417_v63  ;;  %v3325_v42 = vpop.f32.mrb[29].mxu0 }
 0x278   : > { %v3326_v54 = vadd.f32 %v14139_v37, %v3325_v42  ;;  %v13418_v11 = vpop.f32.mrb[30].mxu0 }
 0x279   : > { %v3370_v16 = vmax.f32 %v3334_v5, 0.0  ;;  %v3337_v53 = vadd.f32 %v14139_v37, %v13418_v11  ;;  %v3328_v28 = vpop.f32.mrb[31].mxu0 }
 0x27a   : > { %v3368_v2 = vmax.f32 %v3326_v54, 0.0  ;;  %v3329_v35 = vadd.f32 %v14139_v37, %v3328_v28 }
 0x27b   : > { %v3914_v14 = vcombine.high %v3370_v16, %v3370_v16  ;;  %v3921_v31 = vrot.slane %v3370_v16, %v15721_v47  ;;  %v3371_v51 = vmax.f32 %v3337_v53, 0.0 }
 0x27c   : > { %v3880_v29 = vcombine.high %v3368_v2, %v3368_v2  ;;  %v3887_v22 = vrot.slane %v3368_v2, %v15721_v47  ;;  %v3369_v32 = vmax.f32 %v3329_v35, 0.0  ;;  %v16105_v63 = vpop.permute.xlu1 %5458 }
 0x27d   : > { %v3928_v6 = vrot.slane %v3914_v14, %v15721_v47  ;;  %v3929_v45 = vcombine.high %v3921_v31, %v3921_v31  ;;  %v12237_v38 = vrot.slane %v3921_v31, 9  ;;  %v3931_v43 = vcombine.high %v3371_v51, %v3371_v51 }
 0x27e   : > { %v3894_v58 = vrot.slane %v3880_v29, %v15721_v47  ;;  %v3895_v10 = vcombine.high %v3887_v22, %v3887_v22  ;;  %v12229_v49 = vrot.slane %v3887_v22, 9  ;;  %v3938_v61 = vrot.slane %v3371_v51, %v15721_v47 }
 0x27f   : > { %v3930_v26 = vcombine.high %v3928_v6, %v3928_v6  ;;  %v12238_v1 = vrot.slane %v3929_v45, 9  ;;  %v12239_v25 = vrot.slane %v3928_v6, 9  ;;  %v4580_v20 = vmax.f32 %v3921_v31, %v12237_v38 }
 0x280   : > { %v3896_v33 = vcombine.high %v3894_v58, %v3894_v58  ;;  %v12230_v56 = vrot.slane %v3895_v10, 9  ;;  %v12231_v27 = vrot.slane %v3894_v58, 9  ;;  %v4572_v24 = vmax.f32 %v3887_v22, %v12229_v49 }
 0x281   : > { %v12240_v9 = vrot.slane %v3930_v26, 9  ;;  %v4581_v37 = vmax.f32 %v3929_v45, %v12238_v1  ;;  %v4582_v5 = vmax.f32 %v3928_v6, %v12239_v25  ;;  %v3945_v42 = vrot.slane %v3931_v43, %v15721_v47 }
 0x282   : > { %v12232_v7 = vrot.slane %v3896_v33, 9  ;;  %v4573_v54 = vmax.f32 %v3895_v10, %v12230_v56  ;;  %v4574_v11 = vmax.f32 %v3894_v58, %v12231_v27  ;;  %v4644_v34 = vmax.f32 %v4572_v24, %v4580_v20  ;;  %v5759_v10 = vpop.permute.xlu1 %5758 }
 0x283   : > { %v4583_v4 = vmax.f32 %v3930_v26, %v12240_v9  ;;  %v3946_v16 = vcombine.high %v3938_v61, %v3938_v61  ;;  %v3947_v53 = vcombine.high %v3945_v42, %v3945_v42  ;;  %v12241_v28 = vrot.slane %v3938_v61, 9  ;;  %v5289_v9 = vld [vmem:[#allocation3 + $0x38] sm:$0xf] }
 0x284   : > { %v4575_v13 = vmax.f32 %v3896_v33, %v12232_v7  ;;  %v4645_v2 = vmax.f32 %v4573_v54, %v4581_v37  ;;  %v4646_v35 = vmax.f32 %v4574_v11, %v4582_v5  ;;  %v12929_v14 = vpack.c.bf16 %v4644_v34, %v4644_v34  ;;  %v16113_v54 = vld [vmem:[#allocation3 + $0x3c] sm:$0x1] }
 0x285   : > { %v5890_v31 = vsel %vm5829_vm12, %v5868_v21, %v5663_v46  ;;  %v12242_v51 = vrot.slane %v3946_v16, 9  ;;  %v12243_v29 = vrot.slane %v3945_v42, 9  ;;  %v12244_v22 = vrot.slane %v3947_v53, 9 }
 0x286   : > { %v4647_v6 = vmax.f32 %v4575_v13, %v4583_v4  ;;  %v12930_v45 = vpack.c.bf16 %v4645_v2, %v4645_v2  ;;  %v12931_v38 = vpack.c.bf16 %v4646_v35, %v4646_v35  ;;  %v5034_v43 = vunpack.c.l.b16 %v12929_v14  ;;  %v16117_v35 = vld [vmem:[#allocation3 + $0x38] sm:$0xf] }
 0x287   : > { %v4584_v58 = vmax.f32 %v3938_v61, %v12241_v28  ;;  %v4585_v49 = vmax.f32 %v3946_v16, %v12242_v51  ;;  %v4586_v26 = vmax.f32 %v3945_v42, %v12243_v29  ;;  %v3897_v1 = vcombine.high %v3369_v32, %v3369_v32  ;;  %v5281_v16 = vld [vmem:[#allocation3 + $0x38] sm:$0xe]  ;;  %v5273_v29 = vld [vmem:[#allocation3 + $0x3c] sm:$0x1] }
 0x288   : > { %v12932_v25 = vpack.c.bf16 %v4647_v6, %v4647_v6  ;;  %v5035_v20 = vunpack.c.l.b16 %v12930_v45  ;;  %v5036_v33 = vunpack.c.l.b16 %v12931_v38  ;;  %v4587_v56 = vmax.f32 %v3947_v53, %v12244_v22  ;;  %v5258_v53 = vld [vmem:[#allocation3 + $0x38] sm:$0xe]  ;;  %v5250_v22 = vld [vmem:[#allocation3 + $0x3c] sm:$0x1] }
 0x289   : > { %v5139_v27 = vrot.slane %v5034_v43, 7  ;;  %v3904_v24 = vrot.slane %v3369_v32, %v15721_v47  ;;  %v3911_v46 = vrot.slane %v3897_v1, %v15721_v47  ;;  %v5906_v21 = vsel %vm5846_vm0, %v5890_v31, %v5759_v10  ;;  %v13768_v10 = vld [vmem:[%s17538_s3 + $0x80] sm:$0xff]  }
 0x28a   : > { %v5037_v37 = vunpack.c.l.b16 %v12932_v25  ;;  %v5140_v5 = vrot.slane %v5035_v20, 6  ;;  %v5142_v7 = vrot.slane %v5036_v33, 5  ;;  %v12383_v61 = vcombine.low %v16100_v8, %v5906_v21  ;;  %13419 = vmatprep.subr.bf16.mxu1 %v13768_v10 }
 0x28b   : > { %v3912_v42 = vcombine.high %v3904_v24, %v3904_v24  ;;  %v3913_v11 = vcombine.high %v3911_v46, %v3911_v46  ;;  %v12233_v34 = vrot.slane %v3904_v24, 9  ;;  %v12235_v4 = vrot.slane %v3911_v46, 9 }
 0x28c   : > { %v5141_v32 = vsel %vm5044_vm10, %v5140_v5, %v5139_v27  ;;  %v5144_v28 = vrot.slane %v5037_v37, 4  ;;  %6174 = vmatprep.mubr.bf16.mxu1 %v12383_v61  ;;  %v12362_v13 = vcombine.low %v5289_v9, %v5289_v9  ;;  %v12370_v2 = vcombine.low %v5289_v9, %v16113_v54  ;;  %v5304_v9 = vld [vmem:[#allocation3 + $0x30] sm:$0xe]  ;;  %v5232_v5 = vld [vmem:[#allocation3 + $0x44] sm:$0x1] }
 0x28d   : > { %v5143_v14 = vsel %vm5047_vm13, %v5142_v7, %v5141_v32  ;;  %v12234_v8 = vrot.slane %v3912_v42, 9  ;;  %v12236_v31 = vrot.slane %v3913_v11, 9  ;;  %v4576_v51 = vmax.f32 %v3904_v24, %v12233_v34  ;;  %6175 = vmatmul.mubr.bf16.vlgmr.msra.gmra.mrb[0].mxu1 %v12382_v50  ;;  %v5265_v34 = vld [vmem:[#allocation3 + $0x38] sm:$0xf] }
 0x28e   : > { %v4578_v6 = vmax.f32 %v3911_v46, %v12235_v4  ;;  %v5145_v45 = vsel %vm5050_vm14, %v5144_v28, %v5143_v14  ;;  %5670 = vrot.lane.b32.xlu1 %v12362_v13, %s14163_s30  ;;  %v12355_v38 = vcombine.low %v5281_v16, %v5273_v29  ;;  %v12332_v43 = vcombine.low %v5258_v53, %v5250_v22  ;;  %v5305_v4 = vld [vmem:[#allocation3 + $0x38] sm:$0xe] }
 0x28f   : > { %v4577_v1 = vmax.f32 %v3912_v42, %v12234_v8  ;;  %v4579_v25 = vmax.f32 %v3913_v11, %v12236_v31  ;;  %v4648_v20 = vmax.f32 %v4576_v51, %v4584_v58  ;;  %v12324_v33 = vcombine.low %v16117_v35, %v5250_v22  ;;  %13420 = vmatpush3.bf16.msra.mxu1 %v13768_v10 }
 0x290   : > { %v4650_v59 = vmax.f32 %v4578_v6, %v4586_v26  ;;  %v5618_v55 = vrot.slane %v12355_v38, 1  ;;  %v5451_v50 = vrot.slane %v12332_v43, 1  ;;  %v5738_v21 = vshll.u32 %v12370_v2, 16 }
 0x291   : > { %v4649_v27 = vmax.f32 %v4577_v1, %v4585_v49  ;;  %v4651_v24 = vmax.f32 %v4579_v25, %v4587_v56  ;;  %v12933_v46 = vpack.c.bf16 %v4648_v20, %v4648_v20  ;;  %v5736_v7 = vshrl.u32 %v12370_v2, 16  ;;  %v13769_v1 = vld [vmem:[%s17538_s3 + $0x88] sm:$0xff]  }
 0x292   : > { %v12935_v37 = vpack.c.bf16 %v4650_v59, %v4650_v59  ;;  %5632 = vrot.lane.b32.xlu0 %v5618_v55, %s14162_s0  ;;  %5466 = vrot.lane.b32.xlu1 %v5451_v50, %s14163_s30  ;;  %v5400_v58 = vshll.u32 %v12324_v33, 16  ;;  %v5740_v11 = vrot.slane %v5738_v21, 1  ;;  %v12377_v16 = vcombine.low %v5304_v9, %v16043_v52  ;;  %v5411_v21 = vpop.permute.xlu1 %5410 }
 0x293   : > { %v12934_v61 = vpack.c.bf16 %v4649_v27, %v4649_v27  ;;  %v5038_v42 = vunpack.c.l.b16 %v12933_v46  ;;  %v12944_v26 = vpack.c.bf16 %v4651_v24, %v4651_v24  ;;  %v16134_v14 = vcombine.low %v5265_v34, %v5273_v29  ;;  %v5229_v29 = vld [vmem:[#allocation3 + $0x40] sm:$0xf]  ;;  %13421 = vmatprep.subr.bf16.mxu1 %v13769_v1 }
 0x294   : > { %v5040_v49 = vunpack.c.l.b16 %v12935_v37  ;;  %v5402_v56 = vrot.slane %v5400_v58, 1  ;;  %v5741_v13 = vor.u32 %v5740_v11, %v5736_v7  ;;  %v12378_v2 = vcombine.low %v5305_v4, %v16113_v54  ;;  %13422 = vmatpush3.bf16.msra.mxu1 %v13769_v1 }
 0x295   : > { %v5039_v53 = vunpack.c.l.b16 %v12934_v61  ;;  %v5146_v32 = vrot.slane %v5038_v42, 3  ;;  %v5233_v28 = vsel %vm15620_vm8, %v12944_v26, %v5232_v5  ;;  %v5398_v51 = vshrl.u32 %v12324_v33, 16  ;;  %v5409_v33 = vpop.permute.xlu0 %5408  ;;  %vm16241_vm8 = vmand %vm6604_vm5, %vm17571_vm9 }
 0x296   : > { %5234 = vst [vmem:[#allocation3 + $0x44] sm:$0x1] %v5233_v28  ;;  %5766 = vrot.lane.b32.xlu1 %v5741_v13, %s14164_s18  ;;  %v5150_v22 = vrot.slane %v5040_v49, 1  ;;  %v16139_v6 = vrot.slane %v12377_v16, 1  ;;  %v16141_v52 = vrot.slane %v12378_v2, 1  ;;  %v12339_v4 = vcombine.low %v5265_v34, %v5265_v34 }
 0x297   : > { %v5147_v8 = vsel %vm5053_vm2, %v5146_v32, %v5145_v45  ;;  %v5148_v31 = vrot.slane %v5039_v53, 2  ;;  %v5403_v38 = vor.u32 %v5402_v56, %v5398_v51  ;;  %v5499_v61 = vpop.permute.xlu1 %5498  ;;  %v5549_v16 = vshll.u32 %v15903_v40, 16 }
 0x298   : > { %v12390_v54 = vcombine.low %v16139_v6, %v16141_v52  ;;  %v5556_v53 = vshll.u32 %v15961_v19, 16  ;;  %vm6625_vm2 = vsmask.f32 7946  ;;  %v6613_v6 = vsel %vm16241_vm8, 0, %v6612_v23 }
 0x299   : > { %v5149_v57 = vsel %vm5056_vm4, %v5148_v31, %v5147_v8  ;;  %v5497_v5 = vpop.permute.xlu0 %5496  ;;  %v5551_v13 = vrot.slane %v5549_v16, 1  ;;  %v5547_v8 = vshrl.u32 %v15903_v40, 16  ;;  %v5554_v31 = vshrl.u32 %v15961_v19, 16  ;;  %vm16248_vm4 = vmand %vm6624_vm7, %vm6625_vm2  ;;  %6614 = vst [vmem:[#allocation4 + $0x8] sm:$0x1] %v6613_v6 }
 0x29a   : > { %v5151_v43 = vsel %vm5059_vm15, %v5150_v22, %v5149_v57  ;;  %5418 = vrot.lane.b32.xlu1 %v5403_v38, %s14162_s0  ;;  %v5558_v2 = vrot.slane %v5556_v53, 1  ;;  %v14140_v22 = vld [vmem:[#allocation3 + $0x18] sm:$0xf]  ;;  %v5563_v53 = vshll.u32 %v16001_v48, 16  ;;  %vm6763_vm15 = vsmask.f32 2306 }
 0x29b   : > { %v5166_v10 = vpack.c.b16 %v5151_v43, %v5151_v43  ;;  %v5816_v34 = vsel %vm5804_vm11, %v14140_v22, %v5411_v21  ;;  %v5552_v57 = vor.u32 %v5551_v13, %v5547_v8  ;;  %v14141_v43 = vld [vmem:[#allocation3 + $0x10] sm:$0xf]  ;;  %vm16351_vm1 = vmand %vm6600_vm3, %vm6763_vm15 }
 0x29c   : > { %v5627_v49 = vpop.permute.xlu1 %5626  ;;  %v5559_v38 = vor.u32 %v5558_v2, %v5554_v31  ;;  %v5837_v1 = vsel %vm5829_vm12, %v5816_v34, %v16105_v63  ;;  %v5565_v2 = vrot.slane %v5563_v53, 1  ;;  %v5568_v31 = vshrl.u32 %v16046_v17, 16 }
 0x29d   : > { %v5230_v45 = vsel %vm15766_vm6, %v5166_v10, %v5229_v29  ;;  %v16153_v25 = vld [vmem:[#allocation3 + $0x44] sm:$0x1]  ;;  %v5625_v11 = vpop.permute.xlu0 %5624  ;;  %v5813_v29 = vsel %vm5804_vm11, %v14141_v43, %v5409_v33  ;;  %v5854_v40 = vsel %vm5846_vm0, %v5837_v1, %v5499_v61  ;;  %vm7675_vm6 = vcmask 1040384  }
 0x29e   : > { %5231 = vst [vmem:[#allocation3 + $0x40] sm:$0xf] %v5230_v45  ;;  %v5274_v20 = vld [vmem:[#allocation3 + $0x44] sm:$0x1]  ;;  %v5871_v45 = vsel %vm5804_vm11, %v5552_v57, %v5625_v11 }
 0x2a1   : > { %v5665_v56 = vpop.permute.xlu0 %5664 }
 0x2a2   : > { %v5892_v19 = vsel %vm5829_vm12, %v5871_v45, %v5665_v56 }
 0x2a5   : > { %v5290_v59 = vld [vmem:[#allocation3 + $0x40] sm:$0xf]  ;;  %v5461_v28 = vpop.permute.xlu0 %5460 }
 0x2a6   : > { %v5282_v55 = vld [vmem:[#allocation3 + $0x40] sm:$0xe]  ;;  %v12363_v27 = vcombine.low %v5290_v59, %v5290_v59  ;;  %v12371_v24 = vcombine.low %v5290_v59, %v16153_v25 }
 0x2a7   : > { %v5266_v50 = vld [vmem:[#allocation3 + $0x40] sm:$0xf]  ;;  %v12356_v46 = vcombine.low %v5282_v55, %v5274_v20 }
 0x2a8   : > { %v16156_v44 = vcombine.low %v5266_v50, %v5274_v20  ;;  %5672 = vrot.lane.b32.xlu0 %v12363_v27, %s14163_s30  ;;  %v5745_v37 = vshll.u32 %v12371_v24, 16  ;;  %v5743_v7 = vshrl.u32 %v12371_v24, 16  ;;  %v12340_v26 = vcombine.low %v5266_v50, %v5266_v50 }
 0x2a9   : > { %v5619_v9 = vrot.slane %v12356_v46, 1  ;;  %v5761_v10 = vpop.permute.xlu0 %5760  ;;  %v5874_v20 = vsel %vm5804_vm11, %v5559_v38, %v5627_v49  ;;  %v5835_v50 = vsel %vm5829_vm12, %v5813_v29, %v16070_v62 }
 0x2aa   : > { %v5747_v58 = vrot.slane %v5745_v37, 1  ;;  %v5908_v33 = vsel %vm5846_vm0, %v5892_v19, %v5761_v10  ;;  %v5852_v24 = vsel %vm5846_vm0, %v5835_v50, %v5497_v5  ;;  %v14142_v37 = vld [vmem:[#allocation3 + $0x20] sm:$0xf]  ;;  %v5577_v19 = vshll.u32 %v16134_v14, 16 }
 0x2ab   : > { %5634 = vrot.lane.b32.xlu1 %v5619_v9, %s14162_s0  ;;  %v12385_v63 = vcombine.low %v5852_v24, %v5854_v40  ;;  %v5575_v24 = vshrl.u32 %v16134_v14, 16  ;;  %s561_s0 = scalar_lea.vmem %s17552_s17, %s12871_s29 }
 0x2ac   : > { %v5748_v42 = vor.u32 %v5747_v58, %v5743_v7 }
 0x2ad   : > { %v5413_v21 = vpop.permute.xlu0 %5412 }
 0x2ae   : > { %5768 = vrot.lane.b32.xlu0 %v5748_v42, %s14164_s18  ;;  %v5819_v7 = vsel %vm5804_vm11, %v14142_v37, %v5413_v21 }
 0x2af   : > { %5506 = vrot.lane.b32.xlu1 %v12340_v26, %s14164_s18  ;;  %v5839_v62 = vsel %vm5829_vm12, %v5819_v7, %v5461_v28  ;;  %v5561_v28 = vshrl.u32 %v16001_v48, 16 }
 0x2b1   : > { %v5566_v22 = vor.u32 %v5565_v2, %v5561_v28 }
 0x2b2   : > { %5504 = vrot.lane.b32.xlu0 %v12339_v4, %s14164_s18 }
 0x2b6   : > { %v5667_v32 = vpop.permute.xlu1 %5666 }
 0x2b7   : > { %v5894_v59 = vsel %vm5829_vm12, %v5874_v20, %v5667_v32  ;;  %v5570_v32 = vshll.u32 %v16046_v17, 16  ;;  %v5584_v17 = vshll.u32 %v16156_v44, 16 }
 0x2b9   : > { %v5501_v61 = vpop.permute.xlu0 %5500  ;;  %v5572_v8 = vrot.slane %v5570_v32, 1  ;;  %v14143_v32 = vld [vmem:[#allocation3 + $0x4c] sm:$0x1] }
 0x2ba   : > { %v5856_v5 = vsel %vm5846_vm0, %v5839_v62, %v5501_v61 }
 0x2bb   : > { %v5573_v34 = vor.u32 %v5572_v8, %v5568_v31 }
 0x2bd   : > { %v5463_v51 = vpop.permute.xlu1 %5462  ;;  %v5629_v49 = vpop.permute.xlu0 %5628 }
 0x2be   : > { %v5877_v38 = vsel %vm5804_vm11, %v5566_v22, %v5629_v49 }
 0x2c1   : > { %v5763_v55 = vpop.permute.xlu1 %5762 }
 0x2c2   : > { %v5910_v27 = vsel %vm5846_vm0, %v5894_v59, %v5763_v55  ;;  %v5586_v59 = vrot.slane %v5584_v17, 1 }
 0x2c3   : > { %v12386_v46 = vcombine.low %v5908_v33, %v5910_v27  ;;  %v5579_v33 = vrot.slane %v5577_v19, 1  ;;  %v5582_v27 = vshrl.u32 %v16156_v44, 16  ;;  %v6639_v19 = vld [vmem:[#allocation4 + $0x10] sm:$0x4] }
 0x2c5   : > { %6182 = vmatprep.mubr.bf16.mxu1 %v12386_v46  ;;  %v5415_v9 = vpop.permute.xlu1 %5414  ;;  %v5587_v46 = vor.u32 %v5586_v59, %v5582_v27 }
 0x2c6   : > { %6183 = vmatmul.mubr.bf16.gmra.mrb[4].mxu1 %v12385_v63  ;;  %v5822_v58 = vsel %vm5804_vm11, %v15999_v41, %v5415_v9  ;;  %v5580_v9 = vor.u32 %v5579_v33, %v5575_v24  ;;  %v6636_v33 = vld [vmem:[#allocation4 + $0xc] sm:$0x4] }
 0x2c7   : > { %v5841_v42 = vsel %vm5829_vm12, %v5822_v58, %v5463_v51  ;;  %v6637_v24 = vsel %vm16248_vm4, 0, %v6636_v33 }
 0x2c8   : > { %6638 = vst [vmem:[#allocation4 + $0xc] sm:$0x4] %v6637_v24 }
 0x2d5   : > { %v5503_v26 = vpop.permute.xlu1 %5502  ;;  %v5669_v56 = vpop.permute.xlu0 %5668 }
 0x2d6   : > { %v5858_v11 = vsel %vm5846_vm0, %v5841_v42, %v5503_v26  ;;  %v5896_v29 = vsel %vm5829_vm12, %v5877_v38, %v5669_v56 }
 0x2d7   : > { %v12388_v4 = vcombine.low %v5856_v5, %v5858_v11 }
 0x2dc   : > { %v5631_v16 = vpop.permute.xlu1 %5630  ;;  %v5465_v41 = vpop.permute.xlu0 %5464 }
 0x2dd   : > { %v5880_v43 = vsel %vm5804_vm11, %v5573_v34, %v5631_v16 }
 0x2e0   : > { %v5765_v57 = vpop.permute.xlu0 %5764 }
 0x2e1   : > { %v5912_v1 = vsel %vm5846_vm0, %v5896_v29, %v5765_v57  ;;  %v6630_v29 = vld [vmem:[#allocation4 + $0x4] sm:$0x4] }
 0x2e4   : > { %v5417_v40 = vpop.permute.xlu0 %5416 }
 0x2e5   : > { %v5825_v42 = vsel %vm5804_vm11, %v16048_v3, %v5417_v40  ;;  %v6618_v40 = vld [vmem:[#allocation4 + $0x10] sm:$0x1] }
 0x2e6   : > { %v6619_v59 = vsel %vm16241_vm8, 0, %v6618_v40 }
 0x2e7   : > { %6620 = vst [vmem:[#allocation4 + $0x10] sm:$0x1] %v6619_v59 }
 0x300   : > { %v5671_v13 = vpop.permute.xlu1 %5670 }
 0x301   : > { %v5898_v10 = vsel %vm5829_vm12, %v5880_v43, %v5671_v13  ;;  %v6609_v43 = vld [vmem:[#allocation4 + $0x4] sm:$0x1] }
 0x304   : > { %v5467_v51 = vpop.permute.xlu1 %5466  ;;  %v5633_v55 = vpop.permute.xlu0 %5632 }
 0x305   : > { %v5883_v58 = vsel %vm5804_vm11, %v5580_v9, %v5633_v55  ;;  %v6640_v55 = vsel %vm16248_vm4, 0, %v6639_v19 }
 0x306   : > { %6641 = vst [vmem:[#allocation4 + $0x10] sm:$0x4] %v6640_v55 }
 0x308   : > { %v5767_v45 = vpop.permute.xlu1 %5766 }
 0x309   : > { %v5914_v20 = vsel %vm5846_vm0, %v5898_v10, %v5767_v45  ;;  %v6610_v10 = vsel %vm16241_vm8, 0, %v6609_v43  ;;  %v6631_v45 = vsel %vm16248_vm4, 0, %v6630_v29 }
 0x30a   : > { %v12389_v48 = vcombine.low %v5912_v1, %v5914_v20  ;;  %6611 = vst [vmem:[#allocation4 + $0x4] sm:$0x1] %v6610_v10  ;;  %6632 = vst [vmem:[#allocation4 + $0x4] sm:$0x4] %v6631_v45  ;;  %v6606_v1 = vld [vmem:[#allocation4] sm:$0x1] }
 0x30b   : > { %v6627_v20 = vld [vmem:[#allocation4] sm:$0x4] }
 0x30c   : > { %6190 = vmatprep.mubr.bf16.mxu1 %v12389_v48  ;;  %v5419_v50 = vpop.permute.xlu1 %5418  ;;  %v6607_v48 = vsel %vm16241_vm8, 0, %v6606_v1  ;;  %v6628_v17 = vsel %vm16248_vm4, 0, %v6627_v20 }
 0x30d   : > { %6191 = vmatmul.mubr.bf16.gmra.mrb[8].mxu1 %v12388_v4  ;;  %v5828_v14 = vsel %vm5804_vm11, %v16117_v35, %v5419_v50  ;;  %v5843_v4 = vsel %vm5829_vm12, %v5825_v42, %v5465_v41  ;;  %v5307_v35 = vld [vmem:[#allocation3 + $0x48] sm:$0xe]  ;;  %6608 = vst [vmem:[#allocation4] sm:$0x1] %v6607_v48  ;;  %6629 = vst [vmem:[#allocation4] sm:$0x4] %v6628_v17 }
 0x30e   : > { %v12380_v13 = vcombine.low %v5307_v35, %v14143_v32  ;;  %v6615_v50 = vld [vmem:[#allocation4 + $0xc] sm:$0x1]  ;;  %v13792_v42 = vld [vmem:[%s17540_s5 + $0x40] sm:$0xff]   ;;  %v13799_v35 = vld [vmem:[%s17540_s5 + $0x18] sm:$0xff]  }
 0x30f   : > { %v6616_v27 = vsel %vm16241_vm8, 0, %v6615_v50  ;;  %13033 = vmatprep.subr.bf16.mxu0 %v13792_v42  ;;  %v13801_v32 = vld [vmem:[%s17540_s5 + $0x20] sm:$0xff]  }
 0x310   : > { %v5803_v18 = vrot.slane %v12380_v13, 1  ;;  %6617 = vst [vmem:[#allocation4 + $0xc] sm:$0x1] %v6616_v27 }
 0x31a   : > { %v5673_v63 = vpop.permute.xlu0 %5672 }
 0x31b   : > { %v5900_v61 = vsel %vm5829_vm12, %v5883_v58, %v5673_v63 }
 0x31d   : > { %v5635_v21 = vpop.permute.xlu1 %5634 }
 0x31e   : > { %v5886_v37 = vsel %vm5804_vm11, %v5587_v46, %v5635_v21  ;;  %v13776_v46 = vld [vmem:[#allocation4] ss:$0 sps:$4 sm:$0x77]  }
 0x31f   : > { %v5902_v7 = vsel %vm5829_vm12, %v5886_v37, %v16030_v60  ;;  %v5845_v60 = vsel %vm5829_vm12, %v5828_v14, %v5467_v51  ;;  %v6829_v63 = vshll.u32 %v13776_v46, 16  ;;  %v6827_v21 = vshrl.u32 %v13776_v46, 16  ;;  %v13793_v14 = vld [vmem:[%s17540_s5] sm:$0xff]  }
 0x320   : > { %v5769_v62 = vpop.permute.xlu0 %5768  ;;  %v5918_v44 = vsel %vm5846_vm0, %v5902_v7, %v16034_v36  ;;  %v5306_v36 = vld [vmem:[#allocation3 + $0x40] sm:$0xe]  ;;  %v6642_v7 = vld [vmem:[#allocation4 + $0x14] sm:$0x4]  ;;  %13034 = vmatpush3.bf16.msra.mxu0 %v13793_v14 }
 0x321   : > { %v5916_v26 = vsel %vm5846_vm0, %v5900_v61, %v5769_v62  ;;  %v5507_v5 = vpop.permute.xlu1 %5506  ;;  %v12379_v53 = vcombine.low %v5306_v36, %v16153_v25  ;;  %v6831_v9 = vrot.slane %v6829_v63, 1  ;;  %v6643_v58 = vsel %vm16248_vm4, 0, %v6642_v7  ;;  %v6621_v61 = vld [vmem:[#allocation4 + $0x14] sm:$0x1] }
 0x322   : > { %v12392_v11 = vcombine.low %v5916_v26, %v5918_v44  ;;  %v5862_v56 = vsel %vm5846_vm0, %v5845_v60, %v5507_v5  ;;  %6644 = vst [vmem:[#allocation4 + $0x14] sm:$0x4] %v6643_v58  ;;  %v6622_v62 = vsel %vm16241_vm8, 0, %v6621_v61  ;;  %v13794_v44 = vld [vmem:[%s17540_s5 + $0x48] sm:$0xff]   ;;  %v13796_v5 = vld [vmem:[%s17540_s5 + $0x50] sm:$0xff]  }
 0x323   : > { %v5802_v41 = vrot.slane %v12379_v53, 1  ;;  %v6832_v37 = vor.u32 %v6831_v9, %v6827_v21  ;;  %6623 = vst [vmem:[#allocation4 + $0x14] sm:$0x1] %v6622_v62  ;;  %v13795_v26 = vld [vmem:[%s17540_s5 + $0x8] sm:$0xff]   ;;  %13035 = vmatprep.subr.bf16.mxu0 %v13794_v44  ;;  %v13800_v53 = vld [vmem:[%s17540_s5 + $0x60] sm:$0xff]  }
 0x324   : > { %6198 = vmatprep.mubr.bf16.mxu1 %v12392_v11  ;;  %v5505_v49 = vpop.permute.xlu0 %5504  ;;  %13036 = vmatpush3.bf16.msra.mxu0 %v13795_v26 }
 0x325   : > { %v5860_v3 = vsel %vm5846_vm0, %v5843_v4, %v5505_v49  ;;  %v12393_v39 = vcombine.low %v5802_v41, %v5803_v18  ;;  %6854 = vrot.lane.b32.xlu0 %v6832_v37, %s14163_s30  ;;  %13037 = vmatprep.subr.bf16.mxu0 %v13796_v5 }
 0x326   : > { %v12391_v16 = vcombine.low %v5860_v3, %v5862_v56  ;;  %v13797_v56 = vld [vmem:[%s17540_s5 + $0x10] sm:$0xff]  }
 0x328   : > { %6199 = vmatmul.mubr.bf16.gmra.mrb[12].mxu1 %v12391_v16  ;;  %v13798_v16 = vld [vmem:[%s17540_s5 + $0x58] sm:$0xff]   ;;  %13038 = vmatpush3.bf16.msra.mxu0 %v13797_v56 }
 0x329   : > { %13423 = vmatprep.mubr.msk.bf16.mxu1 %vm5804_vm11, %v12384_v30  ;;  %13039 = vmatprep.subr.bf16.mxu0 %v13798_v16 }
 0x32c   : > { %13040 = vmatpush3.bf16.msra.mxu0 %v13799_v35 }
 0x32d   : > { %13041 = vmatprep.subr.bf16.mxu0 %v13800_v53 }
 0x330   : > { %13424 = vmatmul.mubr.msk.bf16.vlgmr.msra.gmra.mrb[16].mxu1 %vm5804_vm11, %v12387_v15  ;;  %v6633_v15 = vld [vmem:[#allocation4 + $0x8] sm:$0x4]  ;;  %13042 = vmatpush3.bf16.msra.mxu0 %v13801_v32 }
 0x331   : > { %13427 = vmatprep.mubr.msk.bf16.mxu1 %vm5804_vm11, %v12390_v54  ;;  %v6634_v0 = vsel %vm16248_vm4, 0, %v6633_v15 }
 0x332   : > { %6635 = vst [vmem:[#allocation4 + $0x8] sm:$0x4] %v6634_v0 }
 0x338   : > { %13428 = vmatmul.mubr.msk.bf16.gmra.mrb[20].mxu1 %vm5804_vm11, %v12393_v39  ;;  %vm17585_vm11 = vmmov %vm17571_vm9 }
 0x339   : > { %vm16533_vm0 = vmand %vm7675_vm6, %vm17585_vm11 }
 0x360   : > { %v13003_v30 = vpop.f32.mrb[0].mxu1 }
 0x361   : > { %v13004_v2 = vpop.f32.mrb[1].mxu1 }
 0x362   : > { %v16232_v25 = vadd.f32 %v13004_v2, %v13003_v30  ;;  %v13006_v8 = vpop.f32.mrb[2].mxu1 }
 0x363   : > { %v13007_v28 = vpop.f32.mrb[3].mxu1 }
 0x364   : > { %v16234_v31 = vadd.f32 %v13007_v28, %v13006_v8  ;;  %v16316_v8 = vld [vmem:[%s17539_s4] ss:$0 sm:$0xff] }
 0x365   : > { %v6177_v12 = vadd.f32 %v16232_v25, %v16316_v8 }
 0x399   : > { %v13009_v54 = vpop.f32.mrb[4].mxu1 }
 0x39a   : > { %v13010_v51 = vpop.f32.mrb[5].mxu1 }
 0x39b   : > { %v16254_v22 = vadd.f32 %v13010_v51, %v13009_v54  ;;  %v13012_v34 = vpop.f32.mrb[6].mxu1  ;;  %v6180_v51 = vadd.f32 %v16234_v31, %v16316_v8 }
 0x39c   : > { %v13013_v57 = vpop.f32.mrb[7].mxu1 }
 0x39d   : > { %v16256_v38 = vadd.f32 %v13013_v57, %v13012_v34  ;;  %v6185_v28 = vadd.f32 %v16254_v22, %v16316_v8 }
 0x39f   : > { %v6188_v52 = vadd.f32 %v16256_v38, %v16316_v8 }
 0x3e0   : > { %v13015_v11 = vpop.f32.mrb[8].mxu1 }
 0x3e1   : > { %v13016_v60 = vpop.f32.mrb[9].mxu1 }
 0x3e2   : > { %v13017_v4 = vadd.f32 %v13016_v60, %v13015_v11  ;;  %v13018_v49 = vpop.f32.mrb[10].mxu1 }
 0x3e3   : > { %v13019_v3 = vpop.f32.mrb[11].mxu1 }
 0x3e4   : > { %v16300_v36 = vadd.f32 %v13019_v3, %v13018_v49  ;;  %v16328_v25 = vadd.f32 %v13017_v4, %v16316_v8 }
 0x3fb   : > { %v13021_v13 = vpop.f32.mrb[12].mxu1 }
 0x3fc   : > { %v13022_v41 = vpop.f32.mrb[13].mxu1 }
 0x3fd   : > { %v13023_v18 = vadd.f32 %v13022_v41, %v13021_v13  ;;  %v13024_v39 = vpop.f32.mrb[14].mxu1 }
 0x3fe   : > { %v13025_v30 = vpop.f32.mrb[15].mxu1 }
 0x3ff   : > { %v16311_v2 = vadd.f32 %v13025_v30, %v13024_v39  ;;  %v6201_v17 = vadd.f32 %v13023_v18, %v16316_v8 }
 0x403   : > { %v13425_v23 = vpop.f32.mrb[16].mxu1 }
 0x404   : > { %v6250_v15 = vadd.f32 %v13425_v23, %v6185_v28  ;;  %v6241_v6 = vpop.f32.mrb[17].mxu1 }
 0x405   : > { %v6242_v54 = vadd.f32 %v6241_v6, %v6177_v12  ;;  %v13426_v0 = vpop.f32.mrb[18].mxu1 }
 0x406   : > { %v6274_v34 = vmax.f32 %v6250_v15, 0.0  ;;  %v6253_v57 = vadd.f32 %v13426_v0, %v6188_v52  ;;  %v6244_v43 = vpop.f32.mrb[19].mxu1 }
 0x407   : > { %v6272_v29 = vmax.f32 %v6242_v54, 0.0  ;;  %v6245_v10 = vadd.f32 %v6244_v43, %v6180_v51 }
 0x408   : > { %v6322_v22 = vcombine.high %v6274_v34, %v6274_v34  ;;  %v6329_v45 = vrot.slane %v6274_v34, %v15721_v47  ;;  %v6275_v1 = vmax.f32 %v6253_v57, 0.0 }
 0x409   : > { %v6288_v20 = vcombine.high %v6272_v29, %v6272_v29  ;;  %v6295_v38 = vrot.slane %v6272_v29, %v15721_v47  ;;  %v6273_v48 = vmax.f32 %v6245_v10, 0.0 }
 0x40a   : > { %v6336_v31 = vrot.slane %v6322_v22, %v15721_v47  ;;  %v6337_v40 = vcombine.high %v6329_v45, %v6329_v45  ;;  %v12424_v19 = vrot.slane %v6329_v45, 9  ;;  %v6339_v59 = vcombine.high %v6275_v1, %v6275_v1 }
 0x40b   : > { %v6302_v55 = vrot.slane %v6288_v20, %v15721_v47  ;;  %v6303_v50 = vcombine.high %v6295_v38, %v6295_v38  ;;  %v12416_v33 = vrot.slane %v6295_v38, 9  ;;  %v6346_v27 = vrot.slane %v6275_v1, %v15721_v47  ;;  %v13429_v24 = vpop.f32.mrb[20].mxu1 }
 0x40c   : > { %v6338_v46 = vcombine.high %v6336_v31, %v6336_v31  ;;  %v12425_v63 = vrot.slane %v6337_v40, 9  ;;  %v12426_v21 = vrot.slane %v6336_v31, 9  ;;  %v6560_v9 = vmax.f32 %v6329_v45, %v12424_v19  ;;  %v16335_v37 = vpop.f32.mrb[21].mxu1 }
 0x40d   : > { %v6304_v7 = vcombine.high %v6302_v55, %v6302_v55  ;;  %v12417_v58 = vrot.slane %v6303_v50, 9  ;;  %v12418_v61 = vrot.slane %v6302_v55, 9  ;;  %v6552_v62 = vmax.f32 %v6295_v38, %v12416_v33  ;;  %v16337_v42 = vpop.f32.mrb[22].mxu1 }
 0x40e   : > { %v12427_v14 = vrot.slane %v6338_v46, 9  ;;  %v6561_v44 = vmax.f32 %v6337_v40, %v12425_v63  ;;  %v6562_v26 = vmax.f32 %v6336_v31, %v12426_v21  ;;  %v6353_v5 = vrot.slane %v6339_v59, %v15721_v47  ;;  %v16340_v11 = vpop.f32.mrb[23].mxu1 }
 0x40f   : > { %v12419_v60 = vrot.slane %v6304_v7, 9  ;;  %v6553_v4 = vmax.f32 %v6303_v50, %v12417_v58  ;;  %v6554_v49 = vmax.f32 %v6302_v55, %v12418_v61  ;;  %v6354_v56 = vcombine.high %v6346_v27, %v6346_v27 }
 0x410   : > { %v6563_v3 = vmax.f32 %v6338_v46, %v12427_v14  ;;  %v6355_v16 = vcombine.high %v6353_v5, %v6353_v5  ;;  %v12428_v35 = vrot.slane %v6346_v27, 9  ;;  %v12430_v53 = vrot.slane %v6353_v5, 9 }
 0x411   : > { %v6555_v32 = vmax.f32 %v6304_v7, %v12419_v60  ;;  %v12429_v13 = vrot.slane %v6354_v56, 9  ;;  %v6305_v41 = vcombine.high %v6273_v48, %v6273_v48  ;;  %v6312_v18 = vrot.slane %v6273_v48, %v15721_v47 }
 0x412   : > { %v12431_v39 = vrot.slane %v6355_v16, 9  ;;  %v6564_v30 = vmax.f32 %v6346_v27, %v12428_v35  ;;  %v6566_v28 = vmax.f32 %v6353_v5, %v12430_v53  ;;  %v6266_v23 = vadd.f32 %v13429_v24, %v6201_v17 }
 0x413   : > { %v6565_v12 = vmax.f32 %v6354_v56, %v12429_v13  ;;  %v6319_v15 = vrot.slane %v6305_v41, %v15721_v47  ;;  %v6320_v6 = vcombine.high %v6312_v18, %v6312_v18  ;;  %v12420_v52 = vrot.slane %v6312_v18, 9  ;;  %v6768_v41 = vld [vmem:[#allocation4 + $0x8] sm:$0x7] }
 0x414   : > { %v6567_v54 = vmax.f32 %v6355_v16, %v12431_v39  ;;  %v6588_v0 = vmax.f32 %v6560_v9, %v6564_v30  ;;  %v6590_v51 = vmax.f32 %v6562_v26, %v6566_v28  ;;  %v6278_v34 = vmax.f32 %v6266_v23, 0.0 }
 0x415   : > { %v6589_v57 = vmax.f32 %v6561_v44, %v6565_v12  ;;  %v6321_v43 = vcombine.high %v6319_v15, %v6319_v15  ;;  %v12421_v29 = vrot.slane %v6320_v6, 9  ;;  %v12422_v10 = vrot.slane %v6319_v15, 9 }
 0x416   : > { %v6591_v22 = vmax.f32 %v6563_v3, %v6567_v54  ;;  %v12949_v45 = vpack.c.bf16 %v6588_v0, %v6588_v0  ;;  %v12951_v1 = vpack.c.bf16 %v6590_v51, %v6590_v51  ;;  %v6556_v20 = vmax.f32 %v6312_v18, %v12420_v52 }
 0x417   : > { %v12950_v38 = vpack.c.bf16 %v6589_v57, %v6589_v57  ;;  %v12423_v48 = vrot.slane %v6321_v43, 9  ;;  %v6557_v17 = vmax.f32 %v6320_v6, %v12421_v29  ;;  %v6558_v31 = vmax.f32 %v6319_v15, %v12422_v10 }
 0x418   : > { %v12952_v40 = vpack.c.bf16 %v6591_v22, %v6591_v22  ;;  %v6713_v19 = vunpack.c.l.b16 %v12949_v45  ;;  %v6715_v59 = vunpack.c.l.b16 %v12951_v1  ;;  %v6584_v55 = vmax.f32 %v6552_v62, %v6556_v20 }
 0x419   : > { %v6714_v50 = vunpack.c.l.b16 %v12950_v38  ;;  %v6559_v33 = vmax.f32 %v6321_v43, %v12423_v48  ;;  %v6585_v27 = vmax.f32 %v6553_v4, %v6557_v17  ;;  %v6586_v24 = vmax.f32 %v6554_v49, %v6558_v31 }
 0x41a   : > { %v6716_v46 = vunpack.c.l.b16 %v12952_v40  ;;  %v6732_v63 = vrot.slane %v6713_v19, 7  ;;  %v6735_v21 = vrot.slane %v6715_v59, 5  ;;  %v12945_v9 = vpack.c.bf16 %v6584_v55, %v6584_v55 }
 0x41b   : > { %v6733_v7 = vrot.slane %v6714_v50, 6  ;;  %v6587_v58 = vmax.f32 %v6555_v32, %v6559_v33  ;;  %v12946_v61 = vpack.c.bf16 %v6585_v27, %v6585_v27  ;;  %v12947_v14 = vpack.c.bf16 %v6586_v24, %v6586_v24 }
 0x41c   : > { %v6737_v44 = vrot.slane %v6716_v46, 4  ;;  %v6709_v26 = vunpack.c.l.b16 %v12945_v9  ;;  %v6390_v5 = vcombine.high %v6278_v34, %v6278_v34  ;;  %v6397_v60 = vrot.slane %v6278_v34, %v15721_v47 }
 0x41d   : > { %v6734_v56 = vsel %vm5044_vm10, %v6733_v7, %v6732_v63  ;;  %v12948_v62 = vpack.c.bf16 %v6587_v58, %v6587_v58  ;;  %v6710_v3 = vunpack.c.l.b16 %v12946_v61  ;;  %v6711_v16 = vunpack.c.l.b16 %v12947_v14 }
 0x41e   : > { %v6736_v4 = vsel %vm5047_vm13, %v6735_v21, %v6734_v56  ;;  %v6725_v49 = vrot.slane %v6709_v26, 7  ;;  %v6404_v35 = vrot.slane %v6390_v5, %v15721_v47  ;;  %v6405_v53 = vcombine.high %v6397_v60, %v6397_v60 }
 0x41f   : > { %v6738_v32 = vsel %vm5050_vm14, %v6737_v44, %v6736_v4  ;;  %v6712_v18 = vunpack.c.l.b16 %v12948_v62  ;;  %v6726_v39 = vrot.slane %v6710_v3, 6  ;;  %v6728_v30 = vrot.slane %v6711_v16, 5 }
 0x420   : > { %v6754_v28 = vpack.c.b16 %v6738_v32, %v6738_v32  ;;  %v6406_v23 = vcombine.high %v6404_v35, %v6404_v35  ;;  %v12440_v12 = vrot.slane %v6397_v60, 9  ;;  %v6196_v15 = vadd.f32 %v16300_v36, %v16316_v8  ;;  %v6765_v36 = vld [vmem:[#allocation4 + $0x4] sm:$0x7] }
 0x421   : > { %v6727_v6 = vsel %vm5044_vm10, %v6726_v39, %v6725_v49  ;;  %v6730_v52 = vrot.slane %v6712_v18, 4  ;;  %v12441_v54 = vrot.slane %v6405_v53, 9  ;;  %v6258_v0 = vadd.f32 %v16335_v37, %v16328_v25 }
 0x422   : > { %v6769_v51 = vsel %vm16351_vm1, %v6754_v28, %v6768_v41  ;;  %v6729_v34 = vsel %vm5047_vm13, %v6728_v30, %v6727_v6  ;;  %v12442_v57 = vrot.slane %v6404_v35, 9  ;;  %v6204_v43 = vadd.f32 %v16311_v2, %v16316_v8 }
 0x423   : > { %6770 = vst [vmem:[#allocation4 + $0x8] sm:$0x7] %v6769_v51  ;;  %v6731_v29 = vsel %vm5050_vm14, %v6730_v52, %v6729_v34  ;;  %v12443_v10 = vrot.slane %v6406_v23, 9  ;;  %v6276_v22 = vmax.f32 %v6258_v0, 0.0  ;;  %v6261_v25 = vadd.f32 %v16340_v11, %v6196_v15 }
 0x424   : > { %v6753_v45 = vpack.c.b16 %v6731_v29, %v6731_v29  ;;  %v6269_v1 = vadd.f32 %v16337_v42, %v6204_v43  ;;  %v6576_v37 = vmax.f32 %v6397_v60, %v12440_v12  ;;  %v6577_v20 = vmax.f32 %v6405_v53, %v12441_v54  ;;  %v13806_v53 = vld [vmem:[%s17540_s5 + $0x68] sm:$0xff]  }
 0x425   : > { %v6356_v38 = vcombine.high %v6276_v22, %v6276_v22  ;;  %v6363_v48 = vrot.slane %v6276_v22, %v15721_v47  ;;  %v6578_v2 = vmax.f32 %v6404_v35, %v12442_v57  ;;  %v6277_v31 = vmax.f32 %v6261_v25, 0.0  ;;  %13043 = vmatprep.subr.bf16.mxu0 %v13806_v53  ;;  %v13807_v29 = vld [vmem:[%s17540_s5 + $0x28] sm:$0xff]  }
 0x426   : > { %v6766_v17 = vsel %vm16351_vm1, %v6753_v45, %v6765_v36  ;;  %v6279_v8 = vmax.f32 %v6269_v1, 0.0  ;;  %v6579_v40 = vmax.f32 %v6406_v23, %v12443_v10  ;;  %13044 = vmatpush3.bf16.msra.mxu0 %v13807_v29  ;;  %v13816_v29 = vld [vmem:[%s17540_s5 + $0xd0] sm:$0xff]  }
 0x427   : > { %6767 = vst [vmem:[#allocation4 + $0x4] sm:$0x7] %v6766_v17  ;;  %v6370_v19 = vrot.slane %v6356_v38, %v15721_v47  ;;  %v6371_v59 = vcombine.high %v6363_v48, %v6363_v48  ;;  %v12432_v55 = vrot.slane %v6363_v48, 9  ;;  %v6373_v50 = vcombine.high %v6277_v31, %v6277_v31 }
 0x428   : > { %v6407_v42 = vcombine.high %v6279_v8, %v6279_v8  ;;  %v6414_v11 = vrot.slane %v6279_v8, %v15721_v47  ;;  %v6380_v33 = vrot.slane %v6277_v31, %v15721_v47 }
 0x429   : > { %v6372_v27 = vcombine.high %v6370_v19, %v6370_v19  ;;  %v12433_v24 = vrot.slane %v6371_v59, 9  ;;  %v12434_v46 = vrot.slane %v6370_v19, 9  ;;  %v6568_v63 = vmax.f32 %v6363_v48, %v12432_v55 }
 0x42a   : > { %v6421_v21 = vrot.slane %v6407_v42, %v15721_v47  ;;  %v6422_v9 = vcombine.high %v6414_v11, %v6414_v11  ;;  %v12444_v7 = vrot.slane %v6414_v11, 9  ;;  %v6387_v58 = vrot.slane %v6373_v50, %v15721_v47  ;;  %v13777_v61 = vld [vmem:[#allocation4 + $0x8] ss:$0 sps:$4 sm:$0x33]  }
 0x42b   : > { %v12435_v14 = vrot.slane %v6372_v27, 9  ;;  %v6569_v44 = vmax.f32 %v6371_v59, %v12433_v24  ;;  %v6570_v26 = vmax.f32 %v6370_v19, %v12434_v46  ;;  %v6388_v5 = vcombine.high %v6380_v33, %v6380_v33  ;;  %6892 = vrot.lane.b32.xlu1 %v13777_v61, %s14163_s30  ;;  %v13779_v1 = vld [vmem:[#allocation4 + $0x8] ss:$0 sps:$4 sm:$0x66]  }
 0x42c   : > { %v6423_v60 = vcombine.high %v6421_v21, %v6421_v21  ;;  %v12445_v56 = vrot.slane %v6422_v9, 9  ;;  %v12446_v62 = vrot.slane %v6421_v21, 9  ;;  %v6580_v3 = vmax.f32 %v6414_v11, %v12444_v7  ;;  %v13782_v11 = vld [vmem:[#allocation4 + $0x8] ss:$0 sps:$4 sm:$0x77]  }
 0x42d   : > { %v6571_v16 = vmax.f32 %v6372_v27, %v12435_v14  ;;  %v6389_v4 = vcombine.high %v6387_v58, %v6387_v58  ;;  %v12436_v49 = vrot.slane %v6380_v33, 9  ;;  %v12437_v35 = vrot.slane %v6388_v5, 9  ;;  %v13808_v14 = vld [vmem:[%s17540_s5 + $0xc0] sm:$0xff]   ;;  %v13788_v13 = vld [vmem:[#allocation4 + $0x8] ss:$0 sps:$4 sm:$0x77]  }
 0x42e   : > { %v12447_v32 = vrot.slane %v6423_v60, 9  ;;  %v6581_v41 = vmax.f32 %v6422_v9, %v12445_v56  ;;  %v6582_v18 = vmax.f32 %v6421_v21, %v12446_v62  ;;  %v6596_v39 = vmax.f32 %v6576_v37, %v6580_v3  ;;  %v13778_v30 = vld [vmem:[#allocation4 + $0x4] ss:$0 sps:$4 sm:$0x33]   ;;  %v6774_v3 = vld [vmem:[#allocation4 + $0x10] sm:$0x7]  ;;  %13055 = vmatprep.subr.bf16.mxu1 %v13808_v14 }
 0x42f   : > { %v12438_v28 = vrot.slane %v6387_v58, 9  ;;  %v12439_v23 = vrot.slane %v6389_v4, 9  ;;  %v6572_v12 = vmax.f32 %v6380_v33, %v12436_v49  ;;  %v6573_v15 = vmax.f32 %v6388_v5, %v12437_v35  ;;  %6890 = vrot.lane.b32.xlu0 %v13778_v30, %s14163_s30  ;;  %v13780_v31 = vld [vmem:[#allocation4 + $0x4] ss:$0 sps:$4 sm:$0x66]  }
 0x430   : > { %v6583_v6 = vmax.f32 %v6423_v60, %v12447_v32  ;;  %v6597_v52 = vmax.f32 %v6577_v20, %v6581_v41  ;;  %v6598_v54 = vmax.f32 %v6578_v2, %v6582_v18  ;;  %v12957_v0 = vpack.c.bf16 %v6596_v39, %v6596_v39  ;;  %v13781_v24 = vld [vmem:[#allocation4 + $0x4] ss:$0 sps:$4 sm:$0x77]   ;;  %v6771_v18 = vld [vmem:[#allocation4 + $0xc] sm:$0x7] }
 0x431   : > { %v6574_v51 = vmax.f32 %v6387_v58, %v12438_v28  ;;  %v6575_v34 = vmax.f32 %v6389_v4, %v12439_v23  ;;  %v6592_v57 = vmax.f32 %v6568_v63, %v6572_v12  ;;  %v6593_v43 = vmax.f32 %v6569_v44, %v6573_v15  ;;  %v13809_v44 = vld [vmem:[%s17540_s5 + $0x80] sm:$0xff]   ;;  %v13811_v49 = vld [vmem:[%s17540_s5 + $0xc8] sm:$0xff]  }
 0x432   : > { %v6599_v36 = vmax.f32 %v6579_v40, %v6583_v6  ;;  %v12958_v10 = vpack.c.bf16 %v6597_v52, %v6597_v52  ;;  %v12959_v22 = vpack.c.bf16 %v6598_v54, %v6598_v54  ;;  %v6721_v45 = vunpack.c.l.b16 %v12957_v0  ;;  %13056 = vmatpush3.bf16.msra.mxu1 %v13809_v44  ;;  %v13813_v54 = vld [vmem:[%s17540_s5 + $0x70] sm:$0xff]   ;;  %v13814_v0 = vld [vmem:[%s17540_s5 + $0x88] sm:$0xff]  }
 0x433   : > { %v6594_v25 = vmax.f32 %v6570_v26, %v6574_v51  ;;  %v6595_v37 = vmax.f32 %v6571_v16, %v6575_v34  ;;  %v12953_v20 = vpack.c.bf16 %v6592_v57, %v6592_v57  ;;  %v12954_v38 = vpack.c.bf16 %v6593_v43, %v6593_v43  ;;  %13057 = vmatprep.subr.bf16.mxu1 %v13811_v49  ;;  %v13815_v51 = vld [vmem:[%s17540_s5 + $0x30] sm:$0xff]   ;;  %v6855_v49 = vpop.permute.xlu0 %6854 }
 0x434   : > { %v12960_v48 = vpack.c.bf16 %v6599_v36, %v6599_v36  ;;  %v6722_v17 = vunpack.c.l.b16 %v12958_v10  ;;  %v6723_v2 = vunpack.c.l.b16 %v12959_v22  ;;  %v6746_v8 = vrot.slane %v6721_v45, 7  ;;  %13045 = vmatprep.subr.bf16.mxu0 %v13813_v54  ;;  %v13818_v22 = vld [vmem:[%s17540_s5 + $0x90] sm:$0xff]  }
 0x435   : > { %v12955_v19 = vpack.c.bf16 %v6594_v25, %v6594_v25  ;;  %v12956_v59 = vpack.c.bf16 %v6595_v37, %v6595_v37  ;;  %v6717_v55 = vunpack.c.l.b16 %v12953_v20  ;;  %v6718_v42 = vunpack.c.l.b16 %v12954_v38  ;;  %13046 = vmatpush3.bf16.msra.mxu0 %v13815_v51  ;;  %v13791_v25 = vld [vmem:[#allocation4 + $0x14] ss:$0 sps:$4 sm:$0x77]   ;;  %v13804_v54 = vld [vmem:[#allocation4 + $0x8] ss:$0 sps:$4 sm:$0x77]  }
 0x436   : > { %v6724_v40 = vunpack.c.l.b16 %v12960_v48  ;;  %v6747_v50 = vrot.slane %v6722_v17, 6  ;;  %v6749_v33 = vrot.slane %v6723_v2, 5  ;;  %v6951_v27 = vrot.slane %v13779_v1, 1  ;;  %13058 = vmatpush3.bf16.msra.mxu1 %v13814_v0 }
 0x437   : > { %v6719_v46 = vunpack.c.l.b16 %v12955_v19  ;;  %v6720_v63 = vunpack.c.l.b16 %v12956_v59  ;;  %v6739_v21 = vrot.slane %v6717_v55, 7  ;;  %v6740_v9 = vrot.slane %v6718_v42, 6  ;;  %13059 = vmatprep.subr.bf16.mxu1 %v13816_v29 }
 0x438   : > { %v6748_v7 = vsel %vm5044_vm10, %v6747_v50, %v6746_v8  ;;  %v6751_v58 = vrot.slane %v6724_v40, 4  ;;  %6956 = vrot.lane.b32.xlu1 %v6951_v27, %s14163_s30  ;;  %v6950_v61 = vrot.slane %v13780_v31, 1  ;;  %v6836_v16 = vshll.u32 %v13781_v24, 16  ;;  %v13820_v31 = vld [vmem:[%s17540_s5 + $0xd8] sm:$0xff]  }
 0x439   : > { %v6750_v26 = vsel %vm5047_vm13, %v6749_v33, %v6748_v7  ;;  %v6741_v5 = vsel %vm5044_vm10, %v6740_v9, %v6739_v21  ;;  %v6742_v60 = vrot.slane %v6719_v46, 5  ;;  %v6744_v56 = vrot.slane %v6720_v63, 4  ;;  %v13822_v33 = vld [vmem:[%s17540_s5 + $0x98] sm:$0xff]   ;;  %v13824_v46 = vld [vmem:[%s17540_s5 + $0xe0] sm:$0xff]  }
 0x43a   : > { %v6752_v62 = vsel %vm5050_vm14, %v6751_v58, %v6750_v26  ;;  %6954 = vrot.lane.b32.xlu0 %v6950_v61, %s14163_s30  ;;  %v6843_v4 = vshll.u32 %v13782_v11, 16  ;;  %v6834_v32 = vshrl.u32 %v13781_v24, 16  ;;  %v6838_v39 = vrot.slane %v6836_v16, 1  ;;  %13060 = vmatpush3.bf16.msra.mxu1 %v13818_v22  ;;  %v13823_v27 = vld [vmem:[%s17540_s5 + $0x38] sm:$0xff]   ;;  %v13825_v9 = vld [vmem:[%s17540_s5 + $0xa0] sm:$0xff]   ;;  %v13826_v26 = vld [vmem:[%s17540_s5 + $0xe8] sm:$0xff]  }
 0x43b   : > { %v6756_v35 = vpack.c.b16 %v6752_v62, %v6752_v62  ;;  %v6743_v53 = vsel %vm5047_vm13, %v6742_v60, %v6741_v5  ;;  %v6841_v30 = vshrl.u32 %v13782_v11, 16  ;;  %v6977_v57 = vshll.u32 %v13788_v13, 16  ;;  %13061 = vmatprep.subr.bf16.mxu1 %v13820_v31  ;;  %v13821_v11 = vld [vmem:[%s17540_s5 + $0x78] sm:$0xff]   ;;  %v13828_v60 = vld [vmem:[%s17540_s5 + $0xa8] sm:$0xff]  }
 0x43c   : > { %v6745_v41 = vsel %vm5050_vm14, %v6744_v56, %v6743_v53  ;;  %v6845_v28 = vrot.slane %v6843_v4, 1  ;;  %v6839_v15 = vor.u32 %v6838_v39, %v6834_v32  ;;  %v6975_v8 = vshrl.u32 %v13788_v13, 16  ;;  %13047 = vmatprep.subr.bf16.mxu0 %v13821_v11  ;;  %v13829_v56 = vld [vmem:[%s17540_s5 + $0xf0] sm:$0xff]   ;;  %v13832_v16 = vld [vmem:[%s17540_s5 + $0xf8] sm:$0xff]   ;;  %vm16528_vm14 = vmand %vm5044_vm10, %vm6625_vm2 }
 0x43d   : > { %v6775_v23 = vsel %vm16351_vm1, %v6756_v35, %v6774_v3  ;;  %v6755_v12 = vpack.c.b16 %v6745_v41, %v6745_v41  ;;  %v6979_v1 = vrot.slane %v6977_v57, 1  ;;  %v6998_v50 = vshll.u32 %v13791_v25, 16  ;;  %13048 = vmatpush3.bf16.msra.mxu0 %v13823_v27  ;;  %v13831_v3 = vld [vmem:[%s17540_s5 + $0xb0] sm:$0xff]   ;;  %v13834_v4 = vld [vmem:[%s17540_s5 + $0xb8] sm:$0xff]  }
 0x43e   : > { %6776 = vst [vmem:[#allocation4 + $0x10] sm:$0x7] %v6775_v23  ;;  %v6846_v6 = vor.u32 %v6845_v28, %v6841_v30  ;;  %6856 = vrot.lane.b32.xlu1 %v6839_v15, %s14163_s30  ;;  %13062 = vmatpush3.bf16.msra.mxu1 %v13822_v33  ;;  %v14166_v58 = vmov 0.0   ;;  %v6996_v14 = vshrl.u32 %v13791_v25, 16  ;;  %v6777_v15 = vld [vmem:[#allocation4] sm:$0x3] }
 0x43f   : > { %v6772_v52 = vsel %vm16351_vm1, %v6755_v12, %v6771_v18  ;;  %v6980_v42 = vor.u32 %v6979_v1, %v6975_v8  ;;  %13063 = vmatprep.subr.bf16.mxu1 %v13824_v46  ;;  %13431 = vmatprep.subr.bf16.mxu0 %v14166_v58  ;;  %v7000_v44 = vrot.slane %v6998_v50, 1  ;;  %v13803_v18 = vld [vmem:[#allocation4] ss:$0 sps:$4 sm:$0x66]   ;;  %vm14167_vm13 = vmmov 0  }
 0x440   : > { %6773 = vst [vmem:[#allocation4 + $0xc] sm:$0x7] %v6772_v52  ;;  %6858 = vrot.lane.b32.xlu0 %v6846_v6, %s14163_s30  ;;  %v13802_v28 = vld [vmem:[#allocation4 + $0x4] ss:$0 sps:$4 sm:$0x66]   ;;  %v6874_v12 = vrot.slane %v13803_v18, 1 }
 0x441   : > { %v7001_v62 = vor.u32 %v7000_v44, %v6996_v14  ;;  %v13812_v23 = vld [vmem:[#allocation4 + $0x8] ss:$0 sps:$4 sm:$0x66]   ;;  %v6778_v6 = vld [vmem:[#allocation4 + $0x4] sm:$0x3]  ;;  %v6875_v52 = vrot.slane %v13802_v28, 1 }
 0x442   : > { %13064 = vmatpush3.bf16.msra.mxu1 %v13825_v9  ;;  %v13805_v13 = vld [vmem:[#allocation4 + $0x4] ss:$0 sps:$4 sm:$0x77]   ;;  %v6876_v57 = vrot.slane %v13812_v23, 1  ;;  %vm7764_vm10 = vcmask 1042432  }
 0x443   : > { %13065 = vmatprep.subr.bf16.mxu1 %v13826_v26  ;;  %v13839_v46 = vld [vmem:[#allocation4 + $0x14] ss:$0 sps:$4 sm:$0x66]   ;;  %vm16667_vm3 = vmand %vm7764_vm10, %vm6763_vm15 }
 0x445   : > { %v13783_v34 = vld [vmem:[#allocation4 + $0x10] ss:$0 sps:$4 sm:$0x33]  }
 0x446   : > { %6896 = vrot.lane.b32.xlu1 %v13783_v34, %s14163_s30  ;;  %v13790_v17 = vld [vmem:[#allocation4 + $0x10] ss:$0 sps:$4 sm:$0x77]   ;;  %13066 = vmatpush3.bf16.msra.mxu1 %v13828_v60  ;;  %v6911_v60 = vshrl.u32 %v13805_v13, 16 }
 0x447   : > { %v13784_v43 = vld [vmem:[#allocation4 + $0xc] ss:$0 sps:$4 sm:$0x33]   ;;  %v13787_v2 = vld [vmem:[#allocation4 + $0x10] ss:$0 sps:$4 sm:$0x66]   ;;  %13067 = vmatprep.subr.bf16.mxu1 %v13829_v56 }
 0x448   : > { %v13785_v36 = vld [vmem:[#allocation4 + $0xc] ss:$0 sps:$4 sm:$0x77]   ;;  %6894 = vrot.lane.b32.xlu0 %v13784_v43, %s14163_s30  ;;  %v6991_v55 = vshll.u32 %v13790_v17, 16  ;;  %v6989_v24 = vshrl.u32 %v13790_v17, 16  ;;  %v6953_v63 = vrot.slane %v13787_v2, 1  ;;  %v7028_v43 = vsel %vm5829_vm12, %v6777_v15, %v6855_v49 }
 0x449   : > { %v13786_v10 = vld [vmem:[#allocation4 + $0xc] ss:$0 sps:$4 sm:$0x66]   ;;  %v6850_v45 = vshll.u32 %v13785_v36, 16  ;;  %v6848_v38 = vshrl.u32 %v13785_v36, 16  ;;  %v6913_v17 = vshll.u32 %v13805_v13, 16 }
 0x44a   : > { %v6952_v37 = vrot.slane %v13786_v10, 1  ;;  %v13789_v20 = vld [vmem:[#allocation4 + $0xc] ss:$0 sps:$4 sm:$0x77]   ;;  %v6993_v40 = vrot.slane %v6991_v55, 1  ;;  %13068 = vmatpush3.bf16.msra.mxu1 %v13831_v3  ;;  %v7025_v49 = vrot.slane %v13839_v46, 1 }
 0x44b   : > { %v6852_v48 = vrot.slane %v6850_v45, 1  ;;  %v6984_v59 = vshll.u32 %v13789_v20, 16  ;;  %v6982_v61 = vshrl.u32 %v13789_v20, 16  ;;  %13069 = vmatprep.subr.bf16.mxu1 %v13832_v16  ;;  %v13810_v10 = vld [vmem:[#allocation4 + $0xc] ss:$0 sps:$4 sm:$0x66]  }
 0x44c   : > { %6958 = vrot.lane.b32.xlu0 %v6952_v37, %s14163_s30  ;;  %v6994_v7 = vor.u32 %v6993_v40, %v6989_v24  ;;  %v13817_v22 = vld [vmem:[#allocation4 + $0xc] ss:$0 sps:$4 sm:$0x77]   ;;  %v13819_v1 = vld [vmem:[#allocation4 + $0x10] ss:$0 sps:$4 sm:$0x77]  }
 0x44d   : > { %v6853_v19 = vor.u32 %v6852_v48, %v6848_v38  ;;  %v6986_v21 = vrot.slane %v6984_v59, 1  ;;  %v6920_v38 = vshll.u32 %v13804_v54, 16  ;;  %v6779_v48 = vld [vmem:[#allocation4 + $0x8] sm:$0x3]  ;;  %v6877_v8 = vrot.slane %v13810_v10, 1 }
 0x44e   : > { %13070 = vmatpush3.bf16.msra.mxu1 %v13834_v4  ;;  %v6927_v31 = vshll.u32 %v13817_v22, 16  ;;  %v6780_v55 = vld [vmem:[#allocation4 + $0xc] sm:$0x3]  ;;  %v6934_v11 = vshll.u32 %v13819_v1, 16  ;;  %v6932_v3 = vshrl.u32 %v13819_v1, 16 }
 0x44f   : > { %6860 = vrot.lane.b32.xlu1 %v6853_v19, %s14163_s30  ;;  %v6987_v5 = vor.u32 %v6986_v21, %v6982_v61  ;;  %v6915_v21 = vrot.slane %v6913_v17, 1  ;;  %v6802_v16 = vld [vmem:[#allocation4 + $0x8] sm:$0x3] }
 0x450   : > { %7002 = vrot.lane.b32.xlu0 %v6980_v42, %s14163_s30  ;;  %v6929_v9 = vrot.slane %v6927_v31, 1  ;;  %v6936_v44 = vrot.slane %v6934_v11, 1 }
 0x452   : > { %v6937_v23 = vor.u32 %v6936_v44, %v6932_v3  ;;  %v7700_v3 = vld [vmem:[#allocation5 + $0x4] sm:$0x4] }
 0x453   : > { %6960 = vrot.lane.b32.xlu1 %v6953_v63, %s14163_s30  ;;  %v6922_v63 = vrot.slane %v6920_v38, 1 }
 0x454   : > { %7006 = vrot.lane.b32.xlu0 %v6994_v7, %s14163_s30 }
 0x457   : > { %7004 = vrot.lane.b32.xlu1 %v6987_v5, %s14163_s30  ;;  %v6918_v5 = vshrl.u32 %v13804_v54, 16 }
 0x45b   : > { %7008 = vrot.lane.b32.xlu1 %v7001_v62, %s14163_s30  ;;  %v6925_v62 = vshrl.u32 %v13817_v22, 16 }
 0x45d   : > { %v6930_v28 = vor.u32 %v6929_v9, %v6925_v62  ;;  %v13963_v62 = vld [vmem:[%s17547_s12 + $0xf0] sm:$0xff]  }
 0x49d   : > { %v6893_v53 = vpop.permute.xlu1 %6892 }
 0x49e   : > { %v7043_v29 = vsel %vm5829_vm12, %v6875_v52, %v6893_v53  ;;  %v6916_v53 = vor.u32 %v6915_v21, %v6911_v60  ;;  %v7680_v60 = vld [vmem:[#allocation5 + $0x4] sm:$0x1] }
 0x4a1   : > { %v6891_v35 = vpop.permute.xlu0 %6890 }
 0x4a2   : > { %v7040_v36 = vsel %vm5829_vm12, %v6874_v12, %v6891_v35  ;;  %v6923_v35 = vor.u32 %v6922_v63, %v6918_v5  ;;  %v6803_v12 = vld [vmem:[#allocation4 + $0xc] sm:$0x3] }
 0x4a3   : > { %v7090_v20 = vcombine.low %v7028_v43, %v7040_v36  ;;  %v6805_v36 = vld [vmem:[#allocation4 + $0x14] sm:$0x3]  ;;  %v13966_v5 = vld [vmem:[%s17547_s12 + $0x70] sm:$0xff]  }
 0x4a5   : > { %v7098_v27 = vrot.slane %v7090_v20, %v15721_v47 }
 0x4aa   : > { %v16470_v41 = vpop.permute.xlu1 %6956 }
 0x4ac   : > { %v16468_v32 = vpop.permute.xlu0 %6954 }
 0x4b0   : > { %v6857_v30 = vpop.permute.xlu1 %6856 }
 0x4b1   : > { %v7031_v0 = vsel %vm5829_vm12, %v6778_v6, %v6857_v30  ;;  %v13838_v30 = vld [vmem:[#allocation4 + $0x10] ss:$0 sps:$4 sm:$0x66]  }
 0x4b2   : > { %v6859_v39 = vpop.permute.xlu0 %6858  ;;  %v7114_v45 = vcombine.low %v7031_v0, %v7043_v29  ;;  %v6804_v6 = vld [vmem:[#allocation4 + $0x10] sm:$0x3]  ;;  %v7055_v0 = vsel %vm5829_vm12, %v6923_v35, %v16470_v41  ;;  %v7701_v35 = vsel %vm16528_vm14, 0, %v7700_v3 }
 0x4b3   : > { %v7034_v2 = vsel %vm5829_vm12, %v6779_v48, %v6859_v39  ;;  %v13837_v39 = vld [vmem:[#allocation4 + $0xc] ss:$0 sps:$4 sm:$0x66]   ;;  %7702 = vst [vmem:[#allocation5 + $0x4] sm:$0x4] %v7701_v35 }
 0x4b4   : > { %v7122_v19 = vrot.slane %v7114_v45, %v15721_v47  ;;  %v13827_v45 = vld [vmem:[%s17540_s5 + $0x100] sm:$0xff]   ;;  %v7023_v41 = vrot.slane %v13837_v39, 1  ;;  %v7689_v39 = vld [vmem:[#allocation5 + $0x10] sm:$0x1] }
 0x4b6   : > { %v12493_v7 = vcombine.low %v7098_v27, %v7122_v19  ;;  %v7137_v19 = vrot.slane %v7023_v41, %v15721_v47  ;;  %v13833_v27 = vld [vmem:[%s17540_s5 + $0x110] sm:$0xff]   ;;  %v13853_v41 = vld [vmem:[%s17542_s7 + $0x98] sm:$0xff]  }
 0x4b8   : > { %v6897_v34 = vpop.permute.xlu1 %6896  ;;  %v7275_v52 = vrot.slane %v12493_v7, %v15721_v47 }
 0x4b9   : > { %v7049_v40 = vsel %vm5829_vm12, %v6877_v8, %v6897_v34 }
 0x4ba   : > { %v6895_v51 = vpop.permute.xlu0 %6894 }
 0x4bb   : > { %v7046_v25 = vsel %vm5829_vm12, %v6876_v57, %v6895_v51  ;;  %v7052_v51 = vsel %vm5829_vm12, %v6916_v53, %v16468_v32  ;;  %v13836_v57 = vld [vmem:[#allocation4 + $0x8] ss:$0 sps:$4 sm:$0x66]  }
 0x4bc   : > { %v7138_v59 = vcombine.low %v7034_v2, %v7046_v25  ;;  %v7024_v25 = vrot.slane %v13838_v30, 1  ;;  %v7022_v2 = vrot.slane %v13836_v57, 1  ;;  %v7706_v30 = vld [vmem:[#allocation5 + $0xc] sm:$0x4] }
 0x4bd   : > { %v13845_v57 = vld [vmem:[%s17542_s7 + $0x88] sm:$0xff]  }
 0x4be   : > { %v6959_v37 = vpop.permute.xlu0 %6958  ;;  %v7146_v61 = vrot.slane %v7138_v59, %v15721_v47  ;;  %v7161_v59 = vrot.slane %v7024_v25, %v15721_v47  ;;  %v13856_v25 = vld [vmem:[%s17542_s7 + $0x18] sm:$0xff]  }
 0x4bf   : > { %v7058_v1 = vsel %vm5829_vm12, %v6930_v28, %v6959_v37  ;;  %v13830_v37 = vld [vmem:[%s17540_s5 + $0x108] sm:$0xff]  }
 0x4c1   : > { %v6861_v42 = vpop.permute.xlu1 %6860 }
 0x4c2   : > { %v7037_v50 = vsel %vm5829_vm12, %v6780_v55, %v6861_v42  ;;  %v7003_v33 = vpop.permute.xlu0 %7002  ;;  %v7185_v55 = vrot.slane %v7025_v49, %v15721_v47 }
 0x4c3   : > { %v7162_v24 = vcombine.low %v7037_v50, %v7049_v40  ;;  %v7064_v18 = vsel %vm5829_vm12, %v6802_v16, %v7003_v33  ;;  %v7113_v50 = vrot.slane %v7022_v2, %v15721_v47  ;;  %v7703_v16 = vld [vmem:[#allocation5 + $0x8] sm:$0x4] }
 0x4c4   : > { %v7091_v43 = vcombine.low %v7052_v51, %v7064_v18  ;;  %v7302_v46 = vcombine.low %v7161_v59, %v7185_v55  ;;  %v7704_v53 = vsel %vm16528_vm14, 0, %v7703_v16  ;;  %v7686_v18 = vld [vmem:[#allocation5 + $0xc] sm:$0x1]  ;;  %v7692_v59 = vld [vmem:[#allocation5 + $0x14] sm:$0x1] }
 0x4c5   : > { %v7170_v14 = vrot.slane %v7162_v24, %v15721_v47  ;;  %v6961_v26 = vpop.permute.xlu1 %6960  ;;  %v7301_v24 = vcombine.low %v7113_v50, %v7137_v19  ;;  %7705 = vst [vmem:[#allocation5 + $0x8] sm:$0x4] %v7704_v53  ;;  %v7687_v28 = vsel %vm16533_vm0, 0, %v7686_v18  ;;  %v13843_v51 = vld [vmem:[%s17542_s7 + $0xc8] sm:$0xff]   ;;  %v7712_v55 = vld [vmem:[#allocation5 + $0x14] sm:$0x4] }
 0x4c6   : > { %v7007_v4 = vpop.permute.xlu0 %7006  ;;  %v7061_v48 = vsel %vm5829_vm12, %v6937_v23, %v6961_v26  ;;  %v7105_v8 = vrot.slane %v7091_v43, %v15721_v47  ;;  %v7316_v44 = vrot.slane %v7302_v46, %v15721_v47  ;;  %v7690_v23 = vsel %vm16533_vm0, 0, %v7689_v39  ;;  %7688 = vst [vmem:[#allocation5 + $0xc] sm:$0x1] %v7687_v28  ;;  %v13848_v43 = vld [vmem:[%s17542_s7 + $0x8] sm:$0xff]   ;;  %v13868_v46 = vld [vmem:[%s17542_s7 + $0x30] sm:$0xff]  }
 0x4c7   : > { %v12495_v56 = vcombine.low %v7146_v61, %v7170_v14  ;;  %v7070_v34 = vsel %vm5829_vm12, %v6804_v6, %v7007_v4  ;;  %v13835_v61 = vld [vmem:[%s17540_s5 + $0x118] sm:$0xff]   ;;  %v7309_v14 = vrot.slane %v7301_v24, %v15721_v47  ;;  %v7681_v4 = vsel %vm16533_vm0, 0, %v7680_v60  ;;  %7691 = vst [vmem:[#allocation5 + $0x10] sm:$0x1] %v7690_v23  ;;  %v13862_v19 = vld [vmem:[%s17542_s7 + $0x68] sm:$0xff]   ;;  %v13865_v24 = vld [vmem:[%s17542_s7 + $0xb0] sm:$0xff]  }
 0x4c8   : > { %v7139_v20 = vcombine.low %v7058_v1, %v7070_v34  ;;  %7682 = vst [vmem:[#allocation5 + $0x4] sm:$0x1] %v7681_v4  ;;  %v13846_v34 = vld [vmem:[%s17542_s7 + $0x48] sm:$0xff]   ;;  %v13854_v1 = vld [vmem:[%s17542_s7 + $0x58] sm:$0xff]   ;;  %v12492_v4 = vld [vmem:[%s17541_s6] ss:$0 sm:$0xff] }
 0x4c9   : > { %v7005_v15 = vpop.permute.xlu1 %7004  ;;  %v7289_v54 = vrot.slane %v12495_v56, %v15721_v47  ;;  %v7317_v26 = vcombine.low %v7309_v14, %v7316_v44  ;;  %v7683_v56 = vld [vmem:[#allocation5 + $0x8] sm:$0x1]  ;;  %v13882_v14 = vld [vmem:[%s17542_s7 + $0x140] sm:$0xff]  }
 0x4ca   : > { %v7067_v13 = vsel %vm5829_vm12, %v6803_v12, %v7005_v15  ;;  %v7153_v11 = vrot.slane %v7139_v20, %v15721_v47  ;;  %v7684_v49 = vsel %vm16533_vm0, 0, %v7683_v56  ;;  %v7707_v12 = vsel %vm16528_vm14, 0, %v7706_v30  ;;  %v7709_v15 = vld [vmem:[#allocation5 + $0x10] sm:$0x4]  ;;  %v7677_v20 = vld [vmem:[#allocation5] sm:$0x1] }
 0x4cb   : > { %v7115_v29 = vcombine.low %v7055_v0, %v7067_v13  ;;  %v7297_v10 = vcombine.low %v7275_v52, %v7289_v54  ;;  %v7298_v22 = vcombine.high %v7275_v52, %v7289_v54  ;;  %7685 = vst [vmem:[#allocation5 + $0x8] sm:$0x1] %v7684_v49  ;;  %7708 = vst [vmem:[#allocation5 + $0xc] sm:$0x4] %v7707_v12  ;;  %v7710_v6 = vsel %vm16528_vm14, 0, %v7709_v15  ;;  %v13840_v52 = vld [vmem:[%s17542_s7 + $0xc0] sm:$0xff]  }
 0x4cc   : > { %v13841_v54 = vld [vmem:[%s17542_s7 + $0x80] sm:$0xff]   ;;  %7711 = vst [vmem:[#allocation5 + $0x10] sm:$0x4] %v7710_v6  ;;  %13104 = vmatprep.subr.bf16.mxu1 %v13840_v52  ;;  %v7678_v2 = vsel %vm16533_vm0, 0, %v7677_v20  ;;  %v13864_v50 = vld [vmem:[%s17542_s7 + $0x28] sm:$0xff]  }
 0x4cd   : > { %v7129_v32 = vrot.slane %v7115_v29, %v15721_v47  ;;  %v7009_v38 = vpop.permute.xlu1 %7008  ;;  %7573 = vmatprep.mubr.bf16.mxu0 %v7298_v22  ;;  %v13842_v0 = vld [vmem:[%s17542_s7 + $0x40] sm:$0xff]   ;;  %v13847_v29 = vld [vmem:[%s17542_s7 + $0xd0] sm:$0xff]   ;;  %7679 = vst [vmem:[#allocation5] sm:$0x1] %v7678_v2 }
 0x4ce   : > { %v7073_v17 = vsel %vm5829_vm12, %v6805_v36, %v7009_v38  ;;  %7574 = vmatmul.mubr.bf16.vlgmr.msra.gmra.mrb[32].mxu0 %v7297_v10  ;;  %v13844_v13 = vld [vmem:[%s17542_s7] sm:$0xff]   ;;  %v13850_v36 = vld [vmem:[%s17542_s7 + $0x50] sm:$0xff]  }
 0x4cf   : > { %v7163_v31 = vcombine.low %v7061_v48, %v7073_v17  ;;  %13432 = vmatpush3.bf16.msra.mxu0 %v13827_v45  ;;  %13439 = vmatprep.mubr.msk.bf16.mxu0 %vm14167_vm13, %v14166_v58  ;;  %v12494_v42 = vcombine.low %v7105_v8, %v7129_v32  ;;  %v13849_v10 = vld [vmem:[%s17542_s7 + $0x90] sm:$0xff]   ;;  %v13851_v45 = vld [vmem:[%s17542_s7 + $0xd8] sm:$0xff]   ;;  %v7697_v32 = vld [vmem:[#allocation5] sm:$0x4] }
 0x4d0   : > { %13433 = vmatprep.subr.bf16.mxu0 %v14166_v58  ;;  %v13852_v22 = vld [vmem:[%s17542_s7 + $0x10] sm:$0xff]   ;;  %v13855_v38 = vld [vmem:[%s17542_s7 + $0xe0] sm:$0xff]   ;;  %v7698_v17 = vsel %vm16528_vm14, 0, %v7697_v32 }
 0x4d1   : > { %v7177_v40 = vrot.slane %v7163_v31, %v15721_v47  ;;  %v7282_v63 = vrot.slane %v12494_v42, %v15721_v47  ;;  %v13858_v48 = vld [vmem:[%s17542_s7 + $0x60] sm:$0xff]   ;;  %7699 = vst [vmem:[#allocation5] sm:$0x4] %v7698_v17  ;;  %v13859_v31 = vld [vmem:[%s17542_s7 + $0xe8] sm:$0xff]   ;;  %v7693_v42 = vsel %vm16533_vm0, 0, %v7692_v59 }
 0x4d2   : > { %v13857_v8 = vld [vmem:[%s17542_s7 + $0xa0] sm:$0xff]   ;;  %7694 = vst [vmem:[#allocation5 + $0x14] sm:$0x1] %v7693_v42 }
 0x4d3   : > { %v12496_v33 = vcombine.low %v7153_v11, %v7177_v40  ;;  %13434 = vmatpush3.bf16.msra.mxu0 %v13830_v37  ;;  %v13860_v37 = vld [vmem:[%s17542_s7 + $0x20] sm:$0xff]   ;;  %v7713_v11 = vsel %vm16528_vm14, 0, %v7712_v55  ;;  %v13861_v40 = vld [vmem:[%s17542_s7 + $0xa8] sm:$0xff]  }
 0x4d4   : > { %13435 = vmatprep.subr.bf16.mxu0 %v14166_v58  ;;  %7714 = vst [vmem:[#allocation5 + $0x14] sm:$0x4] %v7713_v11 }
 0x4d5   : > { %v7296_v21 = vrot.slane %v12496_v33, %v15721_v47  ;;  %v13863_v33 = vld [vmem:[%s17542_s7 + $0xf0] sm:$0xff]  }
 0x4d7   : > { %13436 = vmatpush3.bf16.msra.mxu0 %v13833_v27  ;;  %v7299_v9 = vcombine.low %v7282_v63, %v7296_v21  ;;  %v7300_v7 = vcombine.high %v7282_v63, %v7296_v21  ;;  %v13866_v27 = vld [vmem:[%s17542_s7 + $0x70] sm:$0xff]   ;;  %v13867_v63 = vld [vmem:[%s17542_s7 + $0xf8] sm:$0xff]  }
 0x4d8   : > { %13437 = vmatprep.subr.bf16.mxu0 %v14166_v58  ;;  %v13870_v21 = vld [vmem:[%s17542_s7 + $0x78] sm:$0xff]  }
 0x4d9   : > { %7614 = vmatprep.mubr.bf16.mxu1 %v7300_v7  ;;  %v13876_v7 = vld [vmem:[%s17542_s7 + $0x38] sm:$0xff]  }
 0x4da   : > { %7615 = vmatmul.mubr.bf16.vlgmr.msra.gmra.mrb[24].mxu1 %v7299_v9  ;;  %v13869_v9 = vld [vmem:[%s17542_s7 + $0xb8] sm:$0xff]  }
 0x4db   : > { %13438 = vmatpush3.bf16.msra.mxu0 %v13835_v61  ;;  %13105 = vmatpush3.bf16.msra.mxu1 %v13841_v54  ;;  %v13875_v61 = vld [vmem:[%s17542_s7 + $0x1c0] sm:$0xff]  }
 0x4dc   : > { %13082 = vmatprep.subr.bf16.mxu0 %v13842_v0  ;;  %13106 = vmatprep.subr.bf16.mxu1 %v13843_v51 }
 0x4de   : > { %13440 = vmatmul.mubr.msk.bf16.vlgmr.msra.gmra.mrb[36].mxu0 %vm5829_vm12, %v7317_v26 }
 0x4df   : > { %13083 = vmatpush3.bf16.msra.mxu0 %v13844_v13  ;;  %13107 = vmatpush3.bf16.msra.mxu1 %v13845_v57 }
 0x4e0   : > { %13084 = vmatprep.subr.bf16.mxu0 %v13846_v34  ;;  %13108 = vmatprep.subr.bf16.mxu1 %v13847_v29 }
 0x4e3   : > { %13085 = vmatpush3.bf16.msra.mxu0 %v13848_v43  ;;  %13109 = vmatpush3.bf16.msra.mxu1 %v13849_v10 }
 0x4e4   : > { %13086 = vmatprep.subr.bf16.mxu0 %v13850_v36  ;;  %13110 = vmatprep.subr.bf16.mxu1 %v13851_v45 }
 0x4e7   : > { %13087 = vmatpush3.bf16.msra.mxu0 %v13852_v22  ;;  %13111 = vmatpush3.bf16.msra.mxu1 %v13853_v41 }
 0x4e8   : > { %13088 = vmatprep.subr.bf16.mxu0 %v13854_v1  ;;  %13112 = vmatprep.subr.bf16.mxu1 %v13855_v38  ;;  %v7766_v38 = vld [vmem:[#allocation5 + $0x4] sm:$0x7] }
 0x4eb   : > { %13089 = vmatpush3.bf16.msra.mxu0 %v13856_v25  ;;  %13113 = vmatpush3.bf16.msra.mxu1 %v13857_v8 }
 0x4ec   : > { %13090 = vmatprep.subr.bf16.mxu0 %v13858_v48  ;;  %13114 = vmatprep.subr.bf16.mxu1 %v13859_v31 }
 0x4ef   : > { %13091 = vmatpush3.bf16.msra.mxu0 %v13860_v37  ;;  %13115 = vmatpush3.bf16.msra.mxu1 %v13861_v40  ;;  %v7769_v37 = vld [vmem:[#allocation5 + $0x8] sm:$0x7] }
 0x4f0   : > { %13092 = vmatprep.subr.bf16.mxu0 %v13862_v19  ;;  %13116 = vmatprep.subr.bf16.mxu1 %v13863_v33 }
 0x4f3   : > { %13093 = vmatpush3.bf16.msra.mxu0 %v13864_v50  ;;  %13117 = vmatpush3.bf16.msra.mxu1 %v13865_v24  ;;  %v7772_v50 = vld [vmem:[#allocation5 + $0xc] sm:$0x7]  ;;  %v13878_v24 = vld [vmem:[#allocation5] ss:$0 sps:$4 sm:$0x77]  }
 0x4f4   : > { %13094 = vmatprep.subr.bf16.mxu0 %v13866_v27  ;;  %13118 = vmatprep.subr.bf16.mxu1 %v13867_v63  ;;  %v7775_v27 = vld [vmem:[#allocation5 + $0x10] sm:$0x7] }
 0x4f7   : > { %13095 = vmatpush3.bf16.msra.mxu0 %v13868_v46  ;;  %13119 = vmatpush3.bf16.msra.mxu1 %v13869_v9 }
 0x4f8   : > { %13096 = vmatprep.subr.bf16.mxu0 %v13870_v21  ;;  %13148 = vmatprep.subr.bf16.mxu1 %v13875_v61  ;;  %v7830_v61 = vshll.u32 %v13878_v24, 16 }
 0x4fb   : > { %13097 = vmatpush3.bf16.msra.mxu0 %v13876_v7  ;;  %v13871_v7 = vld [vmem:[#allocation5] ss:$0 sps:$4 sm:$0x66]  }
 0x4fc   : > { %13126 = vmatprep.subr.bf16.mxu0 %v13882_v14  ;;  %v16679_v14 = vld [vmem:[#allocation5 + $0x14] ss:$0 sps:$4 sm:$0x77]  }
 0x5a1   : > { %v13049_v44 = vpop.f32.mrb[32].mxu0 }
 0x5a2   : > { %v13050_v26 = vpop.f32.mrb[33].mxu0 }
 0x5a3   : > { %v13051_v60 = vadd.f32 %v13050_v26, %v13049_v44  ;;  %v13052_v56 = vpop.f32.mrb[34].mxu0  ;;  %v7867_v26 = vrot.slane %v13871_v7, 1 }
 0x5a4   : > { %v13053_v3 = vpop.f32.mrb[35].mxu0 }
 0x5a5   : > { %v13054_v16 = vadd.f32 %v13053_v3, %v13052_v56  ;;  %v7576_v53 = vadd.f32 %v13051_v60, %v12492_v4  ;;  %v7828_v60 = vshrl.u32 %v13878_v24, 16  ;;  %v7832_v3 = vrot.slane %v7830_v61, 1 }
 0x5a7   : > { %v7579_v28 = vadd.f32 %v13054_v16, %v12492_v4 }
 0x5ad   : > { %v13071_v49 = vpop.f32.mrb[24].mxu1 }
 0x5ae   : > { %v13072_v35 = vpop.f32.mrb[25].mxu1 }
 0x5af   : > { %v13073_v18 = vadd.f32 %v13072_v35, %v13071_v49  ;;  %v13074_v39 = vpop.f32.mrb[26].mxu1 }
 0x5b0   : > { %v13075_v30 = vpop.f32.mrb[27].mxu1 }
 0x5b1   : > { %v13076_v23 = vadd.f32 %v13075_v30, %v13074_v39  ;;  %v7617_v12 = vadd.f32 %v13073_v18, %v7576_v53  ;;  %v7657_v15 = vpop.f32.mrb[36].mxu0  ;;  %v7778_v53 = vld [vmem:[#allocation5] sm:$0x3] }
 0x5b2   : > { %v13441_v6 = vpop.f32.mrb[37].mxu0 }
 0x5b3   : > { %v7658_v52 = vadd.f32 %v7657_v15, %v7617_v12  ;;  %v7620_v54 = vadd.f32 %v13076_v23, %v7579_v28  ;;  %v7660_v0 = vpop.f32.mrb[38].mxu0  ;;  %v7833_v23 = vor.u32 %v7832_v3, %v7828_v60  ;;  %v7963_v12 = vshll.u32 %v16679_v14, 16 }
 0x5b4   : > { %v13442_v51 = vpop.f32.mrb[39].mxu0  ;;  %v7961_v6 = vshrl.u32 %v16679_v14, 16  ;;  %v7806_v14 = vld [vmem:[#allocation5 + $0x14] sm:$0x3] }
 0x5b5   : > { %v7664_v13 = vmax.f32 %v7658_v52, 0.0  ;;  %v7661_v34 = vadd.f32 %v7660_v0, %v7620_v54 }
 0x5b7   : > { %v7668_v57 = vcombine.high %v7664_v13, %v7664_v13  ;;  %v12961_v43 = vpack.c.bf16 %v7664_v13, %v7664_v13  ;;  %v7665_v29 = vmax.f32 %v7661_v34, 0.0 }
 0x5b9   : > { %v12962_v36 = vpack.c.bf16 %v7668_v57, %v7668_v57  ;;  %v7732_v10 = vshrl.u32 %v12961_v43, 16  ;;  %v7669_v22 = vcombine.high %v7665_v29, %v7665_v29  ;;  %v12963_v45 = vpack.c.bf16 %v7665_v29, %v7665_v29 }
 0x5ba   : > { %v7735_v41 = vshll.u32 %v12961_v43, 16 }
 0x5bb   : > { %v7734_v1 = vrot.slane %v7732_v10, 7  ;;  %v7739_v25 = vshrl.u32 %v12962_v36, 16  ;;  %v12964_v32 = vpack.c.bf16 %v7669_v22, %v7669_v22  ;;  %v7746_v48 = vshrl.u32 %v12963_v45, 16 }
 0x5bc   : > { %v7742_v8 = vshll.u32 %v12962_v36, 16  ;;  %v7749_v59 = vshll.u32 %v12963_v45, 16  ;;  %v7995_v36 = vcombine.low %v7778_v53, %v7833_v23  ;;  %v16685_v10 = vrot.slane %v7963_v12, 1 }
 0x5bd   : > { %v7737_v17 = vor.u32 %v7735_v41, %v7734_v1  ;;  %v7741_v2 = vrot.slane %v7739_v25, 7  ;;  %v7753_v31 = vshrl.u32 %v12964_v32, 16  ;;  %v7748_v19 = vrot.slane %v7746_v48, 7 }
 0x5be   : > { %v7756_v40 = vshll.u32 %v12964_v32, 16 }
 0x5bf   : > { %v7744_v55 = vor.u32 %v7742_v8, %v7741_v2  ;;  %v7767_v42 = vsel %vm16667_vm3, %v7737_v17, %v7766_v38  ;;  %v7755_v11 = vrot.slane %v7753_v31, 7  ;;  %v7751_v33 = vor.u32 %v7749_v59, %v7748_v19 }
 0x5c0   : > { %7768 = vst [vmem:[#allocation5 + $0x4] sm:$0x7] %v7767_v42 }
 0x5c1   : > { %v7770_v46 = vsel %vm16667_vm3, %v7744_v55, %v7769_v37  ;;  %v7758_v63 = vor.u32 %v7756_v40, %v7755_v11  ;;  %v7773_v21 = vsel %vm16667_vm3, %v7751_v33, %v7772_v50  ;;  %v8003_v40 = vrot.slane %v7995_v36, %v15721_v47 }
 0x5c2   : > { %7771 = vst [vmem:[#allocation5 + $0x8] sm:$0x7] %v7770_v46  ;;  %7774 = vst [vmem:[#allocation5 + $0xc] sm:$0x7] %v7773_v21 }
 0x5c3   : > { %v7776_v9 = vsel %vm16667_vm3, %v7758_v63, %v7775_v27 }
 0x5c4   : > { %7777 = vst [vmem:[#allocation5 + $0x10] sm:$0x7] %v7776_v9 }
 0x5c7   : > { %v7790_v44 = vld [vmem:[#allocation5 + $0x4] sm:$0x3] }
 0x5c8   : > { %v13872_v56 = vld [vmem:[#allocation5 + $0x4] ss:$0 sps:$4 sm:$0x66]   ;;  %v7996_v35 = vcombine.low %v7867_v26, %v7790_v44 }
 0x5c9   : > { %v7791_v16 = vld [vmem:[#allocation5 + $0x8] sm:$0x3]  ;;  %v7868_v4 = vrot.slane %v13872_v56, 1  ;;  %v7792_v18 = vld [vmem:[#allocation5 + $0xc] sm:$0x3] }
 0x5ca   : > { %v13873_v49 = vld [vmem:[#allocation5 + $0x8] ss:$0 sps:$4 sm:$0x66]   ;;  %v13874_v30 = vld [vmem:[#allocation5 + $0xc] ss:$0 sps:$4 sm:$0x66]   ;;  %v8010_v51 = vrot.slane %v7996_v35, %v15721_v47 }
 0x5cb   : > { %v7793_v39 = vld [vmem:[#allocation5 + $0x10] sm:$0x3]  ;;  %v8037_v28 = vcombine.low %v7868_v4, %v7791_v16  ;;  %v7869_v15 = vrot.slane %v13873_v49, 1  ;;  %v7870_v52 = vrot.slane %v13874_v30, 1  ;;  %v7779_v48 = vld [vmem:[#allocation5 + $0x4] sm:$0x3] }
 0x5cc   : > { %v13879_v0 = vld [vmem:[#allocation5 + $0x4] ss:$0 sps:$4 sm:$0x77]   ;;  %v13880_v34 = vld [vmem:[#allocation5 + $0x8] ss:$0 sps:$4 sm:$0x77]  }
 0x5cd   : > { %v8051_v54 = vrot.slane %v8037_v28, %v15721_v47  ;;  %v8078_v13 = vcombine.low %v7869_v15, %v7792_v18  ;;  %v13881_v57 = vld [vmem:[#allocation5 + $0xc] ss:$0 sps:$4 sm:$0x77]   ;;  %v8119_v43 = vcombine.low %v7870_v52, %v7793_v39  ;;  %v7837_v29 = vshll.u32 %v13879_v0, 16  ;;  %v7780_v31 = vld [vmem:[#allocation5 + $0x8] sm:$0x3] }
 0x5ce   : > { %v7835_v1 = vshrl.u32 %v13879_v0, 16  ;;  %v7844_v41 = vshll.u32 %v13880_v34, 16  ;;  %v7851_v38 = vshll.u32 %v13881_v57, 16  ;;  %v7842_v17 = vshrl.u32 %v13880_v34, 16  ;;  %v7781_v24 = vld [vmem:[#allocation5 + $0xc] sm:$0x3] }
 0x5cf   : > { %v8092_v22 = vrot.slane %v8078_v13, %v15721_v47  ;;  %v12564_v45 = vcombine.low %v8010_v51, %v8051_v54  ;;  %v8133_v25 = vrot.slane %v8119_v43, %v15721_v47  ;;  %v7839_v32 = vrot.slane %v7837_v29, 1  ;;  %v13886_v55 = vld [vmem:[#allocation5 + $0x4] ss:$0 sps:$4 sm:$0x77]   ;;  %v13883_v35 = vld [vmem:[%s17542_s7 + $0x1c8] sm:$0xff]  }
 0x5d0   : > { %v7846_v2 = vrot.slane %v7844_v41, 1  ;;  %v7849_v19 = vshrl.u32 %v13881_v57, 16  ;;  %v7853_v59 = vrot.slane %v7851_v38, 1  ;;  %v13887_v50 = vld [vmem:[#allocation5 + $0x8] ss:$0 sps:$4 sm:$0x77]  }
 0x5d1   : > { %v12566_v8 = vcombine.low %v8092_v22, %v8133_v25  ;;  %v7840_v37 = vor.u32 %v7839_v32, %v7835_v1  ;;  %v8327_v42 = vrot.slane %v12564_v45, %v15721_v47  ;;  %v13888_v33 = vld [vmem:[#allocation5 + $0xc] ss:$0 sps:$4 sm:$0x77]   ;;  %v13889_v21 = vld [vmem:[#allocation5 + $0x10] ss:$0 sps:$4 sm:$0x77]  }
 0x5d2   : > { %v7847_v11 = vor.u32 %v7846_v2, %v7842_v17  ;;  %v7854_v46 = vor.u32 %v7853_v59, %v7849_v19  ;;  %v7884_v9 = vshrl.u32 %v13886_v55, 16  ;;  %v7886_v61 = vshll.u32 %v13886_v55, 16  ;;  %v13890_v60 = vld [vmem:[#allocation5 + $0x4] ss:$0 sps:$4 sm:$0x66]   ;;  %v13885_v52 = vld [vmem:[%s17542_s7 + $0x188] sm:$0xff]  }
 0x5d3   : > { %v8341_v27 = vrot.slane %v12566_v8, %v15721_v47  ;;  %v8036_v63 = vcombine.low %v7779_v48, %v7840_v37  ;;  %v7891_v44 = vshrl.u32 %v13887_v50, 16  ;;  %v7893_v26 = vshll.u32 %v13887_v50, 16  ;;  %v13877_v16 = vld [vmem:[%s17542_s7 + $0x180] sm:$0xff]   ;;  %v13891_v53 = vld [vmem:[#allocation5 + $0x8] ss:$0 sps:$4 sm:$0x66]  }
 0x5d4   : > { %v8077_v7 = vcombine.low %v7780_v31, %v7847_v11  ;;  %v8118_v49 = vcombine.low %v7781_v24, %v7854_v46  ;;  %v7888_v39 = vrot.slane %v7886_v61, 1  ;;  %v7898_v28 = vshrl.u32 %v13888_v33, 16  ;;  %v13892_v23 = vld [vmem:[#allocation5 + $0xc] ss:$0 sps:$4 sm:$0x66]   ;;  %v13899_v48 = vld [vmem:[%s17542_s7 + $0x1d0] sm:$0xff]  }
 0x5d5   : > { %v8345_v56 = vcombine.high %v8327_v42, %v8341_v27  ;;  %v8344_v3 = vcombine.low %v8327_v42, %v8341_v27  ;;  %v8044_v4 = vrot.slane %v8036_v63, %v15721_v47  ;;  %v7895_v30 = vrot.slane %v7893_v26, 1  ;;  %v13893_v0 = vld [vmem:[#allocation5 + $0x10] ss:$0 sps:$4 sm:$0x66]   ;;  %v13884_v50 = vld [vmem:[%s17542_s7 + $0x100] sm:$0xff]   ;;  %v13900_v26 = vld [vmem:[%s17542_s7 + $0x108] sm:$0xff]  }
 0x5d6   : > { %v8085_v18 = vrot.slane %v8077_v7, %v15721_v47  ;;  %v8126_v12 = vrot.slane %v8118_v49, %v15721_v47  ;;  %v7900_v54 = vshll.u32 %v13888_v33, 16  ;;  %v7889_v51 = vor.u32 %v7888_v39, %v7884_v9  ;;  %v13894_v45 = vld [vmem:[#allocation5 + $0x8] ss:$0 sps:$4 sm:$0x77]   ;;  %v13901_v24 = vld [vmem:[%s17542_s7 + $0x190] sm:$0xff]   ;;  %v13903_v9 = vld [vmem:[%s17542_s7 + $0x1d8] sm:$0xff]  }
 0x5d7   : > { %8913 = vmatprep.mubr.bf16.mxu1 %v8345_v56  ;;  %v12563_v15 = vcombine.low %v8003_v40, %v8044_v4  ;;  %v7896_v13 = vor.u32 %v7895_v30, %v7891_v44  ;;  %v7907_v34 = vshll.u32 %v13889_v21, 16  ;;  %v7923_v57 = vrot.slane %v13890_v60, 1  ;;  %v13895_v38 = vld [vmem:[#allocation5 + $0xc] ss:$0 sps:$4 sm:$0x77]   ;;  %v13905_v49 = vld [vmem:[%s17542_s7 + $0x198] sm:$0xff]  }
 0x5d8   : > { %8914 = vmatmul.mubr.bf16.vlgmr.msra.gmra.mrb[28].mxu1 %v8344_v3  ;;  %v12565_v43 = vcombine.low %v8085_v18, %v8126_v12  ;;  %v7902_v29 = vrot.slane %v7900_v54, 1  ;;  %v7905_v36 = vshrl.u32 %v13889_v21, 16  ;;  %v7924_v22 = vrot.slane %v13891_v53, 1  ;;  %v13896_v37 = vld [vmem:[#allocation5 + $0x10] ss:$0 sps:$4 sm:$0x77]  }
 0x5d9   : > { %13149 = vmatpush3.bf16.msra.mxu1 %v13877_v16  ;;  %v8320_v1 = vrot.slane %v12563_v15, %v15721_v47  ;;  %v7909_v41 = vrot.slane %v7907_v34, 1  ;;  %v7925_v25 = vrot.slane %v13892_v23, 1  ;;  %v8012_v32 = vcombine.low %v7889_v51, %v7923_v57  ;;  %v7803_v3 = vld [vmem:[#allocation5 + $0x8] sm:$0x3]  ;;  %v13902_v23 = vld [vmem:[%s17542_s7 + $0x150] sm:$0xff]   ;;  %v13907_v12 = vld [vmem:[%s17542_s7 + $0x1e0] sm:$0xff]  }
 0x5da   : > { %13150 = vmatprep.subr.bf16.mxu1 %v13883_v35  ;;  %v8334_v17 = vrot.slane %v12565_v43, %v15721_v47  ;;  %v7903_v2 = vor.u32 %v7902_v29, %v7898_v28  ;;  %v7926_v8 = vrot.slane %v13893_v0, 1  ;;  %v8053_v31 = vcombine.low %v7896_v13, %v7924_v22  ;;  %v7804_v15 = vld [vmem:[#allocation5 + $0xc] sm:$0x3]  ;;  %v13904_v54 = vld [vmem:[%s17542_s7 + $0x110] sm:$0xff]   ;;  %v13906_v43 = vld [vmem:[%s17542_s7 + $0x158] sm:$0xff]  }
 0x5db   : > { %v7910_v19 = vor.u32 %v7909_v41, %v7905_v36  ;;  %v7940_v59 = vshrl.u32 %v13894_v45, 16  ;;  %v7942_v55 = vshll.u32 %v13894_v45, 16  ;;  %v7966_v42 = vor.u32 %v16685_v10, %v7961_v6  ;;  %v13898_v10 = vld [vmem:[%s17542_s7 + $0x148] sm:$0xff]   ;;  %v7805_v13 = vld [vmem:[#allocation5 + $0x10] sm:$0x3]  ;;  %v13909_v22 = vld [vmem:[%s17542_s7 + $0x1a0] sm:$0xff]  }
 0x5dc   : > { %v8343_v11 = vcombine.high %v8320_v1, %v8334_v17  ;;  %v8342_v40 = vcombine.low %v8320_v1, %v8334_v17  ;;  %v8061_v33 = vrot.slane %v8053_v31, %v15721_v47  ;;  %v8094_v27 = vcombine.low %v7903_v2, %v7925_v25  ;;  %v13911_v41 = vld [vmem:[%s17542_s7 + $0x1e8] sm:$0xff]   ;;  %v13910_v2 = vld [vmem:[%s17542_s7 + $0x160] sm:$0xff]  }
 0x5dd   : > { %13151 = vmatpush3.bf16.msra.mxu1 %v13885_v52  ;;  %v8020_v46 = vrot.slane %v8012_v32, %v15721_v47  ;;  %v8135_v63 = vcombine.low %v7910_v19, %v7926_v8  ;;  %v7944_v21 = vrot.slane %v7942_v55, 1  ;;  %v7949_v6 = vshll.u32 %v13895_v38, 16  ;;  %v13913_v17 = vld [vmem:[%s17542_s7 + $0x1a8] sm:$0xff]   ;;  %v13915_v8 = vld [vmem:[%s17542_s7 + $0x1f0] sm:$0xff]   ;;  %v13912_v19 = vld [vmem:[%s17542_s7 + $0x120] sm:$0xff]  }
 0x5de   : > { %13152 = vmatprep.subr.bf16.mxu1 %v13899_v48  ;;  %8872 = vmatprep.mubr.bf16.mxu0 %v8343_v11  ;;  %v8102_v7 = vrot.slane %v8094_v27, %v15721_v47  ;;  %v7947_v61 = vshrl.u32 %v13895_v38, 16  ;;  %v7956_v44 = vshll.u32 %v13896_v37, 16  ;;  %v7954_v35 = vshrl.u32 %v13896_v37, 16  ;;  %v13908_v48 = vld [vmem:[%s17542_s7 + $0x118] sm:$0xff]   ;;  %v13914_v55 = vld [vmem:[%s17542_s7 + $0x168] sm:$0xff]   ;;  %v13920_v27 = vld [vmem:[%s17542_s7 + $0x130] sm:$0xff]  }
 0x5df   : > { %8873 = vmatmul.mubr.bf16.vlgmr.msra.gmra.mrb[40].mxu0 %v8342_v40  ;;  %v8143_v60 = vrot.slane %v8135_v63, %v15721_v47  ;;  %v12567_v56 = vcombine.low %v8020_v46, %v8061_v33  ;;  %v7945_v16 = vor.u32 %v7944_v21, %v7940_v59  ;;  %v7951_v4 = vrot.slane %v7949_v6, 1  ;;  %v13919_v11 = vld [vmem:[%s17542_s7 + $0x1f8] sm:$0xff]   ;;  %v13916_v40 = vld [vmem:[%s17542_s7 + $0x128] sm:$0xff]   ;;  %v13918_v33 = vld [vmem:[%s17542_s7 + $0x170] sm:$0xff]  }
 0x5e0   : > { %13127 = vmatpush3.bf16.msra.mxu0 %v13884_v50  ;;  %v7958_v53 = vrot.slane %v7956_v44, 1  ;;  %v8136_v18 = vcombine.low %v7806_v14, %v7966_v42  ;;  %v13917_v42 = vld [vmem:[%s17542_s7 + $0x1b0] sm:$0xff]   ;;  %v13921_v50 = vld [vmem:[%s17542_s7 + $0x1b8] sm:$0xff]   ;;  %v13924_v14 = vld [vmem:[%s17542_s7 + $0x200] sm:$0xff]  }
 0x5e1   : > { %13153 = vmatpush3.bf16.msra.mxu1 %v13901_v24  ;;  %v12569_v39 = vcombine.low %v8102_v7, %v8143_v60  ;;  %v7952_v30 = vor.u32 %v7951_v4, %v7947_v61  ;;  %v8013_v28 = vcombine.low %v7803_v3, %v7945_v16  ;;  %13128 = vmatprep.subr.bf16.mxu0 %v13898_v10  ;;  %v13922_v24 = vld [vmem:[%s17542_s7 + $0x178] sm:$0xff]   ;;  %v13925_v6 = vld [vmem:[%s17542_s7 + $0x208] sm:$0xff]   ;;  %v13926_v10 = vld [vmem:[%s17542_s7 + $0x210] sm:$0xff]  }
 0x5e2   : > { %13154 = vmatprep.subr.bf16.mxu1 %v13903_v9  ;;  %v7959_v52 = vor.u32 %v7958_v53, %v7954_v35  ;;  %v16744_v0 = vrot.slane %v12567_v56, %v15721_v47  ;;  %v8150_v36 = vrot.slane %v8136_v18, %v15721_v47  ;;  %v13923_v63 = vld [vmem:[%s17542_s7 + $0x138] sm:$0xff]   ;;  %v13934_v7 = vld [vmem:[#allocation5 + $0x10] ss:$0 sps:$4 sm:$0x66]   ;;  %v13928_v60 = vld [vmem:[%s17542_s7 + $0x220] sm:$0xff]  }
 0x5e3   : > { %v8370_v51 = vrot.slane %v12569_v39, %v15721_v47  ;;  %v8027_v34 = vrot.slane %v8013_v28, %v15721_v47  ;;  %v8054_v57 = vcombine.low %v7804_v15, %v7952_v30  ;;  %v13927_v9 = vld [vmem:[%s17542_s7 + $0x218] sm:$0xff]   ;;  %v13935_v61 = vld [vmem:[#allocation5 + $0x14] ss:$0 sps:$4 sm:$0x66]   ;;  %v7981_v56 = vrot.slane %v13934_v7, 1 }
 0x5e4   : > { %v8095_v29 = vcombine.low %v7805_v13, %v7959_v52  ;;  %13129 = vmatpush3.bf16.msra.mxu0 %v13900_v26  ;;  %v13932_v44 = vld [vmem:[#allocation5 + $0x8] ss:$0 sps:$4 sm:$0x66]   ;;  %v13933_v26 = vld [vmem:[#allocation5 + $0xc] ss:$0 sps:$4 sm:$0x66]  }
 0x5e5   : > { %13155 = vmatpush3.bf16.msra.mxu1 %v13905_v49  ;;  %v8379_v45 = vcombine.high %v16744_v0, %v8370_v51  ;;  %v8068_v1 = vrot.slane %v8054_v57, %v15721_v47  ;;  %13130 = vmatprep.subr.bf16.mxu0 %v13902_v23  ;;  %v8378_v21 = vcombine.low %v16744_v0, %v8370_v51  ;;  %v7982_v3 = vrot.slane %v13935_v61, 1  ;;  %v13929_v49 = vld [vmem:[%s17542_s7 + $0x228] sm:$0xff]   ;;  %v13930_v30 = vld [vmem:[%s17542_s7 + $0x230] sm:$0xff]   ;;  %v13936_v0 = vld [vmem:[%s17544_s9] sm:$0xff]  }
 0x5e6   : > { %13156 = vmatprep.subr.bf16.mxu1 %v13907_v12  ;;  %v8109_v25 = vrot.slane %v8095_v29, %v15721_v47  ;;  %v7979_v16 = vrot.slane %v13932_v44, 1  ;;  %v7980_v4 = vrot.slane %v13933_v26, 1  ;;  %v8117_v35 = vrot.slane %v7981_v56, %v15721_v47  ;;  %v13931_v12 = vld [vmem:[%s17542_s7 + $0x238] sm:$0xff]   ;;  %v13937_v51 = vld [vmem:[%s17544_s9 + $0x8] sm:$0xff]   ;;  %v13938_v13 = vld [vmem:[%s17544_s9 + $0x10] sm:$0xff]  }
 0x5e7   : > { %8954 = vmatprep.mubr.bf16.mxu0 %v8379_v45  ;;  %v12568_v32 = vcombine.low %v8027_v34, %v8068_v1  ;;  %v8158_v53 = vrot.slane %v7982_v3, %v15721_v47  ;;  %v13939_v34 = vld [vmem:[%s17544_s9 + $0x18] sm:$0xff]  }
 0x5e8   : > { %v12570_v38 = vcombine.low %v8109_v25, %v8150_v36  ;;  %13131 = vmatpush3.bf16.msra.mxu0 %v13904_v54  ;;  %v8035_v18 = vrot.slane %v7979_v16, %v15721_v47  ;;  %v8076_v39 = vrot.slane %v7980_v4, %v15721_v47  ;;  %v9145_v4 = vld [vmem:[#allocation6 + $0x4] sm:$0x1] }
 0x5e9   : > { %13157 = vmatpush3.bf16.msra.mxu1 %v13909_v22  ;;  %13132 = vmatprep.subr.bf16.mxu0 %v13906_v43  ;;  %v8363_v31 = vrot.slane %v12568_v32, %v15721_v47  ;;  %v8383_v28 = vcombine.low %v8117_v35, %v8158_v53  ;;  %v9163_v35 = vld [vmem:[#allocation6 + $0x4] sm:$0x4]  ;;  %v9146_v53 = vsel %vm16533_vm0, 0, %v9145_v4 }
 0x5ea   : > { %13158 = vmatprep.subr.bf16.mxu1 %v13911_v41  ;;  %v8377_v37 = vrot.slane %v12570_v38, %v15721_v47  ;;  %v8382_v23 = vcombine.low %v8035_v18, %v8076_v39  ;;  %v12562_v41 = vld [vmem:[%s17543_s8] ss:$0 sm:$0xff]  ;;  %v9164_v39 = vsel %vm16528_vm14, 0, %v9163_v35  ;;  %9147 = vst [vmem:[#allocation6 + $0x4] sm:$0x1] %v9146_v53 }
 0x5eb   : > { %v8397_v15 = vrot.slane %v8383_v28, %v15721_v47  ;;  %9165 = vst [vmem:[#allocation6 + $0x4] sm:$0x4] %v9164_v39 }
 0x5ec   : > { %v8381_v59 = vcombine.high %v8363_v31, %v8377_v37  ;;  %13133 = vmatpush3.bf16.msra.mxu0 %v13908_v48  ;;  %v8380_v46 = vcombine.low %v8363_v31, %v8377_v37  ;;  %v8390_v52 = vrot.slane %v8382_v23, %v15721_v47  ;;  %v9151_v23 = vld [vmem:[#allocation6 + $0xc] sm:$0x1] }
 0x5ed   : > { %13159 = vmatpush3.bf16.msra.mxu1 %v13913_v17  ;;  %13134 = vmatprep.subr.bf16.mxu0 %v13910_v2 }
 0x5ee   : > { %13160 = vmatprep.subr.bf16.mxu1 %v13915_v8  ;;  %8995 = vmatprep.mubr.bf16.mxu1 %v8381_v59  ;;  %v8398_v54 = vcombine.low %v8390_v52, %v8397_v15  ;;  %v9169_v15 = vld [vmem:[#allocation6 + $0xc] sm:$0x4]  ;;  %v9152_v52 = vsel %vm16533_vm0, 0, %v9151_v23 }
 0x5ef   : > { %9153 = vst [vmem:[#allocation6 + $0xc] sm:$0x1] %v9152_v52 }
 0x5f0   : > { %13135 = vmatpush3.bf16.msra.mxu0 %v13912_v19 }
 0x5f1   : > { %13161 = vmatpush3.bf16.msra.mxu1 %v13917_v42  ;;  %13136 = vmatprep.subr.bf16.mxu0 %v13914_v55 }
 0x5f2   : > { %13162 = vmatprep.subr.bf16.mxu1 %v13919_v11 }
 0x5f4   : > { %13137 = vmatpush3.bf16.msra.mxu0 %v13916_v40 }
 0x5f5   : > { %13163 = vmatpush3.bf16.msra.mxu1 %v13921_v50  ;;  %13138 = vmatprep.subr.bf16.mxu0 %v13918_v33 }
 0x5f6   : > { %13463 = vmatprep.subr.bf16.mxu1 %v14166_v58 }
 0x5f8   : > { %8996 = vmatmul.mubr.bf16.vlgmr.msra.gmra.mrb[32].mxu1 %v8380_v46  ;;  %13139 = vmatpush3.bf16.msra.mxu0 %v13920_v27 }
 0x5f9   : > { %13471 = vmatprep.mubr.msk.bf16.mxu1 %vm14167_vm13, %v14166_v58  ;;  %13140 = vmatprep.subr.bf16.mxu0 %v13922_v24 }
 0x5fa   : > { %13464 = vmatpush3.bf16.msra.mxu1 %v13936_v0  ;;  %v9170_v0 = vsel %vm16528_vm14, 0, %v9169_v15 }
 0x5fb   : > { %13465 = vmatprep.subr.bf16.mxu1 %v14166_v58  ;;  %9171 = vst [vmem:[#allocation6 + $0xc] sm:$0x4] %v9170_v0 }
 0x5fc   : > { %13141 = vmatpush3.bf16.msra.mxu0 %v13923_v63 }
 0x5fd   : > { %13443 = vmatprep.subr.bf16.mxu0 %v14166_v58 }
 0x5fe   : > { %13466 = vmatpush3.bf16.msra.mxu1 %v13937_v51  ;;  %v9172_v51 = vld [vmem:[#allocation6 + $0x10] sm:$0x4] }
 0x5ff   : > { %8955 = vmatmul.mubr.bf16.vlgmr.msra.gmra.mrb[44].mxu0 %v8378_v21  ;;  %13467 = vmatprep.subr.bf16.mxu1 %v14166_v58 }
 0x600   : > { %13444 = vmatpush3.bf16.msra.mxu0 %v13924_v14  ;;  %13459 = vmatprep.mubr.msk.bf16.mxu0 %vm14167_vm13, %v14166_v58 }
 0x601   : > { %13445 = vmatprep.subr.bf16.mxu0 %v14166_v58 }
 0x602   : > { %13468 = vmatpush3.bf16.msra.mxu1 %v13938_v13  ;;  %v9173_v13 = vsel %vm16528_vm14, 0, %v9172_v51  ;;  %v9227_v51 = vld [vmem:[#allocation6 + $0x4] sm:$0x7] }
 0x603   : > { %13469 = vmatprep.subr.bf16.mxu1 %v14166_v58  ;;  %9174 = vst [vmem:[#allocation6 + $0x10] sm:$0x4] %v9173_v13 }
 0x604   : > { %13446 = vmatpush3.bf16.msra.mxu0 %v13925_v6 }
 0x605   : > { %13447 = vmatprep.subr.bf16.mxu0 %v14166_v58 }
 0x606   : > { %13470 = vmatpush3.bf16.msra.mxu1 %v13939_v34  ;;  %v13940_v34 = vld [vmem:[%s17547_s12 + $0xc0] sm:$0xff]  }
 0x608   : > { %13448 = vmatpush3.bf16.msra.mxu0 %v13926_v10 }
 0x609   : > { %13449 = vmatprep.subr.bf16.mxu0 %v14166_v58 }
 0x60c   : > { %13450 = vmatpush3.bf16.msra.mxu0 %v13927_v9 }
 0x60d   : > { %13451 = vmatprep.subr.bf16.mxu0 %v14166_v58 }
 0x610   : > { %13452 = vmatpush3.bf16.msra.mxu0 %v13928_v60 }
 0x611   : > { %13453 = vmatprep.subr.bf16.mxu0 %v14166_v58 }
 0x614   : > { %13454 = vmatpush3.bf16.msra.mxu0 %v13929_v49  ;;  %v9148_v49 = vld [vmem:[#allocation6 + $0x8] sm:$0x1] }
 0x615   : > { %13455 = vmatprep.subr.bf16.mxu0 %v14166_v58  ;;  %v9149_v18 = vsel %vm16533_vm0, 0, %v9148_v49 }
 0x616   : > { %9150 = vst [vmem:[#allocation6 + $0x8] sm:$0x1] %v9149_v18 }
 0x618   : > { %13456 = vmatpush3.bf16.msra.mxu0 %v13930_v30  ;;  %v9166_v30 = vld [vmem:[#allocation6 + $0x8] sm:$0x4] }
 0x619   : > { %13457 = vmatprep.subr.bf16.mxu0 %v14166_v58  ;;  %v9167_v28 = vsel %vm16528_vm14, 0, %v9166_v30 }
 0x61a   : > { %9168 = vst [vmem:[#allocation6 + $0x8] sm:$0x4] %v9167_v28 }
 0x61c   : > { %13458 = vmatpush3.bf16.msra.mxu0 %v13931_v12  ;;  %v9154_v12 = vld [vmem:[#allocation6 + $0x10] sm:$0x1] }
 0x61d   : > { %13206 = vmatprep.subr.bf16.mxu0 %v13940_v34 }
 0x61f   : > { %13460 = vmatmul.mubr.bf16.vlgmr.msra.gmra.mrb[48].mxu0 %v8398_v54  ;;  %v9155_v54 = vsel %vm16533_vm0, 0, %v9154_v12 }
 0x620   : > { %9156 = vst [vmem:[#allocation6 + $0x10] sm:$0x1] %v9155_v54 }
 0x6ab   : > { %v13120_v57 = vpop.f32.mrb[28].mxu1 }
 0x6ac   : > { %v13121_v43 = vpop.f32.mrb[29].mxu1 }
 0x6ad   : > { %v13122_v29 = vadd.f32 %v13121_v43, %v13120_v57  ;;  %v13123_v36 = vpop.f32.mrb[30].mxu1  ;;  %v13941_v57 = vld [vmem:[%s17547_s12 + $0x80] sm:$0xff]  }
 0x6ae   : > { %v13124_v22 = vpop.f32.mrb[31].mxu1  ;;  %v13942_v43 = vld [vmem:[%s17547_s12 + $0x40] sm:$0xff]   ;;  %13207 = vmatpush3.bf16.msra.mxu0 %v13941_v57 }
 0x6af   : > { %v13125_v45 = vadd.f32 %v13124_v22, %v13123_v36  ;;  %v13944_v36 = vld [vmem:[%s17547_s12] sm:$0xff]   ;;  %13184 = vmatprep.subr.bf16.mxu1 %v13942_v43  ;;  %v13946_v22 = vld [vmem:[%s17547_s12 + $0x48] sm:$0xff]  }
 0x6b2   : > { %v13098_v1 = vpop.f32.mrb[40].mxu0 }
 0x6b3   : > { %v13099_v25 = vpop.f32.mrb[41].mxu0 }
 0x6b4   : > { %v13100_v32 = vadd.f32 %v13099_v25, %v13098_v1  ;;  %v13101_v38 = vpop.f32.mrb[42].mxu0  ;;  %v13948_v1 = vld [vmem:[%s17547_s12 + $0x8] sm:$0xff]   ;;  %v13950_v25 = vld [vmem:[%s17547_s12 + $0x50] sm:$0xff]  }
 0x6b5   : > { %v13102_v48 = vpop.f32.mrb[43].mxu0 }
 0x6b6   : > { %v8875_v17 = vadd.f32 %v13100_v32, %v12562_v41  ;;  %v13103_v2 = vadd.f32 %v13102_v48, %v13101_v38  ;;  %v13949_v32 = vld [vmem:[%s17547_s12 + $0x90] sm:$0xff]   ;;  %v13951_v48 = vld [vmem:[%s17547_s12 + $0xd8] sm:$0xff]  }
 0x6b7   : > { %v13952_v38 = vld [vmem:[%s17547_s12 + $0x10] sm:$0xff]  }
 0x6b8   : > { %v8878_v8 = vadd.f32 %v13103_v2, %v12562_v41  ;;  %v8916_v31 = vadd.f32 %v13122_v29, %v8875_v17  ;;  %v13943_v29 = vld [vmem:[%s17547_s12 + $0xc8] sm:$0xff]   ;;  %v13947_v41 = vld [vmem:[%s17547_s12 + $0xd0] sm:$0xff]   ;;  %v13954_v17 = vld [vmem:[%s17547_s12 + $0x58] sm:$0xff]  }
 0x6b9   : > { %13208 = vmatprep.subr.bf16.mxu0 %v13943_v29  ;;  %v13953_v2 = vld [vmem:[%s17547_s12 + $0x98] sm:$0xff]  }
 0x6ba   : > { %v8919_v37 = vadd.f32 %v13125_v45, %v8878_v8  ;;  %v13945_v45 = vld [vmem:[%s17547_s12 + $0x88] sm:$0xff]   ;;  %v13956_v8 = vld [vmem:[%s17547_s12 + $0x18] sm:$0xff]  }
 0x6bb   : > { %13209 = vmatpush3.bf16.msra.mxu0 %v13945_v45 }
 0x6bc   : > { %13210 = vmatprep.subr.bf16.mxu0 %v13947_v41 }
 0x6bf   : > { %13211 = vmatpush3.bf16.msra.mxu0 %v13949_v32 }
 0x6c0   : > { %13212 = vmatprep.subr.bf16.mxu0 %v13951_v48  ;;  %v9233_v48 = vld [vmem:[#allocation6 + $0xc] sm:$0x7] }
 0x6c3   : > { %13213 = vmatpush3.bf16.msra.mxu0 %v13953_v2  ;;  %v9236_v2 = vld [vmem:[#allocation6 + $0x10] sm:$0x7] }
 0x6cb   : > { %v13164_v19 = vpop.f32.mrb[32].mxu1 }
 0x6cc   : > { %v13165_v59 = vpop.f32.mrb[33].mxu1 }
 0x6cd   : > { %v13166_v55 = vadd.f32 %v13165_v59, %v13164_v19  ;;  %v13167_v42 = vpop.f32.mrb[34].mxu1  ;;  %v13955_v19 = vld [vmem:[%s17547_s12 + $0xe0] sm:$0xff]  }
 0x6ce   : > { %v13168_v11 = vpop.f32.mrb[35].mxu1  ;;  %v13958_v59 = vld [vmem:[%s17547_s12 + $0x60] sm:$0xff]   ;;  %13214 = vmatprep.subr.bf16.mxu0 %v13955_v19 }
 0x6cf   : > { %v13169_v40 = vadd.f32 %v13168_v11, %v13167_v42  ;;  %v13957_v11 = vld [vmem:[%s17547_s12 + $0xa0] sm:$0xff]  }
 0x6d0   : > { %13215 = vmatpush3.bf16.msra.mxu0 %v13957_v11 }
 0x6d2   : > { %v13142_v50 = vpop.f32.mrb[44].mxu0 }
 0x6d3   : > { %v13143_v33 = vpop.f32.mrb[45].mxu0 }
 0x6d4   : > { %v13144_v27 = vadd.f32 %v13143_v33, %v13142_v50  ;;  %v13145_v24 = vpop.f32.mrb[46].mxu0  ;;  %v13960_v50 = vld [vmem:[%s17547_s12 + $0x20] sm:$0xff]   ;;  %v13962_v33 = vld [vmem:[%s17547_s12 + $0x68] sm:$0xff]  }
 0x6d5   : > { %v13146_v46 = vpop.f32.mrb[47].mxu0 }
 0x6d6   : > { %v8957_v63 = vadd.f32 %v13144_v27, %v8916_v31  ;;  %v13147_v14 = vadd.f32 %v13146_v46, %v13145_v24  ;;  %v9160_v31 = vld [vmem:[#allocation6] sm:$0x4]  ;;  %v9157_v27 = vld [vmem:[#allocation6 + $0x14] sm:$0x1]  ;;  %v9175_v24 = vld [vmem:[#allocation6 + $0x14] sm:$0x4] }
 0x6d7   : > { %v9158_v46 = vsel %vm16533_vm0, 0, %v9157_v27 }
 0x6d8   : > { %v8960_v21 = vadd.f32 %v13147_v14, %v8919_v37  ;;  %v8998_v6 = vadd.f32 %v13166_v55, %v8957_v63  ;;  %v9142_v37 = vld [vmem:[#allocation6] sm:$0x1]  ;;  %v9161_v55 = vsel %vm16528_vm14, 0, %v9160_v31  ;;  %v9176_v63 = vsel %vm16528_vm14, 0, %v9175_v24  ;;  %9159 = vst [vmem:[#allocation6 + $0x14] sm:$0x1] %v9158_v46 }
 0x6d9   : > { %v9143_v42 = vsel %vm16533_vm0, 0, %v9142_v37  ;;  %9162 = vst [vmem:[#allocation6] sm:$0x4] %v9161_v55  ;;  %9177 = vst [vmem:[#allocation6 + $0x14] sm:$0x4] %v9176_v63  ;;  %v13961_v14 = vld [vmem:[%s17547_s12 + $0xa8] sm:$0xff]  }
 0x6da   : > { %v9001_v10 = vadd.f32 %v13169_v40, %v8960_v21  ;;  %9144 = vst [vmem:[#allocation6] sm:$0x1] %v9143_v42  ;;  %v13959_v40 = vld [vmem:[%s17547_s12 + $0xe8] sm:$0xff]   ;;  %v13971_v42 = vld [vmem:[#allocation6] ss:$0 sps:$4 sm:$0x66]  }
 0x6db   : > { %v13964_v21 = vld [vmem:[%s17547_s12 + $0x28] sm:$0xff]   ;;  %13216 = vmatprep.subr.bf16.mxu0 %v13959_v40 }
 0x6dc   : > { %13217 = vmatpush3.bf16.msra.mxu0 %v13961_v14  ;;  %v9852_v14 = vrot.slane %v13971_v42, 1 }
 0x6dd   : > { %13218 = vmatprep.subr.bf16.mxu0 %v13963_v62 }
 0x6df   : > { %v17020_v27 = vld [vmem:[#allocation6 + $0x14] ss:$0 sps:$4 sm:$0x77]  }
 0x6f2   : > { %v9038_v9 = vpop.f32.mrb[48].mxu0 }
 0x6f3   : > { %v9039_v7 = vadd.f32 %v9038_v9, %v8998_v6  ;;  %v13461_v61 = vpop.f32.mrb[49].mxu0  ;;  %v13965_v6 = vld [vmem:[%s17547_s12 + $0xb0] sm:$0xff]   ;;  %v13967_v9 = vld [vmem:[%s17547_s12 + $0xf8] sm:$0xff]  }
 0x6f4   : > { %v9041_v44 = vpop.f32.mrb[50].mxu0  ;;  %13219 = vmatpush3.bf16.msra.mxu0 %v13965_v6  ;;  %v13969_v61 = vld [vmem:[%s17547_s12 + $0xb8] sm:$0xff]  }
 0x6f5   : > { %v9042_v26 = vadd.f32 %v9041_v44, %v9001_v10  ;;  %v13462_v60 = vpop.f32.mrb[51].mxu0  ;;  %v9045_v56 = vmax.f32 %v9039_v7, 0.0  ;;  %v13968_v10 = vld [vmem:[%s17547_s12 + $0x30] sm:$0xff]   ;;  %v13970_v7 = vld [vmem:[%s17547_s12 + $0x78] sm:$0xff]   ;;  %13220 = vmatprep.subr.bf16.mxu0 %v13967_v9 }
 0x6f6   : > { %v13976_v44 = vld [vmem:[%s17547_s12 + $0x38] sm:$0xff]   ;;  %v13982_v60 = vld [vmem:[%s17547_s12 + $0x140] sm:$0xff]  }
 0x6f7   : > { %v9046_v3 = vmax.f32 %v9042_v26, 0.0  ;;  %v13975_v26 = vld [vmem:[%s17547_s12 + $0x1c0] sm:$0xff]  }
 0x6f8   : > { %13221 = vmatpush3.bf16.msra.mxu0 %v13969_v61 }
 0x6f9   : > { %v9047_v16 = vpack.c.bf16 %v9046_v3, %v9045_v56  ;;  %13250 = vmatprep.subr.bf16.mxu0 %v13975_v26  ;;  %v12643_v56 = vld [vmem:[%s17545_s10] ss:$0 sm:$0xff] }
 0x6fb   : > { %13472 = vmatmul.mubr.msk.bf16.vlgmr.msra.gmra.mrb[36].mxu1 %vm5829_vm12, %v9047_v16 }
 0x6fc   : > { %13185 = vmatpush3.bf16.msra.mxu1 %v13944_v36  ;;  %v9230_v36 = vld [vmem:[#allocation6 + $0x8] sm:$0x7] }
 0x6fd   : > { %13186 = vmatprep.subr.bf16.mxu1 %v13946_v22 }
 0x700   : > { %13187 = vmatpush3.bf16.msra.mxu1 %v13948_v1  ;;  %v17003_v1 = vld [vmem:[#allocation5] ss:$0 sps:$4 sm:$0x77]  }
 0x701   : > { %13188 = vmatprep.subr.bf16.mxu1 %v13950_v25  ;;  %v9290_v40 = vshll.u32 %v17003_v1, 16  ;;  %v9288_v24 = vshrl.u32 %v17003_v1, 16 }
 0x703   : > { %v17024_v6 = vrot.slane %v9290_v40, 1 }
 0x704   : > { %13189 = vmatpush3.bf16.msra.mxu1 %v13952_v38 }
 0x705   : > { %13190 = vmatprep.subr.bf16.mxu1 %v13954_v17 }
 0x708   : > { %13191 = vmatpush3.bf16.msra.mxu1 %v13956_v8  ;;  %v13978_v8 = vld [vmem:[#allocation6] ss:$0 sps:$4 sm:$0x77]  }
 0x709   : > { %13192 = vmatprep.subr.bf16.mxu1 %v13958_v59  ;;  %v17011_v59 = vld [vmem:[#allocation5 + $0x8] ss:$0 sps:$4 sm:$0x77]   ;;  %v9815_v11 = vshll.u32 %v13978_v8, 16 }
 0x70a   : > { %v9304_v46 = vshll.u32 %v17011_v59, 16 }
 0x70b   : > { %v9817_v62 = vrot.slane %v9815_v11, 1 }
 0x70c   : > { %13193 = vmatpush3.bf16.msra.mxu1 %v13960_v50  ;;  %v17016_v50 = vld [vmem:[#allocation5 + $0x4] ss:$0 sps:$4 sm:$0x77]  }
 0x70d   : > { %13194 = vmatprep.subr.bf16.mxu1 %v13962_v33  ;;  %v17018_v33 = vld [vmem:[#allocation5 + $0xc] ss:$0 sps:$4 sm:$0x77]  }
 0x70e   : > { %v9309_v61 = vshrl.u32 %v17018_v33, 16 }
 0x710   : > { %13195 = vmatpush3.bf16.msra.mxu1 %v13964_v21  ;;  %v9813_v21 = vshrl.u32 %v13978_v8, 16 }
 0x711   : > { %13196 = vmatprep.subr.bf16.mxu1 %v13966_v5 }
 0x714   : > { %13197 = vmatpush3.bf16.msra.mxu1 %v13968_v10  ;;  %v9297_v10 = vshll.u32 %v17016_v50, 16 }
 0x715   : > { %13198 = vmatprep.subr.bf16.mxu1 %v13970_v7  ;;  %v9302_v7 = vshrl.u32 %v17011_v59, 16  ;;  %v14004_v59 = vld [vmem:[%s17547_s12 + $0x110] sm:$0xff]  }
 0x718   : > { %13199 = vmatpush3.bf16.msra.mxu1 %v13976_v44  ;;  %v9311_v44 = vshll.u32 %v17018_v33, 16  ;;  %v14009_v33 = vld [vmem:[%s17547_s12 + $0x1a0] sm:$0xff]  }
 0x719   : > { %13228 = vmatprep.subr.bf16.mxu1 %v13982_v60 }
 0x7ce   : > { %v9124_v3 = vpop.f32.mrb[36].mxu1 }
 0x7cf   : > { %v9125_v16 = vadd.f32 %v12643_v56, %v9124_v3  ;;  %v13473_v4 = vpop.f32.mrb[37].mxu1  ;;  %v17030_v3 = vrot.slane %v9304_v46, 1 }
 0x7d0   : > { %v9127_v49 = vpop.f32.mrb[38].mxu1 }
 0x7d1   : > { %v9135_v35 = vcombine.high %v9125_v16, %v9125_v16  ;;  %v12965_v53 = vpack.c.bf16 %v9125_v16, %v9125_v16  ;;  %v9128_v18 = vadd.f32 %v12643_v56, %v9127_v49  ;;  %v13474_v39 = vpop.f32.mrb[39].mxu1  ;;  %9131 = vst [vmem:[%s556_s21] sm:$0xff] %v9125_v16  ;;  %v9763_v56 = vld [vmem:[#allocation6] sm:$0x3] }
 0x7d3   : > { %v12966_v30 = vpack.c.bf16 %v9135_v35, %v9135_v35  ;;  %v9195_v28 = vshrl.u32 %v12965_v53, 16  ;;  %v9136_v23 = vcombine.high %v9128_v18, %v9128_v18  ;;  %9132 = vst [vmem:[%s556_s21 + $0x8] sm:$0xff] %v9128_v18  ;;  %v12967_v12 = vpack.c.bf16 %v9128_v18, %v9128_v18 }
 0x7d4   : > { %v9198_v52 = vshll.u32 %v12965_v53, 16  ;;  %v9818_v53 = vor.u32 %v9817_v62, %v9813_v21  ;;  %v9948_v18 = vshll.u32 %v17020_v27, 16 }
 0x7d5   : > { %v9197_v15 = vrot.slane %v9195_v28, 7  ;;  %v9202_v54 = vshrl.u32 %v12966_v30, 16  ;;  %v12968_v0 = vpack.c.bf16 %v9136_v23, %v9136_v23  ;;  %v9209_v13 = vshrl.u32 %v12967_v12, 16 }
 0x7d6   : > { %v9205_v43 = vshll.u32 %v12966_v30, 16  ;;  %v9212_v45 = vshll.u32 %v12967_v12, 16  ;;  %v9946_v30 = vshrl.u32 %v17020_v27, 16  ;;  %v9791_v27 = vld [vmem:[#allocation6 + $0x14] sm:$0x3] }
 0x7d7   : > { %v9200_v34 = vor.u32 %v9198_v52, %v9197_v15  ;;  %v9204_v57 = vrot.slane %v9202_v54, 7  ;;  %v9216_v29 = vshrl.u32 %v12968_v0, 16  ;;  %v9211_v22 = vrot.slane %v9209_v13, 7 }
 0x7d8   : > { %v9219_v38 = vshll.u32 %v12968_v0, 16 }
 0x7d9   : > { %v9207_v41 = vor.u32 %v9205_v43, %v9204_v57  ;;  %v9228_v25 = vsel %vm16667_vm3, %v9200_v34, %v9227_v51  ;;  %v9218_v32 = vrot.slane %v9216_v29, 7  ;;  %v9214_v17 = vor.u32 %v9212_v45, %v9211_v22 }
 0x7da   : > { %9229 = vst [vmem:[#allocation6 + $0x4] sm:$0x7] %v9228_v25  ;;  %v9980_v34 = vcombine.low %v9763_v56, %v9818_v53  ;;  %v17036_v57 = vrot.slane %v9948_v18, 1 }
 0x7db   : > { %v9231_v31 = vsel %vm16667_vm3, %v9207_v41, %v9230_v36  ;;  %v9221_v37 = vor.u32 %v9219_v38, %v9218_v32  ;;  %v9234_v19 = vsel %vm16667_vm3, %v9214_v17, %v9233_v48 }
 0x7dc   : > { %9232 = vst [vmem:[#allocation6 + $0x8] sm:$0x7] %v9231_v31  ;;  %9235 = vst [vmem:[#allocation6 + $0xc] sm:$0x7] %v9234_v19  ;;  %v9988_v11 = vrot.slane %v9980_v34, %v15721_v47 }
 0x7dd   : > { %v9237_v55 = vsel %vm16667_vm3, %v9221_v37, %v9236_v2 }
 0x7de   : > { %9238 = vst [vmem:[#allocation6 + $0x10] sm:$0x7] %v9237_v55 }
 0x7e1   : > { %v9775_v63 = vld [vmem:[#allocation6 + $0x4] sm:$0x3] }
 0x7e2   : > { %v13972_v20 = vld [vmem:[#allocation6 + $0x4] ss:$0 sps:$4 sm:$0x66]   ;;  %v9981_v60 = vcombine.low %v9852_v14, %v9775_v63 }
 0x7e3   : > { %v9776_v5 = vld [vmem:[#allocation6 + $0x8] sm:$0x3]  ;;  %v9853_v9 = vrot.slane %v13972_v20, 1  ;;  %v9777_v16 = vld [vmem:[#allocation6 + $0xc] sm:$0x3] }
 0x7e4   : > { %v13973_v26 = vld [vmem:[#allocation6 + $0x8] ss:$0 sps:$4 sm:$0x66]   ;;  %v13974_v49 = vld [vmem:[#allocation6 + $0xc] ss:$0 sps:$4 sm:$0x66]   ;;  %v9995_v15 = vrot.slane %v9981_v60, %v15721_v47 }
 0x7e5   : > { %v9778_v4 = vld [vmem:[#allocation6 + $0x10] sm:$0x3]  ;;  %v10022_v35 = vcombine.low %v9853_v9, %v9776_v5  ;;  %v9854_v39 = vrot.slane %v13973_v26, 1  ;;  %v9855_v28 = vrot.slane %v13974_v49, 1  ;;  %v9764_v32 = vld [vmem:[#allocation6 + $0x4] sm:$0x3] }
 0x7e6   : > { %v13979_v12 = vld [vmem:[#allocation6 + $0x4] ss:$0 sps:$4 sm:$0x77]   ;;  %v13980_v54 = vld [vmem:[#allocation6 + $0x8] ss:$0 sps:$4 sm:$0x77]  }
 0x7e7   : > { %v10036_v23 = vrot.slane %v10022_v35, %v15721_v47  ;;  %v10063_v52 = vcombine.low %v9854_v39, %v9777_v16  ;;  %v13981_v0 = vld [vmem:[#allocation6 + $0xc] ss:$0 sps:$4 sm:$0x77]   ;;  %v10104_v51 = vcombine.low %v9855_v28, %v9778_v4  ;;  %v9822_v13 = vshll.u32 %v13979_v12, 16  ;;  %v9765_v2 = vld [vmem:[#allocation6 + $0x8] sm:$0x3] }
 0x7e8   : > { %v9820_v36 = vshrl.u32 %v13979_v12, 16  ;;  %v9829_v22 = vshll.u32 %v13980_v54, 16  ;;  %v9836_v25 = vshll.u32 %v13981_v0, 16  ;;  %v9827_v38 = vshrl.u32 %v13980_v54, 16  ;;  %v9766_v14 = vld [vmem:[#allocation6 + $0xc] sm:$0x3] }
 0x7e9   : > { %v10077_v43 = vrot.slane %v10063_v52, %v15721_v47  ;;  %v12702_v29 = vcombine.low %v9995_v15, %v10036_v23  ;;  %v10118_v45 = vrot.slane %v10104_v51, %v15721_v47  ;;  %v9824_v41 = vrot.slane %v9822_v13, 1  ;;  %v13986_v19 = vld [vmem:[#allocation6 + $0x4] ss:$0 sps:$4 sm:$0x77]   ;;  %v13977_v35 = vld [vmem:[%s17547_s12 + $0x180] sm:$0xff]   ;;  %v13983_v39 = vld [vmem:[%s17547_s12 + $0x1c8] sm:$0xff]  }
 0x7ea   : > { %v9831_v48 = vrot.slane %v9829_v22, 1  ;;  %v9834_v31 = vshrl.u32 %v13981_v0, 16  ;;  %v9838_v37 = vrot.slane %v9836_v25, 1  ;;  %v13987_v40 = vld [vmem:[#allocation6 + $0x8] ss:$0 sps:$4 sm:$0x77]  }
 0x7eb   : > { %v12704_v17 = vcombine.low %v10077_v43, %v10118_v45  ;;  %v9825_v8 = vor.u32 %v9824_v41, %v9820_v36  ;;  %v10305_v55 = vrot.slane %v12702_v29, %v15721_v47  ;;  %v13988_v46 = vld [vmem:[#allocation6 + $0xc] ss:$0 sps:$4 sm:$0x77]   ;;  %v13989_v62 = vld [vmem:[#allocation6 + $0x10] ss:$0 sps:$4 sm:$0x77]  }
 0x7ec   : > { %v9832_v42 = vor.u32 %v9831_v48, %v9827_v38  ;;  %v9839_v21 = vor.u32 %v9838_v37, %v9834_v31  ;;  %v9869_v5 = vshrl.u32 %v13986_v19, 16  ;;  %v9871_v26 = vshll.u32 %v13986_v19, 16  ;;  %v13990_v16 = vld [vmem:[#allocation6 + $0x4] ss:$0 sps:$4 sm:$0x66]   ;;  %v13985_v13 = vld [vmem:[%s17547_s12 + $0x188] sm:$0xff]  }
 0x7ed   : > { %v10319_v63 = vrot.slane %v12704_v17, %v15721_v47  ;;  %v10021_v20 = vcombine.low %v9764_v32, %v9825_v8  ;;  %v9876_v60 = vshrl.u32 %v13987_v40, 16  ;;  %v9878_v56 = vshll.u32 %v13987_v40, 16  ;;  %v13991_v28 = vld [vmem:[#allocation6 + $0x8] ss:$0 sps:$4 sm:$0x66]   ;;  %v13999_v19 = vld [vmem:[%s17547_s12 + $0x1d0] sm:$0xff]  }
 0x7ee   : > { %v10062_v9 = vcombine.low %v9765_v2, %v9832_v42  ;;  %v10103_v18 = vcombine.low %v9766_v14, %v9839_v21  ;;  %v9873_v12 = vrot.slane %v9871_v26, 1  ;;  %v9883_v52 = vshrl.u32 %v13988_v46, 16  ;;  %v13992_v54 = vld [vmem:[#allocation6 + $0xc] ss:$0 sps:$4 sm:$0x66]  }
 0x7ef   : > { %v10323_v4 = vcombine.high %v10305_v55, %v10319_v63  ;;  %v10322_v49 = vcombine.low %v10305_v55, %v10319_v63  ;;  %v10029_v53 = vrot.slane %v10021_v20, %v15721_v47  ;;  %v9880_v15 = vrot.slane %v9878_v56, 1  ;;  %v13993_v43 = vld [vmem:[#allocation6 + $0x10] ss:$0 sps:$4 sm:$0x66]   ;;  %v14001_v56 = vld [vmem:[%s17547_s12 + $0x190] sm:$0xff]  }
 0x7f0   : > { %v10070_v23 = vrot.slane %v10062_v9, %v15721_v47  ;;  %v10111_v0 = vrot.slane %v10103_v18, %v15721_v47  ;;  %v9885_v34 = vshll.u32 %v13988_v46, 16  ;;  %v9874_v29 = vor.u32 %v9873_v12, %v9869_v5  ;;  %v13994_v48 = vld [vmem:[#allocation6 + $0x8] ss:$0 sps:$4 sm:$0x77]  }
 0x7f1   : > { %10891 = vmatprep.mubr.bf16.mxu0 %v10323_v4  ;;  %v12701_v51 = vcombine.low %v9988_v11, %v10029_v53  ;;  %v9881_v36 = vor.u32 %v9880_v15, %v9876_v60  ;;  %v9892_v22 = vshll.u32 %v13989_v62, 16  ;;  %v9908_v45 = vrot.slane %v13990_v16, 1  ;;  %v13995_v37 = vld [vmem:[#allocation6 + $0xc] ss:$0 sps:$4 sm:$0x77]  }
 0x7f2   : > { %10892 = vmatmul.mubr.bf16.vlgmr.msra.gmra.mrb[52].mxu0 %v10322_v49  ;;  %v12703_v41 = vcombine.low %v10070_v23, %v10111_v0  ;;  %v9887_v25 = vrot.slane %v9885_v34, 1  ;;  %v9890_v32 = vshrl.u32 %v13989_v62, 16  ;;  %v9909_v38 = vrot.slane %v13991_v28, 1  ;;  %v13996_v46 = vld [vmem:[#allocation6 + $0x10] ss:$0 sps:$4 sm:$0x77]  }
 0x7f3   : > { %13251 = vmatpush3.bf16.msra.mxu0 %v13977_v35  ;;  %v10298_v17 = vrot.slane %v12701_v51, %v15721_v47  ;;  %v9894_v2 = vrot.slane %v9892_v22, 1  ;;  %v9910_v8 = vrot.slane %v13992_v54, 1  ;;  %v9997_v31 = vcombine.low %v9874_v29, %v9908_v45  ;;  %v13984_v9 = vld [vmem:[%s17547_s12 + $0x100] sm:$0xff]   ;;  %v14003_v35 = vld [vmem:[%s17547_s12 + $0x1d8] sm:$0xff]   ;;  %v14000_v34 = vld [vmem:[%s17547_s12 + $0x108] sm:$0xff]  }
 0x7f4   : > { %13252 = vmatprep.subr.bf16.mxu0 %v13983_v39  ;;  %v10312_v55 = vrot.slane %v12703_v41, %v15721_v47  ;;  %v9888_v42 = vor.u32 %v9887_v25, %v9883_v52  ;;  %v9911_v11 = vrot.slane %v13993_v43, 1  ;;  %v10038_v40 = vcombine.low %v9881_v36, %v9909_v38  ;;  %v9788_v54 = vld [vmem:[#allocation6 + $0x8] sm:$0x3]  ;;  %v14002_v22 = vld [vmem:[%s17547_s12 + $0x150] sm:$0xff]   ;;  %v9789_v25 = vld [vmem:[#allocation6 + $0xc] sm:$0x3] }
 0x7f5   : > { %v9895_v63 = vor.u32 %v9894_v2, %v9890_v32  ;;  %v9925_v14 = vshrl.u32 %v13994_v48, 16  ;;  %v9927_v21 = vshll.u32 %v13994_v48, 16  ;;  %v9951_v20 = vor.u32 %v17036_v57, %v9946_v30  ;;  %v13998_v57 = vld [vmem:[%s17547_s12 + $0x148] sm:$0xff]   ;;  %v14007_v45 = vld [vmem:[%s17547_s12 + $0x1e0] sm:$0xff]  }
 0x7f6   : > { %v10321_v62 = vcombine.high %v10298_v17, %v10312_v55  ;;  %v10320_v5 = vcombine.low %v10298_v17, %v10312_v55  ;;  %v10046_v26 = vrot.slane %v10038_v40, %v15721_v47  ;;  %v10079_v60 = vcombine.low %v9888_v42, %v9910_v8  ;;  %v14006_v55 = vld [vmem:[%s17547_s12 + $0x158] sm:$0xff]   ;;  %v14011_v42 = vld [vmem:[%s17547_s12 + $0x1e8] sm:$0xff]   ;;  %v9239_v40 = vld [vmem:[#allocation5] sm:$0x3] }
 0x7f7   : > { %13253 = vmatpush3.bf16.msra.mxu0 %v13985_v13  ;;  %v10005_v16 = vrot.slane %v9997_v31, %v15721_v47  ;;  %v10120_v4 = vcombine.low %v9895_v63, %v9911_v11  ;;  %v9929_v49 = vrot.slane %v9927_v21, 1  ;;  %v9934_v30 = vshll.u32 %v13995_v37, 16  ;;  %v9790_v31 = vld [vmem:[#allocation6 + $0x10] sm:$0x3] }
 0x7f8   : > { %13254 = vmatprep.subr.bf16.mxu0 %v13999_v19  ;;  %10850 = vmatprep.mubr.bf16.mxu1 %v10321_v62  ;;  %v10087_v53 = vrot.slane %v10079_v60, %v15721_v47  ;;  %v9932_v18 = vshrl.u32 %v13995_v37, 16  ;;  %v9941_v39 = vshll.u32 %v13996_v46, 16  ;;  %v9313_v28 = vrot.slane %v9311_v44, 1  ;;  %v14005_v44 = vld [vmem:[%s17547_s12 + $0x198] sm:$0xff]   ;;  %v14013_v62 = vld [vmem:[%s17547_s12 + $0x1a8] sm:$0xff]  }
 0x7f9   : > { %10851 = vmatmul.mubr.bf16.vlgmr.msra.gmra.mrb[40].mxu1 %v10320_v5  ;;  %v10128_v23 = vrot.slane %v10120_v4, %v15721_v47  ;;  %v12705_v12 = vcombine.low %v10005_v16, %v10046_v26  ;;  %v9930_v15 = vor.u32 %v9929_v49, %v9925_v14  ;;  %v9936_v52 = vrot.slane %v9934_v30, 1  ;;  %v9240_v5 = vld [vmem:[#allocation5 + $0x4] sm:$0x3]  ;;  %v14015_v26 = vld [vmem:[%s17547_s12 + $0x1f0] sm:$0xff]  }
 0x7fa   : > { %13229 = vmatpush3.bf16.msra.mxu1 %v13984_v9  ;;  %v9939_v0 = vshrl.u32 %v13996_v46, 16  ;;  %v9943_v51 = vrot.slane %v9941_v39, 1  ;;  %v10121_v13 = vcombine.low %v9791_v27, %v9951_v20  ;;  %v9299_v41 = vrot.slane %v9297_v10, 1  ;;  %v14008_v20 = vld [vmem:[%s17547_s12 + $0x118] sm:$0xff]   ;;  %v14010_v9 = vld [vmem:[%s17547_s12 + $0x160] sm:$0xff]  }
 0x7fb   : > { %13255 = vmatpush3.bf16.msra.mxu0 %v14001_v56  ;;  %v12707_v43 = vcombine.low %v10087_v53, %v10128_v23  ;;  %v9937_v29 = vor.u32 %v9936_v52, %v9932_v18  ;;  %v9998_v36 = vcombine.low %v9788_v54, %v9930_v15  ;;  %13230 = vmatprep.subr.bf16.mxu1 %v13998_v57  ;;  %v9295_v38 = vshrl.u32 %v17016_v50, 16  ;;  %v14012_v57 = vld [vmem:[%s17547_s12 + $0x120] sm:$0xff]   ;;  %v14014_v53 = vld [vmem:[%s17547_s12 + $0x168] sm:$0xff]   ;;  %v14019_v18 = vld [vmem:[%s17547_s12 + $0x1f8] sm:$0xff]  }
 0x7fc   : > { %13256 = vmatprep.subr.bf16.mxu0 %v14003_v35  ;;  %v9944_v32 = vor.u32 %v9943_v51, %v9939_v0  ;;  %v9307_v48 = vor.u32 %v17030_v3, %v9302_v7  ;;  %v9314_v17 = vor.u32 %v9313_v28, %v9309_v61  ;;  %v17102_v2 = vrot.slane %v12705_v12, %v15721_v47  ;;  %v14017_v35 = vld [vmem:[%s17547_s12 + $0x1b0] sm:$0xff]   ;;  %v14016_v12 = vld [vmem:[%s17547_s12 + $0x128] sm:$0xff]   ;;  %v14021_v15 = vld [vmem:[%s17547_s12 + $0x1b8] sm:$0xff]  }
 0x7fd   : > { %v17105_v8 = vrot.slane %v12707_v43, %v15721_v47  ;;  %v10012_v10 = vrot.slane %v9998_v36, %v15721_v47  ;;  %v10039_v37 = vcombine.low %v9789_v25, %v9937_v29  ;;  %v10135_v50 = vrot.slane %v10121_v13, %v15721_v47  ;;  %v14018_v52 = vld [vmem:[%s17547_s12 + $0x170] sm:$0xff]   ;;  %v14023_v54 = vld [vmem:[%s17546_s11 + $0x40] sm:$0xff]   ;;  %v14030_v36 = vld [vmem:[%s17546_s11 + $0x48] sm:$0xff]  }
 0x7fe   : > { %v10080_v19 = vcombine.low %v9790_v31, %v9944_v32  ;;  %13231 = vmatpush3.bf16.msra.mxu1 %v14000_v34  ;;  %v9293_v7 = vor.u32 %v17024_v6, %v9288_v24  ;;  %v9300_v11 = vor.u32 %v9299_v41, %v9295_v38  ;;  %v9241_v24 = vld [vmem:[#allocation5 + $0x8] sm:$0x3]  ;;  %v9242_v6 = vld [vmem:[#allocation5 + $0xc] sm:$0x3]  ;;  %v14020_v13 = vld [vmem:[%s17547_s12 + $0x130] sm:$0xff]  }
 0x7ff   : > { %13257 = vmatpush3.bf16.msra.mxu0 %v14005_v44  ;;  %v10357_v61 = vcombine.high %v17102_v2, %v17105_v8  ;;  %v10053_v3 = vrot.slane %v10039_v37, %v15721_v47  ;;  %13232 = vmatprep.subr.bf16.mxu1 %v14002_v22  ;;  %v9537_v63 = vcombine.low %v9241_v24, %v9307_v48  ;;  %v14025_v34 = vld [vmem:[%s17546_s11] sm:$0xff]   ;;  %v14022_v44 = vld [vmem:[%s17547_s12 + $0x178] sm:$0xff]   ;;  %v14032_v25 = vld [vmem:[%s17546_s11 + $0x8] sm:$0xff]  }
 0x800   : > { %13258 = vmatprep.subr.bf16.mxu0 %v14007_v45  ;;  %v10094_v1 = vrot.slane %v10080_v19, %v15721_v47  ;;  %v9578_v14 = vcombine.low %v9242_v6, %v9314_v17  ;;  %v9455_v60 = vcombine.low %v9239_v40, %v9293_v7  ;;  %v9496_v56 = vcombine.low %v9240_v5, %v9300_v11  ;;  %v14057_v45 = vld [vmem:[#allocation5 + $0x10] ss:$0 sps:$4 sm:$0x77]   ;;  %v14024_v41 = vld [vmem:[%s17547_s12 + $0x138] sm:$0xff]  }
 0x801   : > { %10932 = vmatprep.mubr.bf16.mxu1 %v10357_v61  ;;  %v12706_v46 = vcombine.low %v10012_v10, %v10053_v3  ;;  %v9545_v27 = vrot.slane %v9537_v63, %v15721_v47  ;;  %v14055_v32 = vld [vmem:[#allocation5 + $0x8] ss:$0 sps:$4 sm:$0x77]   ;;  %v14033_v38 = vld [vmem:[%s17546_s11 + $0x50] sm:$0xff]   ;;  %v9367_v31 = vshll.u32 %v14057_v45, 16  ;;  %v14031_v10 = vld [vmem:[%s17547_s12 + $0x200] sm:$0xff]   ;;  %v10356_v19 = vcombine.low %v17102_v2, %v17105_v8 }
 0x802   : > { %v12708_v21 = vcombine.low %v10094_v1, %v10135_v50  ;;  %13233 = vmatpush3.bf16.msra.mxu1 %v14004_v59  ;;  %v9586_v49 = vrot.slane %v9578_v14, %v15721_v47  ;;  %v9463_v39 = vrot.slane %v9455_v60, %v15721_v47  ;;  %v9504_v28 = vrot.slane %v9496_v56, %v15721_v47  ;;  %v14056_v48 = vld [vmem:[#allocation5 + $0xc] ss:$0 sps:$4 sm:$0x77]   ;;  %v14054_v17 = vld [vmem:[#allocation5 + $0x4] ss:$0 sps:$4 sm:$0x77]  }
 0x803   : > { %13259 = vmatpush3.bf16.msra.mxu0 %v14009_v33  ;;  %13234 = vmatprep.subr.bf16.mxu1 %v14006_v55  ;;  %v10341_v16 = vrot.slane %v12706_v46, %v15721_v47  ;;  %v14035_v37 = vld [vmem:[%s17546_s11 + $0x10] sm:$0xff]   ;;  %v14036_v50 = vld [vmem:[%s17546_s11 + $0x58] sm:$0xff]   ;;  %v9353_v59 = vshll.u32 %v14055_v32, 16  ;;  %v9360_v33 = vshll.u32 %v14056_v48, 16  ;;  %v9346_v7 = vshll.u32 %v14054_v17, 16  ;;  %v14034_v3 = vld [vmem:[%s17547_s12 + $0x208] sm:$0xff]  }
 0x804   : > { %13260 = vmatprep.subr.bf16.mxu0 %v14011_v42  ;;  %v10355_v4 = vrot.slane %v12708_v21, %v15721_v47  ;;  %v12783_v23 = vcombine.low %v9545_v27, %v9586_v49  ;;  %v12781_v0 = vcombine.low %v9463_v39, %v9504_v28  ;;  %v9369_v61 = vrot.slane %v9367_v31, 1  ;;  %v14038_v2 = vld [vmem:[%s17546_s11 + $0x18] sm:$0xff]   ;;  %v14061_v8 = vld [vmem:[#allocation5 + $0x10] ss:$0 sps:$4 sm:$0x66]   ;;  %v14039_v55 = vld [vmem:[%s17546_s11 + $0x60] sm:$0xff]  }
 0x805   : > { %v9355_v42 = vrot.slane %v9353_v59, 1  ;;  %v9362_v11 = vrot.slane %v9360_v33, 1  ;;  %v9365_v1 = vshrl.u32 %v14057_v45, 16  ;;  %v14059_v40 = vld [vmem:[#allocation5 + $0x8] ss:$0 sps:$4 sm:$0x66]  }
 0x806   : > { %v10359_v30 = vcombine.high %v10341_v16, %v10355_v4  ;;  %13235 = vmatpush3.bf16.msra.mxu1 %v14008_v20  ;;  %v17171_v51 = vrot.slane %v12783_v23, %v15721_v47  ;;  %v10358_v43 = vcombine.low %v10341_v16, %v10355_v4  ;;  %v17183_v29 = vrot.slane %v12781_v0, %v15721_v47  ;;  %v14060_v14 = vld [vmem:[#allocation5 + $0xc] ss:$0 sps:$4 sm:$0x66]   ;;  %v14037_v21 = vld [vmem:[%s17547_s12 + $0x210] sm:$0xff]   ;;  %v14041_v20 = vld [vmem:[%s17546_s11 + $0x20] sm:$0xff]  }
 0x807   : > { %13261 = vmatpush3.bf16.msra.mxu0 %v14013_v62  ;;  %13236 = vmatprep.subr.bf16.mxu1 %v14010_v9  ;;  %v9348_v24 = vrot.slane %v9346_v7, 1  ;;  %v9351_v6 = vshrl.u32 %v14055_v32, 16  ;;  %v9358_v46 = vshrl.u32 %v14056_v48, 16  ;;  %v9370_v63 = vor.u32 %v9369_v61, %v9365_v1  ;;  %v14042_v62 = vld [vmem:[%s17546_s11 + $0x68] sm:$0xff]   ;;  %v14045_v23 = vld [vmem:[%s17546_s11 + $0x70] sm:$0xff]   ;;  %v14043_v45 = vld [vmem:[%s17547_s12 + $0x220] sm:$0xff]  }
 0x808   : > { %13262 = vmatprep.subr.bf16.mxu0 %v14015_v26  ;;  %10973 = vmatprep.mubr.bf16.mxu0 %v10359_v30  ;;  %v11056_v22 = vcombine.high %v17183_v29, %v17171_v51  ;;  %v9344_v5 = vshrl.u32 %v14054_v17, 16  ;;  %v14058_v60 = vld [vmem:[#allocation5 + $0x4] ss:$0 sps:$4 sm:$0x66]   ;;  %v9386_v56 = vrot.slane %v14061_v8, 1  ;;  %v9384_v49 = vrot.slane %v14059_v40, 1 }
 0x809   : > { %v9356_v9 = vor.u32 %v9355_v42, %v9351_v6  ;;  %v9363_v26 = vor.u32 %v9362_v11, %v9358_v46  ;;  %v14071_v16 = vld [vmem:[#allocation5 + $0x8] ss:$0 sps:$4 sm:$0x66]   ;;  %v14072_v4 = vld [vmem:[#allocation5 + $0xc] ss:$0 sps:$4 sm:$0x66]  }
 0x80a   : > { %13237 = vmatpush3.bf16.msra.mxu1 %v14012_v57  ;;  %v9349_v27 = vor.u32 %v9348_v24, %v9344_v5  ;;  %v9385_v30 = vrot.slane %v14060_v14, 1  ;;  %v9595_v57 = vcombine.low %v9370_v63, %v9386_v56  ;;  %v14065_v39 = vld [vmem:[#allocation6 + $0x14] ss:$0 sps:$4 sm:$0x66]   ;;  %v9254_v0 = vld [vmem:[#allocation5 + $0x10] sm:$0x3] }
 0x80b   : > { %13263 = vmatpush3.bf16.msra.mxu0 %v14017_v35  ;;  %13238 = vmatprep.subr.bf16.mxu1 %v14014_v53  ;;  %v14070_v35 = vld [vmem:[#allocation5 + $0x4] ss:$0 sps:$4 sm:$0x66]   ;;  %v14040_v53 = vld [vmem:[%s17547_s12 + $0x218] sm:$0xff]   ;;  %v14046_v8 = vld [vmem:[%s17547_s12 + $0x228] sm:$0xff]  }
 0x80c   : > { %13264 = vmatprep.subr.bf16.mxu0 %v14019_v18  ;;  %v14044_v18 = vld [vmem:[%s17546_s11 + $0x28] sm:$0xff]   ;;  %v14069_v28 = vld [vmem:[#allocation5] ss:$0 sps:$4 sm:$0x66]   ;;  %v9328_v32 = vrot.slane %v14070_v35, 1 }
 0x80d   : > { %v14051_v11 = vld [vmem:[%s17546_s11 + $0x140] sm:$0xff]  }
 0x80e   : > { %13239 = vmatpush3.bf16.msra.mxu1 %v14016_v12  ;;  %v9383_v12 = vrot.slane %v14058_v60, 1  ;;  %v14053_v5 = vld [vmem:[%s17546_s11 + $0x100] sm:$0xff]  }
 0x80f   : > { %13265 = vmatpush3.bf16.msra.mxu0 %v14021_v15  ;;  %13240 = vmatprep.subr.bf16.mxu1 %v14018_v52  ;;  %v9513_v15 = vcombine.low %v9356_v9, %v9384_v49  ;;  %v9554_v52 = vcombine.low %v9363_v26, %v9385_v30  ;;  %v11055_v26 = vcombine.low %v17183_v29, %v17171_v51  ;;  %v14052_v51 = vld [vmem:[%s17547_s12 + $0x238] sm:$0xff]  }
 0x810   : > { %13281 = vmatprep.subr.bf16.mxu0 %v14023_v54  ;;  %v14064_v54 = vld [vmem:[#allocation6 + $0x10] ss:$0 sps:$4 sm:$0x66]  }
 0x811   : > { %v9521_v48 = vrot.slane %v9513_v15, %v15721_v47  ;;  %v9562_v17 = vrot.slane %v9554_v52, %v15721_v47  ;;  %v9966_v31 = vrot.slane %v14064_v54, 1  ;;  %v14074_v52 = vld [vmem:[%s17546_s11 + $0xc8] sm:$0xff]   ;;  %v14077_v54 = vld [vmem:[%s17546_s11 + $0x110] sm:$0xff]  }
 0x812   : > { %10974 = vmatmul.mubr.bf16.vlgmr.msra.gmra.mrb[56].mxu0 %v10358_v43  ;;  %13241 = vmatpush3.bf16.msra.mxu1 %v14020_v13  ;;  %v9329_v13 = vrot.slane %v14071_v16, 1  ;;  %v9603_v43 = vrot.slane %v9595_v57, %v15721_v47  ;;  %v14067_v16 = vld [vmem:[%s17546_s11 + $0x148] sm:$0xff]  }
 0x813   : > { %13282 = vmatpush3.bf16.msra.mxu0 %v14025_v34  ;;  %13242 = vmatprep.subr.bf16.mxu1 %v14022_v44  ;;  %v9330_v34 = vrot.slane %v14072_v4, 1  ;;  %v9472_v44 = vcombine.low %v9349_v27, %v9383_v12  ;;  %v10102_v40 = vrot.slane %v9966_v31, %v15721_v47  ;;  %v14073_v57 = vld [vmem:[%s17546_s11 + $0x108] sm:$0xff]  }
 0x814   : > { %11585 = vmatprep.mubr.bf16.mxu0 %v11056_v22  ;;  %13283 = vmatprep.subr.bf16.mxu0 %v14030_v36  ;;  %v14062_v36 = vld [vmem:[#allocation6 + $0x8] ss:$0 sps:$4 sm:$0x66]   ;;  %v14063_v22 = vld [vmem:[#allocation6 + $0xc] ss:$0 sps:$4 sm:$0x66]   ;;  %v12787_v7 = vcombine.low %v9562_v17, %v9603_v43 }
 0x815   : > { %v9579_v59 = vcombine.low %v9330_v34, %v9254_v0  ;;  %v9480_v33 = vrot.slane %v9472_v44, %v15721_v47  ;;  %v9964_v61 = vrot.slane %v14062_v36, 1  ;;  %v14106_v0 = vld [vmem:[#allocation5 + $0x14] ss:$0 sps:$4 sm:$0x77]   ;;  %v14079_v34 = vld [vmem:[%s17546_s11 + $0x158] sm:$0xff]   ;;  %v14076_v36 = vld [vmem:[%s17546_s11 + $0x88] sm:$0xff]  }
 0x816   : > { %13243 = vmatpush3.bf16.msra.mxu1 %v14024_v41  ;;  %v14047_v41 = vld [vmem:[%s17546_s11 + $0x30] sm:$0xff]   ;;  %v17272_v14 = vrot.slane %v12787_v7, %v15721_v47  ;;  %v14103_v43 = vld [vmem:[#allocation5 + $0x8] ss:$0 sps:$4 sm:$0x77]   ;;  %v14084_v7 = vld [vmem:[%s17546_s11 + $0x98] sm:$0xff]  }
 0x817   : > { %13284 = vmatpush3.bf16.msra.mxu0 %v14032_v25  ;;  %13475 = vmatprep.subr.bf16.mxu1 %v14166_v58  ;;  %v9252_v25 = vld [vmem:[#allocation5 + $0x8] sm:$0x3]  ;;  %v12785_v1 = vcombine.low %v9480_v33, %v9521_v48  ;;  %v9593_v63 = vrot.slane %v9579_v59, %v15721_v47  ;;  %v14105_v44 = vld [vmem:[#allocation5 + $0x10] ss:$0 sps:$4 sm:$0x77]   ;;  %v9402_v17 = vshll.u32 %v14103_v43, 16 }
 0x818   : > { %13285 = vmatprep.subr.bf16.mxu0 %v14033_v38  ;;  %v14048_v38 = vld [vmem:[%s17546_s11 + $0x78] sm:$0xff]   ;;  %v9497_v42 = vcombine.low %v9328_v32, %v9252_v25  ;;  %v14083_v25 = vld [vmem:[%s17546_s11 + $0x160] sm:$0xff]   ;;  %v9416_v32 = vshll.u32 %v14105_v44, 16  ;;  %v14080_v48 = vld [vmem:[%s17546_s11 + $0x90] sm:$0xff]   ;;  %v9421_v59 = vshrl.u32 %v14106_v0, 16 }
 0x819   : > { %10933 = vmatmul.mubr.bf16.vlgmr.msra.gmra.mrb[44].mxu1 %v10356_v19  ;;  %v9327_v19 = vrot.slane %v14069_v28, 1  ;;  %v17287_v60 = vrot.slane %v12785_v1, %v15721_v47 }
 0x81a   : > { %13476 = vmatpush3.bf16.msra.mxu1 %v14031_v10  ;;  %13491 = vmatprep.mubr.msk.bf16.mxu1 %vm14167_vm13, %v14166_v58  ;;  %v9967_v10 = vrot.slane %v14065_v39, 1  ;;  %v9511_v9 = vrot.slane %v9497_v42, %v15721_v47  ;;  %v14091_v42 = vld [vmem:[%s17546_s11 + $0x170] sm:$0xff]  }
 0x81b   : > { %13286 = vmatpush3.bf16.msra.mxu0 %v14035_v37  ;;  %13477 = vmatprep.subr.bf16.mxu1 %v14166_v58  ;;  %v9253_v37 = vld [vmem:[#allocation5 + $0xc] sm:$0x3]  ;;  %v11092_v49 = vcombine.high %v17287_v60, %v17272_v14 }
 0x81c   : > { %13287 = vmatprep.subr.bf16.mxu0 %v14036_v50  ;;  %v9538_v50 = vcombine.low %v9329_v13, %v9253_v37  ;;  %v10143_v24 = vrot.slane %v9967_v10, %v15721_v47  ;;  %v14082_v10 = vld [vmem:[%s17546_s11 + $0xd8] sm:$0xff]   ;;  %v14085_v37 = vld [vmem:[%s17546_s11 + $0x120] sm:$0xff]  }
 0x81e   : > { %13478 = vmatpush3.bf16.msra.mxu1 %v14034_v3  ;;  %v9965_v3 = vrot.slane %v14063_v22, 1  ;;  %v9552_v46 = vrot.slane %v9538_v50, %v15721_v47  ;;  %v10361_v56 = vcombine.low %v10102_v40, %v10143_v24  ;;  %v14104_v22 = vld [vmem:[#allocation5 + $0xc] ss:$0 sps:$4 sm:$0x77]   ;;  %v9418_v50 = vrot.slane %v9416_v32, 1 }
 0x81f   : > { %13288 = vmatpush3.bf16.msra.mxu0 %v14038_v2  ;;  %13479 = vmatprep.subr.bf16.mxu1 %v14166_v58  ;;  %v9251_v2 = vld [vmem:[#allocation5 + $0x4] sm:$0x3]  ;;  %v9409_v31 = vshll.u32 %v14104_v22, 16  ;;  %v9407_v1 = vshrl.u32 %v14104_v22, 16  ;;  %v14108_v22 = vld [vmem:[%s17546_s11 + $0x1c8] sm:$0xff]  }
 0x820   : > { %13289 = vmatprep.subr.bf16.mxu0 %v14039_v55  ;;  %v14050_v55 = vld [vmem:[%s17546_s11 + $0x38] sm:$0xff]   ;;  %v9456_v6 = vcombine.low %v9327_v19, %v9251_v2  ;;  %v12784_v27 = vcombine.low %v9552_v46, %v9593_v63  ;;  %v10375_v35 = vrot.slane %v10361_v56, %v15721_v47  ;;  %v14087_v19 = vld [vmem:[%s17546_s11 + $0x168] sm:$0xff]   ;;  %v9414_v2 = vshrl.u32 %v14105_v44, 16  ;;  %v14088_v46 = vld [vmem:[%s17546_s11 + $0xa0] sm:$0xff]  }
 0x821   : > { %v14102_v44 = vld [vmem:[%s17546_s11 + $0x180] sm:$0xff]   ;;  %v14129_v32 = vld [vmem:[#allocation5 + $0x10] ss:$0 sps:$4 sm:$0x66]  }
 0x822   : > { %13480 = vmatpush3.bf16.msra.mxu1 %v14037_v21  ;;  %v10020_v21 = vrot.slane %v9964_v61, %v15721_v47  ;;  %v9470_v4 = vrot.slane %v9456_v6, %v15721_v47  ;;  %v17310_v39 = vrot.slane %v12784_v27, %v15721_v47  ;;  %v9404_v61 = vrot.slane %v9402_v17, 1  ;;  %v9266_v6 = vld [vmem:[#allocation5 + $0x14] sm:$0x3]  ;;  %v14092_v27 = vld [vmem:[%s17546_s11 + $0xa8] sm:$0xff]  }
 0x823   : > { %13290 = vmatpush3.bf16.msra.mxu0 %v14041_v20  ;;  %13481 = vmatprep.subr.bf16.mxu1 %v14166_v58  ;;  %v10061_v20 = vrot.slane %v9965_v3, %v15721_v47  ;;  %v9411_v3 = vrot.slane %v9409_v31, 1  ;;  %v9419_v40 = vor.u32 %v9418_v50, %v9414_v2  ;;  %v14112_v17 = vld [vmem:[%s17546_s11 + $0x190] sm:$0xff]   ;;  %v14128_v31 = vld [vmem:[#allocation5 + $0xc] ss:$0 sps:$4 sm:$0x66]  }
 0x824   : > { %13291 = vmatprep.subr.bf16.mxu0 %v14042_v62  ;;  %v14049_v62 = vld [vmem:[%s17547_s12 + $0x230] sm:$0xff]   ;;  %v12782_v29 = vcombine.low %v9470_v4, %v9511_v9  ;;  %v14095_v9 = vld [vmem:[%s17546_s11 + $0x178] sm:$0xff]   ;;  %v9264_v4 = vld [vmem:[#allocation5 + $0xc] sm:$0x3] }
 0x825   : > { %v10360_v30 = vcombine.low %v10020_v21, %v10061_v20  ;;  %v9412_v21 = vor.u32 %v9411_v3, %v9407_v1  ;;  %v14090_v20 = vld [vmem:[%s17546_s11 + $0xe8] sm:$0xff]  }
 0x826   : > { %13482 = vmatpush3.bf16.msra.mxu1 %v14040_v53  ;;  %v14066_v53 = vld [vmem:[%s17546_s11 + $0xc0] sm:$0xff]   ;;  %v17317_v12 = vrot.slane %v12782_v29, %v15721_v47  ;;  %v14097_v29 = vld [vmem:[%s17546_s11 + $0x138] sm:$0xff]   ;;  %v14119_v3 = vld [vmem:[%s17546_s11 + $0x228] sm:$0xff]  }
 0x827   : > { %13292 = vmatpush3.bf16.msra.mxu0 %v14044_v18  ;;  %13483 = vmatprep.subr.bf16.mxu1 %v14166_v58  ;;  %v14075_v18 = vld [vmem:[%s17546_s11 + $0x150] sm:$0xff]   ;;  %v10368_v28 = vrot.slane %v10360_v30, %v15721_v47  ;;  %v9514_v30 = vcombine.low %v9264_v4, %v9412_v21  ;;  %v14120_v1 = vld [vmem:[%s17546_s11 + $0x1e8] sm:$0xff]   ;;  %v14125_v21 = vld [vmem:[%s17546_s11 + $0x238] sm:$0xff]  }
 0x828   : > { %13293 = vmatprep.subr.bf16.mxu0 %v14045_v23  ;;  %v14068_v23 = vld [vmem:[%s17546_s11 + $0x80] sm:$0xff]   ;;  %v11058_v13 = vcombine.high %v17317_v12, %v17310_v39 }
 0x829   : > { %v10376_v15 = vcombine.low %v10368_v28, %v10375_v35  ;;  %v9528_v28 = vrot.slane %v9514_v30, %v15721_v47 }
 0x82a   : > { %13484 = vmatpush3.bf16.msra.mxu1 %v14043_v45  ;;  %v14078_v45 = vld [vmem:[%s17546_s11 + $0xd0] sm:$0xff]  }
 0x82b   : > { %13294 = vmatpush3.bf16.msra.mxu0 %v14047_v41  ;;  %13485 = vmatprep.subr.bf16.mxu1 %v14166_v58  ;;  %v14081_v41 = vld [vmem:[%s17546_s11 + $0x118] sm:$0xff]  }
 0x82c   : > { %13295 = vmatprep.subr.bf16.mxu0 %v14048_v38  ;;  %v9423_v38 = vshll.u32 %v14106_v0, 16  ;;  %v14099_v0 = vld [vmem:[%s17546_s11 + $0xb8] sm:$0xff]  }
 0x82e   : > { %13486 = vmatpush3.bf16.msra.mxu1 %v14046_v8  ;;  %v9425_v33 = vrot.slane %v9423_v38, 1  ;;  %v14086_v8 = vld [vmem:[%s17546_s11 + $0xe0] sm:$0xff]   ;;  %v14130_v38 = vld [vmem:[#allocation5 + $0x14] ss:$0 sps:$4 sm:$0x66]  }
 0x82f   : > { %13296 = vmatpush3.bf16.msra.mxu0 %v14050_v55  ;;  %13487 = vmatprep.subr.bf16.mxu1 %v14166_v58  ;;  %v14089_v55 = vld [vmem:[%s17546_s11 + $0x128] sm:$0xff]   ;;  %v9442_v50 = vrot.slane %v14130_v38, 1 }
 0x830   : > { %13325 = vmatprep.subr.bf16.mxu0 %v14051_v11  ;;  %v9400_v11 = vshrl.u32 %v14103_v43, 16  ;;  %v9426_v24 = vor.u32 %v9425_v33, %v9421_v59  ;;  %v14115_v59 = vld [vmem:[%s17546_s11 + $0x198] sm:$0xff]  }
 0x832   : > { %11586 = vmatmul.mubr.bf16.vlgmr.msra.gmra.mrb[60].mxu0 %v11055_v26  ;;  %13488 = vmatpush3.bf16.msra.mxu1 %v14049_v62  ;;  %v9405_v63 = vor.u32 %v9404_v61, %v9400_v11  ;;  %v14093_v62 = vld [vmem:[%s17546_s11 + $0x130] sm:$0xff]   ;;  %v9596_v56 = vcombine.low %v9266_v6, %v9426_v24  ;;  %v14117_v61 = vld [vmem:[%s17546_s11 + $0x1e0] sm:$0xff]   ;;  %v14121_v6 = vld [vmem:[%s17546_s11 + $0x1a8] sm:$0xff]  }
 0x833   : > { %13326 = vmatpush3.bf16.msra.mxu0 %v14053_v5  ;;  %13489 = vmatprep.subr.bf16.mxu1 %v14166_v58  ;;  %v9265_v5 = vld [vmem:[#allocation5 + $0x10] sm:$0x3] }
 0x834   : > { %11667 = vmatprep.mubr.bf16.mxu0 %v11092_v49  ;;  %13327 = vmatprep.subr.bf16.mxu0 %v14067_v16  ;;  %v9555_v26 = vcombine.low %v9265_v5, %v9419_v40  ;;  %v9263_v16 = vld [vmem:[#allocation5 + $0x8] sm:$0x3]  ;;  %v9610_v35 = vrot.slane %v9596_v56, %v15721_v47  ;;  %v14122_v40 = vld [vmem:[%s17546_s11 + $0x230] sm:$0xff]   ;;  %v14131_v56 = vld [vmem:[%s17546_s11 + $0x1b8] sm:$0xff]  }
 0x835   : > { %v9473_v49 = vcombine.low %v9263_v16, %v9405_v63  ;;  %v14123_v63 = vld [vmem:[%s17546_s11 + $0x1f0] sm:$0xff]  }
 0x836   : > { %13490 = vmatpush3.bf16.msra.mxu1 %v14052_v51  ;;  %v14094_v51 = vld [vmem:[%s17546_s11 + $0xf0] sm:$0xff]  }
 0x837   : > { %13328 = vmatpush3.bf16.msra.mxu0 %v14073_v57  ;;  %13303 = vmatprep.subr.bf16.mxu1 %v14066_v53  ;;  %v9569_v57 = vrot.slane %v9555_v26, %v15721_v47  ;;  %v14096_v53 = vld [vmem:[%s17546_s11 + $0xb0] sm:$0xff]  }
 0x838   : > { %13329 = vmatprep.subr.bf16.mxu0 %v14075_v18  ;;  %v9487_v18 = vrot.slane %v9473_v49, %v15721_v47 }
 0x839   : > { %13492 = vmatmul.mubr.bf16.vlgmr.msra.gmra.mrb[48].mxu1 %v10376_v15  ;;  %v14100_v15 = vld [vmem:[%s17546_s11 + $0x200] sm:$0xff]  }
 0x83a   : > { %13304 = vmatpush3.bf16.msra.mxu1 %v14068_v23  ;;  %11626 = vmatprep.mubr.bf16.mxu1 %v11058_v13  ;;  %v14098_v23 = vld [vmem:[%s17546_s11 + $0xf8] sm:$0xff]   ;;  %v12786_v13 = vcombine.low %v9487_v18, %v9528_v28 }
 0x83b   : > { %13305 = vmatprep.subr.bf16.mxu1 %v14074_v52  ;;  %13330 = vmatpush3.bf16.msra.mxu0 %v14077_v54  ;;  %v11091_v52 = vcombine.low %v17287_v60, %v17272_v14  ;;  %v12788_v54 = vcombine.low %v9569_v57, %v9610_v35  ;;  %v14107_v14 = vld [vmem:[%s17546_s11 + $0x208] sm:$0xff]  }
 0x83c   : > { %13331 = vmatprep.subr.bf16.mxu0 %v14079_v34  ;;  %v14101_v34 = vld [vmem:[%s17546_s11 + $0x1c0] sm:$0xff]   ;;  %v17422_v43 = vrot.slane %v12786_v13, %v15721_v47  ;;  %v14135_v13 = vld [vmem:[%s17549_s14 + $0x18] sm:$0xff]  }
 0x83d   : > { %v17414_v60 = vrot.slane %v12788_v54, %v15721_v47  ;;  %v14133_v54 = vld [vmem:[%s17549_s14 + $0x8] sm:$0xff]  }
 0x83e   : > { %13306 = vmatpush3.bf16.msra.mxu1 %v14076_v36  ;;  %v11057_v36 = vcombine.low %v17317_v12, %v17310_v39  ;;  %v14109_v39 = vld [vmem:[%s17546_s11 + $0x188] sm:$0xff]   ;;  %v14111_v12 = vld [vmem:[%s17546_s11 + $0x1d0] sm:$0xff]  }
 0x83f   : > { %13307 = vmatprep.subr.bf16.mxu1 %v14078_v45  ;;  %13332 = vmatpush3.bf16.msra.mxu0 %v14081_v41  ;;  %v14110_v45 = vld [vmem:[%s17546_s11 + $0x210] sm:$0xff]   ;;  %v11094_v41 = vcombine.high %v17422_v43, %v17414_v60  ;;  %v11093_v16 = vcombine.low %v17422_v43, %v17414_v60 }
 0x840   : > { %13333 = vmatprep.subr.bf16.mxu0 %v14083_v25  ;;  %v14113_v25 = vld [vmem:[%s17546_s11 + $0x218] sm:$0xff]  }
 0x842   : > { %13308 = vmatpush3.bf16.msra.mxu1 %v14080_v48  ;;  %v14127_v48 = vld [vmem:[#allocation5 + $0x8] ss:$0 sps:$4 sm:$0x66]  }
 0x843   : > { %13309 = vmatprep.subr.bf16.mxu1 %v14082_v10  ;;  %13334 = vmatpush3.bf16.msra.mxu0 %v14085_v37  ;;  %v14114_v10 = vld [vmem:[%s17546_s11 + $0x1d8] sm:$0xff]   ;;  %v14116_v37 = vld [vmem:[%s17546_s11 + $0x220] sm:$0xff]   ;;  %v9439_v33 = vrot.slane %v14127_v48, 1 }
 0x844   : > { %13335 = vmatprep.subr.bf16.mxu0 %v14087_v19  ;;  %v9441_v19 = vrot.slane %v14129_v32, 1 }
 0x846   : > { %13310 = vmatpush3.bf16.msra.mxu1 %v14084_v7  ;;  %v9440_v7 = vrot.slane %v14128_v31, 1  ;;  %v9577_v2 = vrot.slane %v9441_v19, %v15721_v47 }
 0x847   : > { %13311 = vmatprep.subr.bf16.mxu1 %v14086_v8  ;;  %13336 = vmatpush3.bf16.msra.mxu0 %v14089_v55  ;;  %v9618_v8 = vrot.slane %v9442_v50, %v15721_v47  ;;  %v14118_v55 = vld [vmem:[%s17546_s11 + $0x1a0] sm:$0xff]  }
 0x848   : > { %13337 = vmatprep.subr.bf16.mxu0 %v14091_v42  ;;  %v9495_v42 = vrot.slane %v9439_v33, %v15721_v47  ;;  %v9536_v11 = vrot.slane %v9440_v7, %v15721_v47 }
 0x849   : > { %v11096_v24 = vcombine.low %v9577_v2, %v9618_v8 }
 0x84a   : > { %13312 = vmatpush3.bf16.msra.mxu1 %v14088_v46  ;;  %v11095_v46 = vcombine.low %v9495_v42, %v9536_v11 }
 0x84b   : > { %13313 = vmatprep.subr.bf16.mxu1 %v14090_v20  ;;  %13338 = vmatpush3.bf16.msra.mxu0 %v14093_v62  ;;  %v11110_v20 = vrot.slane %v11096_v24, %v15721_v47  ;;  %v14124_v62 = vld [vmem:[%s17546_s11 + $0x1b0] sm:$0xff]  }
 0x84c   : > { %13339 = vmatprep.subr.bf16.mxu0 %v14095_v9  ;;  %v11103_v5 = vrot.slane %v11095_v46, %v15721_v47  ;;  %v14126_v9 = vld [vmem:[%s17546_s11 + $0x1f8] sm:$0xff]  }
 0x84e   : > { %13314 = vmatpush3.bf16.msra.mxu1 %v14092_v27  ;;  %v11111_v26 = vcombine.low %v11103_v5, %v11110_v20 }
 0x84f   : > { %13315 = vmatprep.subr.bf16.mxu1 %v14094_v51  ;;  %13340 = vmatpush3.bf16.msra.mxu0 %v14097_v29 }
 0x850   : > { %13495 = vmatprep.subr.bf16.mxu0 %v14166_v58 }
 0x852   : > { %13316 = vmatpush3.bf16.msra.mxu1 %v14096_v53  ;;  %11668 = vmatmul.mubr.bf16.vlgmr.msra.gmra.mrb[64].mxu0 %v11091_v52  ;;  %v14132_v52 = vld [vmem:[%s17549_s14] sm:$0xff]  }
 0x853   : > { %13317 = vmatprep.subr.bf16.mxu1 %v14098_v23  ;;  %13496 = vmatpush3.bf16.msra.mxu0 %v14100_v15 }
 0x854   : > { %13497 = vmatprep.subr.bf16.mxu0 %v14166_v58  ;;  %13511 = vmatprep.mubr.msk.bf16.mxu0 %vm14167_vm13, %v14166_v58 }
 0x856   : > { %13318 = vmatpush3.bf16.msra.mxu1 %v14099_v0  ;;  %v14134_v0 = vld [vmem:[%s17549_s14 + $0x10] sm:$0xff]  }
 0x857   : > { %13347 = vmatprep.subr.bf16.mxu1 %v14101_v34  ;;  %13498 = vmatpush3.bf16.msra.mxu0 %v14107_v14 }
 0x858   : > { %13499 = vmatprep.subr.bf16.mxu0 %v14166_v58 }
 0x859   : > { %11627 = vmatmul.mubr.bf16.vlgmr.msra.gmra.mrb[52].mxu1 %v11057_v36 }
 0x85a   : > { %13348 = vmatpush3.bf16.msra.mxu1 %v14102_v44  ;;  %11708 = vmatprep.mubr.bf16.mxu1 %v11094_v41 }
 0x85b   : > { %13349 = vmatprep.subr.bf16.mxu1 %v14108_v22  ;;  %13500 = vmatpush3.bf16.msra.mxu0 %v14110_v45 }
 0x85c   : > { %13501 = vmatprep.subr.bf16.mxu0 %v14166_v58 }
 0x85e   : > { %13350 = vmatpush3.bf16.msra.mxu1 %v14109_v39 }
 0x85f   : > { %13351 = vmatprep.subr.bf16.mxu1 %v14111_v12  ;;  %13502 = vmatpush3.bf16.msra.mxu0 %v14113_v25 }
 0x860   : > { %13503 = vmatprep.subr.bf16.mxu0 %v14166_v58 }
 0x862   : > { %13352 = vmatpush3.bf16.msra.mxu1 %v14112_v17 }
 0x863   : > { %13353 = vmatprep.subr.bf16.mxu1 %v14114_v10  ;;  %13504 = vmatpush3.bf16.msra.mxu0 %v14116_v37 }
 0x864   : > { %13505 = vmatprep.subr.bf16.mxu0 %v14166_v58 }
 0x866   : > { %13354 = vmatpush3.bf16.msra.mxu1 %v14115_v59 }
 0x867   : > { %13355 = vmatprep.subr.bf16.mxu1 %v14117_v61  ;;  %13506 = vmatpush3.bf16.msra.mxu0 %v14119_v3 }
 0x868   : > { %13507 = vmatprep.subr.bf16.mxu0 %v14166_v58 }
 0x86a   : > { %13356 = vmatpush3.bf16.msra.mxu1 %v14118_v55 }
 0x86b   : > { %13357 = vmatprep.subr.bf16.mxu1 %v14120_v1  ;;  %13508 = vmatpush3.bf16.msra.mxu0 %v14122_v40 }
 0x86c   : > { %13509 = vmatprep.subr.bf16.mxu0 %v14166_v58 }
 0x86e   : > { %13358 = vmatpush3.bf16.msra.mxu1 %v14121_v6 }
 0x86f   : > { %13359 = vmatprep.subr.bf16.mxu1 %v14123_v63  ;;  %13510 = vmatpush3.bf16.msra.mxu0 %v14125_v21 }
 0x872   : > { %13360 = vmatpush3.bf16.msra.mxu1 %v14124_v62  ;;  %13512 = vmatmul.mubr.bf16.vlgmr.msra.gmra.mrb[68].mxu0 %v11111_v26 }
 0x873   : > { %13361 = vmatprep.subr.bf16.mxu1 %v14126_v9 }
 0x876   : > { %13362 = vmatpush3.bf16.msra.mxu1 %v14131_v56 }
 0x877   : > { %13515 = vmatprep.subr.bf16.mxu1 %v14166_v58 }
 0x879   : > { %11709 = vmatmul.mubr.bf16.vlgmr.msra.gmra.mrb[56].mxu1 %v11093_v16 }
 0x87a   : > { %13523 = vmatprep.mubr.msk.bf16.mxu1 %vm14167_vm13, %v14166_v58  ;;  %13516 = vmatpush3.bf16.msra.mxu1 %v14132_v52 }
 0x87b   : > { %13517 = vmatprep.subr.bf16.mxu1 %v14166_v58 }
 0x87e   : > { %13518 = vmatpush3.bf16.msra.mxu1 %v14133_v54 }
 0x87f   : > { %13519 = vmatprep.subr.bf16.mxu1 %v14166_v58 }
 0x882   : > { %13520 = vmatpush3.bf16.msra.mxu1 %v14134_v0 }
 0x883   : > { %13521 = vmatprep.subr.bf16.mxu1 %v14166_v58 }
 0x886   : > { %13522 = vmatpush3.bf16.msra.mxu1 %v14135_v13 }
 0x8c5   : > { %v13222_v47 = vpop.f32.mrb[52].mxu0 }
 0x8c6   : > { %v13223_v4 = vpop.f32.mrb[53].mxu0 }
 0x8c7   : > { %v13224_v27 = vadd.f32 %v13223_v4, %v13222_v47  ;;  %v13225_v49 = vpop.f32.mrb[54].mxu0 }
 0x8c8   : > { %v13226_v30 = vpop.f32.mrb[55].mxu0 }
 0x8c9   : > { %v13227_v51 = vadd.f32 %v13226_v30, %v13225_v49 }
 0x8cc   : > { %v13200_v29 = vpop.f32.mrb[40].mxu1 }
 0x8cd   : > { %v13201_v57 = vpop.f32.mrb[41].mxu1 }
 0x8ce   : > { %v13202_v35 = vadd.f32 %v13201_v57, %v13200_v29  ;;  %v13203_v53 = vpop.f32.mrb[42].mxu1 }
 0x8cf   : > { %v13204_v18 = vpop.f32.mrb[43].mxu1 }
 0x8d0   : > { %v10894_v28 = vadd.f32 %v13224_v27, %v13202_v35  ;;  %v13205_v23 = vadd.f32 %v13204_v18, %v13203_v53 }
 0x8d2   : > { %v10897_v15 = vadd.f32 %v13227_v51, %v13205_v23 }
 0x8e5   : > { %v13266_v34 = vpop.f32.mrb[56].mxu0 }
 0x8e6   : > { %v13267_v14 = vpop.f32.mrb[57].mxu0 }
 0x8e7   : > { %v13268_v60 = vadd.f32 %v13267_v14, %v13266_v34  ;;  %v13269_v44 = vpop.f32.mrb[58].mxu0 }
 0x8e8   : > { %v13270_v43 = vpop.f32.mrb[59].mxu0 }
 0x8e9   : > { %v13271_v36 = vadd.f32 %v13270_v43, %v13269_v44 }
 0x8ec   : > { %v13244_v22 = vpop.f32.mrb[44].mxu1 }
 0x8ed   : > { %v13245_v45 = vpop.f32.mrb[45].mxu1 }
 0x8ee   : > { %v13246_v41 = vadd.f32 %v13245_v45, %v13244_v22  ;;  %v13247_v39 = vpop.f32.mrb[46].mxu1 }
 0x8ef   : > { %v13248_v12 = vpop.f32.mrb[47].mxu1 }
 0x8f0   : > { %v10935_v25 = vadd.f32 %v13246_v41, %v10894_v28  ;;  %v13249_v32 = vadd.f32 %v13248_v12, %v13247_v39  ;;  %v12861_v28 = vld [vmem:[%s17548_s13] ss:$0 sm:$0xff] }
 0x8f2   : > { %v10938_v38 = vadd.f32 %v13249_v32, %v10897_v15  ;;  %v10976_v48 = vadd.f32 %v13268_v60, %v10935_v25  ;;  %v12862_v60 = vld [vmem:[%s17550_s15] ss:$0 sm:$0xff] }
 0x8f4   : > { %v10979_v17 = vadd.f32 %v13271_v36, %v10938_v38 }
 0x905   : > { %v13297_v31 = vpop.f32.mrb[60].mxu0 }
 0x906   : > { %v13298_v10 = vpop.f32.mrb[61].mxu0 }
 0x907   : > { %v13299_v58 = vadd.f32 %v13298_v10, %v13297_v31  ;;  %v13300_v37 = vpop.f32.mrb[62].mxu0 }
 0x908   : > { %v13301_v19 = vpop.f32.mrb[63].mxu0 }
 0x909   : > { %v13302_v50 = vadd.f32 %v13301_v19, %v13300_v37 }
 0x90c   : > { %v11016_v59 = vpop.f32.mrb[48].mxu1 }
 0x90d   : > { %v11017_v33 = vadd.f32 %v11016_v59, %v10976_v48  ;;  %v13493_v7 = vpop.f32.mrb[49].mxu1 }
 0x90e   : > { %v11019_v61 = vpop.f32.mrb[50].mxu1 }
 0x90f   : > { %v11588_v3 = vadd.f32 %v13299_v58, %v11017_v33  ;;  %v11020_v2 = vadd.f32 %v11019_v61, %v10979_v17  ;;  %v13494_v8 = vpop.f32.mrb[51].mxu1 }
 0x911   : > { %v11591_v55 = vadd.f32 %v13302_v50, %v11020_v2 }
 0x925   : > { %v13341_v42 = vpop.f32.mrb[64].mxu0 }
 0x926   : > { %v13342_v11 = vpop.f32.mrb[65].mxu0 }
 0x927   : > { %v13343_v1 = vadd.f32 %v13342_v11, %v13341_v42  ;;  %v13344_v40 = vpop.f32.mrb[66].mxu0 }
 0x928   : > { %v13345_v24 = vpop.f32.mrb[67].mxu0 }
 0x929   : > { %v13346_v6 = vadd.f32 %v13345_v24, %v13344_v40 }
 0x92c   : > { %v13319_v46 = vpop.f32.mrb[52].mxu1 }
 0x92d   : > { %v13320_v63 = vpop.f32.mrb[53].mxu1 }
 0x92e   : > { %v13321_v21 = vadd.f32 %v13320_v63, %v13319_v46  ;;  %v13322_v20 = vpop.f32.mrb[54].mxu1 }
 0x92f   : > { %v13323_v62 = vpop.f32.mrb[55].mxu1 }
 0x930   : > { %v11629_v5 = vadd.f32 %v13321_v21, %v11588_v3  ;;  %v13324_v9 = vadd.f32 %v13323_v62, %v13322_v20 }
 0x932   : > { %v11632_v26 = vadd.f32 %v13324_v9, %v11591_v55  ;;  %v11670_v56 = vadd.f32 %v13343_v1, %v11629_v5 }
 0x934   : > { %v11673_v16 = vadd.f32 %v13346_v6, %v11632_v26 }
 0x945   : > { %v11751_v47 = vpop.f32.mrb[68].mxu0 }
 0x946   : > { %v13513_v4 = vpop.f32.mrb[69].mxu0 }
 0x947   : > { %v11754_v27 = vpop.f32.mrb[70].mxu0 }
 0x948   : > { %v13514_v49 = vpop.f32.mrb[71].mxu0 }
 0x94c   : > { %v13363_v30 = vpop.f32.mrb[56].mxu1 }
 0x94d   : > { %v13364_v51 = vpop.f32.mrb[57].mxu1 }
 0x94e   : > { %v13365_v29 = vadd.f32 %v13364_v51, %v13363_v30  ;;  %v13366_v57 = vpop.f32.mrb[58].mxu1 }
 0x94f   : > { %v13367_v35 = vpop.f32.mrb[59].mxu1 }
 0x950   : > { %v11711_v53 = vadd.f32 %v13365_v29, %v11670_v56  ;;  %v13368_v18 = vadd.f32 %v13367_v35, %v13366_v57 }
 0x952   : > { %v11752_v23 = vadd.f32 %v11751_v47, %v11711_v53  ;;  %v11714_v15 = vadd.f32 %v13368_v18, %v11673_v16 }
 0x954   : > { %v11765_v52 = vadd.f32 %v12861_v28, %v11752_v23  ;;  %v11755_v54 = vadd.f32 %v11754_v27, %v11714_v15 }
 0x956   : > { %v11766_v0 = vadd.f32 %v12861_v28, %v11755_v54  ;;  %v11767_v13 = vmax.f32 %v11765_v52, 0.0 }
 0x958   : > { %v11768_v34 = vmax.f32 %v11766_v0, 0.0 }
 0x95a   : > { %v11769_v14 = vpack.c.bf16 %v11768_v34, %v11767_v13 }
 0x95c   : > { %13524 = vmatmul.mubr.msk.bf16.vlgmr.msra.gmra.mrb[60].mxu1 %vm5829_vm12, %v11769_v14 }
 0xa2f   : > { %v11846_v44 = vpop.f32.mrb[60].mxu1 }
 0xa30   : > { %v11847_v43 = vadd.f32 %v12862_v60, %v11846_v44  ;;  %v13525_v36 = vpop.f32.mrb[61].mxu1 }
 0xa31   : > { %v11849_v22 = vpop.f32.mrb[62].mxu1 }
 0xa32   : > { %11853 = vst [vmem:[%s561_s0] sm:$0xff] %v11847_v43  ;;  %v11850_v45 = vadd.f32 %v12862_v60, %v11849_v22  ;;  %v13526_v41 = vpop.f32.mrb[63].mxu1 }
 0xa34   : > { %11854 = vst [vmem:[%s561_s0 + $0x8] sm:$0xff] %v11850_v45 }
 0xa35 PF: > { %s28_s24 = sadd.s32 1, %s14150_s24  }
 0xa36   : > { %p25_p4 = scmp.ge.s32.totalorder %s28_s24, 4  }
 0xa38   :  { %27 = sbr.rel (!%p25_p4) target bundleno = 3 (0x3), region = 141 }

</bundles_post_ra>
